<compile_context>
chip_gen: v7x
topology: tpu7x:2x2x1
jax: 0.10.0
libtpu: 0.0.40
codegen_flags: <defaults>
</compile_context>

<pallas_src>
import jax
import jax.numpy as jnp
from jax.experimental import pallas as pl
from jax.experimental.pallas import tpu as pltpu

MAX_DIL = 6          # largest dilation used by the module (branch 4)


def _prelu(y, a):
    return jnp.where(y >= 0, y, a * y)


# ---------------------------------------------------------------------------
# Pallas kernel: full ASPP forward for one image per grid step.
# ---------------------------------------------------------------------------
def _aspp_kernel(x_ref,            # (1, H+12, W+12, C) padded NHWC tile, bf16
                 w1_ref,           # (C, D)      f32, conv1 (BN scale folded)
                 w3_ref,           # (3, 9C, D)  f32, conv2/3/4 im2col weights
                 w5_ref,           # (C, D)      f32, conv5 (folded)
                 wf1_ref,          # (5D, C)     f32, fuse conv #1 (folded)
                 wf2_ref,          # (1, C)      f32, fuse conv #2 row (folded)
                 tb_ref,           # (5, D)      f32, folded shifts, branches 1..5
                 tf1_ref,          # (1, C)      f32, folded shift, fuse #1
                 sc_ref,           # (8,) f32 SMEM: [alpha0..alpha6, tf2]
                 out_ref):         # (1, 1, H*W) f32
    _, HP, WP, C = x_ref.shape
    H = HP - 2 * MAX_DIL
    W = WP - 2 * MAX_DIL
    D = w1_ref.shape[1]
    P = H * W

    # Single upcast of the bf16 input tile; every tap is a static slice of it.
    xf = x_ref[0].astype(jnp.float32)                  # (HP, WP, C) f32

    def window(dy, dx):
        return xf[MAX_DIL + dy:MAX_DIL + dy + H,
                  MAX_DIL + dx:MAX_DIL + dx + W, :].reshape(P, C)

    xc = window(0, 0)                                  # (P, C)
    tb = tb_ref[...]                                   # (5, D)

    # ---- branch 1: 1x1 conv (+ folded BN shift) + PReLU ---------------------
    y1 = _prelu(jnp.dot(xc, w1_ref[...], preferred_element_type=jnp.float32)
                + tb[0:1, :], sc_ref[0])

    # ---- branches 2-4: dilated 3x3 convs via im2col (one K=9C matmul each) --
    ys = [y1]
    for bi, dil in enumerate((2, 4, 6)):
        cols = jnp.concatenate(
            [window(dil * (k // 3 - 1), dil * (k % 3 - 1)) for k in range(9)],
            axis=-1)                                   # (P, 9C)
        acc = jnp.dot(cols, w3_ref[bi], preferred_element_type=jnp.float32)
        ys.append(_prelu(acc + tb[bi + 1:bi + 2, :], sc_ref[bi + 1]))

    # ---- branch 5 at pooled resolution (global mean on the MXU) -------------
    xm = jnp.dot(jnp.full((1, P), 1.0 / P, jnp.float32), xc,
                 preferred_element_type=jnp.float32)   # (1, C)
    y5 = _prelu(jnp.dot(xm, w5_ref[...], preferred_element_type=jnp.float32)
                + tb[4:5, :], sc_ref[4])               # (1, D)

    # ---- fuse conv #1: single wide-K matmul; branch-5 term pre-added --------
    wf1 = wf1_ref[...]                                 # (5D, C)
    shift5 = (jnp.dot(y5, wf1[4 * D:, :], preferred_element_type=jnp.float32)
              + tf1_ref[...])                          # (1, C)
    ycat = jnp.concatenate(ys, axis=-1)                # (P, 4D)
    f = _prelu(jnp.dot(ycat, wf1[:4 * D, :],
                       preferred_element_type=jnp.float32) + shift5,
               sc_ref[5])                              # (P, C)

    # ---- fuse conv #2 (1 output channel): VPU mul + lane reduction ----------
    o = jnp.sum(f * wf2_ref[...], axis=-1).reshape(1, P)
    o = _prelu(o + sc_ref[7], sc_ref[6])
    out_ref[...] = o.reshape(1, 1, P)                  # lane-dense when P%128==0


# ---------------------------------------------------------------------------
# Wrapper: BN folding, layout conversion, padding, pallas_call plumbing.
# ---------------------------------------------------------------------------
def _fold_bn_into_params(p):
    """Fold eval-mode BatchNorm scales into conv weights (all f32);
    dilated-branch weights are reshaped to im2col layout (9C, D)."""
    C, D = p["w1"].shape
    f32 = jnp.float32
    sb, sf1, sf2 = p["sb"], p["sf1"], p["sf2"]
    return dict(
        w1=(p["w1"] * sb[0][None, :]).astype(f32),                        # (C, D)
        w3c=(p["w3"] * sb[1:4][:, None, None, :]
             ).reshape(3, 9 * C, D).astype(f32),                          # (3,9C,D)
        w5=(p["w5"] * sb[4][None, :]).astype(f32),                        # (C, D)
        wf1=(p["wf1"] * sf1[None, :]).astype(f32),                        # (5D, C)
        wf2_row=(p["wf2"][:, 0] * sf2[0])[None, :].astype(f32),           # (1, C)
        tb=p["tb"].astype(f32),                                           # (5, D)
        tf1=p["tf1"].reshape(1, C).astype(f32),                           # (1, C)
        scalars=jnp.concatenate([p["alphas"],
                                 p["tf2"].reshape(1)]).astype(f32),       # (8,)
    )


def _resident_spec(arr):
    # small parameter: whole array resident in VMEM across all grid steps
    idx = (0,) * arr.ndim
    return pl.BlockSpec(arr.shape, lambda n, _idx=idx: _idx)


def aspp_forward(x_nchw, params):
    prep = _fold_bn_into_params(params)
    N, C, H, W = x_nchw.shape
    D = C // 2
    P = H * W

    # NHWC, bf16, pad by MAX_DIL per spatial side (halves HBM->VMEM DMA bytes).
    x = jnp.transpose(x_nchw, (0, 2, 3, 1)).astype(jnp.bfloat16)
    xpad = jnp.pad(x, ((0, 0), (MAX_DIL, MAX_DIL), (MAX_DIL, MAX_DIL), (0, 0)))
    HP, WP = H + 2 * MAX_DIL, W + 2 * MAX_DIL

    tensor_args = (prep["w1"], prep["w3c"], prep["w5"], prep["wf1"],
                   prep["wf2_row"], prep["tb"], prep["tf1"])

    in_specs = ([pl.BlockSpec((1, HP, WP, C), lambda n: (n, 0, 0, 0))]
                + [_resident_spec(a) for a in tensor_args]
                + [pl.BlockSpec(memory_space=pltpu.MemorySpace.SMEM)])

    # Per-step VMEM estimate: double-buffered bf16 input tile + f32 temporaries
    # (upcast tile, largest im2col matrix, fuse activations).  Cap at 48 MiB so
    # v7x (64 MiB physical) keeps headroom; v5e/v6e have 128 MiB.
    bytes_in = 2 * (HP * WP * C * 2)
    bytes_tmp = 4 * (HP * WP * C + 9 * P * C + 4 * P * D + 2 * P * C + P)
    vmem_limit = int(min(48 * 2 ** 20,
                         max(32 * 2 ** 20, 2 * (bytes_in + bytes_tmp))))

    out = pl.pallas_call(
        _aspp_kernel,
        out_shape=jax.ShapeDtypeStruct((N, 1, P), jnp.float32),
        grid=(N,),
        in_specs=in_specs,
        out_specs=pl.BlockSpec((1, 1, P), lambda n: (n, 0, 0)),
        compiler_params=pltpu.CompilerParams(
            dimension_semantics=("parallel",),        # megacore-shard the batch
            vmem_limit_bytes=vmem_limit),
    )(xpad, *tensor_args, prep["scalars"])
    return out.reshape(N, 1, H, W)                    # free reshape to NCHW


# ---------------------------------------------------------------------------
# Deterministic parameter construction (BN folded to scale/shift).
# ---------------------------------------------------------------------------
def init_params(key, C):
    D = C // 2
    ks = jax.random.split(key, 20)
    eps = 1e-5

    def u(k, shape, scale):
        return jax.random.uniform(k, shape, jnp.float32, -scale, scale)

    def bn(k, n):
        k1, k2, k3, k4 = jax.random.split(k, 4)
        gamma = 1.0 + u(k1, (n,), 0.1)
        beta = u(k2, (n,), 0.1)
        mean = u(k3, (n,), 0.1)
        var = 1.0 + jax.random.uniform(k4, (n,), jnp.float32, 0.0, 0.2)
        return gamma, beta, mean, var

    def fold(bias, gamma, beta, mean, var):
        s = gamma / jnp.sqrt(var + eps)
        t = (bias - mean) * s + beta
        return s, t

    w1 = u(ks[0], (C, D), 0.3)              # 1x1: (Cin, Cout)
    w3 = u(ks[1], (3, 9, C, D), 0.3)        # 3 dilated branches, 9 taps each
    w5 = u(ks[2], (C, D), 0.3)
    wf1 = u(ks[3], (5 * D, C), 0.3)
    wf2 = u(ks[4], (C, 1), 0.3)

    sb, tb = [], []
    for i in range(5):
        bias = u(ks[5 + i], (D,), 0.1)
        s, t = fold(bias, *bn(ks[10 + i], D))
        sb.append(s)
        tb.append(t)
    sb = jnp.stack(sb)                       # (5, D)
    tb = jnp.stack(tb)

    sf1, tf1 = fold(u(ks[15], (C,), 0.1), *bn(ks[16], C))
    sf2, tf2 = fold(u(ks[17], (1,), 0.1), *bn(ks[18], 1))

    alphas = 0.25 + u(ks[19], (7,), 0.05)    # PReLU slopes (num_parameters=1)

    return dict(w1=w1, w3=w3, w5=w5, wf1=wf1, wf2=wf2,
                sb=sb, tb=tb, sf1=sf1, tf1=tf1, sf2=sf2, tf2=tf2,
                alphas=alphas)


# ---------------------------------------------------------------------------
# Pure-JAX reference (NCHW, lax convs), f32 math, same folded-BN params and
# the same bf16 input quantization as the kernel's DMA path.
# ---------------------------------------------------------------------------
def aspp_reference(x_nchw, params):
    prep = _fold_bn_into_params(params)
    N, C, H, W = x_nchw.shape
    D = C // 2
    x = x_nchw.astype(jnp.bfloat16).astype(jnp.float32)   # match kernel DMA quant
    a = prep["scalars"][:7]
    tf2 = prep["scalars"][7]
    tb = prep["tb"]

    def shift(t):
        return t[None, :, None, None]

    y1 = _prelu(jnp.einsum("nchw,cd->ndhw", x, prep["w1"]) + shift(tb[0]), a[0])

    def dil_branch(w9c, dil, t, al):
        w = w9c.reshape(3, 3, C, D).transpose(3, 2, 0, 1)     # OIHW
        y = jax.lax.conv_general_dilated(
            x, w, window_strides=(1, 1),
            padding=((dil, dil), (dil, dil)), rhs_dilation=(dil, dil),
            dimension_numbers=("NCHW", "OIHW", "NCHW"))
        return _prelu(y + shift(t), al)

    y2 = dil_branch(prep["w3c"][0], 2, tb[1], a[1])
    y3 = dil_branch(prep["w3c"][1], 4, tb[2], a[2])
    y4 = dil_branch(prep["w3c"][2], 6, tb[3], a[3])

    xm = x.mean(axis=(2, 3))                                  # (N, C)
    y5n = _prelu(xm @ prep["w5"] + tb[4][None, :], a[4])      # (N, D)
    y5 = jnp.broadcast_to(y5n[:, :, None, None], (N, D, H, W))

    cat = jnp.concatenate([y1, y2, y3, y4, y5], axis=1)       # (N, 5D, H, W)
    f = jnp.einsum("nchw,cd->ndhw", cat, prep["wf1"])
    f = _prelu(f + prep["tf1"].reshape(1, C, 1, 1), a[5])

    o = jnp.sum(f * prep["wf2_row"][0][None, :, None, None],
                axis=1, keepdims=True)                        # (N, 1, H, W)
    o = _prelu(o + tf2, a[6])
    return o


if __name__ == "__main__":
    key = jax.random.PRNGKey(0)
    kx, kp = jax.random.split(key)

    N, C, H, W = 2, 4, 16, 16            # in_dim = 4 -> down_dim = 2
    x = jax.random.normal(kx, (N, C, H, W), jnp.float32)
    params = init_params(kp, C)

    out = jax.block_until_ready(jax.jit(aspp_forward)(x, params))
    assert out.shape == (N, 1, H, W), out.shape

    ref = aspp_reference(x, params)
    err = float(jnp.max(jnp.abs(out - ref)))
    # f32 accumulation everywhere; loose tolerance covers MXU default-precision
    # (bf16-pass) matmuls on real hardware.
    assert err < 5e-2, err

    print("KERNEL_OK")
</pallas_src>

<mosaic_0001>
module attributes {stable_mosaic.version = 11 : i64} {
  func.func @_aspp_kernel(%arg0: i32, %arg1: memref<1x28x28x4xbf16, #tpu.memory_space<vmem>>, %arg2: memref<4x2xf32, #tpu.memory_space<vmem>>, %arg3: memref<3x36x2xf32, #tpu.memory_space<vmem>>, %arg4: memref<4x2xf32, #tpu.memory_space<vmem>>, %arg5: memref<10x4xf32, #tpu.memory_space<vmem>>, %arg6: memref<1x4xf32, #tpu.memory_space<vmem>>, %arg7: memref<5x2xf32, #tpu.memory_space<vmem>>, %arg8: memref<1x4xf32, #tpu.memory_space<vmem>>, %arg9: memref<8xf32, #tpu.memory_space<smem>>, %arg10: memref<1x1x256xf32, #tpu.memory_space<vmem>>) attributes {dimension_semantics = [#tpu.dimension_semantics<parallel>], iteration_bounds = array<i64: 2>, scalar_prefetch = 0 : i64, scratch_operands = 0 : i64, tpu.core_type = #tpu.core_type<tc>, window_params = [{transform_indices = @transform_0, window_bounds = array<i64: 1, 28, 28, 4>}, {pipeline_mode = #tpu.pipeline_mode<synchronous>, transform_indices = @transform_1, window_bounds = array<i64: 4, 2>}, {pipeline_mode = #tpu.pipeline_mode<synchronous>, transform_indices = @transform_2, window_bounds = array<i64: 3, 36, 2>}, {pipeline_mode = #tpu.pipeline_mode<synchronous>, transform_indices = @transform_3, window_bounds = array<i64: 4, 2>}, {pipeline_mode = #tpu.pipeline_mode<synchronous>, transform_indices = @transform_4, window_bounds = array<i64: 10, 4>}, {pipeline_mode = #tpu.pipeline_mode<synchronous>, transform_indices = @transform_5, window_bounds = array<i64: 1, 4>}, {pipeline_mode = #tpu.pipeline_mode<synchronous>, transform_indices = @transform_6, window_bounds = array<i64: 5, 2>}, {pipeline_mode = #tpu.pipeline_mode<synchronous>, transform_indices = @transform_7, window_bounds = array<i64: 1, 4>}, {transform_indices = @transform_8, window_bounds = array<i64: 8>}, {transform_indices = @transform_9, window_bounds = array<i64: 1, 1, 256>}]} {
    %c0 = arith.constant 0 : index
    %c0_0 = arith.constant 0 : index
    %c0_1 = arith.constant 0 : index
    %c0_2 = arith.constant 0 : index
    %0 = vector.load %arg1[%c0, %c0_0, %c0_1, %c0_2] : memref<1x28x28x4xbf16, #tpu.memory_space<vmem>>, vector<1x28x28x4xbf16>
    %1 = vector.shape_cast %0 : vector<1x28x28x4xbf16> to vector<28x28x4xbf16>
    %2 = arith.extf %1 : vector<28x28x4xbf16> to vector<28x28x4xf32>
    %3 = vector.extract_strided_slice %2 {offsets = [6, 6, 0], sizes = [16, 16, 4], strides = [1, 1, 1]} : vector<28x28x4xf32> to vector<16x16x4xf32>
    %4 = vector.shape_cast %3 : vector<16x16x4xf32> to vector<256x4xf32>
    %c0_3 = arith.constant 0 : index
    %c0_4 = arith.constant 0 : index
    %5 = vector.load %arg7[%c0_3, %c0_4] : memref<5x2xf32, #tpu.memory_space<vmem>>, vector<5x2xf32>
    %c0_5 = arith.constant 0 : index
    %c0_6 = arith.constant 0 : index
    %6 = vector.load %arg2[%c0_5, %c0_6] : memref<4x2xf32, #tpu.memory_space<vmem>>, vector<4x2xf32>
    %cst = arith.constant dense<0.000000e+00> : vector<256x2xf32>
    %7 = tpu.matmul %4, %6, %cst {dimension_numbers = #tpu.dot_dimension_numbers<[1], [0], [0], [1], [0, 0, 1, 1], [], []>} : vector<256x4xf32>, vector<4x2xf32>, vector<256x2xf32> -> vector<256x2xf32>
    %8 = vector.extract_strided_slice %5 {offsets = [0, 0], sizes = [1, 2], strides = [1, 1]} : vector<5x2xf32> to vector<1x2xf32>
    %9 = vector.broadcast %8 : vector<1x2xf32> to vector<256x2xf32>
    %10 = arith.addf %7, %9 : vector<256x2xf32>
    %c0_7 = arith.constant 0 : index
    %11 = memref.load %arg9[%c0_7] : memref<8xf32, #tpu.memory_space<smem>>
    %cst_8 = arith.constant 0.000000e+00 : f32
    %12 = vector.broadcast %cst_8 : f32 to vector<256x2xf32>
    %13 = arith.cmpf oge, %10, %12 : vector<256x2xf32>
    %14 = vector.broadcast %11 : f32 to vector<256x2xf32>
    %15 = arith.mulf %14, %10 : vector<256x2xf32>
    %16 = arith.select %13, %10, %15 : vector<256x2xi1>, vector<256x2xf32>
    %17 = vector.extract_strided_slice %2 {offsets = [4, 4, 0], sizes = [16, 16, 4], strides = [1, 1, 1]} : vector<28x28x4xf32> to vector<16x16x4xf32>
    %18 = vector.shape_cast %17 : vector<16x16x4xf32> to vector<256x4xf32>
    %19 = vector.extract_strided_slice %2 {offsets = [4, 6, 0], sizes = [16, 16, 4], strides = [1, 1, 1]} : vector<28x28x4xf32> to vector<16x16x4xf32>
    %20 = vector.shape_cast %19 : vector<16x16x4xf32> to vector<256x4xf32>
    %21 = vector.extract_strided_slice %2 {offsets = [4, 8, 0], sizes = [16, 16, 4], strides = [1, 1, 1]} : vector<28x28x4xf32> to vector<16x16x4xf32>
    %22 = vector.shape_cast %21 : vector<16x16x4xf32> to vector<256x4xf32>
    %23 = vector.extract_strided_slice %2 {offsets = [6, 4, 0], sizes = [16, 16, 4], strides = [1, 1, 1]} : vector<28x28x4xf32> to vector<16x16x4xf32>
    %24 = vector.shape_cast %23 : vector<16x16x4xf32> to vector<256x4xf32>
    %25 = vector.extract_strided_slice %2 {offsets = [6, 6, 0], sizes = [16, 16, 4], strides = [1, 1, 1]} : vector<28x28x4xf32> to vector<16x16x4xf32>
    %26 = vector.shape_cast %25 : vector<16x16x4xf32> to vector<256x4xf32>
    %27 = vector.extract_strided_slice %2 {offsets = [6, 8, 0], sizes = [16, 16, 4], strides = [1, 1, 1]} : vector<28x28x4xf32> to vector<16x16x4xf32>
    %28 = vector.shape_cast %27 : vector<16x16x4xf32> to vector<256x4xf32>
    %29 = vector.extract_strided_slice %2 {offsets = [8, 4, 0], sizes = [16, 16, 4], strides = [1, 1, 1]} : vector<28x28x4xf32> to vector<16x16x4xf32>
    %30 = vector.shape_cast %29 : vector<16x16x4xf32> to vector<256x4xf32>
    %31 = vector.extract_strided_slice %2 {offsets = [8, 6, 0], sizes = [16, 16, 4], strides = [1, 1, 1]} : vector<28x28x4xf32> to vector<16x16x4xf32>
    %32 = vector.shape_cast %31 : vector<16x16x4xf32> to vector<256x4xf32>
    %33 = vector.extract_strided_slice %2 {offsets = [8, 8, 0], sizes = [16, 16, 4], strides = [1, 1, 1]} : vector<28x28x4xf32> to vector<16x16x4xf32>
    %34 = vector.shape_cast %33 : vector<16x16x4xf32> to vector<256x4xf32>
    %35 = tpu.concatenate %18, %20, %22, %24, %26, %28, %30, %32, %34 in 1 : vector<256x4xf32>, vector<256x4xf32>, vector<256x4xf32>, vector<256x4xf32>, vector<256x4xf32>, vector<256x4xf32>, vector<256x4xf32>, vector<256x4xf32>, vector<256x4xf32> -> vector<256x36xf32>
    %c0_9 = arith.constant 0 : index
    %c0_10 = arith.constant 0 : index
    %c0_11 = arith.constant 0 : index
    %36 = vector.load %arg3[%c0_9, %c0_10, %c0_11] : memref<3x36x2xf32, #tpu.memory_space<vmem>>, vector<1x36x2xf32>
    %37 = vector.shape_cast %36 : vector<1x36x2xf32> to vector<36x2xf32>
    %cst_12 = arith.constant dense<0.000000e+00> : vector<256x2xf32>
    %38 = tpu.matmul %35, %37, %cst_12 {dimension_numbers = #tpu.dot_dimension_numbers<[1], [0], [0], [1], [0, 0, 1, 1], [], []>} : vector<256x36xf32>, vector<36x2xf32>, vector<256x2xf32> -> vector<256x2xf32>
    %39 = vector.extract_strided_slice %5 {offsets = [1, 0], sizes = [1, 2], strides = [1, 1]} : vector<5x2xf32> to vector<1x2xf32>
    %40 = vector.broadcast %39 : vector<1x2xf32> to vector<256x2xf32>
    %41 = arith.addf %38, %40 : vector<256x2xf32>
    %c1 = arith.constant 1 : index
    %42 = memref.load %arg9[%c1] : memref<8xf32, #tpu.memory_space<smem>>
    %cst_13 = arith.constant 0.000000e+00 : f32
    %43 = vector.broadcast %cst_13 : f32 to vector<256x2xf32>
    %44 = arith.cmpf oge, %41, %43 : vector<256x2xf32>
    %45 = vector.broadcast %42 : f32 to vector<256x2xf32>
    %46 = arith.mulf %45, %41 : vector<256x2xf32>
    %47 = arith.select %44, %41, %46 : vector<256x2xi1>, vector<256x2xf32>
    %48 = vector.extract_strided_slice %2 {offsets = [2, 2, 0], sizes = [16, 16, 4], strides = [1, 1, 1]} : vector<28x28x4xf32> to vector<16x16x4xf32>
    %49 = vector.shape_cast %48 : vector<16x16x4xf32> to vector<256x4xf32>
    %50 = vector.extract_strided_slice %2 {offsets = [2, 6, 0], sizes = [16, 16, 4], strides = [1, 1, 1]} : vector<28x28x4xf32> to vector<16x16x4xf32>
    %51 = vector.shape_cast %50 : vector<16x16x4xf32> to vector<256x4xf32>
    %52 = vector.extract_strided_slice %2 {offsets = [2, 10, 0], sizes = [16, 16, 4], strides = [1, 1, 1]} : vector<28x28x4xf32> to vector<16x16x4xf32>
    %53 = vector.shape_cast %52 : vector<16x16x4xf32> to vector<256x4xf32>
    %54 = vector.extract_strided_slice %2 {offsets = [6, 2, 0], sizes = [16, 16, 4], strides = [1, 1, 1]} : vector<28x28x4xf32> to vector<16x16x4xf32>
    %55 = vector.shape_cast %54 : vector<16x16x4xf32> to vector<256x4xf32>
    %56 = vector.extract_strided_slice %2 {offsets = [6, 6, 0], sizes = [16, 16, 4], strides = [1, 1, 1]} : vector<28x28x4xf32> to vector<16x16x4xf32>
    %57 = vector.shape_cast %56 : vector<16x16x4xf32> to vector<256x4xf32>
    %58 = vector.extract_strided_slice %2 {offsets = [6, 10, 0], sizes = [16, 16, 4], strides = [1, 1, 1]} : vector<28x28x4xf32> to vector<16x16x4xf32>
    %59 = vector.shape_cast %58 : vector<16x16x4xf32> to vector<256x4xf32>
    %60 = vector.extract_strided_slice %2 {offsets = [10, 2, 0], sizes = [16, 16, 4], strides = [1, 1, 1]} : vector<28x28x4xf32> to vector<16x16x4xf32>
    %61 = vector.shape_cast %60 : vector<16x16x4xf32> to vector<256x4xf32>
    %62 = vector.extract_strided_slice %2 {offsets = [10, 6, 0], sizes = [16, 16, 4], strides = [1, 1, 1]} : vector<28x28x4xf32> to vector<16x16x4xf32>
    %63 = vector.shape_cast %62 : vector<16x16x4xf32> to vector<256x4xf32>
    %64 = vector.extract_strided_slice %2 {offsets = [10, 10, 0], sizes = [16, 16, 4], strides = [1, 1, 1]} : vector<28x28x4xf32> to vector<16x16x4xf32>
    %65 = vector.shape_cast %64 : vector<16x16x4xf32> to vector<256x4xf32>
    %66 = tpu.concatenate %49, %51, %53, %55, %57, %59, %61, %63, %65 in 1 : vector<256x4xf32>, vector<256x4xf32>, vector<256x4xf32>, vector<256x4xf32>, vector<256x4xf32>, vector<256x4xf32>, vector<256x4xf32>, vector<256x4xf32>, vector<256x4xf32> -> vector<256x36xf32>
    %c1_14 = arith.constant 1 : index
    %c0_15 = arith.constant 0 : index
    %c0_16 = arith.constant 0 : index
    %67 = vector.load %arg3[%c1_14, %c0_15, %c0_16] : memref<3x36x2xf32, #tpu.memory_space<vmem>>, vector<1x36x2xf32>
    %68 = vector.shape_cast %67 : vector<1x36x2xf32> to vector<36x2xf32>
    %cst_17 = arith.constant dense<0.000000e+00> : vector<256x2xf32>
    %69 = tpu.matmul %66, %68, %cst_17 {dimension_numbers = #tpu.dot_dimension_numbers<[1], [0], [0], [1], [0, 0, 1, 1], [], []>} : vector<256x36xf32>, vector<36x2xf32>, vector<256x2xf32> -> vector<256x2xf32>
    %70 = vector.extract_strided_slice %5 {offsets = [2, 0], sizes = [1, 2], strides = [1, 1]} : vector<5x2xf32> to vector<1x2xf32>
    %71 = vector.broadcast %70 : vector<1x2xf32> to vector<256x2xf32>
    %72 = arith.addf %69, %71 : vector<256x2xf32>
    %c2 = arith.constant 2 : index
    %73 = memref.load %arg9[%c2] : memref<8xf32, #tpu.memory_space<smem>>
    %cst_18 = arith.constant 0.000000e+00 : f32
    %74 = vector.broadcast %cst_18 : f32 to vector<256x2xf32>
    %75 = arith.cmpf oge, %72, %74 : vector<256x2xf32>
    %76 = vector.broadcast %73 : f32 to vector<256x2xf32>
    %77 = arith.mulf %76, %72 : vector<256x2xf32>
    %78 = arith.select %75, %72, %77 : vector<256x2xi1>, vector<256x2xf32>
    %79 = vector.extract_strided_slice %2 {offsets = [0, 0, 0], sizes = [16, 16, 4], strides = [1, 1, 1]} : vector<28x28x4xf32> to vector<16x16x4xf32>
    %80 = vector.shape_cast %79 : vector<16x16x4xf32> to vector<256x4xf32>
    %81 = vector.extract_strided_slice %2 {offsets = [0, 6, 0], sizes = [16, 16, 4], strides = [1, 1, 1]} : vector<28x28x4xf32> to vector<16x16x4xf32>
    %82 = vector.shape_cast %81 : vector<16x16x4xf32> to vector<256x4xf32>
    %83 = vector.extract_strided_slice %2 {offsets = [0, 12, 0], sizes = [16, 16, 4], strides = [1, 1, 1]} : vector<28x28x4xf32> to vector<16x16x4xf32>
    %84 = vector.shape_cast %83 : vector<16x16x4xf32> to vector<256x4xf32>
    %85 = vector.extract_strided_slice %2 {offsets = [6, 0, 0], sizes = [16, 16, 4], strides = [1, 1, 1]} : vector<28x28x4xf32> to vector<16x16x4xf32>
    %86 = vector.shape_cast %85 : vector<16x16x4xf32> to vector<256x4xf32>
    %87 = vector.extract_strided_slice %2 {offsets = [6, 6, 0], sizes = [16, 16, 4], strides = [1, 1, 1]} : vector<28x28x4xf32> to vector<16x16x4xf32>
    %88 = vector.shape_cast %87 : vector<16x16x4xf32> to vector<256x4xf32>
    %89 = vector.extract_strided_slice %2 {offsets = [6, 12, 0], sizes = [16, 16, 4], strides = [1, 1, 1]} : vector<28x28x4xf32> to vector<16x16x4xf32>
    %90 = vector.shape_cast %89 : vector<16x16x4xf32> to vector<256x4xf32>
    %91 = vector.extract_strided_slice %2 {offsets = [12, 0, 0], sizes = [16, 16, 4], strides = [1, 1, 1]} : vector<28x28x4xf32> to vector<16x16x4xf32>
    %92 = vector.shape_cast %91 : vector<16x16x4xf32> to vector<256x4xf32>
    %93 = vector.extract_strided_slice %2 {offsets = [12, 6, 0], sizes = [16, 16, 4], strides = [1, 1, 1]} : vector<28x28x4xf32> to vector<16x16x4xf32>
    %94 = vector.shape_cast %93 : vector<16x16x4xf32> to vector<256x4xf32>
    %95 = vector.extract_strided_slice %2 {offsets = [12, 12, 0], sizes = [16, 16, 4], strides = [1, 1, 1]} : vector<28x28x4xf32> to vector<16x16x4xf32>
    %96 = vector.shape_cast %95 : vector<16x16x4xf32> to vector<256x4xf32>
    %97 = tpu.concatenate %80, %82, %84, %86, %88, %90, %92, %94, %96 in 1 : vector<256x4xf32>, vector<256x4xf32>, vector<256x4xf32>, vector<256x4xf32>, vector<256x4xf32>, vector<256x4xf32>, vector<256x4xf32>, vector<256x4xf32>, vector<256x4xf32> -> vector<256x36xf32>
    %c2_19 = arith.constant 2 : index
    %c0_20 = arith.constant 0 : index
    %c0_21 = arith.constant 0 : index
    %98 = vector.load %arg3[%c2_19, %c0_20, %c0_21] : memref<3x36x2xf32, #tpu.memory_space<vmem>>, vector<1x36x2xf32>
    %99 = vector.shape_cast %98 : vector<1x36x2xf32> to vector<36x2xf32>
    %cst_22 = arith.constant dense<0.000000e+00> : vector<256x2xf32>
    %100 = tpu.matmul %97, %99, %cst_22 {dimension_numbers = #tpu.dot_dimension_numbers<[1], [0], [0], [1], [0, 0, 1, 1], [], []>} : vector<256x36xf32>, vector<36x2xf32>, vector<256x2xf32> -> vector<256x2xf32>
    %101 = vector.extract_strided_slice %5 {offsets = [3, 0], sizes = [1, 2], strides = [1, 1]} : vector<5x2xf32> to vector<1x2xf32>
    %102 = vector.broadcast %101 : vector<1x2xf32> to vector<256x2xf32>
    %103 = arith.addf %100, %102 : vector<256x2xf32>
    %c3 = arith.constant 3 : index
    %104 = memref.load %arg9[%c3] : memref<8xf32, #tpu.memory_space<smem>>
    %cst_23 = arith.constant 0.000000e+00 : f32
    %105 = vector.broadcast %cst_23 : f32 to vector<256x2xf32>
    %106 = arith.cmpf oge, %103, %105 : vector<256x2xf32>
    %107 = vector.broadcast %104 : f32 to vector<256x2xf32>
    %108 = arith.mulf %107, %103 : vector<256x2xf32>
    %109 = arith.select %106, %103, %108 : vector<256x2xi1>, vector<256x2xf32>
    %cst_24 = arith.constant 3.906250e-03 : f32
    %110 = vector.broadcast %cst_24 : f32 to vector<1x256xf32>
    %cst_25 = arith.constant dense<0.000000e+00> : vector<1x4xf32>
    %111 = tpu.matmul %110, %4, %cst_25 {dimension_numbers = #tpu.dot_dimension_numbers<[1], [0], [0], [1], [0, 0, 1, 1], [], []>} : vector<1x256xf32>, vector<256x4xf32>, vector<1x4xf32> -> vector<1x4xf32>
    %c0_26 = arith.constant 0 : index
    %c0_27 = arith.constant 0 : index
    %112 = vector.load %arg4[%c0_26, %c0_27] : memref<4x2xf32, #tpu.memory_space<vmem>>, vector<4x2xf32>
    %cst_28 = arith.constant dense<0.000000e+00> : vector<1x2xf32>
    %113 = tpu.matmul %111, %112, %cst_28 {dimension_numbers = #tpu.dot_dimension_numbers<[1], [0], [0], [1], [0, 0, 1, 1], [], []>} : vector<1x4xf32>, vector<4x2xf32>, vector<1x2xf32> -> vector<1x2xf32>
    %114 = vector.extract_strided_slice %5 {offsets = [4, 0], sizes = [1, 2], strides = [1, 1]} : vector<5x2xf32> to vector<1x2xf32>
    %115 = arith.addf %113, %114 : vector<1x2xf32>
    %c4 = arith.constant 4 : index
    %116 = memref.load %arg9[%c4] : memref<8xf32, #tpu.memory_space<smem>>
    %cst_29 = arith.constant 0.000000e+00 : f32
    %117 = vector.broadcast %cst_29 : f32 to vector<1x2xf32>
    %118 = arith.cmpf oge, %115, %117 : vector<1x2xf32>
    %119 = vector.broadcast %116 : f32 to vector<1x2xf32>
    %120 = arith.mulf %119, %115 : vector<1x2xf32>
    %121 = arith.select %118, %115, %120 : vector<1x2xi1>, vector<1x2xf32>
    %c0_30 = arith.constant 0 : index
    %c0_31 = arith.constant 0 : index
    %122 = vector.load %arg5[%c0_30, %c0_31] : memref<10x4xf32, #tpu.memory_space<vmem>>, vector<10x4xf32>
    %123 = vector.extract_strided_slice %122 {offsets = [8, 0], sizes = [2, 4], strides = [1, 1]} : vector<10x4xf32> to vector<2x4xf32>
    %cst_32 = arith.constant dense<0.000000e+00> : vector<1x4xf32>
    %124 = tpu.matmul %121, %123, %cst_32 {dimension_numbers = #tpu.dot_dimension_numbers<[1], [0], [0], [1], [0, 0, 1, 1], [], []>} : vector<1x2xf32>, vector<2x4xf32>, vector<1x4xf32> -> vector<1x4xf32>
    %c0_33 = arith.constant 0 : index
    %c0_34 = arith.constant 0 : index
    %125 = vector.load %arg8[%c0_33, %c0_34] : memref<1x4xf32, #tpu.memory_space<vmem>>, vector<1x4xf32>
    %126 = arith.addf %124, %125 : vector<1x4xf32>
    %127 = tpu.concatenate %16, %47, %78, %109 in 1 : vector<256x2xf32>, vector<256x2xf32>, vector<256x2xf32>, vector<256x2xf32> -> vector<256x8xf32>
    %128 = vector.extract_strided_slice %122 {offsets = [0, 0], sizes = [8, 4], strides = [1, 1]} : vector<10x4xf32> to vector<8x4xf32>
    %cst_35 = arith.constant dense<0.000000e+00> : vector<256x4xf32>
    %129 = tpu.matmul %127, %128, %cst_35 {dimension_numbers = #tpu.dot_dimension_numbers<[1], [0], [0], [1], [0, 0, 1, 1], [], []>} : vector<256x8xf32>, vector<8x4xf32>, vector<256x4xf32> -> vector<256x4xf32>
    %130 = vector.broadcast %126 : vector<1x4xf32> to vector<256x4xf32>
    %131 = arith.addf %129, %130 : vector<256x4xf32>
    %c5 = arith.constant 5 : index
    %132 = memref.load %arg9[%c5] : memref<8xf32, #tpu.memory_space<smem>>
    %cst_36 = arith.constant 0.000000e+00 : f32
    %133 = vector.broadcast %cst_36 : f32 to vector<256x4xf32>
    %134 = arith.cmpf oge, %131, %133 : vector<256x4xf32>
    %135 = vector.broadcast %132 : f32 to vector<256x4xf32>
    %136 = arith.mulf %135, %131 : vector<256x4xf32>
    %137 = arith.select %134, %131, %136 : vector<256x4xi1>, vector<256x4xf32>
    %c0_37 = arith.constant 0 : index
    %c0_38 = arith.constant 0 : index
    %138 = vector.load %arg6[%c0_37, %c0_38] : memref<1x4xf32, #tpu.memory_space<vmem>>, vector<1x4xf32>
    %139 = vector.broadcast %138 : vector<1x4xf32> to vector<256x4xf32>
    %140 = arith.mulf %137, %139 : vector<256x4xf32>
    %cst_39 = arith.constant dense<0.000000e+00> : vector<256xf32>
    %141 = vector.multi_reduction <add>, %140, %cst_39 [1] : vector<256x4xf32> to vector<256xf32>
    %142 = vector.shape_cast %141 : vector<256xf32> to vector<1x256xf32>
    %c7 = arith.constant 7 : index
    %143 = memref.load %arg9[%c7] : memref<8xf32, #tpu.memory_space<smem>>
    %144 = vector.broadcast %143 : f32 to vector<1x256xf32>
    %145 = arith.addf %142, %144 : vector<1x256xf32>
    %c6 = arith.constant 6 : index
    %146 = memref.load %arg9[%c6] : memref<8xf32, #tpu.memory_space<smem>>
    %cst_40 = arith.constant 0.000000e+00 : f32
    %147 = vector.broadcast %cst_40 : f32 to vector<1x256xf32>
    %148 = arith.cmpf oge, %145, %147 : vector<1x256xf32>
    %149 = vector.broadcast %146 : f32 to vector<1x256xf32>
    %150 = arith.mulf %149, %145 : vector<1x256xf32>
    %151 = arith.select %148, %145, %150 : vector<1x256xi1>, vector<1x256xf32>
    %152 = vector.shape_cast %151 : vector<1x256xf32> to vector<1x1x256xf32>
    %c0_41 = arith.constant 0 : index
    %c0_42 = arith.constant 0 : index
    %c0_43 = arith.constant 0 : index
    %153 = vector.load %arg10[%c0_41, %c0_42, %c0_43] : memref<1x1x256xf32, #tpu.memory_space<vmem>>, vector<1x1x256xf32>
    tpu.vector_store %arg10[%c0_41, %c0_42, %c0_43], %152 {strides = array<i32>} : memref<1x1x256xf32, #tpu.memory_space<vmem>>, vector<1x1x256xf32>,
    return
  }
  func.func @transform_0(%arg0: i32) -> (i32, i32, i32, i32) {
    %c0_i32 = arith.constant 0 : i32
    %c0_i32_0 = arith.constant 0 : i32
    %c0_i32_1 = arith.constant 0 : i32
    %c0_i32_2 = arith.constant 0 : i32
    return %arg0, %c0_i32, %c0_i32_0, %c0_i32_1 : i32, i32, i32, i32
  }
  func.func @transform_1(%arg0: i32) -> (i32, i32) {
    %c0_i32 = arith.constant 0 : i32
    %c0_i32_0 = arith.constant 0 : i32
    %c0_i32_1 = arith.constant 0 : i32
    return %c0_i32, %c0_i32_0 : i32, i32
  }
  func.func @transform_2(%arg0: i32) -> (i32, i32, i32) {
    %c0_i32 = arith.constant 0 : i32
    %c0_i32_0 = arith.constant 0 : i32
    %c0_i32_1 = arith.constant 0 : i32
    %c0_i32_2 = arith.constant 0 : i32
    return %c0_i32, %c0_i32_0, %c0_i32_1 : i32, i32, i32
  }
  func.func @transform_3(%arg0: i32) -> (i32, i32) {
    %c0_i32 = arith.constant 0 : i32
    %c0_i32_0 = arith.constant 0 : i32
    %c0_i32_1 = arith.constant 0 : i32
    return %c0_i32, %c0_i32_0 : i32, i32
  }
  func.func @transform_4(%arg0: i32) -> (i32, i32) {
    %c0_i32 = arith.constant 0 : i32
    %c0_i32_0 = arith.constant 0 : i32
    %c0_i32_1 = arith.constant 0 : i32
    return %c0_i32, %c0_i32_0 : i32, i32
  }
  func.func @transform_5(%arg0: i32) -> (i32, i32) {
    %c0_i32 = arith.constant 0 : i32
    %c0_i32_0 = arith.constant 0 : i32
    %c0_i32_1 = arith.constant 0 : i32
    return %c0_i32, %c0_i32_0 : i32, i32
  }
  func.func @transform_6(%arg0: i32) -> (i32, i32) {
    %c0_i32 = arith.constant 0 : i32
    %c0_i32_0 = arith.constant 0 : i32
    %c0_i32_1 = arith.constant 0 : i32
    return %c0_i32, %c0_i32_0 : i32, i32
  }
  func.func @transform_7(%arg0: i32) -> (i32, i32) {
    %c0_i32 = arith.constant 0 : i32
    %c0_i32_0 = arith.constant 0 : i32
    %c0_i32_1 = arith.constant 0 : i32
    return %c0_i32, %c0_i32_0 : i32, i32
  }
  func.func @transform_8(%arg0: i32) -> i32 {
    %c0_i32 = arith.constant 0 : i32
    %c0_i32_0 = arith.constant 0 : i32
    return %c0_i32 : i32
  }
  func.func @transform_9(%arg0: i32) -> (i32, i32, i32) {
    %c0_i32 = arith.constant 0 : i32
    %c0_i32_0 = arith.constant 0 : i32
    %c0_i32_1 = arith.constant 0 : i32
    return %arg0, %c0_i32, %c0_i32_0 : i32, i32, i32
  }
}

</mosaic_0001>

<bundles_post_ra>
// kernel: aspp_forward.1
= control target key start
LH: loop header
LB: loop body
LE: loop exit
PB: predicated region body
PF: predicated region fallthrough
CT: control target
= control target key end

     0   :  { %14 = vsyncpa [#allocation3], 0  ;;  %s12424_s30 = smov 0   ;;  %s20194_s0 = inlined_call_operand.vmem [shape: bf16[2,28,28,4], index: 0, kind: input, shape index: {}]   ;;  %s20195_s1 = inlined_call_operand.vmem [shape: f32[4,2], index: 1, kind: input, shape index: {}]   ;;  %s20196_s2 = inlined_call_operand.vmem [shape: f32[3,36,2], index: 2, kind: input, shape index: {}]   ;;  %s20197_s3 = inlined_call_operand.vmem [shape: f32[4,2], index: 3, kind: input, shape index: {}]   ;;  %s20198_s4 = inlined_call_operand.vmem [shape: f32[10,4], index: 4, kind: input, shape index: {}]   ;;  %s20199_s5 = inlined_call_operand.vmem [shape: f32[1,4], index: 5, kind: input, shape index: {}]   ;;  %s20200_s6 = inlined_call_operand.vmem [shape: f32[5,2], index: 6, kind: input, shape index: {}]   ;;  %s20201_s7 = inlined_call_operand.vmem [shape: f32[1,4], index: 7, kind: input, shape index: {}]   ;;  %s20202_s8 = inlined_call_operand.vmem [shape: f32[8], index: 8, kind: input, shape index: {}]   ;;  %s20203_s9 = inlined_call_operand.vmem [shape: f32[2,1,256], index: 9, kind: output, shape index: {}]  }
   0x1 LB: > { %s9914_s10 = sadd.s32 4294967295, %s12356_s30   ;;  %p9916_p0 = scmp.ge.s32.totalorder %s12356_s30, 1  ;;  %s12356_s30 = sphi %s12424_s30, %s20_s30  }
   0x2   : > { %p245_p1 = scmp.lt.s32.totalorder %s12356_s30, 3  ;;  %s279_s13 = sshll.u32 %s20202_s8, 4  ;;  %s280_s13 = int_to_ptr.vmem [resolvable:$true] %s279_s13 }
   0x3   : > { %p10821_p3 = scmp.eq.s32.totalorder %s9914_s10, 0  ;;  %s12331_s15 = scalar_lea.vmem %s280_s13, 16 }
   0x4   : > { %p12435_p2 = pnand %p9916_p0, %p245_p1  ;;  %p12332_p6 = scmp.ne.s32.totalorder %s280_s13, %s12331_s15 }
   0x5   : > { %p12339_p10 = scmp.lt.s32.totalorder %s280_s13, %s280_s13  ;;  %p12340_p11 = scmp.lt.s32.totalorder %s12331_s15, %s12331_s15 }
   0x6   : > { %p10817_p4 = pneg %p12435_p2 }
   0x7   : > { %p12341_p12 = por %p12340_p11, %p12339_p10 }
   0x8   : > { %p10818_p5 = pnand %p10821_p3, %p10817_p4 }
   0xa   : > { %p12333_p7 = pneg %p10818_p5 }
   0xc   : > { %p12334_p8 = pnand %p12333_p7, %p12332_p6 }
   0xe   : > { %p12335_p9 = pneg %p12334_p8 }
  0x10   : > { %p12342_p13 = pnand %p12341_p12, %p12335_p9 }
  0x12   : > { %12345 = shalt.err (!%p12342_p13)
}
  0x13   : > { %s12358_s16 = smov [#allocation2]   ;;  %300 = sbr.rel (%p12435_p2) target bundleno = 1770 (0x6ea), region = 56 }
  0x14   : > { %10820 = dma.vmem_to_smem (!%p10818_p5), %s280_s13, 16, %s12358_s16, [#allocation3]  }
  0x1a   : > { %12351 = dma.done.wait (%p10821_p3), [#allocation3], 16  }
  0x1b   : > { %12353 = vsyncadd (%p10821_p3), [#allocation3], 4294967280 }
  0x1c   : > { %306 = sfence }
  0x1d   : > { %p336_p0 = scmp.lt.s32.totalorder %s9914_s10, 1  ;;  %vm20914_vm0 = vcmask 1041408   ;;  %vm20915_vm1 = vcmask 31744   ;;  %s12359_s21 = smov 4   ;;  %vm20916_vm2 = vcmask 1043456   ;;  %vm2761_vm3 = vcmask 1045504  }
  0x1e   : > { %s12360_s22 = smov 8   ;;  %s12361_s23 = smov 12   ;;  %vm20917_vm4 = vcmask 64512   ;;  %vm20918_vm5 = vcmask 97280   ;;  %vm2158_vm6 = vcmask 130048   ;;  %vm2191_vm7 = vcmask 162816  }
  0x1f   : > { %s22696_s10 = smov (!%p336_p0, %s9914_s10), 1  ;;  %s12362_s24 = smov 16   ;;  %vm20919_vm8 = vcmask 195584   ;;  %vm2257_vm9 = vcmask 228352   ;;  %vm2290_vm10 = vcmask 261120   ;;  %vm20920_vm11 = vcmask 293888  }
  0x20   : > { %s10812_s17 = smul.u32 448, %s22696_s10  ;;  %s12363_s25 = smov 20  }
  0x21   : > { %s12364_s28 = smov 24   ;;  %s12365_s29 = smov 28  }
  0x22   : > { %s12452_s20 = scalar_lea.vmem %s20194_s0, %s10812_s17  ;;  %s12366_s26 = smov 32  }
  0x23   : > { %v10228_v0 = vld [vmem:[%s12452_s20 + $0x60] sm:$0xff]   ;;  %v371_v1 = vld [vmem:[%s12452_s20 + $0x68] ss:$16 sps:$4 sm:$0xff]   ;;  %v10229_v8 = vld [vmem:[%s12452_s20 + $0x70] sm:$0xff]   ;;  %s17263_s19 = sld [smem:[#allocation2 + $0x1]]  ;;  %s12371_s13 = smov 6  }
  0x24   : > { %v10226_v2 = vld [vmem:[%s12452_s20 + $0x40] sm:$0xff]   ;;  %v12457_v3 = vunpack.c.l.bf16 %v10228_v0  ;;  %v12459_v4 = vunpack.c.h.bf16 %v10228_v0  ;;  %v12461_v5 = vunpack.c.l.bf16 %v371_v1  ;;  %v363_v7 = vld [vmem:[%s12452_s20 + $0x48] ss:$16 sps:$4 sm:$0xff]   ;;  %v12471_v11 = vunpack.c.l.bf16 %v10229_v8  ;;  %v10227_v13 = vld [vmem:[%s12452_s20 + $0x50] sm:$0xff]   ;;  %s1030_s16 = sld [smem:[#allocation2]]  ;;  %s10105_s27 = sld [smem:[#allocation2 + $0x5]] }
  0x25   : > { %v12463_v6 = vunpack.c.l.bf16 %v10226_v2  ;;  %v12467_v9 = vunpack.c.h.bf16 %v10226_v2  ;;  %v12469_v10 = vunpack.c.l.bf16 %v363_v7  ;;  %v12473_v12 = vunpack.c.h.bf16 %v10229_v8  ;;  %v10231_v26 = vld [vmem:[%s12452_s20 + $0x90] sm:$0xff]   ;;  %v383_v31 = vld [vmem:[%s12452_s20 + $0x88] ss:$16 sps:$4 sm:$0xff]   ;;  %v10230_v36 = vld [vmem:[%s12452_s20 + $0x80] sm:$0xff]  }
  0x26   : > { %20927 = vst [vmem:[#allocation5_spill] sm:$0xff] %v12457_v3  ;;  %20928 = vst [vmem:[#allocation6_spill] sm:$0xff] %v12459_v4  ;;  %v618_v14 = vrot.slane %v12457_v3, 6  ;;  %v619_v15 = vrot.slane %v12459_v4, 6  ;;  %v621_v16 = vrot.slane %v12461_v5, 6  ;;  %v12482_v20 = vunpack.c.h.bf16 %v371_v1  ;;  %v10233_v49 = vld [vmem:[%s12452_s20 + $0xb0] sm:$0xff]  }
  0x27   : > { %20929 = vst [vmem:[#allocation7_spill] sm:$0xff] %v12461_v5  ;;  %20930 = vst [vmem:[#allocation8_spill] sm:$0xff] %v12463_v6  ;;  %v1246_v17 = vrot.slane %v12463_v6, 6  ;;  %v1247_v18 = vrot.slane %v12467_v9, 6  ;;  %v1249_v19 = vrot.slane %v12469_v10, 6  ;;  %v623_v21 = vrot.slane %v12471_v11, 6 }
  0x28   : > { %20931 = vst [vmem:[#allocation9_spill] sm:$0xff] %v12469_v10  ;;  %20932 = vst [vmem:[#allocation10_spill] sm:$0xff] %v12471_v11  ;;  %v12486_v22 = vsel %vm20914_vm0, %v618_v14, %v619_v15  ;;  %v12489_v23 = vsel %vm20914_vm0, %v619_v15, %v621_v16  ;;  %v624_v24 = vrot.slane %v12473_v12, 6  ;;  %v12492_v25 = vunpack.c.l.bf16 %v10227_v13  ;;  %v391_v54 = vld [vmem:[%s12452_s20 + $0xa8] ss:$16 sps:$4 sm:$0xff]   ;;  %v10232_v55 = vld [vmem:[%s12452_s20 + $0xa0] sm:$0xff]  }
  0x29   : > { %20933 = vst [vmem:[#allocation11_spill] sm:$0xff] %v12473_v12  ;;  %20934 = vst [vmem:[#allocation12_spill] sm:$0xff] %v12482_v20  ;;  %v12497_v27 = vpack.i.bf16 %v12489_v23, %v12486_v22  ;;  %v1248_v28 = vsel %vm20914_vm0, %v1246_v17, %v1247_v18  ;;  %v1250_v29 = vsel %vm20914_vm0, %v1247_v18, %v1249_v19  ;;  %v626_v30 = vrot.slane %v12482_v20, 6  ;;  %v10235_v8 = vld [vmem:[%s12452_s20 + $0xd0] sm:$0xff]   ;;  %v399_v17 = vld [vmem:[%s12452_s20 + $0xc8] ss:$16 sps:$4 sm:$0xff]  }
  0x2a   : > { %20935 = vst [vmem:[#allocation13_spill] sm:$0xff] %v12486_v22  ;;  %20936 = vst [vmem:[#allocation14_spill] sm:$0xff] %v12489_v23  ;;  %10468 = vmatprep.mubr.msk.f32.mxu0 %vm20915_vm1, %v12486_v22  ;;  %v10847_v32 = vpack.i.bf16 %v1250_v29, %v1248_v28  ;;  %v12506_v33 = vsel %vm20914_vm0, %v623_v21, %v624_v24  ;;  %v12508_v34 = vunpack.c.h.bf16 %v10227_v13  ;;  %v12510_v35 = vunpack.c.h.bf16 %v363_v7  ;;  %v10234_v18 = vld [vmem:[%s12452_s20 + $0xc0] sm:$0xff]  }
  0x2b   : > { %20937 = vst [vmem:[#allocation15_spill] sm:$0xff] %v12492_v25  ;;  %20938 = vst [vmem:[#allocation16_spill] sm:$0xff] %v12506_v33  ;;  %10858 = vrot.lane.b32.xlu1 %v12497_v27, %s12359_s21  ;;  %v12516_v37 = vsel %vm20914_vm0, %v624_v24, %v626_v30  ;;  %v1251_v38 = vrot.slane %v12492_v25, 6  ;;  %v12519_v39 = vunpack.c.l.bf16 %v10231_v26  ;;  %v12521_v40 = vunpack.c.h.bf16 %v10231_v26  ;;  %v423_v25 = vld [vmem:[%s12452_s20 + $0x128] ss:$16 sps:$4 sm:$0xff]  }
  0x2c   : > { %20939 = vst [vmem:[#allocation17_spill] sm:$0xff] %v12510_v35  ;;  %20940 = vst [vmem:[#allocation18_spill] sm:$0xff] %v12516_v37  ;;  %10848 = vrot.lane.b32.xlu0 %v10847_v32, %s12359_s21  ;;  %v12526_v41 = vpack.i.bf16 %v12516_v37, %v12506_v33  ;;  %v1252_v42 = vrot.slane %v12508_v34, 6  ;;  %v1254_v43 = vrot.slane %v12510_v35, 6  ;;  %v12530_v44 = vunpack.c.h.bf16 %v383_v31 }
  0x2d   : > { %20941 = vst [vmem:[#allocation19_spill] sm:$0xff] %v12519_v39  ;;  %20942 = vst [vmem:[#allocation20_spill] sm:$0xff] %v12521_v40  ;;  %v633_v45 = vrot.slane %v12519_v39, 6  ;;  %v634_v46 = vrot.slane %v12521_v40, 6  ;;  %v12534_v47 = vunpack.c.l.bf16 %v10230_v36  ;;  %v12536_v48 = vunpack.c.h.bf16 %v10230_v36 }
  0x2e   : > { %20943 = vst [vmem:[#allocation21_spill] sm:$0xff] %v12530_v44  ;;  %v1253_v50 = vsel %vm20914_vm0, %v1251_v38, %v1252_v42  ;;  %v1255_v51 = vsel %vm20914_vm0, %v1252_v42, %v1254_v43  ;;  %v636_v52 = vrot.slane %v12530_v44, 6  ;;  %v12542_v53 = vunpack.c.l.bf16 %v383_v31  ;;  %v10237_v43 = vld [vmem:[%s12452_s20 + $0xf0] sm:$0xff]  }
  0x2f   : > { %20944 = vst [vmem:[#allocation22_spill] sm:$0xff] %v12534_v47  ;;  %20945 = vst [vmem:[#allocation23_spill] sm:$0xff] %v12536_v48  ;;  %10863 = vrot.lane.b32.xlu1 %v12526_v41, %s12359_s21  ;;  %v10852_v56 = vpack.i.bf16 %v1255_v51, %v1253_v50  ;;  %v12549_v57 = vsel %vm20914_vm0, %v633_v45, %v634_v46  ;;  %v628_v58 = vrot.slane %v12534_v47, 6  ;;  %v629_v59 = vrot.slane %v12536_v48, 6 }
  0x30   : > { %20946 = vst [vmem:[#allocation24_spill] sm:$0xff] %v12542_v53  ;;  %20947 = vst [vmem:[#allocation25_spill] sm:$0xff] %v12549_v57  ;;  %v12554_v60 = vsel %vm20914_vm0, %v634_v46, %v636_v52  ;;  %v631_v61 = vrot.slane %v12542_v53, 6  ;;  %v12557_v62 = vunpack.c.l.bf16 %v10233_v49  ;;  %v12559_v63 = vunpack.c.h.bf16 %v10233_v49 }
  0x31   : > { %20948 = vst [vmem:[#allocation26_spill] sm:$0xff] %v12554_v60  ;;  %10853 = vrot.lane.b32.xlu0 %v10852_v56, %s12359_s21  ;;  %v12564_v0 = vpack.i.bf16 %v12554_v60, %v12549_v57  ;;  %v12567_v1 = vsel %vm20914_vm0, %v628_v58, %v629_v59  ;;  %v12569_v2 = vunpack.c.h.bf16 %v391_v54  ;;  %v12571_v7 = vunpack.c.l.bf16 %v10232_v55  ;;  %v407_v56 = vld [vmem:[%s12452_s20 + $0xe8] ss:$16 sps:$4 sm:$0xff]   ;;  %v10236_v58 = vld [vmem:[%s12452_s20 + $0xe0] sm:$0xff]   ;;  %v10241_v57 = vld [vmem:[%s12452_s20 + $0x130] sm:$0xff]  }
  0x32   : > { %20949 = vst [vmem:[#allocation27_spill] sm:$0xff] %v12557_v62  ;;  %20950 = vst [vmem:[#allocation28_spill] sm:$0xff] %v12559_v63  ;;  %v12575_v13 = vsel %vm20914_vm0, %v629_v59, %v631_v61  ;;  %v643_v14 = vrot.slane %v12557_v62, 6  ;;  %v644_v15 = vrot.slane %v12559_v63, 6  ;;  %v12579_v16 = vunpack.c.h.bf16 %v10232_v55 }
  0x33   : > { %20951 = vst [vmem:[#allocation29_spill] sm:$0xff] %v12564_v0  ;;  %20952 = vst [vmem:[#allocation30_spill] sm:$0xff] %v12567_v1  ;;  %10873 = vrot.lane.b32.xlu1 %v12564_v0, %s12359_s21  ;;  %v12587_v19 = vpack.i.bf16 %v12575_v13, %v12567_v1  ;;  %v646_v21 = vrot.slane %v12569_v2, 6  ;;  %v12590_v24 = vunpack.c.l.bf16 %v391_v54  ;;  %v638_v26 = vrot.slane %v12571_v7, 6 }
  0x34   : > { %20953 = vst [vmem:[#allocation31_spill] sm:$0xff] %v12569_v2  ;;  %20954 = vst [vmem:[#allocation32_spill] sm:$0xff] %v12571_v7  ;;  %v12594_v28 = vsel %vm20914_vm0, %v643_v14, %v644_v15  ;;  %v639_v29 = vrot.slane %v12579_v16, 6  ;;  %v12597_v30 = vunpack.c.l.bf16 %v10235_v8  ;;  %v12599_v31 = vunpack.c.h.bf16 %v10235_v8 }
  0x35   : > { %20955 = vst [vmem:[#allocation33_spill] sm:$0xff] %v12575_v13  ;;  %20956 = vst [vmem:[#allocation34_spill] sm:$0xff] %v12579_v16  ;;  %10868 = vrot.lane.b32.xlu0 %v12587_v19, %s12359_s21  ;;  %v12604_v32 = vsel %vm20914_vm0, %v644_v15, %v646_v21  ;;  %v641_v36 = vrot.slane %v12590_v24, 6  ;;  %v12607_v38 = vunpack.c.h.bf16 %v399_v17  ;;  %v12609_v42 = vunpack.c.l.bf16 %v10234_v18 }
  0x36   : > { %20957 = vst [vmem:[#allocation35_spill] sm:$0xff] %v12587_v19  ;;  %20958 = vst [vmem:[#allocation36_spill] sm:$0xff] %v12590_v24  ;;  %v12614_v45 = vpack.i.bf16 %v12604_v32, %v12594_v28  ;;  %v12617_v46 = vsel %vm20914_vm0, %v638_v26, %v639_v29  ;;  %v653_v49 = vrot.slane %v12597_v30, 6  ;;  %v654_v50 = vrot.slane %v12599_v31, 6 }
  0x37   : > { %20959 = vst [vmem:[#allocation37_spill] sm:$0xff] %v12594_v28  ;;  %20960 = vst [vmem:[#allocation38_spill] sm:$0xff] %v12597_v30  ;;  %v12622_v51 = vsel %vm20914_vm0, %v639_v29, %v641_v36  ;;  %v656_v52 = vrot.slane %v12607_v38, 6  ;;  %v12625_v54 = vunpack.c.h.bf16 %v10234_v18  ;;  %v12627_v55 = vunpack.c.l.bf16 %v399_v17  ;;  %v415_v28 = vld [vmem:[%s12452_s20 + $0x108] ss:$16 sps:$4 sm:$0xff]  }
  0x38   : > { %20961 = vst [vmem:[#allocation39_spill] sm:$0xff] %v12599_v31  ;;  %20962 = vst [vmem:[#allocation40_spill] sm:$0xff] %v12604_v32  ;;  %10883 = vrot.lane.b32.xlu1 %v12614_v45, %s12359_s21  ;;  %v12635_v59 = vpack.i.bf16 %v12622_v51, %v12617_v46  ;;  %v12638_v61 = vsel %vm20914_vm0, %v653_v49, %v654_v50  ;;  %v648_v8 = vrot.slane %v12609_v42, 6  ;;  %v12641_v14 = vunpack.c.l.bf16 %v10237_v43 }
  0x39   : > { %20963 = vst [vmem:[#allocation41_spill] sm:$0xff] %v12607_v38  ;;  %20964 = vst [vmem:[#allocation42_spill] sm:$0xff] %v12609_v42  ;;  %v12644_v15 = vsel %vm20914_vm0, %v654_v50, %v656_v52  ;;  %v649_v17 = vrot.slane %v12625_v54, 6  ;;  %v651_v18 = vrot.slane %v12627_v55, 6  ;;  %v12648_v21 = vunpack.c.h.bf16 %v10237_v43  ;;  %v10239_v50 = vld [vmem:[%s12452_s20 + $0x110] sm:$0xff]  }
  0x3a   : > { %20965 = vst [vmem:[#allocation43_spill] sm:$0xff] %v12614_v45  ;;  %20966 = vst [vmem:[#allocation44_spill] sm:$0xff] %v12617_v46  ;;  %10878 = vrot.lane.b32.xlu0 %v12635_v59, %s12359_s21  ;;  %v12654_v26 = vpack.i.bf16 %v12644_v15, %v12638_v61  ;;  %v12656_v29 = vunpack.c.h.bf16 %v407_v56  ;;  %v663_v36 = vrot.slane %v12641_v14, 6  ;;  %v12659_v49 = vunpack.c.l.bf16 %v10236_v58 }
  0x3b   : > { %20967 = vst [vmem:[#allocation45_spill] sm:$0xff] %v12622_v51  ;;  %20968 = vst [vmem:[#allocation46_spill] sm:$0xff] %v12625_v54  ;;  %v12663_v52 = vsel %vm20914_vm0, %v648_v8, %v649_v17  ;;  %v12666_v43 = vsel %vm20914_vm0, %v649_v17, %v651_v18  ;;  %v664_v22 = vrot.slane %v12648_v21, 6  ;;  %v12669_v32 = vunpack.c.h.bf16 %v10236_v58 }
  0x3c   : > { %20969 = vst [vmem:[#allocation47_spill] sm:$0xff] %v12627_v55  ;;  %20970 = vst [vmem:[#allocation48_spill] sm:$0xff] %v12635_v59  ;;  %10893 = vrot.lane.b32.xlu1 %v12654_v26, %s12359_s21  ;;  %v666_v8 = vrot.slane %v12656_v29, 6  ;;  %v12680_v51 = vunpack.c.l.bf16 %v407_v56  ;;  %v658_v17 = vrot.slane %v12659_v49, 6  ;;  %v12687_v46 = vunpack.c.l.bf16 %v10239_v50 }
  0x3d   : > { %20971 = vst [vmem:[#allocation49_spill] sm:$0xff] %v12638_v61  ;;  %20972 = vst [vmem:[#allocation50_spill] sm:$0xff] %v12641_v14  ;;  %v12677_v61 = vpack.i.bf16 %v12666_v43, %v12663_v52  ;;  %v12684_v18 = vsel %vm20914_vm0, %v663_v36, %v664_v22  ;;  %v659_v58 = vrot.slane %v12669_v32, 6  ;;  %v12689_v60 = vunpack.c.h.bf16 %v10239_v50 }
  0x3e   : > { %20973 = vst [vmem:[#allocation51_spill] sm:$0xff] %v12644_v15  ;;  %20974 = vst [vmem:[#allocation52_spill] sm:$0xff] %v12648_v21  ;;  %v10238_v15 = vld [vmem:[%s12452_s20 + $0x100] sm:$0xff]   ;;  %v661_v56 = vrot.slane %v12680_v51, 6  ;;  %v673_v1 = vrot.slane %v12687_v46, 6  ;;  %v12717_v23 = vunpack.c.l.bf16 %v415_v28 }
  0x3f   : > { %20975 = vst [vmem:[#allocation53_spill] sm:$0xff] %v12654_v26  ;;  %20976 = vst [vmem:[#allocation54_spill] sm:$0xff] %v12656_v29  ;;  %10888 = vrot.lane.b32.xlu0 %v12677_v61, %s12359_s21  ;;  %v12699_v36 = vunpack.c.l.bf16 %v10238_v15  ;;  %v12707_v50 = vsel %vm20914_vm0, %v658_v17, %v659_v58  ;;  %v674_v37 = vrot.slane %v12689_v60, 6  ;;  %v12715_v33 = vunpack.c.h.bf16 %v10238_v15 }
  0x40   : > { %20977 = vst [vmem:[#allocation55_spill] sm:$0xff] %v12659_v49  ;;  %20978 = vst [vmem:[#allocation56_spill] sm:$0xff] %v12663_v52  ;;  %v12697_v52 = vunpack.c.h.bf16 %v415_v28  ;;  %v12738_v26 = vunpack.c.h.bf16 %v10241_v57 }
  0x41   : > { %20979 = vst [vmem:[#allocation57_spill] sm:$0xff] %v12666_v43  ;;  %20980 = vst [vmem:[#allocation58_spill] sm:$0xff] %v12669_v32  ;;  %v12694_v43 = vsel %vm20914_vm0, %v664_v22, %v666_v8  ;;  %v12712_v22 = vsel %vm20914_vm0, %v659_v58, %v661_v56  ;;  %v668_v58 = vrot.slane %v12699_v36, 6  ;;  %v12731_v56 = vunpack.c.l.bf16 %v10241_v57 }
  0x42   : > { %20981 = vst [vmem:[#allocation59_spill] sm:$0xff] %v12677_v61  ;;  %20982 = vst [vmem:[#allocation60_spill] sm:$0xff] %v12680_v51  ;;  %v12704_v13 = vpack.i.bf16 %v12694_v43, %v12684_v18  ;;  %v676_v8 = vrot.slane %v12697_v52, 6  ;;  %v10240_v61 = vld [vmem:[%s12452_s20 + $0x120] sm:$0xff]   ;;  %v12725_v17 = vpack.i.bf16 %v12712_v22, %v12707_v50  ;;  %v669_v28 = vrot.slane %v12715_v33, 6 }
  0x43   : > { %20983 = vst [vmem:[#allocation61_spill] sm:$0xff] %v12684_v18  ;;  %20984 = vst [vmem:[#allocation62_spill] sm:$0xff] %v12687_v46  ;;  %v671_v18 = vrot.slane %v12717_v23, 6  ;;  %v684_v57 = vrot.slane %v12738_v26, 6  ;;  %v12758_v6 = vunpack.c.h.bf16 %v10240_v61 }
  0x44   : > { %20985 = vst [vmem:[#allocation63_spill] sm:$0xff] %v12689_v60  ;;  %20986 = vst [vmem:[#allocation64_spill] sm:$0xff] %v12694_v43  ;;  %10903 = vrot.lane.b32.xlu1 %v12704_v13, %s12359_s21  ;;  %v12728_v43 = vsel %vm20914_vm0, %v673_v1, %v674_v37  ;;  %v12734_v15 = vsel %vm20914_vm0, %v674_v37, %v676_v8  ;;  %10898 = vrot.lane.b32.xlu0 %v12725_v17, %s12359_s21 }
  0x45   : > { %20987 = vst [vmem:[#allocation65_spill] sm:$0xff] %v12697_v52  ;;  %20988 = vst [vmem:[#allocation66_spill] sm:$0xff] %v12699_v36  ;;  %v12744_v1 = vpack.i.bf16 %v12734_v15, %v12728_v43  ;;  %v12752_v37 = vsel %vm20914_vm0, %v668_v58, %v669_v28  ;;  %v12755_v8 = vsel %vm20914_vm0, %v669_v28, %v671_v18  ;;  %v679_v28 = vrot.slane %v12758_v6, 6 }
  0x46   : > { %20989 = vst [vmem:[#allocation67_spill] sm:$0xff] %v12704_v13  ;;  %20990 = vst [vmem:[#allocation68_spill] sm:$0xff] %v12707_v50  ;;  %v683_v50 = vrot.slane %v12731_v56, 6  ;;  %v12749_v13 = vunpack.c.l.bf16 %v10240_v61 }
  0x47   : > { %20991 = vst [vmem:[#allocation69_spill] sm:$0xff] %v12712_v22  ;;  %20992 = vst [vmem:[#allocation70_spill] sm:$0xff] %v12715_v33  ;;  %v12746_v22 = vunpack.c.h.bf16 %v423_v25 }
  0x48   : > { %20993 = vst [vmem:[#allocation71_spill] sm:$0xff] %v12717_v23  ;;  %20994 = vst [vmem:[#allocation72_spill] sm:$0xff] %v12725_v17  ;;  %10913 = vrot.lane.b32.xlu1 %v12744_v1, %s12359_s21  ;;  %v12767_v17 = vunpack.c.l.bf16 %v423_v25  ;;  %v678_v58 = vrot.slane %v12749_v13, 6  ;;  %v12771_v18 = vsel %vm20914_vm0, %v683_v50, %v684_v57 }
  0x49   : > { %20995 = vst [vmem:[#allocation73_spill] sm:$0xff] %v12728_v43  ;;  %20996 = vst [vmem:[#allocation74_spill] sm:$0xff] %v12731_v56  ;;  %v686_v43 = vrot.slane %v12746_v22, 6 }
  0x4a   : > { %20997 = vst [vmem:[#allocation75_spill] sm:$0xff] %v12734_v15  ;;  %20998 = vst [vmem:[#allocation76_spill] sm:$0xff] %v12738_v26  ;;  %v12764_v15 = vpack.i.bf16 %v12755_v8, %v12752_v37  ;;  %v12785_v25 = vsel %vm20914_vm0, %v678_v58, %v679_v28  ;;  %v12810_v58 = vpack.i.bf16 %v12461_v5, %v12459_v4 }
  0x4b   : > { %20999 = vst [vmem:[#allocation77_spill] sm:$0xff] %v12744_v1  ;;  %21000 = vst [vmem:[#allocation78_spill] sm:$0xff] %v12746_v22  ;;  %v12777_v61 = vsel %vm20914_vm0, %v684_v57, %v686_v43  ;;  %v10932_v43 = vpack.i.bf16 %v12510_v35, %v12508_v34  ;;  %v10927_v57 = vpack.i.bf16 %v12469_v10, %v12467_v9  ;;  %v1160_v35 = vrot.slane %v12521_v40, 4 }
  0x4c   : > { %21001 = vst [vmem:[#allocation79_spill] sm:$0xff] %v12749_v13  ;;  %21002 = vst [vmem:[#allocation80_spill] sm:$0xff] %v12752_v37  ;;  %10908 = vrot.lane.b32.xlu0 %v12764_v15, %s12359_s21  ;;  %v12782_v37 = vpack.i.bf16 %v12777_v61, %v12771_v18 }
  0x4d   : > { %21003 = vst [vmem:[#allocation81_spill] sm:$0xff] %v12755_v8  ;;  %21004 = vst [vmem:[#allocation82_spill] sm:$0xff] %v12758_v6  ;;  %v681_v8 = vrot.slane %v12767_v17, 6 }
  0x4e   : > { %21005 = vst [vmem:[#allocation83_spill] sm:$0xff] %v12764_v15  ;;  %21006 = vst [vmem:[#allocation84_spill] sm:$0xff] %v12767_v17  ;;  %10923 = vrot.lane.b32.xlu1 %v12782_v37, %s12359_s21 }
  0x4f   : > { %21007 = vst [vmem:[#allocation85_spill] sm:$0xff] %v12771_v18  ;;  %21008 = vst [vmem:[#allocation86_spill] sm:$0xff] %v12777_v61  ;;  %v12788_v50 = vsel %vm20914_vm0, %v679_v28, %v681_v8  ;;  %v12805_v8 = vpack.i.bf16 %v12482_v20, %v12473_v12  ;;  %v12816_v28 = vpack.i.bf16 %v12530_v44, %v12521_v40 }
  0x50   : > { %21009 = vst [vmem:[#allocation87_spill] sm:$0xff] %v12782_v37  ;;  %21010 = vst [vmem:[#allocation88_spill] sm:$0xff] %v12785_v25  ;;  %v12794_v15 = vpack.i.bf16 %v12788_v50, %v12785_v25  ;;  %v12834_v61 = vpack.i.bf16 %v12590_v24, %v12579_v16  ;;  %v12840_v18 = vpack.i.bf16 %v12607_v38, %v12599_v31  ;;  %v21026_v37 = vrot.slane %v12482_v20, 4 }
  0x51   : > { %21011 = vst [vmem:[#allocation89_spill] sm:$0xff] %v12788_v50  ;;  %21013 = vst [vmem:[#allocation91_spill] sm:$0xff] %v12805_v8  ;;  %v12846_v50 = vpack.i.bf16 %v12627_v55, %v12625_v54  ;;  %v12852_v25 = vpack.i.bf16 %v12656_v29, %v12648_v21 }
  0x52   : > { %21012 = vst [vmem:[#allocation90_spill] sm:$0xff] %v12794_v15  ;;  %10918 = vrot.lane.b32.xlu0 %v12794_v15, %s12359_s21  ;;  %10933 = vrot.lane.b32.xlu1 %v10932_v43, %s12360_s22  ;;  %21014 = vst [vmem:[#allocation92_spill] sm:$0xff] %v12810_v58  ;;  %v12822_v43 = vpack.i.bf16 %v12542_v53, %v12536_v48 }
  0x53   : > { %21015 = vst [vmem:[#allocation93_spill] sm:$0xff] %v12816_v28  ;;  %21018 = vst [vmem:[#allocation96_spill] sm:$0xff] %v12834_v61 }
  0x54   : > { %21016 = vst [vmem:[#allocation94_spill] sm:$0xff] %v12822_v43  ;;  %21019 = vst [vmem:[#allocation97_spill] sm:$0xff] %v12840_v18 }
  0x55   : > { %21020 = vst [vmem:[#allocation98_spill] sm:$0xff] %v12846_v50  ;;  %21021 = vst [vmem:[#allocation99_spill] sm:$0xff] %v12852_v25 }
  0x56   : > { %10928 = vrot.lane.b32.xlu0 %v10927_v57, %s12360_s22  ;;  %10943 = vrot.lane.b32.xlu1 %v12805_v8, %s12360_s22  ;;  %v12828_v57 = vpack.i.bf16 %v12569_v2, %v12559_v63  ;;  %v1145_v8 = vrot.slane %v12459_v4, 4  ;;  %v1154_v4 = vrot.slane %v12534_v47, 4 }
  0x58   : > { %21017 = vst [vmem:[#allocation95_spill] sm:$0xff] %v12828_v57 }
  0x5a   : > { %10938 = vrot.lane.b32.xlu0 %v12810_v58, %s12360_s22  ;;  %10953 = vrot.lane.b32.xlu1 %v12816_v28, %s12360_s22  ;;  %v1144_v58 = vrot.slane %v12457_v3, 4  ;;  %v12893_v28 = vpack.i.bf16 %v12746_v22, %v12738_v26  ;;  %v21031_v3 = vrot.slane %v12461_v5, 4 }
  0x5c   : > { %21028 = vst [vmem:[#allocation105_spill] sm:$0xff] %v12893_v28 }
  0x5e   : > { %10948 = vrot.lane.b32.xlu0 %v12822_v43, %s12360_s22  ;;  %10963 = vrot.lane.b32.xlu1 %v12828_v57, %s12360_s22  ;;  %v12858_v57 = vpack.i.bf16 %v12680_v51, %v12669_v32  ;;  %v1150_v43 = vrot.slane %v12473_v12, 4 }
  0x60   : > { %21022 = vst [vmem:[#allocation100_spill] sm:$0xff] %v12858_v57  ;;  %v12885_v1 = vsel %vm20916_vm2, %v1150_v43, %v21026_v37  ;;  %v12902_v37 = vpack.i.bf16 %v12767_v17, %v12758_v6 }
  0x61   : > { %21027 = vst [vmem:[#allocation104_spill] sm:$0xff] %v12885_v1 }
  0x62   : > { %10958 = vrot.lane.b32.xlu0 %v12834_v61, %s12360_s22  ;;  %10973 = vrot.lane.b32.xlu1 %v12840_v18, %s12360_s22  ;;  %v1149_v61 = vrot.slane %v12471_v11, 4  ;;  %v12867_v18 = vpack.i.bf16 %v12697_v52, %v12689_v60  ;;  %21029 = vst [vmem:[#allocation106_spill] sm:$0xff] %v12902_v37 }
  0x64   : > { %21023 = vst [vmem:[#allocation101_spill] sm:$0xff] %v12867_v18  ;;  %v12880_v15 = vsel %vm20916_vm2, %v1149_v61, %v1150_v43  ;;  %v1155_v61 = vrot.slane %v12536_v48, 4 }
  0x65   : > { %21025 = vst [vmem:[#allocation103_spill] sm:$0xff] %v12880_v15  ;;  %v11012_v43 = vpack.i.bf16 %v12885_v1, %v12880_v15  ;;  %v1170_v1 = vrot.slane %v12559_v63, 4  ;;  %v1179_v63 = vrot.slane %v12597_v30, 4 }
  0x66   : > { %10968 = vrot.lane.b32.xlu0 %v12846_v50, %s12360_s22  ;;  %10983 = vrot.lane.b32.xlu1 %v12852_v25, %s12360_s22  ;;  %v12871_v50 = vpack.i.bf16 %v12717_v23, %v12715_v33  ;;  %v1159_v25 = vrot.slane %v12519_v39, 4  ;;  %v12925_v15 = vsel %vm20916_vm2, %v1154_v4, %v1155_v61 }
  0x67   : > { %21036 = vst [vmem:[#allocation111_spill] sm:$0xff] %v12925_v15 }
  0x68   : > { %21024 = vst [vmem:[#allocation102_spill] sm:$0xff] %v12871_v50  ;;  %v12915_v20 = vsel %vm20916_vm2, %v1159_v25, %v1160_v35  ;;  %v21037_v25 = vrot.slane %v12542_v53, 4 }
  0x69   : > { %21033 = vst [vmem:[#allocation109_spill] sm:$0xff] %v12915_v20 }
  0x6a   : > { %10978 = vrot.lane.b32.xlu0 %v12858_v57, %s12360_s22  ;;  %10993 = vrot.lane.b32.xlu1 %v12867_v18, %s12360_s22  ;;  %v12907_v57 = vsel %vm20916_vm2, %v1144_v58, %v1145_v8  ;;  %v12912_v18 = vsel %vm20916_vm2, %v1145_v8, %v21031_v3  ;;  %v1169_v58 = vrot.slane %v12557_v62, 4  ;;  %v12933_v8 = vsel %vm20916_vm2, %v1155_v61, %v21037_v25 }
  0x6b   : > { %21030 = vst [vmem:[#allocation107_spill] sm:$0xff] %v12907_v57  ;;  %21032 = vst [vmem:[#allocation108_spill] sm:$0xff] %v12912_v18  ;;  %v11007_v4 = vpack.i.bf16 %v12912_v18, %v12907_v57  ;;  %v1180_v3 = vrot.slane %v12599_v31, 4  ;;  %v12952_v25 = vpack.i.bf16 %v12933_v8, %v12925_v15  ;;  %v21040_v57 = vrot.slane %v12569_v2, 4 }
  0x6c   : > { %21038 = vst [vmem:[#allocation112_spill] sm:$0xff] %v12933_v8  ;;  %v1175_v15 = vrot.slane %v12625_v54, 4  ;;  %v1189_v8 = vrot.slane %v12641_v14, 4  ;;  %v1184_v54 = vrot.slane %v12659_v49, 4 }
  0x6d   : > { %v12960_v18 = vsel %vm20916_vm2, %v1170_v1, %v21040_v57 }
  0x6e   : > { %10988 = vrot.lane.b32.xlu0 %v12871_v50, %s12360_s22  ;;  %v21034_v50 = vrot.slane %v12530_v44, 4  ;;  %11003 = vrot.lane.b32.xlu1 %v12893_v28, %s12360_s22  ;;  %v12955_v44 = vsel %vm20916_vm2, %v1169_v58, %v1170_v1  ;;  %21041 = vst [vmem:[#allocation114_spill] sm:$0xff] %v12960_v18  ;;  %v12974_v58 = vsel %vm20916_vm2, %v1179_v63, %v1180_v3  ;;  %v21046_v1 = vrot.slane %v12607_v38, 4 }
  0x6f   : > { %21039 = vst [vmem:[#allocation113_spill] sm:$0xff] %v12955_v44  ;;  %21045 = vst [vmem:[#allocation117_spill] sm:$0xff] %v12974_v58  ;;  %v12991_v63 = vpack.i.bf16 %v12960_v18, %v12955_v44  ;;  %v21049_v44 = vrot.slane %v12627_v55, 4 }
  0x70   : > { %v12920_v48 = vsel %vm20916_vm2, %v1160_v35, %v21034_v50  ;;  %v1164_v35 = vrot.slane %v12571_v7, 4  ;;  %v1165_v50 = vrot.slane %v12579_v16, 4  ;;  %v12979_v57 = vsel %vm20916_vm2, %v1180_v3, %v21046_v1 }
  0x71   : > { %21035 = vst [vmem:[#allocation110_spill] sm:$0xff] %v12920_v48  ;;  %v12948_v61 = vpack.i.bf16 %v12920_v48, %v12915_v20  ;;  %v1174_v48 = vrot.slane %v12609_v42, 4  ;;  %21047 = vst [vmem:[#allocation118_spill] sm:$0xff] %v12979_v57  ;;  %v13010_v3 = vsel %vm20916_vm2, %v1175_v15, %v21049_v44  ;;  %v1199_v44 = vrot.slane %v12687_v46, 4  ;;  %v431_v46 = vld [vmem:[%s12452_s20 + $0x148] ss:$16 sps:$4 sm:$0xff]  }
  0x72   : > { %10998 = vrot.lane.b32.xlu0 %v12902_v37, %s12360_s22  ;;  %11013 = vrot.lane.b32.xlu1 %v11012_v43, %s12361_s23  ;;  %v12963_v62 = vsel %vm20916_vm2, %v1164_v35, %v1165_v50  ;;  %v21043_v43 = vrot.slane %v12590_v24, 4  ;;  %21050 = vst [vmem:[#allocation120_spill] sm:$0xff] %v13010_v3 }
  0x73   : > { %21042 = vst [vmem:[#allocation115_spill] sm:$0xff] %v12963_v62  ;;  %v13005_v35 = vsel %vm20916_vm2, %v1174_v48, %v1175_v15  ;;  %v21055_v48 = vrot.slane %v12680_v51, 4  ;;  %v1200_v15 = vrot.slane %v12689_v60, 4  ;;  %v13070_v51 = vunpack.c.h.bf16 %v431_v46 }
  0x74   : > { %v12968_v20 = vsel %vm20916_vm2, %v1165_v50, %v21043_v43  ;;  %v1190_v50 = vrot.slane %v12648_v21, 4  ;;  %v13002_v43 = vpack.i.bf16 %v12979_v57, %v12974_v58  ;;  %21048 = vst [vmem:[#allocation119_spill] sm:$0xff] %v13005_v35 }
  0x75   : > { %21044 = vst [vmem:[#allocation116_spill] sm:$0xff] %v12968_v20  ;;  %v12998_v1 = vpack.i.bf16 %v12968_v20, %v12963_v62  ;;  %v21052_v62 = vrot.slane %v12656_v29, 4  ;;  %21062 = vst [vmem:[#allocation129_spill] sm:$0xff] %v13070_v51 }
  0x76   : > { %11008 = vrot.lane.b32.xlu0 %v11007_v4, %s12361_s23  ;;  %v1185_v4 = vrot.slane %v12669_v32, 4  ;;  %11023 = vrot.lane.b32.xlu1 %v12948_v61, %s12361_s23  ;;  %v13013_v18 = vsel %vm20916_vm2, %v1189_v8, %v1190_v50  ;;  %v13089_v32 = vunpack.c.l.bf16 %v431_v46 }
  0x77   : > { %21051 = vst [vmem:[#allocation121_spill] sm:$0xff] %v13013_v18  ;;  %v13018_v20 = vsel %vm20916_vm2, %v1190_v50, %v21052_v62  ;;  %v13037_v62 = vpack.i.bf16 %v13010_v3, %v13005_v35  ;;  %v1195_v50 = vrot.slane %v12715_v33, 4  ;;  %v13055_v35 = vsel %vm20916_vm2, %v1199_v44, %v1200_v15 }
  0x78   : > { %21053 = vst [vmem:[#allocation122_spill] sm:$0xff] %v13018_v20  ;;  %v13021_v58 = vsel %vm20916_vm2, %v1184_v54, %v1185_v4  ;;  %v13028_v57 = vsel %vm20916_vm2, %v1185_v4, %v21055_v48  ;;  %v1194_v54 = vrot.slane %v12699_v36, 4  ;;  %v10243_v48 = vld [vmem:[%s12452_s20 + $0x150] sm:$0xff]   ;;  %v13046_v60 = vpack.i.bf16 %v13018_v20, %v13013_v18  ;;  %21057 = vst [vmem:[#allocation125_spill] sm:$0xff] %v13055_v35  ;;  %v10242_v20 = vld [vmem:[%s12452_s20 + $0x140] sm:$0xff]  }
  0x79   : > { %21054 = vst [vmem:[#allocation123_spill] sm:$0xff] %v13021_v58  ;;  %21056 = vst [vmem:[#allocation124_spill] sm:$0xff] %v13028_v57  ;;  %v13050_v8 = vpack.i.bf16 %v13028_v57, %v13021_v58  ;;  %v21058_v3 = vrot.slane %v12697_v52, 4  ;;  %v1209_v33 = vrot.slane %v12731_v56, 4  ;;  %v1210_v18 = vrot.slane %v12738_v26, 4 }
  0x7a   : > { %11018 = vrot.lane.b32.xlu0 %v12952_v25, %s12361_s23  ;;  %11033 = vrot.lane.b32.xlu1 %v12991_v63, %s12361_s23  ;;  %v13066_v58 = vunpack.c.l.bf16 %v10243_v48  ;;  %v13068_v57 = vunpack.c.h.bf16 %v10243_v48  ;;  %v13075_v44 = vsel %vm20916_vm2, %v1194_v54, %v1195_v50  ;;  %v1204_v26 = vrot.slane %v12749_v13, 4  ;;  %21068 = vst [vmem:[#allocation134_spill] sm:$0xff] %v13089_v32 }
  0x7b   : > { %v13060_v4 = vsel %vm20916_vm2, %v1200_v15, %v21058_v3  ;;  %21063 = vst [vmem:[#allocation130_spill] sm:$0xff] %v13075_v44  ;;  %v21064_v3 = vrot.slane %v12717_v23, 4  ;;  %v1205_v36 = vrot.slane %v12758_v6, 4  ;;  %v13085_v56 = vunpack.c.l.bf16 %v10242_v20 }
  0x7c   : > { %21059 = vst [vmem:[#allocation126_spill] sm:$0xff] %v13060_v4  ;;  %21060 = vst [vmem:[#allocation127_spill] sm:$0xff] %v13066_v58  ;;  %v13087_v52 = vunpack.c.h.bf16 %v10242_v20  ;;  %v13095_v54 = vpack.i.bf16 %v13060_v4, %v13055_v35  ;;  %v1261_v20 = vrot.slane %v13066_v58, 4  ;;  %v1262_v46 = vrot.slane %v13068_v57, 4  ;;  %v13154_v4 = vld [vmem:[%s12452_s20 + $0x17c] sm:$0x3] }
  0x7d   : > { %21061 = vst [vmem:[#allocation128_spill] sm:$0xff] %v13068_v57  ;;  %v13080_v15 = vsel %vm20916_vm2, %v1195_v50, %v21064_v3  ;;  %21066 = vst [vmem:[#allocation132_spill] sm:$0xff] %v13085_v56  ;;  %v13098_v50 = vsel %vm20916_vm2, %v1209_v33, %v1210_v18  ;;  %v21070_v3 = vrot.slane %v12746_v22, 4  ;;  %v13115_v13 = vsel %vm20916_vm2, %v1204_v26, %v1205_v36 }
  0x7e   : > { %11028 = vrot.lane.b32.xlu0 %v12998_v1, %s12361_s23  ;;  %11043 = vrot.lane.b32.xlu1 %v13002_v43, %s12361_s23  ;;  %21065 = vst [vmem:[#allocation131_spill] sm:$0xff] %v13080_v15  ;;  %21067 = vst [vmem:[#allocation133_spill] sm:$0xff] %v13087_v52  ;;  %v13112_v33 = vpack.i.bf16 %v13080_v15, %v13075_v44  ;;  %v1256_v6 = vrot.slane %v13085_v56, 4  ;;  %v1257_v22 = vrot.slane %v13087_v52, 4  ;;  %v21077_v15 = vrot.slane %v13089_v32, 4 }
  0x7f   : > { %21069 = vst [vmem:[#allocation135_spill] sm:$0xff] %v13098_v50  ;;  %v13103_v48 = vsel %vm20916_vm2, %v1210_v18, %v21070_v3  ;;  %21072 = vst [vmem:[#allocation137_spill] sm:$0xff] %v13115_v13  ;;  %v21073_v18 = vrot.slane %v12767_v17, 4  ;;  %v1263_v17 = vsel %vm20916_vm2, %v1261_v20, %v1262_v46  ;;  %v13150_v20 = vld [vmem:[%s12452_s20 + $0x170] sm:$0xff]  }
  0x80   : > { %21071 = vst [vmem:[#allocation136_spill] sm:$0xff] %v13103_v48  ;;  %v13129_v26 = vpack.i.bf16 %v13103_v48, %v13098_v50  ;;  %v1258_v44 = vsel %vm20916_vm2, %v1256_v6, %v1257_v22  ;;  %v13147_v50 = vsel %vm20916_vm2, %v1257_v22, %v21077_v15  ;;  %v439_v48 = vld [vmem:[%s12452_s20 + $0x168] ss:$16 sps:$4 sm:$0xff]   ;;  %21079 = vst [vmem:[#allocation141_spill] sm:$0xff] %v13154_v4  ;;  %v13173_v22 = vunpack.c.h.bf16 %v13150_v20 }
  0x81   : > { %v13120_v3 = vsel %vm20916_vm2, %v1205_v36, %v21073_v18  ;;  %v21075_v36 = vrot.slane %v13070_v51, 4  ;;  %21078 = vst [vmem:[#allocation140_spill] sm:$0xff] %v13147_v50  ;;  %v13170_v6 = vpack.i.bf16 %v13147_v50, %v1258_v44  ;;  %v13175_v15 = vunpack.c.h.bf16 %v439_v48 }
  0x82   : > { %11038 = vrot.lane.b32.xlu0 %v13037_v62, %s12361_s23  ;;  %11053 = vrot.lane.b32.xlu1 %v13046_v60, %s12361_s23  ;;  %21074 = vst [vmem:[#allocation138_spill] sm:$0xff] %v13120_v3  ;;  %v13141_v35 = vpack.i.bf16 %v13120_v3, %v13115_v13  ;;  %v13165_v13 = vld [vmem:[%s12452_s20 + $0x16c] sm:$0x3]  ;;  %21082 = vst [vmem:[#allocation144_spill] sm:$0xff] %v13173_v22  ;;  %v20402_v3 = vunpack.c.l.bf16 %v13154_v4  ;;  %v20405_v44 = vrot.slane %v13173_v22, 4 }
  0x83   : > { %v13135_v18 = vsel %vm20916_vm2, %v1262_v46, %v21075_v36  ;;  %v13162_v36 = vld [vmem:[%s12452_s20 + $0x160] sm:$0xff]   ;;  %21080 = vst [vmem:[#allocation142_spill] sm:$0xff] %v13165_v13  ;;  %21081 = vst [vmem:[#allocation143_spill] sm:$0xff] %v13170_v6  ;;  %v20404_v23 = vunpack.c.l.bf16 %v13165_v13  ;;  %v1280_v50 = vrot.slane %v13175_v15, 4  ;;  %v21095_v13 = vld [vmem:[#allocation67_spill] sm:$0xff] }
  0x84   : > { %21076 = vst [vmem:[#allocation139_spill] sm:$0xff] %v13135_v18  ;;  %v13159_v46 = vpack.i.bf16 %v13135_v18, %v1263_v17  ;;  %21083 = vst [vmem:[#allocation145_spill] sm:$0xff] %v13175_v15  ;;  %v13179_v17 = vunpack.c.h.bf16 %v13162_v36  ;;  %v13181_v18 = vunpack.c.l.bf16 %v439_v48  ;;  %v4298_v49 = vrot.slane %v20402_v3, 4 }
  0x85   : > { %v4296_v48 = vrot.slane %v20404_v23, 4  ;;  %v13199_v14 = vsel %vm20916_vm2, %v20405_v44, %v1280_v50  ;;  %v2787_v3 = vrot.slane %v12471_v11, 2  ;;  %v21097_v11 = vld [vmem:[#allocation17_spill] sm:$0xff]  ;;  %v693_v44 = vrot.slane %v13066_v58, 6 }
  0x86   : > { %11048 = vrot.lane.b32.xlu0 %v13050_v8, %s12361_s23  ;;  %11063 = vrot.lane.b32.xlu1 %v13095_v54, %s12361_s23  ;;  %21084 = vst [vmem:[#allocation146_spill] sm:$0xff] %v13179_v17  ;;  %21085 = vst [vmem:[#allocation147_spill] sm:$0xff] %v13181_v18  ;;  %v20406_v29 = vrot.slane %v13179_v17, 4  ;;  %v1275_v21 = vrot.slane %v13181_v18, 4  ;;  %v13202_v15 = vsel %vm20916_vm2, %v1280_v50, %v4298_v49  ;;  %v2773_v49 = vrot.slane %v12467_v9, 2 }
  0x87   : > { %21086 = vst [vmem:[#allocation148_spill] sm:$0xff] %v13199_v14  ;;  %21087 = vst [vmem:[#allocation149_spill] sm:$0xff] %v13202_v15  ;;  %v20418_v50 = vrot.slane %v12469_v10, 2  ;;  %v694_v18 = vrot.slane %v13068_v57, 6  ;;  %v21120_v14 = vld [vmem:[#allocation90_spill] sm:$0xff] }
  0x88   : > { %v13209_v4 = vsel %vm20916_vm2, %v20406_v29, %v1275_v21  ;;  %v13212_v23 = vsel %vm20916_vm2, %v1275_v21, %v4296_v48  ;;  %v21090_v21 = vld [vmem:[#allocation8_spill] sm:$0xff]  ;;  %v21092_v48 = vld [vmem:[#allocation59_spill] sm:$0xff] }
  0x89   : > { %21088 = vst [vmem:[#allocation150_spill] sm:$0xff] %v13209_v4  ;;  %21089 = vst [vmem:[#allocation151_spill] sm:$0xff] %v13212_v23  ;;  %v13243_v23 = vsel %vm2761_vm3, %v2773_v49, %v20418_v50  ;;  %v21100_v50 = vld [vmem:[#allocation72_spill] sm:$0xff]  ;;  %v689_v4 = vrot.slane %v13087_v52, 6  ;;  %v13290_v55 = vsel %vm20914_vm0, %v693_v44, %v694_v18  ;;  %v21112_v44 = vld [vmem:[#allocation23_spill] sm:$0xff] }
  0x8a   : > { %11058 = vrot.lane.b32.xlu0 %v13112_v33, %s12361_s23  ;;  %11073 = vrot.lane.b32.xlu1 %v13129_v26, %s12361_s23  ;;  %21094 = vst [vmem:[#allocation152_spill] sm:$0xff] %v13243_v23  ;;  %21109 = vst [vmem:[#allocation159_spill] sm:$0xff] %v13290_v55 }
  0x8e   : > { %11068 = vrot.lane.b32.xlu0 %v13141_v35, %s12361_s23  ;;  %11083 = vrot.lane.b32.xlu1 %v13159_v46, %s12361_s23 }
  0x92   : > { %11078 = vrot.lane.b32.xlu0 %v13170_v6, %s12361_s23  ;;  %11093 = vrot.lane.b32.xlu1 %v12526_v41, %s12362_s24  ;;  %v2772_v41 = vrot.slane %v21090_v21, 2  ;;  %v691_v6 = vrot.slane %v13089_v32, 6 }
  0x94   : > { %v2774_v15 = vsel %vm2761_vm3, %v2772_v41, %v2773_v49  ;;  %v696_v49 = vrot.slane %v13070_v51, 6 }
  0x96   : > { %11088 = vrot.lane.b32.xlu0 %v12497_v27, %s12362_s24  ;;  %11103 = vrot.lane.b32.xlu1 %v12564_v0, %s12362_s24  ;;  %v21091_v27 = vld [vmem:[#allocation53_spill] sm:$0xff] }
  0x9a   : > { %11098 = vrot.lane.b32.xlu0 %v12587_v19, %s12362_s24  ;;  %11113 = vrot.lane.b32.xlu1 %v12614_v45, %s12362_s24 }
  0x9d   : > { %v13237_v29 = vpop.permute.xlu1 %10858 }
  0x9e   : > { %11108 = vrot.lane.b32.xlu0 %v12635_v59, %s12362_s24  ;;  %11123 = vrot.lane.b32.xlu1 %v21091_v27, %s12362_s24  ;;  %21093 = vst [vmem:[#allocation8_spill] sm:$0xff] %v13237_v29  ;;  %v10849_v27 = vpop.permute.xlu0 %10848  ;;  %v21096_v59 = vld [vmem:[#allocation15_spill] sm:$0xff] }
  0x9f   : > { %v2777_v45 = vrot.slane %v21096_v59, 2  ;;  %v13251_v29 = vunpack.i.h.bf16 %v10849_v27  ;;  %v13253_v41 = vunpack.i.l.bf16 %v10849_v27  ;;  %v688_v27 = vrot.slane %v13085_v56, 6 }
  0xa1   : > { %21098 = vst [vmem:[#allocation15_spill] sm:$0xff] %v13251_v29  ;;  %21099 = vst [vmem:[#allocation153_spill] sm:$0xff] %v13253_v41  ;;  %v13267_v19 = vsel %vm20915_vm1, %v13243_v23, %v13251_v29  ;;  %v13269_v58 = vpop.permute.xlu1 %10863 }
  0xa2   : > { %11118 = vrot.lane.b32.xlu0 %v21092_v48, %s12362_s24  ;;  %11133 = vrot.lane.b32.xlu1 %v21095_v13, %s12362_s24  ;;  %v2778_v48 = vrot.slane %v12508_v34, 2  ;;  %v21101_v13 = vrot.slane %v12473_v12, 2  ;;  %21103 = vst [vmem:[#allocation155_spill] sm:$0xff] %v13267_v19  ;;  %21104 = vst [vmem:[#allocation156_spill] sm:$0xff] %v13269_v58  ;;  %v13282_v23 = vunpack.i.l.bf16 %v13269_v58  ;;  %v21107_v19 = vrot.slane %v21097_v11, 2 }
  0xa3   : > { %v10854_v29 = vpop.permute.xlu0 %10853 }
  0xa4   : > { %v13262_v0 = vsel %vm2761_vm3, %v2787_v3, %v21101_v13  ;;  %v21106_v13 = vld [vmem:[#allocation77_spill] sm:$0xff]  ;;  %v2779_v3 = vsel %vm2761_vm3, %v2777_v45, %v2778_v48  ;;  %v13287_v56 = vsel %vm2761_vm3, %v2778_v48, %v21107_v19  ;;  %v13299_v45 = vunpack.i.l.bf16 %v10854_v29 }
  0xa5   : > { %21102 = vst [vmem:[#allocation154_spill] sm:$0xff] %v13262_v0  ;;  %21108 = vst [vmem:[#allocation158_spill] sm:$0xff] %v13287_v56  ;;  %v13303_v19 = vpop.permute.xlu1 %10873  ;;  %v2792_v48 = vrot.slane %v12534_v47, 2  ;;  %v21117_v47 = vld [vmem:[#allocation87_spill] sm:$0xff] }
  0xa6   : > { %11128 = vrot.lane.b32.xlu0 %v21100_v50, %s12362_s24  ;;  %v13276_v50 = vsel %vm20915_vm1, %v2774_v15, %v13253_v41  ;;  %11143 = vrot.lane.b32.xlu1 %v21106_v13, %s12362_s24  ;;  %v13293_v15 = vsel %vm20914_vm0, %v694_v18, %v696_v49  ;;  %v13297_v13 = vunpack.i.h.bf16 %v10854_v29  ;;  %v2797_v41 = vrot.slane %v12519_v39, 2 }
  0xa7   : > { %21105 = vst [vmem:[#allocation157_spill] sm:$0xff] %v13276_v50  ;;  %21110 = vst [vmem:[#allocation160_spill] sm:$0xff] %v13293_v15  ;;  %v21111_v50 = vld [vmem:[#allocation83_spill] sm:$0xff]  ;;  %v13308_v18 = vsel %vm20914_vm0, %v688_v27, %v689_v4  ;;  %v13311_v49 = vsel %vm20914_vm0, %v689_v4, %v691_v6  ;;  %v13316_v29 = vsel %vm20915_vm1, %v13262_v0, %v13282_v23  ;;  %v13333_v6 = vpop.permute.xlu0 %10868  ;;  %v13343_v0 = vunpack.i.l.bf16 %v13303_v19 }
  0xa8   : > { %21113 = vst [vmem:[#allocation83_spill] sm:$0xff] %v13308_v18  ;;  %21114 = vst [vmem:[#allocation161_spill] sm:$0xff] %v13311_v49  ;;  %v13321_v58 = vsel %vm20915_vm1, %v13287_v56, %v13297_v13  ;;  %v13327_v27 = vpack.i.bf16 %v13293_v15, %v13290_v55  ;;  %v13331_v4 = vsel %vm20915_vm1, %v2779_v3, %v13299_v45  ;;  %v13346_v56 = vunpack.i.l.bf16 %v13333_v6  ;;  %v21130_v55 = vld [vmem:[#allocation92_spill] sm:$0xff] }
  0xa9   : > { %21115 = vst [vmem:[#allocation162_spill] sm:$0xff] %v13316_v29  ;;  %21116 = vst [vmem:[#allocation163_spill] sm:$0xff] %v13321_v58  ;;  %v21121_v29 = vrot.slane %v12521_v40, 2  ;;  %v13350_v3 = vpack.i.bf16 %v13311_v49, %v13308_v18  ;;  %v21136_v49 = vld [vmem:[#allocation95_spill] sm:$0xff] }
  0xaa   : > { %11138 = vrot.lane.b32.xlu0 %v21111_v50, %s12362_s24  ;;  %11153 = vrot.lane.b32.xlu1 %v21117_v47, %s12362_s24  ;;  %21118 = vst [vmem:[#allocation164_spill] sm:$0xff] %v13327_v27  ;;  %21119 = vst [vmem:[#allocation165_spill] sm:$0xff] %v13331_v4  ;;  %v21124_v4 = vrot.slane %v21112_v44, 2 }
  0xab   : > { %v13340_v58 = vsel %vm2761_vm3, %v2797_v41, %v21121_v29  ;;  %21123 = vst [vmem:[#allocation167_spill] sm:$0xff] %v13350_v3  ;;  %v13359_v41 = vpop.permute.xlu1 %10883 }
  0xac   : > { %21122 = vst [vmem:[#allocation166_spill] sm:$0xff] %v13340_v58  ;;  %v13355_v15 = vsel %vm2761_vm3, %v2792_v48, %v21124_v4  ;;  %v13364_v29 = vsel %vm20915_vm1, %v13340_v58, %v13343_v0  ;;  %v13373_v48 = vpop.permute.xlu0 %10878  ;;  %v21128_v4 = vld [vmem:[#allocation91_spill] sm:$0xff]  ;;  %v21132_v58 = vld [vmem:[#allocation93_spill] sm:$0xff] }
  0xad   : > { %21125 = vst [vmem:[#allocation168_spill] sm:$0xff] %v13355_v15  ;;  %21126 = vst [vmem:[#allocation169_spill] sm:$0xff] %v13364_v29 }
  0xae   : > { %11148 = vrot.lane.b32.xlu0 %v21120_v14, %s12362_s24  ;;  %11163 = vrot.lane.b32.xlu1 %v13327_v27, %s12362_s24  ;;  %v13369_v14 = vsel %vm20915_vm1, %v13355_v15, %v13346_v56  ;;  %v21134_v15 = vld [vmem:[#allocation94_spill] sm:$0xff] }
  0xaf   : > { %21127 = vst [vmem:[#allocation170_spill] sm:$0xff] %v13369_v14  ;;  %v13377_v27 = vpop.permute.xlu1 %10893 }
  0xb0   : > { %21129 = vst [vmem:[#allocation91_spill] sm:$0xff] %v13377_v27  ;;  %v21138_v27 = vld [vmem:[#allocation96_spill] sm:$0xff] }
  0xb1   : > { %v13381_v29 = vpop.permute.xlu0 %10888 }
  0xb2   : > { %11158 = vrot.lane.b32.xlu0 %v13350_v3, %s12362_s24  ;;  %11173 = vrot.lane.b32.xlu1 %v21128_v4, %s12363_s25  ;;  %21131 = vst [vmem:[#allocation92_spill] sm:$0xff] %v13381_v29  ;;  %v21140_v29 = vld [vmem:[#allocation97_spill] sm:$0xff] }
  0xb6   : > { %11168 = vrot.lane.b32.xlu0 %v21130_v55, %s12363_s25  ;;  %11183 = vrot.lane.b32.xlu1 %v21132_v58, %s12363_s25  ;;  %v13385_v14 = vpop.permute.xlu1 %10903  ;;  %v13389_v3 = vpop.permute.xlu0 %10898  ;;  %v21141_v58 = vld [vmem:[#allocation98_spill] sm:$0xff] }
  0xb7   : > { %21133 = vst [vmem:[#allocation171_spill] sm:$0xff] %v13385_v14  ;;  %21135 = vst [vmem:[#allocation172_spill] sm:$0xff] %v13389_v3  ;;  %v21144_v3 = vld [vmem:[#allocation99_spill] sm:$0xff] }
  0xba   : > { %11178 = vrot.lane.b32.xlu0 %v21134_v15, %s12363_s25  ;;  %11193 = vrot.lane.b32.xlu1 %v21136_v49, %s12363_s25  ;;  %v13393_v4 = vpop.permute.xlu1 %10913  ;;  %v21145_v49 = vld [vmem:[#allocation100_spill] sm:$0xff] }
  0xbb   : > { %21137 = vst [vmem:[#allocation173_spill] sm:$0xff] %v13393_v4 }
  0xbe   : > { %11188 = vrot.lane.b32.xlu0 %v21138_v27, %s12363_s25  ;;  %v13397_v55 = vpop.permute.xlu0 %10908  ;;  %11203 = vrot.lane.b32.xlu1 %v21140_v29, %s12363_s25  ;;  %v21149_v29 = vld [vmem:[#allocation102_spill] sm:$0xff] }
  0xbf   : > { %21139 = vst [vmem:[#allocation174_spill] sm:$0xff] %v13397_v55  ;;  %v21148_v55 = vld [vmem:[#allocation101_spill] sm:$0xff] }
  0xc0   : > { %v13403_v14 = vpop.permute.xlu1 %10923 }
  0xc1   : > { %21142 = vst [vmem:[#allocation175_spill] sm:$0xff] %v13403_v14 }
  0xc2   : > { %11198 = vrot.lane.b32.xlu0 %v21141_v58, %s12363_s25  ;;  %11213 = vrot.lane.b32.xlu1 %v21144_v3, %s12363_s25 }
  0xc4   : > { %v13405_v15 = vpop.permute.xlu0 %10918  ;;  %v13411_v4 = vpop.permute.xlu1 %10933 }
  0xc5   : > { %21143 = vst [vmem:[#allocation176_spill] sm:$0xff] %v13405_v15  ;;  %21146 = vst [vmem:[#allocation177_spill] sm:$0xff] %v13411_v4  ;;  %v731_v15 = vld [vmem:[%s20195_s1] sm:$0xf] }
  0xc6   : > { %11208 = vrot.lane.b32.xlu0 %v21145_v49, %s12363_s25  ;;  %11223 = vrot.lane.b32.xlu1 %v21148_v55, %s12363_s25  ;;  %v13430_v49 = vpack.i.bf16 %v13070_v51, %v13068_v57  ;;  %v13440_v55 = vpack.i.bf16 %v13089_v32, %v13087_v52  ;;  %v21159_v57 = vld [vmem:[#allocation18_spill] sm:$0xff]  ;;  %v21163_v52 = vld [vmem:[#allocation33_spill] sm:$0xff] }
  0xc7   : > { %10466 = vmatprep.subr.msk.mxu0 %vm20916_vm2, %v731_v15  ;;  %v21160_v32 = vld [vmem:[#allocation30_spill] sm:$0xff] }
  0xc8   : > { %v13413_v27 = vpop.permute.xlu0 %10928  ;;  %v13419_v58 = vpop.permute.xlu1 %10943  ;;  %21152 = vst [vmem:[#allocation181_spill] sm:$0xff] %v13430_v49  ;;  %10467 = vmatpush3.msk.msra.mxu0 %vm20916_vm2, %v731_v15  ;;  %21154 = vst [vmem:[#allocation183_spill] sm:$0xff] %v13440_v55 }
  0xc9   : > { %21147 = vst [vmem:[#allocation178_spill] sm:$0xff] %v13413_v27  ;;  %21150 = vst [vmem:[#allocation179_spill] sm:$0xff] %v13419_v58  ;;  %v21228_v27 = vld [vmem:[#allocation69_spill] sm:$0xff] }
  0xca   : > { %11218 = vrot.lane.b32.xlu0 %v21149_v29, %s12363_s25  ;;  %11233 = vrot.lane.b32.xlu1 %v12893_v28, %s12363_s25  ;;  %v21156_v28 = vld [vmem:[#allocation16_spill] sm:$0xff] }
  0xcc   : > { %v13424_v3 = vpop.permute.xlu0 %10938  ;;  %v13436_v29 = vpop.permute.xlu1 %10953 }
  0xcd   : > { %21151 = vst [vmem:[#allocation180_spill] sm:$0xff] %v13424_v3  ;;  %21153 = vst [vmem:[#allocation182_spill] sm:$0xff] %v13436_v29  ;;  %v21155_v3 = vld [vmem:[#allocation14_spill] sm:$0xff]  ;;  %v21192_v29 = vld [vmem:[#allocation49_spill] sm:$0xff] }
  0xce   : > { %11228 = vrot.lane.b32.xlu0 %v12902_v37, %s12363_s25  ;;  %10469 = vmatmul.mubr.msk.f32.vlgmr.msra.gmra.mrb[0].mxu0 %vm20915_vm1, %v21155_v3  ;;  %v21178_v37 = vld [vmem:[#allocation40_spill] sm:$0xff] }
  0xcf   : > { %10471 = vmatprep.mubr.msk.f32.mxu0 %vm20915_vm1, %v21156_v28  ;;  %11243 = vrot.lane.b32.xlu1 %v13430_v49, %s12363_s25 }
  0xd0   : > { %v13446_v51 = vpop.permute.xlu0 %10948  ;;  %v13452_v15 = vpop.permute.xlu1 %10963 }
  0xd1   : > { %21157 = vst [vmem:[#allocation184_spill] sm:$0xff] %v13446_v51  ;;  %21158 = vst [vmem:[#allocation185_spill] sm:$0xff] %v13452_v15 }
  0xd2   : > { %11238 = vrot.lane.b32.xlu0 %v13440_v55, %s12363_s25  ;;  %10472 = vmatmul.mubr.msk.f32.gmra.mrb[2].mxu0 %vm20915_vm1, %v21159_v57  ;;  %v21164_v55 = vld [vmem:[#allocation25_spill] sm:$0xff] }
  0xd3   : > { %10474 = vmatprep.mubr.msk.f32.mxu0 %vm20915_vm1, %v21160_v32  ;;  %11253 = vrot.lane.b32.xlu1 %v12948_v61, %s12364_s28  ;;  %v21167_v32 = vld [vmem:[#allocation26_spill] sm:$0xff] }
  0xd4   : > { %v13458_v3 = vpop.permute.xlu0 %10958  ;;  %v13464_v28 = vpop.permute.xlu1 %10973 }
  0xd5   : > { %21161 = vst [vmem:[#allocation186_spill] sm:$0xff] %v13458_v3  ;;  %21162 = vst [vmem:[#allocation187_spill] sm:$0xff] %v13464_v28 }
  0xd6   : > { %11248 = vrot.lane.b32.xlu0 %v12952_v25, %s12364_s28  ;;  %10475 = vmatmul.mubr.msk.f32.gmra.mrb[4].mxu0 %vm20915_vm1, %v21163_v52  ;;  %v21168_v25 = vld [vmem:[#allocation44_spill] sm:$0xff] }
  0xd7   : > { %10477 = vmatprep.mubr.msk.f32.mxu0 %vm20915_vm1, %v21164_v55  ;;  %11263 = vrot.lane.b32.xlu1 %v12991_v63, %s12364_s28  ;;  %v21171_v55 = vld [vmem:[#allocation45_spill] sm:$0xff] }
  0xd8   : > { %v13470_v57 = vpop.permute.xlu0 %10968  ;;  %v13476_v61 = vpop.permute.xlu1 %10983 }
  0xd9   : > { %21165 = vst [vmem:[#allocation188_spill] sm:$0xff] %v13470_v57  ;;  %21166 = vst [vmem:[#allocation189_spill] sm:$0xff] %v13476_v61  ;;  %v21173_v61 = vld [vmem:[#allocation6_spill] sm:$0xff]  ;;  %v21182_v57 = vld [vmem:[#allocation56_spill] sm:$0xff] }
  0xda   : > { %11258 = vrot.lane.b32.xlu0 %v12998_v1, %s12364_s28  ;;  %10478 = vmatmul.mubr.msk.f32.gmra.mrb[6].mxu0 %vm20915_vm1, %v21167_v32  ;;  %v21172_v1 = vld [vmem:[#allocation5_spill] sm:$0xff]  ;;  %v2783_v32 = vrot.slane %v21173_v61, 2 }
  0xdb   : > { %10480 = vmatprep.mubr.msk.f32.mxu0 %vm20915_vm1, %v21168_v25  ;;  %11273 = vrot.lane.b32.xlu1 %v13002_v43, %s12364_s28  ;;  %v2782_v49 = vrot.slane %v21172_v1, 2  ;;  %v21174_v25 = vld [vmem:[#allocation37_spill] sm:$0xff]  ;;  %v13502_v43 = vunpack.c.l.bf16 %v13150_v20 }
  0xdc   : > { %v13482_v52 = vpop.permute.xlu0 %10978  ;;  %v13488_v63 = vpop.permute.xlu1 %10993 }
  0xdd   : > { %21169 = vst [vmem:[#allocation190_spill] sm:$0xff] %v13482_v52  ;;  %21170 = vst [vmem:[#allocation191_spill] sm:$0xff] %v13488_v63  ;;  %v1277_v3 = vrot.slane %v13502_v43, 4 }
  0xde   : > { %11268 = vrot.lane.b32.xlu0 %v13037_v62, %s12364_s28  ;;  %10481 = vmatmul.mubr.msk.f32.gmra.mrb[8].mxu0 %vm20915_vm1, %v21171_v55  ;;  %21176 = vst [vmem:[#allocation193_spill] sm:$0xff] %v13502_v43  ;;  %v1135_v62 = vrot.slane %v12467_v9, 4  ;;  %v13522_v55 = vunpack.c.l.bf16 %v13162_v36 }
  0xdf   : > { %10483 = vmatprep.mubr.msk.f32.mxu0 %vm20915_vm1, %v21174_v25  ;;  %11283 = vrot.lane.b32.xlu1 %v13046_v60, %s12364_s28  ;;  %v13513_v25 = vsel %vm2761_vm3, %v2782_v49, %v2783_v32  ;;  %v21180_v60 = vrot.slane %v12461_v5, 2  ;;  %v1140_v49 = vrot.slane %v12508_v34, 4  ;;  %v21190_v5 = vrot.slane %v12469_v10, 4 }
  0xe0   : > { %v13497_v52 = vpop.permute.xlu0 %10988  ;;  %v13508_v63 = vpop.permute.xlu1 %11003  ;;  %21179 = vst [vmem:[#allocation195_spill] sm:$0xff] %v13513_v25  ;;  %21181 = vst [vmem:[#allocation196_spill] sm:$0xff] %v13522_v55 }
  0xe1   : > { %21175 = vst [vmem:[#allocation192_spill] sm:$0xff] %v13497_v52  ;;  %21177 = vst [vmem:[#allocation194_spill] sm:$0xff] %v13508_v63  ;;  %v13518_v20 = vsel %vm2761_vm3, %v2783_v32, %v21180_v60  ;;  %v1134_v52 = vrot.slane %v21090_v21, 4  ;;  %v21185_v60 = vld [vmem:[#allocation21_spill] sm:$0xff]  ;;  %v21187_v63 = vld [vmem:[#allocation28_spill] sm:$0xff]  ;;  %v13549_v36 = vsel %vm20916_vm2, %v1135_v62, %v21190_v5  ;;  %v2802_v32 = vrot.slane %v12571_v7, 2 }
  0xe2   : > { %11278 = vrot.lane.b32.xlu0 %v13050_v8, %s12364_s28  ;;  %10484 = vmatmul.mubr.msk.f32.gmra.mrb[10].mxu0 %vm20915_vm1, %v21178_v37  ;;  %v21183_v8 = vld [vmem:[#allocation12_spill] sm:$0xff]  ;;  %v1139_v37 = vrot.slane %v21096_v59, 4  ;;  %v2808_v51 = vrot.slane %v21187_v63, 2  ;;  %21191 = vst [vmem:[#allocation199_spill] sm:$0xff] %v13549_v36  ;;  %v1272_v63 = vrot.slane %v13522_v55, 4 }
  0xe3   : > { %10486 = vmatprep.mubr.msk.f32.mxu0 %vm20915_vm1, %v21182_v57  ;;  %11293 = vrot.lane.b32.xlu1 %v13095_v54, %s12364_s28  ;;  %v21186_v57 = vld [vmem:[#allocation27_spill] sm:$0xff]  ;;  %v21189_v54 = vld [vmem:[#allocation57_spill] sm:$0xff] }
  0xe4   : > { %v13529_v28 = vpop.permute.xlu0 %10998  ;;  %v2807_v15 = vrot.slane %v21186_v57, 2  ;;  %v2803_v57 = vrot.slane %v12579_v16, 2  ;;  %v13567_v5 = vsel %vm20916_vm2, %v1139_v37, %v1140_v49  ;;  %v21199_v16 = vrot.slane %v12521_v40, 2 }
  0xe5   : > { %21184 = vst [vmem:[#allocation197_spill] sm:$0xff] %v13529_v28  ;;  %v13542_v28 = vpop.permute.xlu1 %11013  ;;  %v21200_v37 = vrot.slane %v12542_v53, 2  ;;  %v21215_v53 = vld [vmem:[#allocation47_spill] sm:$0xff] }
  0xe6   : > { %11288 = vrot.lane.b32.xlu0 %v13112_v33, %s12364_s28  ;;  %21188 = vst [vmem:[#allocation198_spill] sm:$0xff] %v13542_v28  ;;  %10487 = vmatmul.mubr.msk.f32.gmra.mrb[12].mxu0 %vm20915_vm1, %v21189_v54  ;;  %v13557_v33 = vsel %vm20916_vm2, %v1134_v52, %v1135_v62  ;;  %v21193_v28 = vrot.slane %v21183_v8, 2  ;;  %v21194_v54 = vrot.slane %v12473_v12, 2  ;;  %v21198_v62 = vrot.slane %v21185_v60, 2 }
  0xe7   : > { %10489 = vmatprep.mubr.msk.f32.mxu0 %vm20915_vm1, %v21192_v29  ;;  %11303 = vrot.lane.b32.xlu1 %v13129_v26, %s12364_s28  ;;  %v21196_v29 = vrot.slane %v21097_v11, 4  ;;  %v21203_v26 = vrot.slane %v13173_v22, 4 }
  0xe8   : > { %v13564_v10 = vsel %vm2761_vm3, %v21194_v54, %v21193_v28  ;;  %v13569_v7 = vpop.permute.xlu0 %11008  ;;  %v13583_v28 = vsel %vm2761_vm3, %v21199_v16, %v21198_v62  ;;  %v21201_v54 = vrot.slane %v21112_v44, 2  ;;  %v21208_v62 = vld [vmem:[#allocation51_spill] sm:$0xff] }
  0xe9   : > { %21195 = vst [vmem:[#allocation200_spill] sm:$0xff] %v13569_v7  ;;  %v13576_v52 = vsel %vm20916_vm2, %v1140_v49, %v21196_v29  ;;  %v1279_v8 = vsel %vm20916_vm2, %v1277_v3, %v21203_v26  ;;  %v13596_v29 = vsel %vm2761_vm3, %v2807_v15, %v2808_v51  ;;  %v21205_v49 = vrot.slane %v12569_v2, 2  ;;  %v13605_v16 = vpop.permute.xlu1 %11023  ;;  %v21211_v26 = vld [vmem:[#allocation68_spill] sm:$0xff] }
  0xea   : > { %21197 = vst [vmem:[#allocation201_spill] sm:$0xff] %v13576_v52  ;;  %v13590_v7 = vsel %vm2761_vm3, %v21201_v54, %v21200_v37  ;;  %21204 = vst [vmem:[#allocation203_spill] sm:$0xff] %v13596_v29  ;;  %11298 = vrot.lane.b32.xlu0 %v13141_v35, %s12364_s28  ;;  %10490 = vmatmul.mubr.msk.f32.gmra.mrb[14].mxu0 %vm20915_vm1, %v21208_v62  ;;  %v13610_v37 = vsel %vm2761_vm3, %v2802_v32, %v2803_v57  ;;  %v2817_v15 = vrot.slane %v12597_v30, 2  ;;  %v21213_v32 = vld [vmem:[#allocation148_spill] sm:$0xff]  ;;  %v21214_v30 = vld [vmem:[#allocation46_spill] sm:$0xff] }
  0xeb   : > { %21202 = vst [vmem:[#allocation202_spill] sm:$0xff] %v13590_v7  ;;  %v13601_v60 = vsel %vm2761_vm3, %v2808_v51, %v21205_v49  ;;  %21207 = vst [vmem:[#allocation205_spill] sm:$0xff] %v13605_v16  ;;  %v21210_v54 = vrot.slane %v13179_v17, 4  ;;  %10492 = vmatprep.mubr.msk.f32.mxu0 %vm20915_vm1, %v21211_v26  ;;  %v2818_v35 = vrot.slane %v12599_v31, 2  ;;  %v2812_v62 = vrot.slane %v12609_v42, 2  ;;  %11313 = vrot.lane.b32.xlu1 %v13159_v46, %s12364_s28  ;;  %v21217_v26 = vld [vmem:[#allocation52_spill] sm:$0xff] }
  0xec   : > { %21206 = vst [vmem:[#allocation204_spill] sm:$0xff] %v13601_v60  ;;  %21209 = vst [vmem:[#allocation206_spill] sm:$0xff] %v13610_v37  ;;  %v13622_v16 = vpop.permute.xlu0 %11018  ;;  %v11322_v3 = vpack.i.bf16 %v21213_v32, %v1279_v8  ;;  %v2813_v2 = vrot.slane %v21214_v30, 2  ;;  %v2828_v58 = vrot.slane %v21217_v26, 2  ;;  %v21218_v31 = vld [vmem:[#allocation54_spill] sm:$0xff]  ;;  %v21219_v49 = vld [vmem:[#allocation55_spill] sm:$0xff] }
  0xed   : > { %v1274_v51 = vsel %vm20916_vm2, %v1272_v63, %v21210_v54  ;;  %21212 = vst [vmem:[#allocation207_spill] sm:$0xff] %v13622_v16  ;;  %v21216_v54 = vld [vmem:[#allocation50_spill] sm:$0xff]  ;;  %v2822_v4 = vrot.slane %v21219_v49, 2  ;;  %v21221_v16 = vld [vmem:[#allocation143_spill] sm:$0xff]  ;;  %v13636_v46 = vpop.permute.xlu1 %11033  ;;  %v21224_v30 = vld [vmem:[#allocation60_spill] sm:$0xff] }
  0xee   : > { %v2827_v11 = vrot.slane %v21216_v54, 2  ;;  %v21220_v42 = vld [vmem:[#allocation58_spill] sm:$0xff]  ;;  %11308 = vrot.lane.b32.xlu0 %v21221_v16, %s12364_s28  ;;  %21222 = vst [vmem:[#allocation143_spill] sm:$0xff] %v13636_v46  ;;  %v21226_v54 = vld [vmem:[#allocation63_spill] sm:$0xff]  ;;  %v21227_v26 = vld [vmem:[#allocation65_spill] sm:$0xff]  ;;  %10493 = vmatmul.mubr.msk.f32.gmra.mrb[16].mxu0 %vm20915_vm1, %v21228_v27  ;;  %v13651_v16 = vsel %vm2761_vm3, %v2817_v15, %v2818_v35  ;;  %v13662_v47 = vsel %vm2761_vm3, %v2812_v62, %v2813_v2 }
  0xef   : > { %v2823_v14 = vrot.slane %v21220_v42, 2  ;;  %v21223_v8 = vld [vmem:[#allocation150_spill] sm:$0xff]  ;;  %v2838_v60 = vrot.slane %v21226_v54, 2  ;;  %v21229_v42 = vrot.slane %v12590_v24, 2  ;;  %21231 = vst [vmem:[#allocation209_spill] sm:$0xff] %v13651_v16  ;;  %11323 = vrot.lane.b32.xlu1 %v11322_v3, %s12364_s28  ;;  %21235 = vst [vmem:[#allocation212_spill] sm:$0xff] %v13662_v47 }
  0xf0   : > { %v11317_v32 = vpack.i.bf16 %v21223_v8, %v1274_v51  ;;  %v21225_v63 = vld [vmem:[#allocation62_spill] sm:$0xff]  ;;  %v21232_v51 = vrot.slane %v12607_v38, 2  ;;  %v13658_v8 = vpop.permute.xlu0 %11028  ;;  %v21236_v54 = vrot.slane %v21215_v53, 2  ;;  %v21240_v46 = vld [vmem:[#allocation61_spill] sm:$0xff]  ;;  %v21242_v3 = vrot.slane %v21218_v31, 2  ;;  %v21404_v38 = vld [vmem:[#allocation136_spill] sm:$0xff] }
  0xf1   : > { %v2837_v29 = vrot.slane %v21225_v63, 2  ;;  %v13648_v49 = vsel %vm2761_vm3, %v2803_v57, %v21229_v42  ;;  %21234 = vst [vmem:[#allocation211_spill] sm:$0xff] %v13658_v8  ;;  %v21238_v57 = vld [vmem:[#allocation66_spill] sm:$0xff]  ;;  %10495 = vmatprep.mubr.msk.f32.mxu0 %vm20915_vm1, %v21240_v46  ;;  %v21252_v8 = vld [vmem:[#allocation64_spill] sm:$0xff] }
  0xf2   : > { %21230 = vst [vmem:[#allocation208_spill] sm:$0xff] %v13648_v49  ;;  %v13656_v37 = vsel %vm2761_vm3, %v2818_v35, %v21232_v51  ;;  %v13667_v42 = vsel %vm2761_vm3, %v2813_v2, %v21236_v54  ;;  %v2832_v15 = vrot.slane %v21238_v57, 2  ;;  %v21239_v63 = vld [vmem:[#allocation70_spill] sm:$0xff]  ;;  %v13674_v35 = vsel %vm2761_vm3, %v2827_v11, %v2828_v58  ;;  %v21244_v51 = vld [vmem:[#allocation71_spill] sm:$0xff]  ;;  %11318 = vrot.lane.b32.xlu0 %v11317_v32, %s12364_s28  ;;  %v13683_v2 = vpop.permute.xlu1 %11043 }
  0xf3   : > { %21233 = vst [vmem:[#allocation210_spill] sm:$0xff] %v13656_v37  ;;  %21237 = vst [vmem:[#allocation213_spill] sm:$0xff] %v13667_v42  ;;  %v2833_v27 = vrot.slane %v21239_v63, 2  ;;  %v13679_v62 = vsel %vm2761_vm3, %v2828_v58, %v21242_v3  ;;  %v13686_v54 = vsel %vm2761_vm3, %v2822_v4, %v2823_v14  ;;  %v21247_v63 = vrot.slane %v21224_v30, 2  ;;  %10496 = vmatmul.mubr.msk.f32.gmra.mrb[18].mxu0 %vm20915_vm1, %v21252_v8  ;;  %v21254_v4 = vld [vmem:[#allocation29_spill] sm:$0xff]  ;;  %v21400_v53 = vld [vmem:[#allocation178_spill] sm:$0xff] }
  0xf4   : > { %21241 = vst [vmem:[#allocation214_spill] sm:$0xff] %v13674_v35  ;;  %21243 = vst [vmem:[#allocation215_spill] sm:$0xff] %v13679_v62  ;;  %v13694_v11 = vsel %vm2761_vm3, %v2837_v29, %v2838_v60  ;;  %v21250_v58 = vrot.slane %v21227_v26, 2  ;;  %v13703_v32 = vpop.permute.xlu0 %11038  ;;  %11333 = vrot.lane.b32.xlu1 %v21254_v4, %s12365_s29  ;;  %v21255_v29 = vld [vmem:[#allocation145_spill] sm:$0xff]  ;;  %v1283_v8 = vrot.slane %v13179_v17, 6  ;;  %v21259_v4 = vrot.slane %v21244_v51, 2 }
  0xf5   : > { %21245 = vst [vmem:[#allocation216_spill] sm:$0xff] %v13683_v2  ;;  %21246 = vst [vmem:[#allocation217_spill] sm:$0xff] %v13686_v54  ;;  %v13691_v46 = vsel %vm2761_vm3, %v2823_v14, %v21247_v63  ;;  %v1287_v14 = vrot.slane %v13502_v43, 6  ;;  %v1288_v63 = vrot.slane %v13173_v22, 6  ;;  %v1290_v57 = vrot.slane %v21255_v29, 6 }
  0xf6   : > { %21248 = vst [vmem:[#allocation218_spill] sm:$0xff] %v13691_v46  ;;  %21249 = vst [vmem:[#allocation219_spill] sm:$0xff] %v13694_v11  ;;  %v13699_v3 = vsel %vm2761_vm3, %v2838_v60, %v21250_v58  ;;  %v21256_v11 = vld [vmem:[#allocation80_spill] sm:$0xff]  ;;  %v13713_v60 = vsel %vm2761_vm3, %v2832_v15, %v2833_v27  ;;  %v1282_v58 = vrot.slane %v13522_v55, 6  ;;  %v13721_v43 = vsel %vm2761_vm3, %v2833_v27, %v21259_v4  ;;  %v13725_v26 = vpop.permute.xlu1 %11053  ;;  %v21265_v55 = vld [vmem:[#allocation43_spill] sm:$0xff] }
  0xf7   : > { %21251 = vst [vmem:[#allocation220_spill] sm:$0xff] %v13699_v3  ;;  %21253 = vst [vmem:[#allocation221_spill] sm:$0xff] %v13703_v32  ;;  %10498 = vmatprep.mubr.msk.f32.mxu0 %vm20915_vm1, %v21256_v11  ;;  %v21258_v32 = vld [vmem:[#allocation147_spill] sm:$0xff]  ;;  %v21263_v11 = vld [vmem:[#allocation81_spill] sm:$0xff]  ;;  %v13737_v51 = vsel %vm20914_vm0, %v1288_v63, %v1290_v57 }
  0xf8   : > { %21257 = vst [vmem:[#allocation29_spill] sm:$0xff] %v13713_v60  ;;  %v1285_v2 = vrot.slane %v21258_v32, 6  ;;  %21260 = vst [vmem:[#allocation222_spill] sm:$0xff] %v13721_v43  ;;  %v21261_v3 = vld [vmem:[#allocation35_spill] sm:$0xff]  ;;  %10499 = vmatmul.mubr.msk.f32.gmra.mrb[20].mxu0 %vm20915_vm1, %v21263_v11  ;;  %v13729_v15 = vpop.permute.xlu0 %11048  ;;  %11343 = vrot.lane.b32.xlu1 %v21265_v55, %s12365_s29  ;;  %v13734_v60 = vsel %vm20914_vm0, %v1287_v14, %v1288_v63  ;;  %v21266_v27 = vld [vmem:[#allocation73_spill] sm:$0xff] }
  0xf9   : > { %11328 = vrot.lane.b32.xlu0 %v21261_v3, %s12365_s29  ;;  %21262 = vst [vmem:[#allocation35_spill] sm:$0xff] %v13725_v26  ;;  %21264 = vst [vmem:[#allocation223_spill] sm:$0xff] %v13729_v15  ;;  %10501 = vmatprep.mubr.msk.f32.mxu0 %vm20915_vm1, %v21266_v27  ;;  %v21267_v3 = vld [vmem:[#allocation8_spill] sm:$0xff]  ;;  %v13743_v26 = vsel %vm20914_vm0, %v1282_v58, %v1283_v8  ;;  %v21270_v63 = vld [vmem:[#allocation75_spill] sm:$0xff] }
  0xfa   : > { %v10861_v4 = vunpack.i.h.bf16 %v21267_v3  ;;  %v13746_v11 = vsel %vm20914_vm0, %v1283_v8, %v1285_v2  ;;  %v10860_v15 = vunpack.i.l.bf16 %v21267_v3  ;;  %v21268_v55 = vld [vmem:[#allocation48_spill] sm:$0xff]  ;;  %v13751_v14 = vpop.permute.xlu1 %11063  ;;  %v21272_v58 = vld [vmem:[#allocation53_spill] sm:$0xff]  ;;  %v21283_v43 = vld [vmem:[#allocation15_spill] sm:$0xff] }
  0xfb   : > { %21269 = vst [vmem:[#allocation43_spill] sm:$0xff] %v13751_v14  ;;  %v21273_v2 = vld [vmem:[#allocation88_spill] sm:$0xff] }
  0xfc   : > { %10502 = vmatmul.mubr.msk.f32.gmra.mrb[22].mxu0 %vm20915_vm1, %v21270_v63  ;;  %v13757_v27 = vpop.permute.xlu0 %11058  ;;  %11353 = vrot.lane.b32.xlu1 %v21272_v58, %s12365_s29  ;;  %v21274_v3 = vld [vmem:[#allocation108_spill] sm:$0xff]  ;;  %v13772_v63 = vsel %vm20915_vm1, %v13518_v20, %v10861_v4  ;;  %v21278_v58 = vld [vmem:[#allocation107_spill] sm:$0xff] }
  0xfd   : > { %11338 = vrot.lane.b32.xlu0 %v21268_v55, %s12365_s29  ;;  %21271 = vst [vmem:[#allocation8_spill] sm:$0xff] %v13757_v27  ;;  %10504 = vmatprep.mubr.msk.f32.mxu0 %vm20915_vm1, %v21273_v2  ;;  %v13767_v55 = vsel %vm20915_vm1, %v21274_v3, %v10861_v4  ;;  %v21275_v14 = vld [vmem:[#allocation156_spill] sm:$0xff]  ;;  %21276 = vst [vmem:[#allocation48_spill] sm:$0xff] %v13772_v63  ;;  %v13776_v27 = vsel %vm20915_vm1, %v21173_v61, %v10861_v4  ;;  %v21280_v3 = vld [vmem:[#allocation59_spill] sm:$0xff] }
  0xfe   : > { %v10866_v57 = vunpack.i.h.bf16 %v21275_v14  ;;  %21277 = vst [vmem:[#allocation53_spill] sm:$0xff] %v13776_v27  ;;  %v13780_v8 = vsel %vm20915_vm1, %v21278_v58, %v10860_v15  ;;  %v13784_v2 = vsel %vm20915_vm1, %v13513_v25, %v10860_v15  ;;  %v13788_v14 = vpop.permute.xlu1 %11073  ;;  %v13792_v63 = vsel %vm20915_vm1, %v21172_v1, %v10860_v15  ;;  %v21285_v27 = vld [vmem:[#allocation153_spill] sm:$0xff]  ;;  %v21334_v1 = vld [vmem:[#allocation203_spill] sm:$0xff] }
  0xff   : > { %21279 = vst [vmem:[#allocation156_spill] sm:$0xff] %v13784_v2  ;;  %21281 = vst [vmem:[#allocation107_spill] sm:$0xff] %v13788_v14  ;;  %v13797_v4 = vsel %vm20915_vm1, %v13549_v36, %v21283_v43  ;;  %v13802_v58 = vsel %vm20915_vm1, %v12467_v9, %v21283_v43  ;;  %v21286_v2 = vld [vmem:[#allocation89_spill] sm:$0xff]  ;;  %v13814_v15 = vsel %vm20915_vm1, %v21090_v21, %v21285_v27  ;;  %v21289_v36 = vld [vmem:[#allocation67_spill] sm:$0xff] }
 0x100   : > { %21282 = vst [vmem:[#allocation59_spill] sm:$0xff] %v13792_v63  ;;  %21284 = vst [vmem:[#allocation15_spill] sm:$0xff] %v13802_v58  ;;  %10505 = vmatmul.mubr.msk.f32.gmra.mrb[24].mxu0 %vm20915_vm1, %v21286_v2  ;;  %v13816_v63 = vpop.permute.xlu0 %11068  ;;  %11363 = vrot.lane.b32.xlu1 %v21289_v36, %s12365_s29  ;;  %v21290_v9 = vld [vmem:[#allocation85_spill] sm:$0xff]  ;;  %v21291_v43 = vld [vmem:[#allocation104_spill] sm:$0xff]  ;;  %v13828_v58 = vsel %vm20915_vm1, %v13564_v10, %v10866_v57  ;;  %v10876_v2 = vunpack.i.h.bf16 %v13303_v19  ;;  %v13833_v21 = vsel %vm20915_vm1, %v12473_v12, %v10866_v57 }
 0x101   : > { %11348 = vrot.lane.b32.xlu0 %v21280_v3, %s12365_s29  ;;  %v13807_v3 = vsel %vm20915_vm1, %v13557_v33, %v21285_v27  ;;  %21287 = vst [vmem:[#allocation153_spill] sm:$0xff] %v13814_v15  ;;  %21288 = vst [vmem:[#allocation224_spill] sm:$0xff] %v13816_v63  ;;  %10507 = vmatprep.mubr.msk.f32.mxu0 %vm20915_vm1, %v21290_v9  ;;  %v13824_v33 = vsel %vm20915_vm1, %v21291_v43, %v10866_v57  ;;  %v21294_v27 = vld [vmem:[#allocation103_spill] sm:$0xff]  ;;  %v21295_v15 = vld [vmem:[#allocation10_spill] sm:$0xff] }
 0x102   : > { %21292 = vst [vmem:[#allocation67_spill] sm:$0xff] %v13828_v58  ;;  %21293 = vst [vmem:[#allocation225_spill] sm:$0xff] %v13833_v21  ;;  %v13838_v36 = vsel %vm20915_vm1, %v21294_v27, %v13282_v23  ;;  %v13843_v9 = vsel %vm20915_vm1, %v21295_v15, %v13282_v23  ;;  %v13848_v58 = vsel %vm20915_vm1, %v13576_v52, %v13297_v13  ;;  %v21297_v19 = vld [vmem:[#allocation72_spill] sm:$0xff]  ;;  %v13852_v57 = vpop.permute.xlu1 %11083  ;;  %v2323_v27 = vld [vmem:[%s20196_s2] sm:$0xff]  ;;  %v10871_v52 = vunpack.i.h.bf16 %v13333_v6 }
 0x103   : > { %21296 = vst [vmem:[#allocation103_spill] sm:$0xff] %v13843_v9  ;;  %21298 = vst [vmem:[#allocation72_spill] sm:$0xff] %v13852_v57  ;;  %v2324_v21 = vld [vmem:[%s20196_s2 + $0x8] sm:$0xff]  ;;  %v13863_v23 = vsel %vm20915_vm1, %v12508_v34, %v13297_v13  ;;  %v13868_v9 = vsel %vm20915_vm1, %v13567_v5, %v13299_v45  ;;  %v21303_v34 = vld [vmem:[#allocation77_spill] sm:$0xff] }
 0x104   : > { %21299 = vst [vmem:[#allocation226_spill] sm:$0xff] %v13863_v23  ;;  %v21301_v43 = vld [vmem:[#allocation86_spill] sm:$0xff]  ;;  %v13878_v12 = vpop.permute.xlu0 %11078  ;;  %11373 = vrot.lane.b32.xlu1 %v21303_v34, %s12365_s29  ;;  %v10750_v13 = vpack.c.bf16 %v2324_v21, %v2323_v27  ;;  %v21307_v6 = vld [vmem:[#allocation109_spill] sm:$0xff]  ;;  %v13904_v21 = vsel %vm20915_vm1, %v12519_v39, %v13343_v0  ;;  %v13907_v27 = vunpack.i.h.bf16 %v13359_v41  ;;  %v21346_v14 = vld [vmem:[#allocation164_spill] sm:$0xff] }
 0x105   : > { %11358 = vrot.lane.b32.xlu0 %v21297_v19, %s12365_s29  ;;  %v13873_v19 = vsel %vm20915_vm1, %v21096_v59, %v13299_v45  ;;  %10508 = vmatmul.mubr.msk.f32.gmra.mrb[26].mxu0 %vm20915_vm1, %v21301_v43  ;;  %21302 = vst [vmem:[#allocation228_spill] sm:$0xff] %v13878_v12  ;;  %v21304_v5 = vld [vmem:[#allocation110_spill] sm:$0xff]  ;;  %v13890_v59 = vsel %vm20915_vm1, %v13583_v28, %v10876_v2  ;;  %21308 = vst [vmem:[#allocation109_spill] sm:$0xff] %v13904_v21  ;;  %v21312_v21 = vld [vmem:[#allocation112_spill] sm:$0xff] }
 0x106   : > { %21300 = vst [vmem:[#allocation227_spill] sm:$0xff] %v13873_v19  ;;  %10510 = vmatprep.mubr.msk.f32.mxu0 %vm20915_vm1, %v13308_v18  ;;  %v13886_v23 = vsel %vm20915_vm1, %v21304_v5, %v10876_v2  ;;  %21305 = vst [vmem:[#allocation77_spill] sm:$0xff] %v13890_v59  ;;  %v13894_v45 = vsel %vm20915_vm1, %v12521_v40, %v10876_v2  ;;  %v13899_v34 = vsel %vm20915_vm1, %v21307_v6, %v13343_v0  ;;  %v13914_v2 = vpop.permute.xlu1 %11093  ;;  %v2325_v6 = vld [vmem:[%s20196_s2 + $0x10] sm:$0xff]  ;;  %v2326_v0 = vld [vmem:[%s20196_s2 + $0x18] sm:$0xff] }
 0x107   : > { %21306 = vst [vmem:[#allocation229_spill] sm:$0xff] %v13894_v45  ;;  %21309 = vst [vmem:[#allocation230_spill] sm:$0xff] %v13907_v27  ;;  %v13910_v19 = vunpack.i.l.bf16 %v13359_v41  ;;  %v10225_v45 = vld [vmem:[%s12452_s20 + $0x30] sm:$0xff]   ;;  %10751 = vmatprep.subr.bf16.mxu0 %v10750_v13  ;;  %v13925_v59 = vsel %vm20915_vm1, %v21312_v21, %v10871_v52  ;;  %v13929_v41 = vsel %vm20915_vm1, %v13590_v7, %v10871_v52  ;;  %v13936_v18 = vunpack.i.h.bf16 %v13373_v48  ;;  %v21317_v21 = vld [vmem:[#allocation22_spill] sm:$0xff] }
 0x108   : > { %21311 = vst [vmem:[#allocation232_spill] sm:$0xff] %v13914_v2  ;;  %21313 = vst [vmem:[#allocation233_spill] sm:$0xff] %v13929_v41  ;;  %10753 = vmatpush3.bf16.msra.mxu0 %v10750_v13  ;;  %10806 = vmatprep.subr.bf16.mxu1 %v10750_v13  ;;  %v21316_v43 = vld [vmem:[#allocation111_spill] sm:$0xff]  ;;  %v13946_v40 = vsel %vm20915_vm1, %v21317_v21, %v13346_v56  ;;  %v13949_v41 = vunpack.i.l.bf16 %v13373_v48  ;;  %v21322_v39 = vld [vmem:[#allocation161_spill] sm:$0xff]  ;;  %v13963_v48 = vunpack.c.h.bf16 %v10225_v45 }
 0x109   : > { %21310 = vst [vmem:[#allocation231_spill] sm:$0xff] %v13910_v19  ;;  %11368 = vrot.lane.b32.xlu0 %v21111_v50, %s12365_s29  ;;  %v13933_v50 = vsel %vm20915_vm1, %v21112_v44, %v10871_v52  ;;  %21315 = vst [vmem:[#allocation235_spill] sm:$0xff] %v13936_v18  ;;  %v13941_v5 = vsel %vm20915_vm1, %v21316_v43, %v13346_v56  ;;  %v13951_v52 = vpop.permute.xlu0 %11088  ;;  %10511 = vmatmul.mubr.msk.f32.gmra.mrb[28].mxu0 %vm20915_vm1, %v21322_v39  ;;  %v21325_v21 = vld [vmem:[#allocation159_spill] sm:$0xff]  ;;  %v21329_v56 = vld [vmem:[#allocation113_spill] sm:$0xff] }
 0x10a   : > { %21314 = vst [vmem:[#allocation234_spill] sm:$0xff] %v13933_v50  ;;  %21318 = vst [vmem:[#allocation111_spill] sm:$0xff] %v13946_v40  ;;  %v21321_v50 = vld [vmem:[#allocation87_spill] sm:$0xff]  ;;  %v10754_v43 = vpack.c.bf16 %v2326_v0, %v2325_v6  ;;  %v13961_v40 = vunpack.c.l.bf16 %v10225_v45  ;;  %10513 = vmatprep.mubr.msk.f32.mxu0 %vm20915_vm1, %v21325_v21  ;;  %10809 = vmatpush3.bf16.msra.mxu1 %v10750_v13  ;;  %v21327_v6 = vld [vmem:[#allocation204_spill] sm:$0xff]  ;;  %v13980_v44 = vsel %vm20915_vm1, %v21329_v56, %v13910_v19  ;;  %v13987_v21 = vpop.permute.xlu1 %11103 }
 0x10b   : > { %21319 = vst [vmem:[#allocation236_spill] sm:$0xff] %v13949_v41  ;;  %21320 = vst [vmem:[#allocation237_spill] sm:$0xff] %v13951_v52  ;;  %11383 = vrot.lane.b32.xlu1 %v21321_v50, %s12365_s29  ;;  %v21326_v50 = vld [vmem:[#allocation114_spill] sm:$0xff]  ;;  %v13975_v0 = vsel %vm20915_vm1, %v21327_v6, %v13907_v27  ;;  %v21330_v45 = vld [vmem:[#allocation91_spill] sm:$0xff] }
 0x10c   : > { %21323 = vst [vmem:[#allocation87_spill] sm:$0xff] %v13961_v40  ;;  %21324 = vst [vmem:[#allocation238_spill] sm:$0xff] %v13963_v48  ;;  %v13970_v15 = vsel %vm20915_vm1, %v21326_v50, %v13907_v27  ;;  %v13983_v39 = vunpack.i.h.bf16 %v21330_v45  ;;  %v21332_v13 = vld [vmem:[#allocation90_spill] sm:$0xff]  ;;  %v10224_v61 = vld [vmem:[%s12452_s20 + $0x20] sm:$0xff]   ;;  %10755 = vmatprep.subr.bf16.mxu0 %v10754_v43  ;;  %v13994_v27 = vsel %vm20915_vm1, %v21334_v1, %v13910_v19  ;;  %v14002_v52 = vunpack.i.l.bf16 %v21330_v45 }
 0x10d   : > { %21328 = vst [vmem:[#allocation239_spill] sm:$0xff] %v13975_v0  ;;  %11378 = vrot.lane.b32.xlu0 %v21332_v13, %s12365_s29  ;;  %21333 = vst [vmem:[#allocation91_spill] sm:$0xff] %v13987_v21  ;;  %v359_v50 = vld [vmem:[%s12452_s20 + $0x28] ss:$16 sps:$4 sm:$0xff]   ;;  %10757 = vmatpush3.bf16.msra.mxu0 %v10754_v43  ;;  %v2327_v21 = vld [vmem:[%s20196_s2 + $0x20] sm:$0xf]  ;;  %v14013_v19 = vsel %vm20915_vm1, %v13648_v49, %v13936_v18  ;;  %v14028_v63 = vpop.permute.xlu0 %11098  ;;  %v14038_v25 = vunpack.c.l.bf16 %v10224_v61  ;;  %v10931_v49 = vunpack.i.h.bf16 %v21400_v53 }
 0x10e   : > { %21331 = vst [vmem:[#allocation113_spill] sm:$0xff] %v13983_v39  ;;  %21335 = vst [vmem:[#allocation90_spill] sm:$0xff] %v13994_v27  ;;  %v21336_v0 = vld [vmem:[#allocation116_spill] sm:$0xff]  ;;  %10807 = vmatprep.subr.bf16.mxu1 %v10754_v43  ;;  %v21341_v27 = vld [vmem:[#allocation115_spill] sm:$0xff]  ;;  %v2880_v1 = vrot.slane %v13963_v48, 6  ;;  %10524 = vmatprep.subr.msk.mxu0 %vm20916_vm2, %v2327_v21 }
 0x10f   : > { %v13999_v56 = vsel %vm20915_vm1, %v21336_v0, %v13936_v18  ;;  %21337 = vst [vmem:[#allocation240_spill] sm:$0xff] %v14002_v52  ;;  %v21338_v2 = vld [vmem:[#allocation92_spill] sm:$0xff]  ;;  %21340 = vst [vmem:[#allocation241_spill] sm:$0xff] %v14013_v19  ;;  %v14018_v0 = vsel %vm20915_vm1, %v21341_v27, %v13949_v41  ;;  %v21342_v45 = vld [vmem:[#allocation206_spill] sm:$0xff]  ;;  %11393 = vrot.lane.b32.xlu1 %v21346_v14, %s12365_s29  ;;  %v14034_v19 = vunpack.c.h.bf16 %v359_v50  ;;  %v2879_v27 = vrot.slane %v13961_v40, 6 }
 0x110   : > { %v14005_v13 = vunpack.i.h.bf16 %v21338_v2  ;;  %v14023_v12 = vsel %vm20915_vm1, %v21342_v45, %v13949_v41  ;;  %v14026_v57 = vunpack.i.l.bf16 %v21338_v2  ;;  %21345 = vst [vmem:[#allocation243_spill] sm:$0xff] %v14028_v63  ;;  %v21347_v18 = vld [vmem:[#allocation160_spill] sm:$0xff]  ;;  %21349 = vst [vmem:[#allocation244_spill] sm:$0xff] %v14038_v25  ;;  %10810 = vmatpush3.bf16.msra.mxu1 %v10754_v43  ;;  %v21350_v2 = vld [vmem:[#allocation118_spill] sm:$0xff]  ;;  %v14049_v14 = vsel %vm20915_vm1, %v13656_v37, %v13983_v39  ;;  %v14059_v43 = vpop.permute.xlu1 %11113 }
 0x111   : > { %21343 = vst [vmem:[#allocation115_spill] sm:$0xff] %v14023_v12  ;;  %10514 = vmatmul.mubr.msk.f32.gmra.mrb[30].mxu0 %vm20915_vm1, %v21347_v18  ;;  %21348 = vst [vmem:[#allocation164_spill] sm:$0xff] %v14034_v19  ;;  %v14044_v41 = vsel %vm20915_vm1, %v21350_v2, %v13983_v39  ;;  %v21352_v12 = vld [vmem:[#allocation171_spill] sm:$0xff]  ;;  %10808 = vmatprep.subr.msk.mxu1 %vm20916_vm2, %v2327_v21  ;;  %v21357_v2 = vld [vmem:[#allocation117_spill] sm:$0xff]  ;;  %v14070_v39 = vsel %vm20915_vm1, %v13651_v16, %v14002_v52  ;;  %v14099_v16 = vpop.permute.xlu0 %11108 }
 0x112   : > { %21339 = vst [vmem:[#allocation92_spill] sm:$0xff] %v14005_v13  ;;  %21344 = vst [vmem:[#allocation242_spill] sm:$0xff] %v14026_v57  ;;  %v14052_v18 = vunpack.i.h.bf16 %v21352_v12  ;;  %v14055_v40 = vunpack.i.l.bf16 %v21352_v12  ;;  %v21355_v63 = vld [vmem:[#allocation167_spill] sm:$0xff]  ;;  %v14065_v45 = vsel %vm20915_vm1, %v21357_v2, %v14002_v52  ;;  %v21359_v12 = vld [vmem:[#allocation120_spill] sm:$0xff]  ;;  %10525 = vmatpush3.msk.msra.mxu0 %vm20916_vm2, %v2327_v21  ;;  %v14084_v2 = vsel %vm20915_vm1, %v13667_v42, %v14005_v13 }
 0x113   : > { %21351 = vst [vmem:[#allocation245_spill] sm:$0xff] %v14049_v14  ;;  %11388 = vrot.lane.b32.xlu0 %v21355_v63, %s12365_s29  ;;  %21356 = vst [vmem:[#allocation167_spill] sm:$0xff] %v14059_v43  ;;  %v14075_v14 = vsel %vm20915_vm1, %v21359_v12, %v14005_v13  ;;  %v21360_v63 = vld [vmem:[#allocation172_spill] sm:$0xff]  ;;  %v21363_v43 = vld [vmem:[#allocation119_spill] sm:$0xff]  ;;  %v21367_v13 = vpack.i.bf16 %v13737_v51, %v13734_v60  ;;  %v14108_v31 = vsel %vm20914_vm0, %v2879_v27, %v2880_v1 }
 0x114   : > { %21353 = vst [vmem:[#allocation171_spill] sm:$0xff] %v14052_v18  ;;  %21354 = vst [vmem:[#allocation246_spill] sm:$0xff] %v14055_v40  ;;  %v14078_v30 = vunpack.i.h.bf16 %v21360_v63  ;;  %v14089_v52 = vsel %vm20915_vm1, %v21363_v43, %v14026_v57  ;;  %v14097_v12 = vunpack.i.l.bf16 %v21360_v63  ;;  %10811 = vmatpush3.msk.msra.mxu1 %vm20916_vm2, %v2327_v21  ;;  %v21369_v63 = vld [vmem:[#allocation122_spill] sm:$0xff]  ;;  %v14120_v51 = vsel %vm20915_vm1, %v13679_v62, %v14052_v18  ;;  %v21371_v60 = vld [vmem:[#allocation121_spill] sm:$0xff]  ;;  %v14136_v43 = vpop.permute.xlu1 %11123 }
 0x115   : > { %21358 = vst [vmem:[#allocation117_spill] sm:$0xff] %v14070_v39  ;;  %21362 = vst [vmem:[#allocation247_spill] sm:$0xff] %v14084_v2  ;;  %v14094_v39 = vsel %vm20915_vm1, %v13662_v47, %v14026_v57  ;;  %11403 = vrot.lane.b32.xlu1 %v21367_v13, %s12365_s29  ;;  %v21368_v2 = vld [vmem:[#allocation173_spill] sm:$0xff]  ;;  %v2882_v57 = vrot.slane %v14034_v19, 6  ;;  %v14125_v13 = vsel %vm20915_vm1, %v21371_v60, %v14055_v40  ;;  %v21375_v42 = vld [vmem:[#allocation124_spill] sm:$0xff] }
 0x116   : > { %21361 = vst [vmem:[#allocation172_spill] sm:$0xff] %v14078_v30  ;;  %21364 = vst [vmem:[#allocation119_spill] sm:$0xff] %v14094_v39  ;;  %v14115_v39 = vsel %vm20915_vm1, %v21369_v63, %v14052_v18  ;;  %v14130_v27 = vsel %vm20915_vm1, %v13674_v35, %v14055_v40  ;;  %v21373_v21 = vpack.i.bf16 %v13746_v11, %v13743_v26  ;;  %v14144_v63 = vunpack.c.h.bf16 %v10224_v61  ;;  %v14149_v40 = vld [vmem:[%s12452_s20 + $0x3c] sm:$0x3]  ;;  %v21381_v11 = vld [vmem:[#allocation123_spill] sm:$0xff] }
 0x117   : > { %21365 = vst [vmem:[#allocation248_spill] sm:$0xff] %v14097_v12  ;;  %21366 = vst [vmem:[#allocation249_spill] sm:$0xff] %v14099_v16  ;;  %v14141_v18 = vsel %vm20915_vm1, %v21375_v42, %v14078_v30  ;;  %v14146_v16 = vunpack.c.l.bf16 %v359_v50  ;;  %v14154_v26 = vsel %vm20915_vm1, %v13691_v46, %v14078_v30  ;;  %v14164_v60 = vsel %vm20915_vm1, %v13686_v54, %v14097_v12  ;;  %v14167_v50 = vpop.permute.xlu0 %11118  ;;  %v21390_v54 = vld [vmem:[#allocation125_spill] sm:$0xff] }
 0x118   : > { %21370 = vst [vmem:[#allocation250_spill] sm:$0xff] %v14120_v51  ;;  %21372 = vst [vmem:[#allocation121_spill] sm:$0xff] %v14130_v27  ;;  %11398 = vrot.lane.b32.xlu0 %v21373_v21, %s12365_s29  ;;  %v21376_v51 = vld [vmem:[#allocation174_spill] sm:$0xff]  ;;  %v14159_v21 = vsel %vm20915_vm1, %v21381_v11, %v14097_v12  ;;  %v21384_v27 = vld [vmem:[#allocation93_spill] sm:$0xff]  ;;  %v21385_v30 = vunpack.i.h.bf16 %v21368_v2  ;;  %v21389_v61 = vunpack.i.l.bf16 %v21368_v2  ;;  %v14188_v47 = vpop.permute.xlu1 %11133 }
 0x119   : > { %21374 = vst [vmem:[#allocation251_spill] sm:$0xff] %v14136_v43  ;;  %21377 = vst [vmem:[#allocation252_spill] sm:$0xff] %v14144_v63  ;;  %11413 = vrot.lane.b32.xlu1 %v21384_v27, %s12366_s26  ;;  %v21387_v11 = vld [vmem:[#allocation175_spill] sm:$0xff]  ;;  %v21388_v12 = vld [vmem:[#allocation176_spill] sm:$0xff]  ;;  %v21393_v46 = vunpack.i.h.bf16 %v21376_v51 }
 0x11a   : > { %21378 = vst [vmem:[#allocation253_spill] sm:$0xff] %v14146_v16  ;;  %21379 = vst [vmem:[#allocation254_spill] sm:$0xff] %v14149_v40  ;;  %v10926_v43 = vunpack.i.h.bf16 %v21387_v11  ;;  %v10925_v35 = vunpack.i.l.bf16 %v21387_v11  ;;  %v21391_v27 = vld [vmem:[#allocation94_spill] sm:$0xff]  ;;  %v21394_v2 = vld [vmem:[#allocation131_spill] sm:$0xff] }
 0x11b   : > { %21380 = vst [vmem:[#allocation255_spill] sm:$0xff] %v14154_v26  ;;  %21382 = vst [vmem:[#allocation123_spill] sm:$0xff] %v14164_v60  ;;  %v21386_v26 = vld [vmem:[#allocation126_spill] sm:$0xff]  ;;  %v10921_v60 = vunpack.i.h.bf16 %v21388_v12  ;;  %v14199_v62 = vsel %vm20915_vm1, %v21394_v2, %v21393_v46  ;;  %v10930_v46 = vunpack.i.l.bf16 %v21400_v53  ;;  %v14213_v2 = vpop.permute.xlu0 %11128 }
 0x11c   : > { %21383 = vst [vmem:[#allocation256_spill] sm:$0xff] %v14167_v50  ;;  %v14175_v42 = vsel %vm20915_vm1, %v21386_v26, %v21385_v30  ;;  %v14184_v50 = vsel %vm20915_vm1, %v21390_v54, %v21389_v61  ;;  %11408 = vrot.lane.b32.xlu0 %v21391_v27, %s12366_s26  ;;  %21392 = vst [vmem:[#allocation93_spill] sm:$0xff] %v14188_v47  ;;  %v14191_v30 = vsel %vm20914_vm0, %v2880_v1, %v2882_v57  ;;  %v21397_v1 = vld [vmem:[#allocation130_spill] sm:$0xff]  ;;  %v14237_v6 = vpop.permute.xlu1 %11143 }
 0x11d   : > { %v2874_v26 = vrot.slane %v14038_v25, 6  ;;  %21395 = vst [vmem:[#allocation175_spill] sm:$0xff] %v14199_v62  ;;  %v10920_v54 = vunpack.i.l.bf16 %v21388_v12  ;;  %v2875_v61 = vrot.slane %v14144_v63, 6  ;;  %v2877_v27 = vrot.slane %v14146_v16, 6  ;;  %v21399_v25 = vld [vmem:[#allocation177_spill] sm:$0xff]  ;;  %21401 = vst [vmem:[#allocation125_spill] sm:$0xff] %v14213_v2 }
 0x11e   : > { %v21396_v47 = vunpack.i.l.bf16 %v21376_v51  ;;  %v10936_v11 = vunpack.i.h.bf16 %v21399_v25  ;;  %v10935_v37 = vunpack.i.l.bf16 %v21399_v25  ;;  %v21402_v12 = vld [vmem:[#allocation95_spill] sm:$0xff]  ;;  %v14218_v62 = vld [vmem:[%s12452_s20 + $0x2c] sm:$0x3]  ;;  %v14222_v51 = vsel %vm20915_vm1, %v21404_v38, %v10926_v43  ;;  %21408 = vst [vmem:[#allocation130_spill] sm:$0xff] %v14237_v6  ;;  %v14282_v6 = vld [vmem:[%s12452_s20 + $0x7c] sm:$0x3] }
 0x11f   : > { %11423 = vrot.lane.b32.xlu1 %v21402_v12, %s12366_s26  ;;  %21403 = vst [vmem:[#allocation94_spill] sm:$0xff] %v14218_v62  ;;  %v21407_v12 = vld [vmem:[#allocation96_spill] sm:$0xff]  ;;  %v14251_v53 = vsel %vm20914_vm0, %v2874_v26, %v2875_v61 }
 0x120   : > { %v14208_v57 = vsel %vm20915_vm1, %v21397_v1, %v21396_v47  ;;  %v21405_v47 = vld [vmem:[#allocation135_spill] sm:$0xff]  ;;  %11418 = vrot.lane.b32.xlu0 %v21407_v12, %s12366_s26  ;;  %v14254_v12 = vsel %vm20914_vm0, %v2875_v61, %v2877_v27  ;;  %v21415_v61 = vld [vmem:[#allocation97_spill] sm:$0xff]  ;;  %v14275_v27 = vld [vmem:[%s12452_s20 + $0x4c] sm:$0x3]  ;;  %21418 = vst [vmem:[#allocation96_spill] sm:$0xff] %v14282_v6 }
 0x121   : > { %21398 = vst [vmem:[#allocation176_spill] sm:$0xff] %v14208_v57  ;;  %v14226_v1 = vsel %vm20915_vm1, %v21405_v47, %v10925_v35  ;;  %v21406_v57 = vld [vmem:[#allocation138_spill] sm:$0xff]  ;;  %v2770_v35 = vrot.slane %v14034_v19, 2  ;;  %v21409_v47 = vunpack.c.l.bf16 %v14149_v40  ;;  %v14259_v19 = vsel %vm20917_vm4, %v13868_v9, %v10935_v37  ;;  %v14270_v40 = vpop.permute.xlu0 %11138  ;;  %21416 = vst [vmem:[#allocation135_spill] sm:$0xff] %v14275_v27  ;;  %v21417_v9 = vld [vmem:[#allocation180_spill] sm:$0xff] }
 0x122   : > { %v14230_v25 = vsel %vm20915_vm1, %v21406_v57, %v10921_v60  ;;  %v14244_v60 = vld [vmem:[%s12452_s20 + $0x5c] sm:$0x3]  ;;  %v21411_v57 = vld [vmem:[#allocation137_spill] sm:$0xff]  ;;  %21414 = vst [vmem:[#allocation95_spill] sm:$0xff] %v14270_v40  ;;  %v10941_v43 = vunpack.i.h.bf16 %v21417_v9  ;;  %v21422_v40 = vrot.slane %v13963_v48, 2  ;;  %v21426_v48 = vld [vmem:[#allocation182_spill] sm:$0xff] }
 0x123   : > { %v2902_v38 = vrot.slane %v21409_v47, 2  ;;  %21410 = vst [vmem:[#allocation177_spill] sm:$0xff] %v14244_v60  ;;  %v14248_v2 = vsel %vm20915_vm1, %v21411_v57, %v10920_v54  ;;  %v14263_v47 = vsel %vm20917_vm4, %v13848_v58, %v10936_v11  ;;  %v14267_v54 = vsel %vm20917_vm4, %v13807_v3, %v10930_v46  ;;  %v21413_v57 = vld [vmem:[#allocation179_spill] sm:$0xff]  ;;  %11433 = vrot.lane.b32.xlu1 %v21415_v61, %s12366_s26  ;;  %v21420_v46 = vld [vmem:[#allocation98_spill] sm:$0xff]  ;;  %v14290_v61 = vpop.permute.xlu1 %11153 }
 0x124   : > { %21412 = vst [vmem:[#allocation178_spill] sm:$0xff] %v14267_v54  ;;  %v10946_v26 = vunpack.i.h.bf16 %v21413_v57  ;;  %v10945_v37 = vunpack.i.l.bf16 %v21413_v57  ;;  %v10940_v58 = vunpack.i.l.bf16 %v21417_v9  ;;  %v14286_v3 = vsel %vm20917_vm4, %v13797_v4, %v10931_v49  ;;  %11428 = vrot.lane.b32.xlu0 %v21420_v46, %s12366_s26  ;;  %21421 = vst [vmem:[#allocation179_spill] sm:$0xff] %v14290_v61 }
 0x125   : > { %21419 = vst [vmem:[#allocation137_spill] sm:$0xff] %v14286_v3  ;;  %v14297_v9 = vsel %vm2761_vm3, %v21422_v40, %v2770_v35  ;;  %v14300_v11 = vsel %vm2761_vm3, %v2770_v35, %v2902_v38  ;;  %v2765_v4 = vrot.slane %v14146_v16, 2  ;;  %v21424_v3 = vunpack.c.l.bf16 %v14218_v62  ;;  %v14313_v38 = vpop.permute.xlu0 %11148  ;;  %v21428_v35 = vld [vmem:[#allocation99_spill] sm:$0xff]  ;;  %v14319_v62 = vld [vmem:[%s12452_s20 + $0x6c] sm:$0x3] }
 0x126   : > { %21423 = vst [vmem:[#allocation97_spill] sm:$0xff] %v14297_v9  ;;  %v14309_v57 = vsel %vm20917_vm4, %v13824_v33, %v10946_v26  ;;  %v10956_v54 = vunpack.i.h.bf16 %v21426_v48  ;;  %v10955_v40 = vunpack.i.l.bf16 %v21426_v48  ;;  %21427 = vst [vmem:[#allocation98_spill] sm:$0xff] %v14313_v38  ;;  %v14327_v33 = vsel %vm20917_vm4, %v13767_v55, %v10941_v43  ;;  %v21432_v38 = vld [vmem:[#allocation185_spill] sm:$0xff] }
 0x127   : > { %v2900_v46 = vrot.slane %v21424_v3, 2  ;;  %21425 = vst [vmem:[#allocation180_spill] sm:$0xff] %v14309_v57  ;;  %11443 = vrot.lane.b32.xlu1 %v21428_v35, %s12366_s26  ;;  %21429 = vst [vmem:[#allocation182_spill] sm:$0xff] %v14319_v62  ;;  %v14323_v3 = vsel %vm20917_vm4, %v13838_v36, %v10945_v37  ;;  %v14331_v48 = vsel %vm20917_vm4, %v13780_v8, %v10940_v58  ;;  %v21430_v26 = vunpack.c.l.bf16 %v14244_v60  ;;  %v21431_v35 = vld [vmem:[#allocation184_spill] sm:$0xff]  ;;  %v14340_v37 = vpop.permute.xlu1 %11163 }
 0x128   : > { %v10951_v16 = vunpack.i.h.bf16 %v21431_v35  ;;  %v10950_v49 = vunpack.i.l.bf16 %v21431_v35  ;;  %v10966_v57 = vunpack.i.h.bf16 %v21432_v38  ;;  %v21433_v36 = vld [vmem:[#allocation100_spill] sm:$0xff]  ;;  %21434 = vst [vmem:[#allocation99_spill] sm:$0xff] %v14340_v37  ;;  %v21436_v43 = vrot.slane %v14144_v63, 2 }
 0x129   : > { %v2906_v61 = vrot.slane %v21430_v26, 2  ;;  %11438 = vrot.lane.b32.xlu0 %v21433_v36, %s12366_s26  ;;  %v14345_v8 = vld [vmem:[%s12452_s20 + $0x9c] sm:$0x3]  ;;  %v14353_v26 = vsel %vm2761_vm3, %v2765_v4, %v2900_v46  ;;  %v21438_v35 = vunpack.c.l.bf16 %v14275_v27  ;;  %v14360_v37 = vsel %vm20917_vm4, %v13886_v23, %v10956_v54  ;;  %v14367_v63 = vpop.permute.xlu0 %11158  ;;  %v14374_v36 = vld [vmem:[%s12452_s20 + $0x8c] sm:$0x3] }
 0x12a   : > { %21435 = vst [vmem:[#allocation184_spill] sm:$0xff] %v14345_v8  ;;  %v14350_v58 = vsel %vm2761_vm3, %v21436_v43, %v2765_v4  ;;  %21439 = vst [vmem:[#allocation100_spill] sm:$0xff] %v14360_v37  ;;  %v14364_v55 = vsel %vm20917_vm4, %v13899_v34, %v10955_v40  ;;  %v10965_v43 = vunpack.i.l.bf16 %v21432_v38  ;;  %v21441_v4 = vld [vmem:[#allocation101_spill] sm:$0xff]  ;;  %v21442_v46 = vunpack.c.l.bf16 %v14282_v6  ;;  %v21444_v27 = vld [vmem:[#allocation186_spill] sm:$0xff] }
 0x12b   : > { %21437 = vst [vmem:[#allocation185_spill] sm:$0xff] %v14350_v58  ;;  %v2904_v60 = vrot.slane %v21438_v35, 2  ;;  %21440 = vst [vmem:[#allocation257_spill] sm:$0xff] %v14367_v63  ;;  %11453 = vrot.lane.b32.xlu1 %v21441_v4, %s12366_s26  ;;  %v10961_v23 = vunpack.i.h.bf16 %v21444_v27  ;;  %v10960_v54 = vunpack.i.l.bf16 %v21444_v27  ;;  %v21445_v34 = vld [vmem:[#allocation17_spill] sm:$0xff]  ;;  %v14386_v4 = vsel %vm20917_vm4, %v13941_v5, %v10950_v49  ;;  %v21449_v27 = vld [vmem:[#allocation102_spill] sm:$0xff] }
 0x12c   : > { %v2910_v35 = vrot.slane %v21442_v46, 2  ;;  %21443 = vst [vmem:[#allocation101_spill] sm:$0xff] %v14374_v36  ;;  %v21446_v40 = vrot.slane %v21445_v34, 2  ;;  %v14390_v46 = vsel %vm20917_vm4, %v13925_v59, %v10951_v16  ;;  %v14394_v6 = vsel %vm20917_vm4, %v13970_v15, %v10966_v57  ;;  %v14398_v34 = vpop.permute.xlu1 %11173  ;;  %v21452_v5 = vld [vmem:[#allocation187_spill] sm:$0xff]  ;;  %v21453_v38 = vld [vmem:[#allocation9_spill] sm:$0xff] }
 0x12d   : > { %21447 = vst [vmem:[#allocation186_spill] sm:$0xff] %v14390_v46  ;;  %21448 = vst [vmem:[#allocation258_spill] sm:$0xff] %v14394_v6  ;;  %11448 = vrot.lane.b32.xlu0 %v21449_v27, %s12366_s26  ;;  %v10976_v49 = vunpack.i.h.bf16 %v21452_v5  ;;  %v21454_v63 = vrot.slane %v21453_v38, 2  ;;  %v21455_v15 = vunpack.c.l.bf16 %v14319_v62  ;;  %v14415_v27 = vld [vmem:[%s12452_s20 + $0xac] sm:$0x3]  ;;  %v14422_v6 = vpop.permute.xlu0 %11168  ;;  %v21459_v38 = vld [vmem:[#allocation105_spill] sm:$0xff]  ;;  %v14433_v46 = vsel %vm20917_vm4, %v14018_v0, %v10960_v54 }
 0x12e   : > { %v14381_v37 = vsel %vm2761_vm3, %v21446_v40, %v2906_v61  ;;  %21450 = vst [vmem:[#allocation102_spill] sm:$0xff] %v14398_v34  ;;  %v14403_v40 = vld [vmem:[%s12452_s20 + $0xbc] sm:$0x3]  ;;  %21456 = vst [vmem:[#allocation187_spill] sm:$0xff] %v14415_v27  ;;  %v14419_v34 = vsel %vm20917_vm4, %v13980_v44, %v10965_v43  ;;  %v10975_v61 = vunpack.i.l.bf16 %v21452_v5  ;;  %v14437_v44 = vsel %vm20917_vm4, %v13999_v56, %v10961_v23  ;;  %v21477_v56 = vld [vmem:[#allocation189_spill] sm:$0xff] }
 0x12f   : > { %21451 = vst [vmem:[#allocation259_spill] sm:$0xff] %v14403_v40  ;;  %v14409_v16 = vsel %vm2761_vm3, %v21454_v63, %v2904_v60  ;;  %v2908_v59 = vrot.slane %v21455_v15, 2  ;;  %21457 = vst [vmem:[#allocation260_spill] sm:$0xff] %v14419_v34  ;;  %11463 = vrot.lane.b32.xlu1 %v21459_v38, %s12366_s26  ;;  %v21460_v63 = vld [vmem:[#allocation158_spill] sm:$0xff]  ;;  %v21461_v15 = vld [vmem:[#allocation12_spill] sm:$0xff]  ;;  %v21465_v43 = vunpack.c.l.bf16 %v14345_v8  ;;  %v14456_v54 = vsel %vm20917_vm4, %v14044_v41, %v10976_v49 }
 0x130   : > { %21458 = vst [vmem:[#allocation261_spill] sm:$0xff] %v14422_v6  ;;  %v21462_v62 = vrot.slane %v21461_v15, 2  ;;  %21463 = vst [vmem:[#allocation105_spill] sm:$0xff] %v14433_v46  ;;  %v21466_v6 = vld [vmem:[#allocation188_spill] sm:$0xff]  ;;  %v21467_v15 = vld [vmem:[#allocation106_spill] sm:$0xff]  ;;  %v21475_v8 = vunpack.c.l.bf16 %v14374_v36  ;;  %v10985_v41 = vunpack.i.l.bf16 %v21477_v56  ;;  %v21484_v36 = vunpack.c.l.bf16 %v14403_v40 }
 0x131   : > { %21464 = vst [vmem:[#allocation158_spill] sm:$0xff] %v14437_v44  ;;  %v2914_v5 = vrot.slane %v21465_v43, 2  ;;  %v10971_v34 = vunpack.i.h.bf16 %v21466_v6  ;;  %v10970_v60 = vunpack.i.l.bf16 %v21466_v6  ;;  %11458 = vrot.lane.b32.xlu0 %v21467_v15, %s12366_s26  ;;  %v21469_v0 = vld [vmem:[#allocation152_spill] sm:$0xff]  ;;  %v21473_v6 = vld [vmem:[#allocation7_spill] sm:$0xff]  ;;  %v10986_v44 = vunpack.i.h.bf16 %v21477_v56  ;;  %v21478_v49 = vld [vmem:[#allocation190_spill] sm:$0xff] }
 0x132   : > { %v2911_v57 = vsel %vm2761_vm3, %v21462_v62, %v2910_v35  ;;  %v14446_v62 = vpop.permute.xlu1 %11183  ;;  %v14452_v23 = vld [vmem:[%s12452_s20 + $0xdc] sm:$0x3]  ;;  %21471 = vst [vmem:[#allocation152_spill] sm:$0xff] %v14456_v54  ;;  %v21474_v38 = vrot.slane %v21473_v6, 2  ;;  %v14468_v35 = vsel %vm20917_vm4, %v14065_v45, %v10975_v61  ;;  %v10980_v54 = vunpack.i.l.bf16 %v21478_v49  ;;  %v21480_v6 = vld [vmem:[#allocation181_spill] sm:$0xff]  ;;  %v21485_v46 = vld [vmem:[#allocation183_spill] sm:$0xff] }
 0x133   : > { %21468 = vst [vmem:[#allocation188_spill] sm:$0xff] %v14446_v62  ;;  %21470 = vst [vmem:[#allocation106_spill] sm:$0xff] %v14452_v23  ;;  %v14459_v43 = vpack.i.bf16 %v2911_v57, %v13564_v10  ;;  %v2912_v62 = vrot.slane %v21475_v8, 2  ;;  %v14473_v57 = vpop.permute.xlu0 %11178  ;;  %11473 = vrot.lane.b32.xlu1 %v21480_v6, %s12366_s26  ;;  %v10981_v8 = vunpack.i.h.bf16 %v21478_v49  ;;  %v14493_v6 = vsel %vm20917_vm4, %v14075_v14, %v10971_v34  ;;  %v14505_v56 = vld [vmem:[%s12452_s20 + $0xfc] sm:$0x3]  ;;  %v21490_v40 = vld [vmem:[#allocation191_spill] sm:$0xff] }
 0x134   : > { %v2909_v15 = vsel %vm2761_vm3, %v21474_v38, %v2908_v59  ;;  %21476 = vst [vmem:[#allocation263_spill] sm:$0xff] %v14468_v35  ;;  %21479 = vst [vmem:[#allocation189_spill] sm:$0xff] %v14473_v57  ;;  %v14478_v59 = vld [vmem:[%s12452_s20 + $0xcc] sm:$0x3]  ;;  %v21482_v38 = vld [vmem:[#allocation21_spill] sm:$0xff]  ;;  %v2918_v35 = vrot.slane %v21484_v36, 2  ;;  %v14489_v57 = vsel %vm20917_vm4, %v14089_v52, %v10970_v60  ;;  %v21488_v36 = vunpack.c.l.bf16 %v14415_v27 }
 0x135   : > { %21472 = vst [vmem:[#allocation262_spill] sm:$0xff] %v14459_v43  ;;  %21481 = vst [vmem:[#allocation190_spill] sm:$0xff] %v14478_v59  ;;  %v21483_v45 = vrot.slane %v21482_v38, 2  ;;  %11468 = vrot.lane.b32.xlu0 %v21485_v46, %s12366_s26  ;;  %v10996_v52 = vunpack.i.h.bf16 %v21490_v40  ;;  %v10995_v60 = vunpack.i.l.bf16 %v21490_v40  ;;  %v21491_v14 = vld [vmem:[#allocation24_spill] sm:$0xff]  ;;  %v14526_v27 = vsel %vm20917_vm4, %v14159_v21, %v10980_v54  ;;  %v14565_v46 = vld [vmem:[%s12452_s20 + $0x10c] sm:$0x3] }
 0x136   : > { %v14497_v49 = vpop.permute.xlu1 %11193  ;;  %21489 = vst [vmem:[#allocation264_spill] sm:$0xff] %v14505_v56  ;;  %v21492_v34 = vrot.slane %v21491_v14, 2  ;;  %v21499_v54 = vunpack.c.l.bf16 %v14452_v23  ;;  %v14548_v14 = vld [vmem:[%s12452_s20 + $0x11c] sm:$0x3]  ;;  %21506 = vst [vmem:[#allocation269_spill] sm:$0xff] %v14565_v46 }
 0x137   : > { %v2915_v61 = vsel %vm2761_vm3, %v21483_v45, %v2914_v5  ;;  %21486 = vst [vmem:[#allocation181_spill] sm:$0xff] %v14497_v49  ;;  %v14500_v5 = vpack.i.bf16 %v2909_v15, %v13518_v20  ;;  %v2916_v45 = vrot.slane %v21488_v36, 2  ;;  %v14514_v49 = vld [vmem:[%s12452_s20 + $0xec] sm:$0x3]  ;;  %v14518_v15 = vsel %vm20917_vm4, %v14115_v39, %v10986_v44  ;;  %v14528_v40 = vpop.permute.xlu0 %11188  ;;  %v21497_v44 = vld [vmem:[#allocation31_spill] sm:$0xff]  ;;  %21500 = vst [vmem:[#allocation267_spill] sm:$0xff] %v14548_v14 }
 0x138   : > { %v2913_v38 = vsel %vm2761_vm3, %v21492_v34, %v2912_v62  ;;  %21493 = vst [vmem:[#allocation191_spill] sm:$0xff] %v14514_v49  ;;  %v14522_v36 = vsel %vm20917_vm4, %v14125_v13, %v10985_v41  ;;  %21494 = vst [vmem:[#allocation265_spill] sm:$0xff] %v14528_v40  ;;  %v21495_v62 = vpack.i.bf16 %v21255_v29, %v13173_v22  ;;  %v21498_v41 = vrot.slane %v21497_v44, 2  ;;  %v21501_v29 = vld [vmem:[#allocation192_spill] sm:$0xff] }
 0x139   : > { %21487 = vst [vmem:[#allocation183_spill] sm:$0xff] %v14500_v5  ;;  %v14535_v39 = vpack.i.bf16 %v2915_v61, %v13583_v28  ;;  %v14539_v13 = vsel %vm20917_vm4, %v14141_v18, %v10981_v8  ;;  %v2922_v34 = vrot.slane %v21499_v54, 2  ;;  %v21502_v61 = vpack.i.bf16 %v21258_v32, %v13179_v17  ;;  %v21518_v40 = vld [vmem:[#allocation176_spill] sm:$0xff] }
 0x13a   : > { %11483 = vrot.lane.b32.xlu1 %v21495_v62, %s12366_s26  ;;  %v2919_v21 = vsel %vm2761_vm3, %v21498_v41, %v2918_v35  ;;  %v10990_v62 = vunpack.i.l.bf16 %v21501_v29  ;;  %v14555_v18 = vpop.permute.xlu1 %11203  ;;  %v14558_v8 = vpack.i.bf16 %v2913_v38, %v13590_v7  ;;  %v21505_v35 = vrot.slane %v12590_v24, 2  ;;  %v21508_v24 = vld [vmem:[#allocation194_spill] sm:$0xff]  ;;  %v21601_v7 = vld [vmem:[#allocation29_spill] sm:$0xff] }
 0x13b   : > { %21496 = vst [vmem:[#allocation266_spill] sm:$0xff] %v14535_v39  ;;  %11478 = vrot.lane.b32.xlu0 %v21502_v61, %s12366_s26  ;;  %21503 = vst [vmem:[#allocation192_spill] sm:$0xff] %v14555_v18  ;;  %v14569_v44 = vsel %vm20917_vm4, %v14175_v42, %v10996_v52  ;;  %v14573_v61 = vsel %vm20917_vm4, %v14184_v50, %v10995_v60  ;;  %v10991_v23 = vunpack.i.h.bf16 %v21501_v29  ;;  %v21507_v38 = vunpack.c.l.bf16 %v14478_v59  ;;  %v21511_v52 = vld [vmem:[#allocation204_spill] sm:$0xff] }
 0x13c   : > { %21504 = vst [vmem:[#allocation268_spill] sm:$0xff] %v14558_v8  ;;  %v2917_v41 = vsel %vm2761_vm3, %v21505_v35, %v2916_v45  ;;  %v11006_v32 = vunpack.i.h.bf16 %v21508_v24  ;;  %v11005_v45 = vunpack.i.l.bf16 %v21508_v24  ;;  %v14580_v35 = vpop.permute.xlu0 %11198  ;;  %v21510_v42 = vpack.i.bf16 %v14191_v30, %v14108_v31  ;;  %v21513_v29 = vld [vmem:[#allocation208_spill] sm:$0xff]  ;;  %v21520_v30 = vld [vmem:[#allocation197_spill] sm:$0xff] }
 0x13d   : > { %v2920_v22 = vrot.slane %v21507_v38, 2  ;;  %21509 = vst [vmem:[#allocation194_spill] sm:$0xff] %v14580_v35  ;;  %v14587_v54 = vpack.i.bf16 %v2919_v21, %v21511_v52  ;;  %v14591_v60 = vpack.i.bf16 %v2917_v41, %v21513_v29  ;;  %v21515_v38 = vld [vmem:[#allocation41_spill] sm:$0xff]  ;;  %v21517_v24 = vunpack.c.l.bf16 %v14505_v56 }
 0x13e   : > { %11493 = vrot.lane.b32.xlu1 %v21510_v42, %s12359_s21  ;;  %v21516_v59 = vrot.slane %v21515_v38, 2  ;;  %v14601_v31 = vsel %vm20917_vm4, %v21518_v40, %v10990_v62  ;;  %v11001_v21 = vunpack.i.h.bf16 %v21520_v30  ;;  %v11000_v42 = vunpack.i.l.bf16 %v21520_v30  ;;  %v14609_v50 = vpop.permute.xlu1 %11213  ;;  %v21525_v40 = vld [vmem:[#allocation198_spill] sm:$0xff]  ;;  %v21526_v38 = vld [vmem:[#allocation47_spill] sm:$0xff] }
 0x13f   : > { %21512 = vst [vmem:[#allocation204_spill] sm:$0xff] %v14587_v54  ;;  %21514 = vst [vmem:[#allocation208_spill] sm:$0xff] %v14591_v60  ;;  %v2926_v35 = vrot.slane %v21517_v24, 2  ;;  %v21521_v41 = vpack.i.bf16 %v14254_v12, %v14251_v53  ;;  %v21524_v24 = vld [vmem:[#allocation175_spill] sm:$0xff]  ;;  %v11016_v62 = vunpack.i.h.bf16 %v21525_v40  ;;  %v11015_v56 = vunpack.i.l.bf16 %v21525_v40 }
 0x140   : > { %v2923_v17 = vsel %vm2761_vm3, %v21516_v59, %v2922_v34  ;;  %21519 = vst [vmem:[#allocation176_spill] sm:$0xff] %v14601_v31  ;;  %21522 = vst [vmem:[#allocation197_spill] sm:$0xff] %v14609_v50  ;;  %v21523_v59 = vunpack.c.l.bf16 %v14514_v49  ;;  %v14615_v18 = vsel %vm20917_vm4, %v21524_v24, %v10991_v23  ;;  %v21527_v30 = vrot.slane %v21526_v38, 2  ;;  %v21534_v49 = vld [vmem:[#allocation54_spill] sm:$0xff] }
 0x141   : > { %11488 = vrot.lane.b32.xlu0 %v21521_v41, %s12359_s21  ;;  %v14624_v53 = vsel %vm20917_vm4, %v14222_v51, %v11006_v32  ;;  %v14628_v12 = vsel %vm20917_vm4, %v14226_v1, %v11005_v45  ;;  %v14630_v41 = vpop.permute.xlu0 %11208  ;;  %v21529_v23 = vpack.i.bf16 %v14300_v11, %v14297_v9  ;;  %v21535_v1 = vrot.slane %v21534_v49, 2  ;;  %v21551_v49 = vld [vmem:[#allocation178_spill] sm:$0xff] }
 0x142   : > { %v2924_v34 = vrot.slane %v21523_v59, 2  ;;  %v2921_v31 = vsel %vm2761_vm3, %v21527_v30, %v2920_v22  ;;  %21528 = vst [vmem:[#allocation175_spill] sm:$0xff] %v14630_v41  ;;  %v21530_v59 = vld [vmem:[#allocation210_spill] sm:$0xff]  ;;  %v21532_v22 = vunpack.c.l.bf16 %v14548_v14  ;;  %v21533_v30 = vld [vmem:[#allocation200_spill] sm:$0xff]  ;;  %v21536_v38 = vunpack.c.l.bf16 %v14565_v46  ;;  %v21552_v46 = vld [vmem:[#allocation137_spill] sm:$0xff] }
 0x143   : > { %11503 = vrot.lane.b32.xlu1 %v21529_v23, %s12360_s22  ;;  %v14637_v24 = vpack.i.bf16 %v2923_v17, %v21530_v59  ;;  %v11011_v32 = vunpack.i.h.bf16 %v21533_v30  ;;  %v11010_v51 = vunpack.i.l.bf16 %v21533_v30  ;;  %v2927_v45 = vsel %vm2761_vm3, %v21535_v1, %v2926_v35  ;;  %v21539_v30 = vld [vmem:[#allocation213_spill] sm:$0xff]  ;;  %v21541_v1 = vld [vmem:[#allocation60_spill] sm:$0xff] }
 0x144   : > { %v2930_v40 = vrot.slane %v21532_v22, 2  ;;  %v2928_v41 = vrot.slane %v21536_v38, 2  ;;  %v14650_v11 = vsel %vm20917_vm4, %v14248_v2, %v11000_v42  ;;  %v14654_v17 = vsel %vm20917_vm4, %v14230_v25, %v11001_v21  ;;  %v14660_v22 = vpop.permute.xlu1 %11223  ;;  %v21543_v21 = vld [vmem:[#allocation205_spill] sm:$0xff] }
 0x145   : > { %21531 = vst [vmem:[#allocation198_spill] sm:$0xff] %v14637_v24  ;;  %v21537_v23 = vpack.i.bf16 %v14353_v26, %v14350_v58  ;;  %21538 = vst [vmem:[#allocation210_spill] sm:$0xff] %v14660_v22  ;;  %v14663_v35 = vpack.i.bf16 %v2921_v31, %v21539_v30  ;;  %v21542_v38 = vrot.slane %v21541_v1, 2  ;;  %v14670_v2 = vsel %vm20918_vm5, %v14259_v19, %v11015_v56  ;;  %v14680_v14 = vpop.permute.xlu0 %11218  ;;  %v21547_v19 = vld [vmem:[#allocation215_spill] sm:$0xff]  ;;  %v21553_v1 = vld [vmem:[#allocation218_spill] sm:$0xff] }
 0x146   : > { %v14674_v25 = vsel %vm20918_vm5, %v14263_v47, %v11016_v62  ;;  %v11026_v26 = vunpack.i.h.bf16 %v21543_v21  ;;  %v11025_v42 = vunpack.i.l.bf16 %v21543_v21  ;;  %21545 = vst [vmem:[#allocation213_spill] sm:$0xff] %v14680_v14  ;;  %v14687_v56 = vpack.i.bf16 %v2927_v45, %v21547_v19  ;;  %v21549_v47 = vld [vmem:[#allocation65_spill] sm:$0xff] }
 0x147   : > { %11498 = vrot.lane.b32.xlu0 %v21537_v23, %s12360_s22  ;;  %21540 = vst [vmem:[#allocation200_spill] sm:$0xff] %v14663_v35  ;;  %v2925_v9 = vsel %vm2761_vm3, %v21542_v38, %v2924_v34  ;;  %v21544_v23 = vld [vmem:[#allocation207_spill] sm:$0xff]  ;;  %v21546_v34 = vpack.i.bf16 %v14381_v37, %v21460_v63  ;;  %v21550_v62 = vrot.slane %v21549_v47, 2  ;;  %v14694_v21 = vsel %vm20918_vm5, %v21551_v49, %v11010_v51 }
 0x148   : > { %v11021_v58 = vunpack.i.h.bf16 %v21544_v23  ;;  %v11020_v31 = vunpack.i.l.bf16 %v21544_v23  ;;  %21548 = vst [vmem:[#allocation205_spill] sm:$0xff] %v14687_v56  ;;  %v14698_v23 = vsel %vm20918_vm5, %v21552_v46, %v11011_v32  ;;  %v14701_v14 = vpack.i.bf16 %v2925_v9, %v21553_v1  ;;  %v21555_v37 = vld [vmem:[#allocation71_spill] sm:$0xff]  ;;  %v21560_v46 = vld [vmem:[#allocation154_spill] sm:$0xff] }
 0x149   : > { %11513 = vrot.lane.b32.xlu1 %v21546_v34, %s12360_s22  ;;  %v2931_v38 = vsel %vm2761_vm3, %v21550_v62, %v2930_v40  ;;  %v21556_v63 = vrot.slane %v21555_v37, 2  ;;  %v21557_v34 = vld [vmem:[#allocation143_spill] sm:$0xff]  ;;  %v21558_v49 = vpack.i.bf16 %v14409_v16, %v21469_v0  ;;  %v14712_v40 = vpop.permute.xlu1 %11233  ;;  %v21562_v62 = vld [vmem:[#allocation180_spill] sm:$0xff]  ;;  %v21565_v16 = vld [vmem:[#allocation166_spill] sm:$0xff] }
 0x14a   : > { %21554 = vst [vmem:[#allocation207_spill] sm:$0xff] %v14701_v14  ;;  %v11036_v22 = vunpack.i.h.bf16 %v21557_v34  ;;  %v11035_v47 = vunpack.i.l.bf16 %v21557_v34  ;;  %21559 = vst [vmem:[#allocation215_spill] sm:$0xff] %v14712_v40  ;;  %v21561_v9 = vld [vmem:[#allocation195_spill] sm:$0xff]  ;;  %v21563_v34 = vld [vmem:[#allocation220_spill] sm:$0xff]  ;;  %v14737_v51 = vsel %vm20918_vm5, %v14327_v33, %v11021_v58 }
 0x14b   : > { %v2929_v45 = vsel %vm2761_vm3, %v21556_v63, %v2928_v41  ;;  %11508 = vrot.lane.b32.xlu0 %v21558_v49, %s12360_s22  ;;  %v14720_v41 = vsel %vm20918_vm5, %v14323_v3, %v11025_v42  ;;  %v14724_v63 = vsel %vm20918_vm5, %v21562_v62, %v11026_v26  ;;  %v14727_v37 = vpack.i.bf16 %v2931_v38, %v21563_v34  ;;  %v14739_v3 = vpop.permute.xlu0 %11228  ;;  %v21567_v26 = vld [vmem:[#allocation222_spill] sm:$0xff]  ;;  %v21570_v0 = vld [vmem:[#allocation211_spill] sm:$0xff]  ;;  %v21575_v58 = vld [vmem:[#allocation209_spill] sm:$0xff] }
 0x14c   : > { %v14733_v49 = vsel %vm20918_vm5, %v14331_v48, %v11020_v31  ;;  %21566 = vst [vmem:[#allocation137_spill] sm:$0xff] %v14739_v3  ;;  %v14744_v42 = vpack.i.bf16 %v2929_v45, %v21567_v26  ;;  %v11030_v32 = vunpack.i.l.bf16 %v21570_v0  ;;  %v21571_v40 = vld [vmem:[#allocation203_spill] sm:$0xff]  ;;  %v21573_v31 = vld [vmem:[#allocation206_spill] sm:$0xff]  ;;  %v14759_v3 = vpack.i.bf16 %v21530_v59, %v21575_v58  ;;  %v21581_v59 = vld [vmem:[#allocation216_spill] sm:$0xff] }
 0x14d   : > { %21564 = vst [vmem:[#allocation178_spill] sm:$0xff] %v14727_v37  ;;  %11523 = vrot.lane.b32.xlu1 %v14459_v43, %s12360_s22  ;;  %v14751_v48 = vpack.i.bf16 %v21511_v52, %v21571_v40  ;;  %v14755_v33 = vpack.i.bf16 %v21513_v29, %v21573_v31  ;;  %v14763_v45 = vsel %vm20918_vm5, %v14364_v55, %v11035_v47  ;;  %v21577_v43 = vld [vmem:[#allocation100_spill] sm:$0xff]  ;;  %v11031_v50 = vunpack.i.h.bf16 %v21570_v0  ;;  %v14772_v52 = vpop.permute.xlu1 %11243  ;;  %v21582_v47 = vld [vmem:[#allocation214_spill] sm:$0xff]  ;;  %v21585_v0 = vld [vmem:[#allocation221_spill] sm:$0xff] }
 0x14e   : > { %21568 = vst [vmem:[#allocation218_spill] sm:$0xff] %v14744_v42  ;;  %21576 = vst [vmem:[#allocation195_spill] sm:$0xff] %v14759_v3  ;;  %v14767_v62 = vsel %vm20918_vm5, %v21577_v43, %v11036_v22  ;;  %v21579_v29 = vld [vmem:[#allocation212_spill] sm:$0xff]  ;;  %v11046_v31 = vunpack.i.h.bf16 %v21581_v59  ;;  %v11045_v55 = vunpack.i.l.bf16 %v21581_v59  ;;  %v14782_v58 = vpack.i.bf16 %v21547_v19, %v21582_v47  ;;  %v21584_v43 = vld [vmem:[#allocation74_spill] sm:$0xff] }
 0x14f   : > { %21572 = vst [vmem:[#allocation143_spill] sm:$0xff] %v14751_v48  ;;  %21574 = vst [vmem:[#allocation154_spill] sm:$0xff] %v14755_v33  ;;  %11518 = vrot.lane.b32.xlu0 %v14500_v5, %s12360_s22  ;;  %v14776_v40 = vpack.i.bf16 %v21539_v30, %v21579_v29  ;;  %v2937_v22 = vrot.slane %v21584_v43, 2  ;;  %v11041_v3 = vunpack.i.h.bf16 %v21585_v0  ;;  %v11040_v5 = vunpack.i.l.bf16 %v21585_v0  ;;  %v14787_v33 = vpop.permute.xlu0 %11238  ;;  %v21587_v30 = vld [vmem:[#allocation76_spill] sm:$0xff]  ;;  %v21589_v19 = vld [vmem:[#allocation217_spill] sm:$0xff] }
 0x150   : > { %21578 = vst [vmem:[#allocation180_spill] sm:$0xff] %v14772_v52  ;;  %21583 = vst [vmem:[#allocation211_spill] sm:$0xff] %v14782_v58  ;;  %v2938_v29 = vrot.slane %v21587_v30, 2  ;;  %v21588_v52 = vld [vmem:[#allocation78_spill] sm:$0xff]  ;;  %v14795_v59 = vsel %vm20918_vm5, %v14386_v4, %v11030_v32  ;;  %v14799_v47 = vpack.i.bf16 %v21553_v1, %v21589_v19  ;;  %v21591_v43 = vld [vmem:[#allocation79_spill] sm:$0xff] }
 0x151   : > { %21580 = vst [vmem:[#allocation166_spill] sm:$0xff] %v14776_v40  ;;  %21586 = vst [vmem:[#allocation203_spill] sm:$0xff] %v14787_v33  ;;  %11533 = vrot.lane.b32.xlu1 %v14535_v39, %s12360_s22  ;;  %v2932_v58 = vrot.slane %v21591_v43, 2  ;;  %v21592_v0 = vld [vmem:[#allocation82_spill] sm:$0xff]  ;;  %v21594_v39 = vld [vmem:[#allocation35_spill] sm:$0xff]  ;;  %v14810_v40 = vpop.permute.xlu1 %11253 }
 0x152   : > { %21590 = vst [vmem:[#allocation206_spill] sm:$0xff] %v14799_v47  ;;  %v2933_v48 = vrot.slane %v21592_v0, 2  ;;  %v21593_v33 = vld [vmem:[#allocation186_spill] sm:$0xff]  ;;  %v11055_v30 = vunpack.i.l.bf16 %v21594_v39  ;;  %21595 = vst [vmem:[#allocation209_spill] sm:$0xff] %v14810_v40  ;;  %v21596_v4 = vld [vmem:[#allocation219_spill] sm:$0xff] }
 0x153   : > { %v14805_v38 = vsel %vm20918_vm5, %v21593_v33, %v11031_v50  ;;  %11528 = vrot.lane.b32.xlu0 %v14558_v8, %s12360_s22  ;;  %v14814_v32 = vpack.i.bf16 %v21563_v34, %v21596_v4  ;;  %v21598_v1 = vld [vmem:[#allocation84_spill] sm:$0xff]  ;;  %v21600_v47 = vld [vmem:[#allocation258_spill] sm:$0xff]  ;;  %v11056_v33 = vunpack.i.h.bf16 %v21594_v39  ;;  %v14828_v8 = vpack.i.bf16 %v21567_v26, %v21601_v7  ;;  %v21603_v40 = vld [vmem:[#allocation105_spill] sm:$0xff] }
 0x154   : > { %v21599_v43 = vld [vmem:[#allocation260_spill] sm:$0xff]  ;;  %v14823_v50 = vsel %vm20918_vm5, %v21600_v47, %v11046_v31  ;;  %v14832_v4 = vsel %vm20918_vm5, %v21603_v40, %v11040_v5  ;;  %v21604_v34 = vld [vmem:[#allocation158_spill] sm:$0xff]  ;;  %v2939_v31 = vsel %vm2761_vm3, %v2937_v22, %v2938_v29  ;;  %v21606_v39 = vrot.slane %v21588_v52, 2  ;;  %v21607_v47 = vld [vmem:[#allocation223_spill] sm:$0xff] }
 0x155   : > { %21597 = vst [vmem:[#allocation100_spill] sm:$0xff] %v14814_v32  ;;  %v14819_v0 = vsel %vm20918_vm5, %v21599_v43, %v11045_v55  ;;  %21602 = vst [vmem:[#allocation212_spill] sm:$0xff] %v14828_v8  ;;  %v14836_v19 = vsel %vm20918_vm5, %v21604_v34, %v11041_v3  ;;  %v14838_v55 = vpop.permute.xlu0 %11248  ;;  %11543 = vrot.lane.b32.xlu1 %v14587_v54, %s12360_s22  ;;  %v11051_v7 = vunpack.i.h.bf16 %v21607_v47  ;;  %v11050_v5 = vunpack.i.l.bf16 %v21607_v47  ;;  %v21608_v34 = vld [vmem:[#allocation263_spill] sm:$0xff]  ;;  %v14859_v22 = vpop.permute.xlu1 %11263 }
 0x156   : > { %21605 = vst [vmem:[#allocation216_spill] sm:$0xff] %v14838_v55  ;;  %v14846_v43 = vsel %vm2761_vm3, %v2938_v29, %v21606_v39  ;;  %v2934_v40 = vsel %vm2761_vm3, %v2932_v58, %v2933_v48  ;;  %v14853_v3 = vsel %vm20918_vm5, %v21608_v34, %v11055_v30  ;;  %v21609_v26 = vld [vmem:[#allocation43_spill] sm:$0xff]  ;;  %21610 = vst [vmem:[#allocation214_spill] sm:$0xff] %v14859_v22  ;;  %v21611_v29 = vrot.slane %v21598_v1, 2  ;;  %v21612_v58 = vld [vmem:[#allocation152_spill] sm:$0xff] }
 0x157   : > { %v11066_v55 = vunpack.i.h.bf16 %v21609_v26  ;;  %v11065_v54 = vunpack.i.l.bf16 %v21609_v26  ;;  %11538 = vrot.lane.b32.xlu0 %v14591_v60, %s12360_s22  ;;  %v14868_v47 = vsel %vm20918_vm5, %v21612_v58, %v11056_v33  ;;  %v14871_v30 = vpack.i.bf16 %v14846_v43, %v2939_v31  ;;  %v21614_v34 = vld [vmem:[#allocation8_spill] sm:$0xff]  ;;  %v21615_v8 = vld [vmem:[#allocation107_spill] sm:$0xff] }
 0x158   : > { %v14864_v39 = vsel %vm2761_vm3, %v2933_v48, %v21611_v29  ;;  %v11061_v26 = vunpack.i.h.bf16 %v21614_v34  ;;  %v11060_v52 = vunpack.i.l.bf16 %v21614_v34  ;;  %v11076_v60 = vunpack.i.h.bf16 %v21615_v8  ;;  %v21617_v58 = vld [vmem:[#allocation224_spill] sm:$0xff] }
 0x159   : > { %21613 = vst [vmem:[#allocation221_spill] sm:$0xff] %v14871_v30  ;;  %v11075_v22 = vunpack.i.l.bf16 %v21615_v8  ;;  %v14877_v32 = vpop.permute.xlu0 %11258  ;;  %11553 = vrot.lane.b32.xlu1 %v14637_v24, %s12360_s22  ;;  %v14883_v48 = vsel %vm20918_vm5, %v14489_v57, %v11050_v5  ;;  %v14887_v33 = vsel %vm20918_vm5, %v14493_v6, %v11051_v7  ;;  %v14890_v31 = vpack.i.bf16 %v14864_v39, %v2934_v40  ;;  %v14904_v7 = vpop.permute.xlu1 %11273  ;;  %v21618_v6 = vld [vmem:[#allocation72_spill] sm:$0xff] }
 0x15a   : > { %v14894_v29 = vsel %vm20918_vm5, %v14522_v36, %v11065_v54  ;;  %v14898_v8 = vsel %vm20918_vm5, %v14518_v15, %v11066_v55  ;;  %v11071_v34 = vunpack.i.h.bf16 %v21617_v58  ;;  %v11070_v57 = vunpack.i.l.bf16 %v21617_v58  ;;  %v21620_v24 = vld [vmem:[#allocation232_spill] sm:$0xff] }
 0x15b   : > { %21616 = vst [vmem:[#allocation217_spill] sm:$0xff] %v14890_v31  ;;  %11548 = vrot.lane.b32.xlu0 %v14663_v35, %s12360_s22  ;;  %v11086_v5 = vunpack.i.h.bf16 %v21618_v6  ;;  %v11085_v40 = vunpack.i.l.bf16 %v21618_v6  ;;  %v14910_v36 = vsel %vm20918_vm5, %v14526_v27, %v11060_v52  ;;  %v14914_v15 = vsel %vm20918_vm5, %v14539_v13, %v11061_v26  ;;  %v21619_v6 = vld [vmem:[#allocation228_spill] sm:$0xff] }
 0x15c   : > { %v14918_v54 = vsel %vm20918_vm5, %v14573_v61, %v11075_v22  ;;  %v14922_v55 = vsel %vm20918_vm5, %v14569_v44, %v11076_v60  ;;  %v11081_v27 = vunpack.i.h.bf16 %v21619_v6  ;;  %v11080_v52 = vunpack.i.l.bf16 %v21619_v6  ;;  %v21623_v61 = vld [vmem:[#allocation176_spill] sm:$0xff] }
 0x15d   : > { %v14924_v58 = vpop.permute.xlu0 %11268  ;;  %11563 = vrot.lane.b32.xlu1 %v14687_v56, %s12360_s22  ;;  %v14931_v13 = vunpack.i.h.bf16 %v21620_v24  ;;  %v14934_v26 = vunpack.i.l.bf16 %v21620_v24  ;;  %v14938_v22 = vsel %vm20918_vm5, %v21623_v61, %v11070_v57  ;;  %v14942_v44 = vsel %vm20918_vm5, %v14615_v18, %v11071_v34  ;;  %v14946_v60 = vpop.permute.xlu1 %11283  ;;  %v21624_v56 = vld [vmem:[#allocation237_spill] sm:$0xff]  ;;  %v21627_v18 = vld [vmem:[#allocation91_spill] sm:$0xff] }
 0x15e   : > { %v14950_v6 = vsel %vm20918_vm5, %v14628_v12, %v11085_v40  ;;  %v14954_v24 = vsel %vm20918_vm5, %v14624_v53, %v11086_v5  ;;  %v14957_v57 = vunpack.i.h.bf16 %v21624_v56  ;;  %v14960_v61 = vunpack.i.l.bf16 %v21624_v56  ;;  %v21630_v40 = vld [vmem:[#allocation243_spill] sm:$0xff] }
 0x15f   : > { %21621 = vst [vmem:[#allocation186_spill] sm:$0xff] %v14931_v13  ;;  %21622 = vst [vmem:[#allocation35_spill] sm:$0xff] %v14934_v26  ;;  %11558 = vrot.lane.b32.xlu0 %v14701_v14, %s12360_s22  ;;  %v14963_v34 = vunpack.i.h.bf16 %v21627_v18  ;;  %v14966_v14 = vunpack.i.l.bf16 %v21627_v18  ;;  %v14974_v53 = vsel %vm20918_vm5, %v14650_v11, %v11080_v52  ;;  %v14978_v12 = vsel %vm20918_vm5, %v14654_v17, %v11081_v27  ;;  %v21633_v52 = vld [vmem:[#allocation167_spill] sm:$0xff] }
 0x160   : > { %21625 = vst [vmem:[#allocation260_spill] sm:$0xff] %v14957_v57  ;;  %21626 = vst [vmem:[#allocation258_spill] sm:$0xff] %v14960_v61  ;;  %v14983_v56 = vsel %vm2158_vm6, %v14670_v2, %v14934_v26  ;;  %v14988_v5 = vsel %vm2158_vm6, %v14674_v25, %v14931_v13  ;;  %v14991_v18 = vunpack.i.h.bf16 %v21630_v40  ;;  %v14994_v11 = vunpack.i.l.bf16 %v21630_v40 }
 0x161   : > { %21628 = vst [vmem:[#allocation105_spill] sm:$0xff] %v14963_v34  ;;  %21629 = vst [vmem:[#allocation158_spill] sm:$0xff] %v14966_v14  ;;  %v14968_v35 = vpop.permute.xlu0 %11278  ;;  %11573 = vrot.lane.b32.xlu1 %v14727_v37, %s12360_s22  ;;  %v14997_v37 = vunpack.i.l.bf16 %v21633_v52  ;;  %v15001_v17 = vpop.permute.xlu1 %11293  ;;  %v15006_v2 = vsel %vm2158_vm6, %v14694_v21, %v14960_v61  ;;  %v15011_v25 = vsel %vm2158_vm6, %v14698_v23, %v14957_v57  ;;  %v15014_v27 = vunpack.i.h.bf16 %v21633_v52  ;;  %v21637_v21 = vld [vmem:[#allocation249_spill] sm:$0xff] }
 0x162   : > { %21631 = vst [vmem:[#allocation223_spill] sm:$0xff] %v14991_v18  ;;  %21632 = vst [vmem:[#allocation263_spill] sm:$0xff] %v14994_v11  ;;  %v15019_v40 = vsel %vm2158_vm6, %v14720_v41, %v14966_v14  ;;  %v15024_v13 = vsel %vm2158_vm6, %v14724_v63, %v14963_v34  ;;  %v15027_v26 = vunpack.i.h.bf16 %v21637_v21  ;;  %v15030_v61 = vunpack.i.l.bf16 %v21637_v21  ;;  %v21642_v41 = vld [vmem:[#allocation251_spill] sm:$0xff] }
 0x163   : > { %21634 = vst [vmem:[#allocation43_spill] sm:$0xff] %v14997_v37  ;;  %11568 = vrot.lane.b32.xlu0 %v14744_v42, %s12360_s22  ;;  %21635 = vst [vmem:[#allocation152_spill] sm:$0xff] %v15001_v17  ;;  %v21641_v52 = vpack.i.bf16 %v13564_v10, %v21560_v46  ;;  %v15039_v14 = vunpack.i.h.bf16 %v21642_v41  ;;  %v15042_v57 = vunpack.i.l.bf16 %v21642_v41  ;;  %v15047_v63 = vsel %vm2158_vm6, %v14733_v49, %v14994_v11  ;;  %v21645_v46 = vld [vmem:[#allocation256_spill] sm:$0xff]  ;;  %v21674_v11 = vld [vmem:[#allocation98_spill] sm:$0xff] }
 0x164   : > { %21636 = vst [vmem:[#allocation8_spill] sm:$0xff] %v15014_v27  ;;  %21638 = vst [vmem:[#allocation107_spill] sm:$0xff] %v15027_v26  ;;  %v15052_v21 = vsel %vm2158_vm6, %v14737_v51, %v14991_v18  ;;  %v15057_v10 = vsel %vm2158_vm6, %v14763_v45, %v14997_v37  ;;  %v21647_v41 = vpack.i.bf16 %v13518_v20, %v21561_v9  ;;  %v15074_v34 = vunpack.i.h.bf16 %v21645_v46  ;;  %v21650_v45 = vld [vmem:[#allocation93_spill] sm:$0xff] }
 0x165   : > { %21639 = vst [vmem:[#allocation224_spill] sm:$0xff] %v15030_v61  ;;  %v15032_v23 = vpop.permute.xlu0 %11288  ;;  %11583 = vrot.lane.b32.xlu1 %v21641_v52, %s12361_s23  ;;  %21643 = vst [vmem:[#allocation228_spill] sm:$0xff] %v15039_v14  ;;  %v15060_v52 = vunpack.i.l.bf16 %v21645_v46  ;;  %v15066_v49 = vpop.permute.xlu1 %11303  ;;  %v15071_v51 = vsel %vm2158_vm6, %v14767_v62, %v15014_v27  ;;  %v15077_v37 = vunpack.i.h.bf16 %v21650_v45  ;;  %v15080_v18 = vunpack.i.l.bf16 %v21650_v45  ;;  %v21655_v45 = vld [vmem:[#allocation125_spill] sm:$0xff] }
 0x166   : > { %21640 = vst [vmem:[#allocation72_spill] sm:$0xff] %v15032_v23  ;;  %21644 = vst [vmem:[#allocation232_spill] sm:$0xff] %v15042_v57  ;;  %v15085_v20 = vsel %vm2158_vm6, %v14795_v59, %v15030_v61  ;;  %v15090_v9 = vsel %vm2158_vm6, %v14805_v38, %v15027_v26  ;;  %v21654_v46 = vpack.i.bf16 %v13583_v28, %v21565_v16  ;;  %v15109_v38 = vunpack.i.h.bf16 %v21655_v45  ;;  %v21658_v16 = vld [vmem:[#allocation130_spill] sm:$0xff] }
 0x167   : > { %21646 = vst [vmem:[#allocation176_spill] sm:$0xff] %v15060_v52  ;;  %11578 = vrot.lane.b32.xlu0 %v21647_v41, %s12361_s23  ;;  %21648 = vst [vmem:[#allocation237_spill] sm:$0xff] %v15066_v49  ;;  %v15101_v41 = vsel %vm2158_vm6, %v14819_v0, %v15042_v57  ;;  %v15106_v59 = vsel %vm2158_vm6, %v14823_v50, %v15039_v14  ;;  %v15112_v27 = vunpack.i.l.bf16 %v21655_v45  ;;  %v21660_v0 = vld [vmem:[#allocation202_spill] sm:$0xff]  ;;  %v21661_v57 = vld [vmem:[#allocation168_spill] sm:$0xff] }
 0x168   : > { %21649 = vst [vmem:[#allocation91_spill] sm:$0xff] %v15074_v34  ;;  %21651 = vst [vmem:[#allocation243_spill] sm:$0xff] %v15077_v37  ;;  %v15117_v28 = vsel %vm2158_vm6, %v14832_v4, %v15060_v52  ;;  %v21662_v26 = vpack.i.bf16 %v21660_v0, %v21661_v57  ;;  %v15131_v45 = vsel %vm2158_vm6, %v14836_v19, %v15074_v34  ;;  %v15144_v57 = vunpack.i.h.bf16 %v21658_v16  ;;  %v21666_v0 = vld [vmem:[#allocation95_spill] sm:$0xff]  ;;  %v21693_v49 = vld [vmem:[#allocation261_spill] sm:$0xff] }
 0x169   : > { %21652 = vst [vmem:[#allocation167_spill] sm:$0xff] %v15080_v18  ;;  %v15092_v62 = vpop.permute.xlu0 %11298  ;;  %11593 = vrot.lane.b32.xlu1 %v21654_v46, %s12361_s23  ;;  %21656 = vst [vmem:[#allocation251_spill] sm:$0xff] %v15109_v38  ;;  %v15120_v46 = vunpack.i.l.bf16 %v21658_v16  ;;  %v15126_v50 = vpop.permute.xlu1 %11313  ;;  %v15136_v4 = vsel %vm2158_vm6, %v14853_v3, %v15080_v18  ;;  %v15141_v14 = vsel %vm2158_vm6, %v14868_v47, %v15077_v37  ;;  %v15150_v52 = vunpack.i.h.bf16 %v21666_v0  ;;  %v21669_v34 = vld [vmem:[#allocation179_spill] sm:$0xff] }
 0x16a   : > { %21653 = vst [vmem:[#allocation249_spill] sm:$0xff] %v15092_v62  ;;  %21657 = vst [vmem:[#allocation256_spill] sm:$0xff] %v15112_v27  ;;  %v15153_v19 = vunpack.i.l.bf16 %v21666_v0  ;;  %v15156_v61 = vunpack.i.l.bf16 %v21669_v34  ;;  %v21672_v47 = vld [vmem:[#allocation143_spill] sm:$0xff]  ;;  %v15165_v16 = vsel %vm2158_vm6, %v14883_v48, %v15112_v27  ;;  %v15170_v37 = vsel %vm2158_vm6, %v14887_v33, %v15109_v38  ;;  %v21677_v27 = vld [vmem:[#allocation154_spill] sm:$0xff] }
 0x16b   : > { %21659 = vst [vmem:[#allocation93_spill] sm:$0xff] %v15120_v46  ;;  %11588 = vrot.lane.b32.xlu0 %v21662_v26, %s12361_s23  ;;  %21663 = vst [vmem:[#allocation125_spill] sm:$0xff] %v15126_v50  ;;  %v15147_v26 = vld [vmem:[%s12452_s20 + $0x12c] sm:$0x3]  ;;  %v15173_v0 = vunpack.i.h.bf16 %v21669_v34  ;;  %v15178_v18 = vsel %vm2158_vm6, %v14894_v29, %v15120_v46  ;;  %v15181_v50 = vunpack.i.h.bf16 %v21674_v11  ;;  %v15184_v48 = vunpack.i.l.bf16 %v21674_v11  ;;  %v21679_v29 = vld [vmem:[#allocation99_spill] sm:$0xff] }
 0x16c   : > { %21664 = vst [vmem:[#allocation130_spill] sm:$0xff] %v15144_v57  ;;  %21665 = vst [vmem:[#allocation202_spill] sm:$0xff] %v15147_v26  ;;  %v15194_v34 = vsel %vm2158_vm6, %v14898_v8, %v15144_v57  ;;  %v15197_v46 = vunpack.i.l.bf16 %v21679_v29  ;;  %v15202_v11 = vsel %vm2158_vm6, %v14910_v36, %v15153_v19  ;;  %v15212_v38 = vsel %vm2158_vm6, %v14918_v54, %v15156_v61  ;;  %v15222_v36 = vld [vmem:[%s12452_s20 + $0x13c] sm:$0x3] }
 0x16d   : > { %21667 = vst [vmem:[#allocation168_spill] sm:$0xff] %v15150_v52  ;;  %21668 = vst [vmem:[#allocation95_spill] sm:$0xff] %v15153_v19  ;;  %v15158_v3 = vpop.permute.xlu0 %11308  ;;  %11603 = vrot.lane.b32.xlu1 %v21672_v47, %s12361_s23  ;;  %v15188_v33 = vpop.permute.xlu1 %11323  ;;  %v15215_v8 = vunpack.i.h.bf16 %v21679_v29  ;;  %v15235_v54 = vsel %vm2158_vm6, %v14938_v22, %v15184_v48  ;;  %v15240_v29 = vsel %vm2158_vm6, %v14942_v44, %v15181_v50  ;;  %v11171_v23 = vunpack.i.h.bf16 %v21693_v49 }
 0x16e   : > { %21670 = vst [vmem:[#allocation179_spill] sm:$0xff] %v15156_v61  ;;  %21671 = vst [vmem:[#allocation270_spill] sm:$0xff] %v15158_v3  ;;  %v15207_v3 = vsel %vm2158_vm6, %v14914_v15, %v15150_v52  ;;  %v15227_v15 = vsel %vm2158_vm6, %v14922_v55, %v15173_v0  ;;  %v21685_v52 = vld [vmem:[#allocation257_spill] sm:$0xff]  ;;  %v15254_v22 = vsel %vm2158_vm6, %v14950_v6, %v15197_v46  ;;  %v21694_v6 = vld [vmem:[#allocation211_spill] sm:$0xff] }
 0x16f   : > { %21673 = vst [vmem:[#allocation143_spill] sm:$0xff] %v15173_v0  ;;  %21675 = vst [vmem:[#allocation98_spill] sm:$0xff] %v15181_v50  ;;  %11598 = vrot.lane.b32.xlu0 %v21677_v27, %s12361_s23  ;;  %v15230_v19 = vunpack.i.l.bf16 %v21685_v52  ;;  %v15243_v61 = vunpack.i.h.bf16 %v21685_v52  ;;  %v21689_v0 = vunpack.c.l.bf16 %v15147_v26  ;;  %v15262_v50 = vsel %vm2158_vm6, %v14954_v24, %v15215_v8  ;;  %v21697_v52 = vld [vmem:[#allocation244_spill] sm:$0xff] }
 0x170   : > { %21676 = vst [vmem:[#allocation271_spill] sm:$0xff] %v15184_v48  ;;  %21678 = vst [vmem:[#allocation154_spill] sm:$0xff] %v15188_v33  ;;  %v21683_v33 = vld [vmem:[#allocation195_spill] sm:$0xff]  ;;  %v21691_v48 = vld [vmem:[#allocation102_spill] sm:$0xff] }
 0x171   : > { %21680 = vst [vmem:[#allocation99_spill] sm:$0xff] %v15197_v46  ;;  %21681 = vst [vmem:[#allocation272_spill] sm:$0xff] %v15215_v8  ;;  %v15217_v57 = vpop.permute.xlu0 %11318  ;;  %11613 = vrot.lane.b32.xlu1 %v21683_v33, %s12361_s23  ;;  %v15247_v55 = vpop.permute.xlu1 %11333  ;;  %v2956_v42 = vrot.slane %v21689_v0, 2  ;;  %v11176_v62 = vunpack.i.h.bf16 %v21691_v48  ;;  %v11175_v44 = vunpack.i.l.bf16 %v21691_v48  ;;  %v11170_v0 = vunpack.i.l.bf16 %v21693_v49  ;;  %v21695_v46 = vld [vmem:[#allocation87_spill] sm:$0xff]  ;;  %v21699_v49 = vld [vmem:[#allocation188_spill] sm:$0xff] }
 0x172   : > { %21682 = vst [vmem:[#allocation273_spill] sm:$0xff] %v15217_v57  ;;  %21684 = vst [vmem:[#allocation274_spill] sm:$0xff] %v15222_v36  ;;  %v21688_v57 = vld [vmem:[#allocation166_spill] sm:$0xff]  ;;  %v15274_v48 = vsel %vm2158_vm6, %v14974_v53, %v15230_v19  ;;  %v2762_v33 = vrot.slane %v21697_v52, 2  ;;  %v15280_v24 = vsel %vm2158_vm6, %v14978_v12, %v15243_v61  ;;  %v11186_v8 = vunpack.i.h.bf16 %v21699_v49 }
 0x173   : > { %21686 = vst [vmem:[#allocation257_spill] sm:$0xff] %v15230_v19  ;;  %21687 = vst [vmem:[#allocation275_spill] sm:$0xff] %v15243_v61  ;;  %11608 = vrot.lane.b32.xlu0 %v21688_v57, %s12361_s23  ;;  %v21702_v53 = vrot.slane %v21598_v1, 2  ;;  %v15293_v52 = vsel %vm2191_vm7, %v14983_v56, %v11175_v44  ;;  %v15297_v12 = vsel %vm2191_vm7, %v14988_v5, %v11176_v62  ;;  %v21706_v44 = vld [vmem:[#allocation100_spill] sm:$0xff]  ;;  %v21707_v5 = vld [vmem:[#allocation238_spill] sm:$0xff] }
 0x174   : > { %21690 = vst [vmem:[#allocation166_spill] sm:$0xff] %v15254_v22  ;;  %21692 = vst [vmem:[#allocation102_spill] sm:$0xff] %v15262_v50  ;;  %v2767_v22 = vrot.slane %v21695_v46, 2  ;;  %v11185_v50 = vunpack.i.l.bf16 %v21699_v49  ;;  %v21703_v49 = vunpack.c.l.bf16 %v15222_v36  ;;  %v15307_v1 = vsel %vm2191_vm7, %v15011_v25, %v11171_v23 }
 0x175   : > { %v15266_v26 = vpop.permute.xlu0 %11328  ;;  %11623 = vrot.lane.b32.xlu1 %v21694_v6, %s12361_s23  ;;  %21696 = vst [vmem:[#allocation261_spill] sm:$0xff] %v15274_v48  ;;  %21698 = vst [vmem:[#allocation276_spill] sm:$0xff] %v15280_v24  ;;  %v21700_v6 = vld [vmem:[#allocation206_spill] sm:$0xff]  ;;  %v15286_v46 = vpop.permute.xlu1 %11343  ;;  %v2957_v19 = vsel %vm2761_vm3, %v21702_v53, %v2956_v42  ;;  %v15303_v24 = vsel %vm2191_vm7, %v15006_v2, %v11170_v0  ;;  %v21704_v42 = vld [vmem:[#allocation189_spill] sm:$0xff]  ;;  %v21708_v62 = vrot.slane %v21707_v5, 2 }
 0x176   : > { %21701 = vst [vmem:[#allocation188_spill] sm:$0xff] %v15286_v46  ;;  %v2958_v61 = vrot.slane %v21703_v49, 2  ;;  %v11180_v53 = vunpack.i.l.bf16 %v21704_v42  ;;  %v11181_v2 = vunpack.i.h.bf16 %v21704_v42  ;;  %v21710_v0 = vld [vmem:[#allocation181_spill] sm:$0xff]  ;;  %v21711_v48 = vld [vmem:[#allocation252_spill] sm:$0xff]  ;;  %v15327_v46 = vpack.i.bf16 %v2957_v19, %v14864_v39  ;;  %v9990_v5 = vld [vmem:[%s20196_s2 + $0x28] sm:$0xff] }
 0x177   : > { %11618 = vrot.lane.b32.xlu0 %v21700_v6, %s12361_s23  ;;  %v15317_v49 = vsel %vm2761_vm3, %v2767_v22, %v21708_v62  ;;  %v11195_v36 = vunpack.i.l.bf16 %v21710_v0  ;;  %v21712_v25 = vrot.slane %v21711_v48, 2  ;;  %v15330_v6 = vld [vmem:[%s12452_s20 + $0x14c] sm:$0x3]  ;;  %v9991_v22 = vld [vmem:[%s20196_s2 + $0x30] sm:$0xff]  ;;  %v15340_v42 = vsel %vm2191_vm7, %v15019_v40, %v11185_v50  ;;  %v21716_v19 = vld [vmem:[#allocation212_spill] sm:$0xff] }
 0x178   : > { %21709 = vst [vmem:[#allocation277_spill] sm:$0xff] %v15317_v49  ;;  %21714 = vst [vmem:[#allocation278_spill] sm:$0xff] %v15327_v46  ;;  %v11196_v39 = vunpack.i.h.bf16 %v21710_v0  ;;  %v21721_v46 = vld [vmem:[#allocation132_spill] sm:$0xff]  ;;  %v21722_v50 = vld [vmem:[#allocation133_spill] sm:$0xff] }
 0x179   : > { %v15310_v56 = vpop.permute.xlu0 %11338  ;;  %11633 = vrot.lane.b32.xlu1 %v21706_v44, %s12361_s23  ;;  %v15324_v23 = vsel %vm2761_vm3, %v2762_v33, %v21712_v25  ;;  %21715 = vst [vmem:[#allocation279_spill] sm:$0xff] %v15330_v6  ;;  %v15344_v33 = vsel %vm2191_vm7, %v15024_v13, %v11186_v8  ;;  %v15349_v62 = vpop.permute.xlu1 %11353  ;;  %v15352_v25 = vld [vmem:[%s12452_s20 + $0x15c] sm:$0x3]  ;;  %v2942_v40 = vrot.slane %v21721_v46, 2  ;;  %v2943_v44 = vrot.slane %v21722_v50, 2  ;;  %v21724_v0 = vld [vmem:[#allocation265_spill] sm:$0xff] }
 0x17a   : > { %21705 = vst [vmem:[#allocation189_spill] sm:$0xff] %v15310_v56  ;;  %21713 = vst [vmem:[#allocation181_spill] sm:$0xff] %v15324_v23  ;;  %v21719_v23 = vld [vmem:[#allocation78_spill] sm:$0xff]  ;;  %v15362_v8 = vsel %vm2191_vm7, %v15047_v63, %v11180_v53  ;;  %v11191_v63 = vunpack.i.h.bf16 %v21724_v0  ;;  %v15384_v50 = vsel %vm2191_vm7, %v15071_v51, %v11196_v39  ;;  %v21726_v46 = vld [vmem:[#allocation192_spill] sm:$0xff] }
 0x17b   : > { %11628 = vrot.lane.b32.xlu0 %v21716_v19, %s12361_s23  ;;  %21717 = vst [vmem:[#allocation280_spill] sm:$0xff] %v15349_v62  ;;  %21718 = vst [vmem:[#allocation281_spill] sm:$0xff] %v15352_v25  ;;  %v21720_v49 = vrot.slane %v21719_v23, 2  ;;  %v21723_v56 = vld [vmem:[#allocation134_spill] sm:$0xff]  ;;  %v11190_v19 = vunpack.i.l.bf16 %v21724_v0  ;;  %v11206_v23 = vunpack.i.h.bf16 %v21726_v46  ;;  %v2944_v51 = vsel %vm2761_vm3, %v2942_v40, %v2943_v44  ;;  %v21729_v0 = vld [vmem:[#allocation197_spill] sm:$0xff] }
 0x17c   : > { %v2945_v13 = vrot.slane %v21723_v56, 2  ;;  %v15378_v56 = vsel %vm2191_vm7, %v15057_v10, %v11195_v36  ;;  %v21728_v36 = vld [vmem:[#allocation194_spill] sm:$0xff]  ;;  %v11215_v53 = vunpack.i.l.bf16 %v21729_v0  ;;  %v21732_v40 = vld [vmem:[#allocation128_spill] sm:$0xff] }
 0x17d   : > { %v2959_v48 = vsel %vm2761_vm3, %v21720_v49, %v2958_v61  ;;  %v15365_v17 = vpop.permute.xlu0 %11348  ;;  %11643 = vrot.lane.b32.xlu1 %v14871_v30, %s12361_s23  ;;  %v15370_v61 = vpack.c.bf16 %v9991_v22, %v9990_v5  ;;  %v15374_v49 = vsel %vm2191_vm7, %v15052_v21, %v11181_v2  ;;  %v11205_v5 = vunpack.i.l.bf16 %v21726_v46  ;;  %v15390_v21 = vpop.permute.xlu1 %11363 }
 0x17e   : > { %21725 = vst [vmem:[#allocation265_spill] sm:$0xff] %v15365_v17  ;;  %v15393_v10 = vpack.i.bf16 %v2959_v48, %v14846_v43  ;;  %v11201_v2 = vunpack.i.h.bf16 %v21728_v36  ;;  %v11200_v22 = vunpack.i.l.bf16 %v21728_v36  ;;  %v2946_v39 = vsel %vm2761_vm3, %v2943_v44, %v2945_v13 }
 0x17f   : > { %11638 = vrot.lane.b32.xlu0 %v14890_v31, %s12361_s23  ;;  %10759 = vmatprep.subr.bf16.mxu0 %v15370_v61  ;;  %v15402_v46 = vsel %vm2191_vm7, %v15085_v20, %v11190_v19  ;;  %v21731_v43 = vunpack.c.l.bf16 %v15330_v6  ;;  %v15413_v36 = vsel %vm2191_vm7, %v15090_v9, %v11191_v63  ;;  %v2948_v44 = vrot.slane %v21732_v40, 2 }
 0x180   : > { %21727 = vst [vmem:[#allocation192_spill] sm:$0xff] %v15393_v10  ;;  %v21733_v10 = vld [vmem:[#allocation129_spill] sm:$0xff]  ;;  %v21734_v20 = vunpack.c.l.bf16 %v15352_v25  ;;  %v15429_v9 = vsel %vm2191_vm7, %v15101_v41, %v11205_v5  ;;  %v15431_v63 = vpack.i.bf16 %v2946_v39, %v2944_v51  ;;  %v21740_v41 = vld [vmem:[#allocation175_spill] sm:$0xff] }
 0x181   : > { %v15405_v30 = vpop.permute.xlu0 %11358  ;;  %11653 = vrot.lane.b32.xlu1 %v21677_v27, %s12364_s28  ;;  %v2960_v48 = vrot.slane %v21731_v43, 2  ;;  %v2950_v31 = vrot.slane %v21733_v10, 2  ;;  %v21735_v27 = vld [vmem:[#allocation183_spill] sm:$0xff]  ;;  %v15425_v6 = vpop.permute.xlu1 %11373  ;;  %v11211_v5 = vunpack.i.h.bf16 %v21740_v41  ;;  %v11210_v51 = vunpack.i.l.bf16 %v21740_v41  ;;  %v21745_v41 = vld [vmem:[#allocation208_spill] sm:$0xff] }
 0x182   : > { %21730 = vst [vmem:[#allocation194_spill] sm:$0xff] %v15405_v30  ;;  %v2962_v19 = vrot.slane %v21734_v20, 2  ;;  %v15421_v30 = vsel %vm2191_vm7, %v15106_v59, %v11206_v23  ;;  %21736 = vst [vmem:[#allocation197_spill] sm:$0xff] %v15425_v6  ;;  %v21738_v43 = vld [vmem:[#allocation127_spill] sm:$0xff]  ;;  %v15436_v20 = vsel %vm2191_vm7, %v15117_v28, %v11200_v22  ;;  %v15440_v59 = vsel %vm2191_vm7, %v15131_v45, %v11201_v2  ;;  %v21743_v22 = vld [vmem:[#allocation210_spill] sm:$0xff] }
 0x183   : > { %11648 = vrot.lane.b32.xlu0 %v21735_v27, %s12363_s25  ;;  %21737 = vst [vmem:[#allocation183_spill] sm:$0xff] %v15431_v63  ;;  %v2947_v10 = vrot.slane %v21738_v43, 2  ;;  %21739 = vst [vmem:[#allocation282_spill] sm:$0xff] %v15440_v59  ;;  %v11216_v23 = vunpack.i.h.bf16 %v21729_v0  ;;  %v15445_v27 = vsel %vm2191_vm7, %v15136_v4, %v11215_v53  ;;  %v21742_v43 = vld [vmem:[#allocation262_spill] sm:$0xff]  ;;  %v2961_v28 = vsel %vm2761_vm3, %v2945_v13, %v2960_v48  ;;  %v21744_v53 = vld [vmem:[#allocation213_spill] sm:$0xff] }
 0x184   : > { %v11226_v45 = vunpack.i.h.bf16 %v21743_v22  ;;  %v11225_v2 = vunpack.i.l.bf16 %v21743_v22  ;;  %v2951_v0 = vsel %vm2761_vm3, %v2948_v44, %v2950_v31  ;;  %v2963_v4 = vsel %vm2761_vm3, %v2950_v31, %v2962_v19  ;;  %v21746_v59 = vld [vmem:[#allocation196_spill] sm:$0xff]  ;;  %v21747_v48 = vld [vmem:[#allocation146_spill] sm:$0xff]  ;;  %v21749_v19 = vld [vmem:[#allocation147_spill] sm:$0xff] }
 0x185   : > { %v15449_v40 = vpop.permute.xlu0 %11368  ;;  %11663 = vrot.lane.b32.xlu1 %v21742_v43, %s12363_s25  ;;  %v11220_v25 = vunpack.i.l.bf16 %v21744_v53  ;;  %v15461_v63 = vpop.permute.xlu1 %11383  ;;  %v2949_v43 = vsel %vm2761_vm3, %v2947_v10, %v2948_v44  ;;  %v2970_v13 = vrot.slane %v21746_v59, 2  ;;  %v2971_v6 = vrot.slane %v21747_v48, 2  ;;  %v21750_v44 = vld [vmem:[#allocation215_spill] sm:$0xff] }
 0x186   : > { %21741 = vst [vmem:[#allocation175_spill] sm:$0xff] %v15449_v40  ;;  %v15468_v22 = vsel %vm2191_vm7, %v15141_v14, %v11216_v23  ;;  %v11221_v40 = vunpack.i.h.bf16 %v21744_v53  ;;  %v15471_v31 = vpack.i.bf16 %v2961_v28, %v2946_v39  ;;  %v20782_v17 = vrot.slane %v21749_v19, 2  ;;  %v21751_v14 = vld [vmem:[#allocation204_spill] sm:$0xff]  ;;  %v21754_v28 = vld [vmem:[#allocation137_spill] sm:$0xff] }
 0x187   : > { %11658 = vrot.lane.b32.xlu0 %v21745_v41, %s12366_s26  ;;  %v15476_v62 = vsel %vm2191_vm7, %v15165_v16, %v11210_v51  ;;  %v15480_v10 = vsel %vm2191_vm7, %v15170_v37, %v11211_v5  ;;  %v11235_v48 = vunpack.i.l.bf16 %v21750_v44  ;;  %v15487_v23 = vpack.i.bf16 %v2963_v4, %v2951_v0 }
 0x188   : > { %21748 = vst [vmem:[#allocation262_spill] sm:$0xff] %v15471_v31  ;;  %v15491_v39 = vsel %vm2191_vm7, %v15178_v18, %v11225_v2  ;;  %v15495_v16 = vsel %vm2191_vm7, %v15194_v34, %v11226_v45  ;;  %v11236_v37 = vunpack.i.h.bf16 %v21750_v44  ;;  %v15498_v5 = vpack.i.bf16 %v2951_v0, %v2949_v43  ;;  %v21760_v43 = vld [vmem:[#allocation209_spill] sm:$0xff]  ;;  %v21766_v31 = vld [vmem:[#allocation266_spill] sm:$0xff] }
 0x189   : > { %v15483_v59 = vpop.permute.xlu0 %11378  ;;  %11673 = vrot.lane.b32.xlu1 %v21751_v14, %s12366_s26  ;;  %21752 = vst [vmem:[#allocation210_spill] sm:$0xff] %v15487_v23  ;;  %v15502_v51 = vsel %vm2191_vm7, %v15202_v11, %v11220_v25  ;;  %v11230_v53 = vunpack.i.l.bf16 %v21754_v28  ;;  %v15507_v4 = vpop.permute.xlu1 %11393  ;;  %v15510_v18 = vsel %vm2761_vm3, %v2970_v13, %v2971_v6  ;;  %v15514_v34 = vsel %vm2191_vm7, %v15207_v3, %v11221_v40  ;;  %v21757_v25 = vld [vmem:[#allocation142_spill] sm:$0xff]  ;;  %v21761_v40 = vld [vmem:[#allocation216_spill] sm:$0xff] }
 0x18a   : > { %21753 = vst [vmem:[#allocation213_spill] sm:$0xff] %v15498_v5  ;;  %21755 = vst [vmem:[#allocation208_spill] sm:$0xff] %v15510_v18  ;;  %v11231_v45 = vunpack.i.h.bf16 %v21754_v28  ;;  %v15520_v11 = vsel %vm2761_vm3, %v2971_v6, %v20782_v17  ;;  %v21758_v2 = vunpack.c.l.bf16 %v21757_v25  ;;  %v15528_v0 = vsel %vm2191_vm7, %v15212_v38, %v11235_v48  ;;  %v21763_v38 = vld [vmem:[#allocation214_spill] sm:$0xff]  ;;  %v21764_v5 = vld [vmem:[#allocation268_spill] sm:$0xff] }
 0x18b   : > { %11668 = vrot.lane.b32.xlu0 %v21672_v47, %s12364_s28  ;;  %21756 = vst [vmem:[#allocation215_spill] sm:$0xff] %v15520_v11  ;;  %v11256_v13 = vunpack.i.h.bf16 %v21760_v43  ;;  %v11255_v3 = vunpack.i.l.bf16 %v21760_v43  ;;  %v11251_v44 = vunpack.i.h.bf16 %v21761_v40  ;;  %v15539_v6 = vsel %vm2191_vm7, %v15227_v15, %v11236_v37  ;;  %v21771_v18 = vld [vmem:[#allocation189_spill] sm:$0xff] }
 0x18c   : > { %v15524_v47 = vrot.slane %v21758_v2, 2  ;;  %21762 = vst [vmem:[#allocation137_spill] sm:$0xff] %v15539_v6  ;;  %v11250_v25 = vunpack.i.l.bf16 %v21761_v40  ;;  %v11266_v48 = vunpack.i.h.bf16 %v21763_v38  ;;  %v11265_v2 = vunpack.i.l.bf16 %v21763_v38 }
 0x18d   : > { %v15533_v28 = vpop.permute.xlu0 %11388  ;;  %11683 = vrot.lane.b32.xlu1 %v21688_v57, %s12364_s28  ;;  %v15546_v43 = vsel %vm2191_vm7, %v15235_v54, %v11230_v53  ;;  %v11261_v17 = vunpack.i.h.bf16 %v14877_v32  ;;  %v11260_v57 = vunpack.i.l.bf16 %v14877_v32  ;;  %v15552_v15 = vpop.permute.xlu1 %11403  ;;  %v15558_v40 = vsel %vm2191_vm7, %v15240_v29, %v11231_v45 }
 0x18e   : > { %21759 = vst [vmem:[#allocation204_spill] sm:$0xff] %v15524_v47  ;;  %21765 = vst [vmem:[#allocation142_spill] sm:$0xff] %v15552_v15  ;;  %v11276_v38 = vunpack.i.h.bf16 %v14904_v7  ;;  %v11275_v54 = vunpack.i.l.bf16 %v14904_v7  ;;  %v11270_v53 = vunpack.i.l.bf16 %v14924_v58  ;;  %v2226_v32 = vsel %vm20919_vm8, %v15307_v1, %v11251_v44 }
 0x18f   : > { %11678 = vrot.lane.b32.xlu0 %v21764_v5, %s12363_s25  ;;  %v11271_v5 = vunpack.i.h.bf16 %v14924_v58  ;;  %v2227_v29 = vsel %vm20919_vm8, %v15293_v52, %v11255_v3  ;;  %v2228_v45 = vsel %vm20919_vm8, %v15297_v12, %v11256_v13  ;;  %v11285_v7 = vunpack.i.l.bf16 %v14946_v60  ;;  %v21767_v3 = vld [vmem:[#allocation200_spill] sm:$0xff] }
 0x190   : > { %v2225_v37 = vsel %vm20919_vm8, %v15303_v24, %v11250_v25  ;;  %v15579_v1 = vsel %vm20919_vm8, %v15340_v42, %v11265_v2  ;;  %v15583_v58 = vsel %vm20919_vm8, %v15344_v33, %v11266_v48  ;;  %v11330_v52 = vunpack.i.l.bf16 %v15266_v26 }
 0x191   : > { %v15566_v23 = vpop.permute.xlu0 %11398  ;;  %11693 = vrot.lane.b32.xlu1 %v21766_v31, %s12363_s25  ;;  %v11331_v31 = vunpack.i.h.bf16 %v15266_v26  ;;  %v11414_v12 = vpop.permute.xlu1 %11413  ;;  %v2229_v13 = vsel %vm20919_vm8, %v15362_v8, %v11260_v57  ;;  %v15593_v24 = vsel %vm20919_vm8, %v15374_v49, %v11261_v17  ;;  %v11286_v42 = vunpack.i.h.bf16 %v14946_v60  ;;  %v21768_v60 = vld [vmem:[#allocation198_spill] sm:$0xff]  ;;  %v9992_v57 = vld [vmem:[%s20196_s2 + $0x38] sm:$0xff] }
 0x192   : > { %v15598_v33 = vsel %vm20919_vm8, %v15402_v46, %v11270_v53  ;;  %v15602_v26 = vsel %vm20919_vm8, %v15378_v56, %v11275_v54  ;;  %v15606_v44 = vsel %vm20919_vm8, %v15384_v50, %v11276_v38  ;;  %v11280_v25 = vunpack.i.l.bf16 %v14968_v35  ;;  %v9993_v38 = vld [vmem:[%s20196_s2 + $0x40] sm:$0xff]  ;;  %v21769_v54 = vld [vmem:[#allocation152_spill] sm:$0xff] }
 0x193   : > { %11688 = vrot.lane.b32.xlu0 %v21767_v3, %s12366_s26  ;;  %v11335_v17 = vunpack.i.l.bf16 %v15247_v55  ;;  %v15615_v46 = vsel %vm20919_vm8, %v15413_v36, %v11271_v5  ;;  %v11415_v56 = vunpack.i.l.bf16 %v11414_v12  ;;  %v15619_v50 = vsel %vm20919_vm8, %v15429_v9, %v11285_v7 }
 0x194   : > { %v11296_v53 = vunpack.i.h.bf16 %v21769_v54  ;;  %v11295_v36 = vunpack.i.l.bf16 %v21769_v54  ;;  %v2259_v5 = vsel %vm2257_vm9, %v2226_v32, %v11331_v31  ;;  %v2258_v9 = vsel %vm2257_vm9, %v2225_v37, %v11330_v52  ;;  %v21772_v31 = vld [vmem:[#allocation206_spill] sm:$0xff] }
 0x195   : > { %v11409_v49 = vpop.permute.xlu0 %11408  ;;  %11703 = vrot.lane.b32.xlu1 %v21768_v60, %s12366_s26  ;;  %v15632_v8 = vpop.permute.xlu1 %11423  ;;  %v11336_v7 = vunpack.i.h.bf16 %v15247_v55  ;;  %v20793_v11 = vunpack.i.l.bf16 %v21771_v18  ;;  %v11416_v15 = vunpack.i.h.bf16 %v11414_v12  ;;  %v2260_v32 = vsel %vm2257_vm9, %v2227_v29, %v11335_v17  ;;  %v21773_v55 = vld [vmem:[#allocation72_spill] sm:$0xff]  ;;  %v21775_v17 = vld [vmem:[#allocation237_spill] sm:$0xff] }
 0x196   : > { %v11411_v48 = vunpack.i.h.bf16 %v11409_v49  ;;  %v11410_v2 = vunpack.i.l.bf16 %v11409_v49  ;;  %v21770_v49 = vld [vmem:[#allocation195_spill] sm:$0xff]  ;;  %v2240_v37 = vsel %vm20919_vm8, %v15421_v30, %v11286_v42  ;;  %v10762_v52 = vpack.c.bf16 %v9993_v38, %v9992_v57 }
 0x197   : > { %11698 = vrot.lane.b32.xlu0 %v21770_v49, %s12364_s28  ;;  %v11291_v54 = vunpack.i.h.bf16 %v21773_v55  ;;  %v11290_v49 = vunpack.i.l.bf16 %v21773_v55  ;;  %v2293_v12 = vsel %vm2290_vm10, %v2260_v32, %v11415_v56  ;;  %v15657_v30 = vsel %vm20919_vm8, %v15445_v27, %v11295_v36  ;;  %v21782_v32 = vld [vmem:[#allocation265_spill] sm:$0xff] }
 0x198   : > { %v2292_v19 = vsel %vm2290_vm10, %v2259_v5, %v11411_v48  ;;  %v2291_v47 = vsel %vm2290_vm10, %v2258_v9, %v11410_v2  ;;  %v21774_v2 = vld [vmem:[#allocation188_spill] sm:$0xff]  ;;  %v15661_v42 = vsel %vm20919_vm8, %v15468_v22, %v11296_v53  ;;  %v11305_v56 = vunpack.i.l.bf16 %v21775_v17 }
 0x199   : > { %v11419_v6 = vpop.permute.xlu0 %11418  ;;  %10526 = vmatprep.mubr.msk.f32.mxu0 %vm20920_vm11, %v2291_v47  ;;  %11713 = vrot.lane.b32.xlu1 %v21772_v31, %s12364_s28  ;;  %v20792_v47 = vunpack.i.l.bf16 %v21774_v2  ;;  %v15653_v29 = vpop.permute.xlu1 %11433  ;;  %v20794_v57 = vunpack.i.h.bf16 %v21771_v18  ;;  %v2262_v38 = vsel %vm2257_vm9, %v2229_v13, %v20793_v11  ;;  %v15675_v27 = vunpack.i.h.bf16 %v15390_v21  ;;  %v21779_v5 = vld [vmem:[#allocation280_spill] sm:$0xff] }
 0x19a   : > { %v11420_v48 = vunpack.i.l.bf16 %v11419_v6  ;;  %10527 = vmatmul.mubr.msk.f32.vlgmr.msra.gmra.mrb[32].mxu0 %vm20920_vm11, %v2292_v19  ;;  %v15665_v19 = vsel %vm20919_vm8, %v15436_v20, %v11280_v25  ;;  %v15678_v22 = vunpack.i.l.bf16 %v15390_v21  ;;  %v11421_v20 = vunpack.i.h.bf16 %v11419_v6  ;;  %v9994_v6 = vld [vmem:[%s20196_s2 + $0x48] sm:$0xf] }
 0x19b   : > { %10529 = vmatprep.mubr.msk.f32.mxu0 %vm20920_vm11, %v2293_v12  ;;  %11708 = vrot.lane.b32.xlu0 %v21745_v41, %s12363_s25  ;;  %v2261_v41 = vsel %vm2257_vm9, %v2228_v45, %v11336_v7  ;;  %21776 = vst [vmem:[#allocation209_spill] sm:$0xff] %v15675_v27  ;;  %v11425_v45 = vunpack.i.l.bf16 %v15632_v8  ;;  %v2241_v13 = vsel %vm20919_vm8, %v15476_v62, %v11290_v49  ;;  %v15698_v9 = vunpack.i.l.bf16 %v21779_v5  ;;  %v21781_v7 = vld [vmem:[#allocation207_spill] sm:$0xff] }
 0x19c   : > { %10761 = vmatpush3.bf16.msra.mxu0 %v15370_v61  ;;  %21777 = vst [vmem:[#allocation216_spill] sm:$0xff] %v15678_v22  ;;  %v2294_v53 = vsel %vm2290_vm10, %v2261_v41, %v11416_v15  ;;  %v2295_v61 = vsel %vm2290_vm10, %v2262_v38, %v11420_v48  ;;  %v2242_v21 = vsel %vm20919_vm8, %v15480_v10, %v11291_v54  ;;  %v21778_v15 = vld [vmem:[#allocation249_spill] sm:$0xff]  ;;  %v15708_v31 = vunpack.i.l.bf16 %v21782_v32 }
 0x19d   : > { %v15680_v25 = vpop.permute.xlu0 %11428  ;;  %11723 = vrot.lane.b32.xlu1 %v21751_v14, %s12363_s25  ;;  %10763 = vmatprep.subr.bf16.mxu0 %v10762_v52  ;;  %v11301_v36 = vunpack.i.h.bf16 %v21778_v15  ;;  %v20791_v14 = vunpack.i.h.bf16 %v21774_v2  ;;  %21780 = vst [vmem:[#allocation214_spill] sm:$0xff] %v15698_v9  ;;  %v11444_v62 = vpop.permute.xlu1 %11443  ;;  %v2264_v10 = vsel %vm2257_vm9, %v15579_v1, %v20792_v47  ;;  %v2263_v49 = vsel %vm2257_vm9, %v15593_v24, %v20794_v57  ;;  %v21784_v38 = vld [vmem:[#allocation205_spill] sm:$0xff]  ;;  %v21832_v57 = vld [vmem:[#allocation154_spill] sm:$0xff] }
 0x19e   : > { %10530 = vmatmul.mubr.msk.f32.gmra.mrb[34].mxu0 %vm20920_vm11, %v2294_v53  ;;  %21783 = vst [vmem:[#allocation268_spill] sm:$0xff] %v15708_v31  ;;  %v11446_v55 = vunpack.i.h.bf16 %v11444_v62  ;;  %v11445_v54 = vunpack.i.l.bf16 %v11444_v62  ;;  %v11426_v48 = vunpack.i.h.bf16 %v15632_v8  ;;  %v2296_v41 = vsel %vm2290_vm10, %v2263_v49, %v11421_v20 }
 0x19f   : > { %10532 = vmatprep.mubr.msk.f32.mxu0 %vm20920_vm11, %v2295_v61  ;;  %11718 = vrot.lane.b32.xlu0 %v21781_v7, %s12366_s26  ;;  %v2272_v1 = vsel %vm2257_vm9, %v15619_v50, %v15678_v22  ;;  %v2273_v53 = vsel %vm2257_vm9, %v2240_v37, %v15675_v27  ;;  %v11430_v24 = vunpack.i.l.bf16 %v15680_v25  ;;  %v2297_v8 = vsel %vm2290_vm10, %v2264_v10, %v11425_v45  ;;  %v21786_v50 = vld [vmem:[#allocation175_spill] sm:$0xff]  ;;  %v21916_v27 = vld [vmem:[#allocation164_spill] sm:$0xff] }
 0x1a0   : > { %10765 = vmatpush3.bf16.msra.mxu0 %v10762_v52  ;;  %v2305_v52 = vsel %vm2290_vm10, %v2272_v1, %v11445_v54  ;;  %v2306_v20 = vsel %vm2290_vm10, %v2273_v53, %v11446_v55  ;;  %v11300_v61 = vunpack.i.l.bf16 %v21778_v15  ;;  %v15733_v62 = vunpack.i.h.bf16 %v21782_v32  ;;  %v21791_v1 = vld [vmem:[#allocation197_spill] sm:$0xff] }
 0x1a1   : > { %v15715_v12 = vpop.permute.xlu0 %11438  ;;  %11733 = vrot.lane.b32.xlu1 %v21784_v38, %s12366_s26  ;;  %10582 = vmatprep.subr.msk.mxu0 %vm20916_vm2, %v9994_v6  ;;  %v15736_v49 = vunpack.i.h.bf16 %v21786_v50  ;;  %v15739_v37 = vunpack.i.l.bf16 %v21786_v50  ;;  %v11454_v45 = vpop.permute.xlu1 %11453  ;;  %v15745_v10 = vunpack.i.h.bf16 %v21779_v5  ;;  %v2265_v32 = vsel %vm2257_vm9, %v15583_v58, %v20791_v14  ;;  %v21794_v14 = vld [vmem:[#allocation194_spill] sm:$0xff] }
 0x1a2   : > { %10533 = vmatmul.mubr.msk.f32.gmra.mrb[36].mxu0 %vm20920_vm11, %v2296_v41  ;;  %21785 = vst [vmem:[#allocation266_spill] sm:$0xff] %v15733_v62  ;;  %v21789_v41 = vld [vmem:[#allocation211_spill] sm:$0xff]  ;;  %10547 = vmatprep.mubr.msk.f32.mxu1 %vm20920_vm11, %v2305_v52  ;;  %v2266_v55 = vsel %vm2257_vm9, %v15598_v33, %v15708_v31  ;;  %v2268_v54 = vsel %vm2257_vm9, %v15602_v26, %v15698_v9  ;;  %v15760_v5 = vunpack.i.l.bf16 %v21791_v1  ;;  %v11435_v53 = vunpack.i.l.bf16 %v15653_v29  ;;  %v21793_v33 = vld [vmem:[#allocation212_spill] sm:$0xff] }
 0x1a3   : > { %21787 = vst [vmem:[#allocation200_spill] sm:$0xff] %v15736_v49  ;;  %21788 = vst [vmem:[#allocation198_spill] sm:$0xff] %v15739_v37  ;;  %10535 = vmatprep.mubr.msk.f32.mxu0 %vm20920_vm11, %v2297_v8  ;;  %11728 = vrot.lane.b32.xlu0 %v21789_v41, %s12364_s28  ;;  %v11431_v8 = vunpack.i.h.bf16 %v15680_v25  ;;  %v2298_v58 = vsel %vm2290_vm10, %v2265_v32, %v11426_v48  ;;  %v11455_v50 = vunpack.i.l.bf16 %v11454_v45  ;;  %v15771_v47 = vunpack.i.l.bf16 %v21794_v14  ;;  %v21940_v9 = vld [vmem:[#allocation191_spill] sm:$0xff] }
 0x1a4   : > { %21790 = vst [vmem:[#allocation152_spill] sm:$0xff] %v15745_v10  ;;  %10583 = vmatpush3.msk.msra.mxu0 %vm20916_vm2, %v9994_v6  ;;  %21792 = vst [vmem:[#allocation195_spill] sm:$0xff] %v15760_v5  ;;  %10548 = vmatmul.mubr.msk.f32.vlgmr.msra.gmra.mrb[0].mxu1 %vm20920_vm11, %v2306_v20  ;;  %v2299_v6 = vsel %vm2290_vm10, %v2266_v55, %v11430_v24  ;;  %v2274_v48 = vsel %vm2257_vm9, %v2241_v13, %v15739_v37  ;;  %v15786_v32 = vunpack.i.h.bf16 %v21791_v1 }
 0x1a5   : > { %v11449_v52 = vpop.permute.xlu0 %11448  ;;  %11743 = vrot.lane.b32.xlu1 %v21793_v33, %s12364_s28  ;;  %21795 = vst [vmem:[#allocation189_spill] sm:$0xff] %v15771_v47  ;;  %v15776_v25 = vpop.permute.xlu1 %11463  ;;  %v2267_v20 = vsel %vm2257_vm9, %v15615_v46, %v15733_v62  ;;  %v2275_v24 = vsel %vm2257_vm9, %v2242_v21, %v15736_v49  ;;  %v15789_v55 = vunpack.i.l.bf16 %v15483_v59  ;;  %v11456_v13 = vunpack.i.h.bf16 %v11454_v45  ;;  %v21942_v62 = vld [vmem:[#allocation135_spill] sm:$0xff] }
 0x1a6   : > { %v11451_v41 = vunpack.i.h.bf16 %v11449_v52  ;;  %v11450_v26 = vunpack.i.l.bf16 %v11449_v52  ;;  %10536 = vmatmul.mubr.msk.f32.gmra.mrb[38].mxu0 %vm20920_vm11, %v2298_v58  ;;  %21796 = vst [vmem:[#allocation206_spill] sm:$0xff] %v15786_v32  ;;  %v11436_v58 = vunpack.i.h.bf16 %v15653_v29  ;;  %v2300_v46 = vsel %vm2290_vm10, %v2267_v20, %v11431_v8  ;;  %v21802_v20 = vld [vmem:[#allocation178_spill] sm:$0xff] }
 0x1a7   : > { %10538 = vmatprep.mubr.msk.f32.mxu0 %vm20920_vm11, %v2299_v6  ;;  %11738 = vrot.lane.b32.xlu0 %v21767_v3, %s12363_s25  ;;  %21797 = vst [vmem:[#allocation72_spill] sm:$0xff] %v15789_v55  ;;  %v2276_v21 = vsel %vm2257_vm9, %v15657_v30, %v15760_v5  ;;  %v11440_v1 = vunpack.i.l.bf16 %v15715_v12  ;;  %v2301_v29 = vsel %vm2290_vm10, %v2268_v54, %v11435_v53  ;;  %v15807_v8 = vunpack.i.h.bf16 %v21794_v14 }
 0x1a8   : > { %v2307_v3 = vsel %vm2290_vm10, %v2274_v48, %v11450_v26  ;;  %v2308_v52 = vsel %vm2290_vm10, %v2275_v24, %v11451_v41  ;;  %v2309_v45 = vsel %vm2290_vm10, %v2276_v21, %v11455_v50  ;;  %v2270_v41 = vsel %vm2257_vm9, %v15665_v19, %v15771_v47  ;;  %v21801_v50 = vld [vmem:[#allocation218_spill] sm:$0xff] }
 0x1a9   : > { %v11459_v33 = vpop.permute.xlu0 %11458  ;;  %10550 = vmatprep.mubr.msk.f32.mxu1 %vm20920_vm11, %v2307_v3  ;;  %11753 = vrot.lane.b32.xlu1 %v21768_v60, %s12363_s25  ;;  %21798 = vst [vmem:[#allocation237_spill] sm:$0xff] %v15807_v8  ;;  %v15811_v30 = vpop.permute.xlu1 %11473  ;;  %v2269_v60 = vsel %vm2257_vm9, %v15606_v44, %v15745_v10  ;;  %v2245_v54 = vsel %vm20919_vm8, %v15502_v51, %v11300_v61  ;;  %v15822_v14 = vunpack.i.l.bf16 %v15461_v63  ;;  %v15825_v53 = vunpack.i.h.bf16 %v15483_v59  ;;  %v21930_v47 = vld [vmem:[#allocation38_spill] sm:$0xff] }
 0x1aa   : > { %v11460_v26 = vunpack.i.l.bf16 %v11459_v33  ;;  %10539 = vmatmul.mubr.msk.f32.gmra.mrb[40].mxu0 %vm20920_vm11, %v2300_v46  ;;  %10551 = vmatmul.mubr.msk.f32.gmra.mrb[2].mxu1 %vm20920_vm11, %v2308_v52  ;;  %v2277_v44 = vsel %vm2257_vm9, %v15661_v42, %v15786_v32  ;;  %v2278_v6 = vsel %vm2257_vm9, %v2245_v54, %v15789_v55  ;;  %v11441_v19 = vunpack.i.h.bf16 %v15715_v12  ;;  %v21804_v52 = vld [vmem:[#allocation282_spill] sm:$0xff]  ;;  %v21841_v54 = vld [vmem:[#allocation141_spill] sm:$0xff]  ;;  %v16156_v32 = vpop.f32.mrb[0].mxu0 }
 0x1ab   : > { %10541 = vmatprep.mubr.msk.f32.mxu0 %vm20920_vm11, %v2301_v29  ;;  %10553 = vmatprep.mubr.msk.f32.mxu1 %vm20920_vm11, %v2309_v45  ;;  %21799 = vst [vmem:[#allocation249_spill] sm:$0xff] %v15822_v14  ;;  %21800 = vst [vmem:[#allocation280_spill] sm:$0xff] %v15825_v53  ;;  %v11461_v48 = vunpack.i.h.bf16 %v11459_v33  ;;  %v2302_v61 = vsel %vm2290_vm10, %v2269_v60, %v11436_v58  ;;  %v2310_v59 = vsel %vm2290_vm10, %v2277_v44, %v11456_v13  ;;  %v21805_v33 = vld [vmem:[#allocation270_spill] sm:$0xff]  ;;  %v21807_v29 = vld [vmem:[#allocation100_spill] sm:$0xff]  ;;  %v16183_v49 = vpop.f32.mrb[1].mxu0 }
 0x1ac   : > { %11748 = vrot.lane.b32.xlu0 %v21801_v50, %s12366_s26  ;;  %v11465_v24 = vunpack.i.l.bf16 %v15776_v25  ;;  %v2303_v42 = vsel %vm2290_vm10, %v2270_v41, %v11440_v1  ;;  %v2311_v12 = vsel %vm2290_vm10, %v2278_v6, %v11460_v26  ;;  %v21803_v3 = vunpack.i.h.bf16 %v14968_v35  ;;  %v21809_v60 = vld [vmem:[#allocation217_spill] sm:$0xff]  ;;  %v21810_v41 = vld [vmem:[#allocation180_spill] sm:$0xff] }
 0x1ad   : > { %v15835_v51 = vpop.permute.xlu0 %11468  ;;  %11763 = vrot.lane.b32.xlu1 %v21802_v20, %s12366_s26  ;;  %v11306_v13 = vunpack.i.h.bf16 %v21775_v17  ;;  %v11310_v46 = vunpack.i.l.bf16 %v21805_v33  ;;  %v15854_v21 = vpop.permute.xlu1 %11483  ;;  %v2246_v1 = vsel %vm20919_vm8, %v15514_v34, %v11301_v36  ;;  %v2247_v35 = vsel %vm20919_vm8, %v15491_v39, %v11305_v56 }
 0x1ae   : > { %10542 = vmatmul.mubr.msk.f32.gmra.mrb[42].mxu0 %vm20920_vm11, %v2302_v61  ;;  %10554 = vmatmul.mubr.msk.f32.gmra.mrb[4].mxu1 %vm20920_vm11, %v2310_v59  ;;  %v2238_v58 = vsel %vm20919_vm8, %v21804_v52, %v21803_v3  ;;  %v15865_v26 = vunpack.i.h.bf16 %v15461_v63  ;;  %v2279_v15 = vsel %vm2257_vm9, %v2246_v1, %v15825_v53  ;;  %v2280_v34 = vsel %vm2257_vm9, %v2247_v35, %v15822_v14  ;;  %v21811_v61 = vld [vmem:[#allocation125_spill] sm:$0xff]  ;;  %v21837_v3 = vld [vmem:[#allocation183_spill] sm:$0xff] }
 0x1af   : > { %10544 = vmatprep.mubr.msk.f32.mxu0 %vm20920_vm11, %v2303_v42  ;;  %10556 = vmatprep.mubr.msk.f32.mxu1 %vm20920_vm11, %v2311_v12  ;;  %v2271_v45 = vsel %vm2257_vm9, %v2238_v58, %v15807_v8  ;;  %v15876_v17 = vunpack.i.l.bf16 %v15533_v28  ;;  %v11466_v39 = vunpack.i.h.bf16 %v15776_v25  ;;  %v2312_v36 = vsel %vm2290_vm10, %v2279_v15, %v11461_v48  ;;  %v21813_v12 = vld [vmem:[#allocation193_spill] sm:$0xff] }
 0x1b0   : > { %21806 = vst [vmem:[#allocation207_spill] sm:$0xff] %v15865_v26  ;;  %11758 = vrot.lane.b32.xlu0 %v21807_v29, %s12364_s28  ;;  %v2304_v63 = vsel %vm2290_vm10, %v2271_v45, %v11441_v19  ;;  %v11245_v44 = vunpack.i.l.bf16 %v21810_v41  ;;  %v11470_v6 = vunpack.i.l.bf16 %v15835_v51  ;;  %v2313_v25 = vsel %vm2290_vm10, %v2280_v34, %v11465_v24  ;;  %v21818_v29 = vld [vmem:[#allocation203_spill] sm:$0xff]  ;;  %v21820_v34 = vld [vmem:[#allocation166_spill] sm:$0xff] }
 0x1b1   : > { %21808 = vst [vmem:[#allocation265_spill] sm:$0xff] %v15876_v17  ;;  %v15879_v56 = vpop.permute.xlu0 %11478  ;;  %11773 = vrot.lane.b32.xlu1 %v21809_v60, %s12364_s28  ;;  %v11315_v59 = vunpack.i.l.bf16 %v21811_v61  ;;  %v11311_v19 = vunpack.i.h.bf16 %v21805_v33  ;;  %v15894_v48 = vpop.permute.xlu1 %11493  ;;  %v2248_v42 = vsel %vm20919_vm8, %v15495_v16, %v11306_v13  ;;  %v15900_v52 = vunpack.i.h.bf16 %v15533_v28  ;;  %v21815_v33 = vld [vmem:[#allocation144_spill] sm:$0xff] }
 0x1b2   : > { %10545 = vmatmul.mubr.msk.f32.gmra.mrb[44].mxu0 %vm20920_vm11, %v2304_v63  ;;  %10557 = vmatmul.mubr.msk.f32.gmra.mrb[6].mxu1 %vm20920_vm11, %v2312_v36  ;;  %21812 = vst [vmem:[#allocation205_spill] sm:$0xff] %v15894_v48  ;;  %v2281_v24 = vsel %vm2257_vm9, %v2248_v42, %v15865_v26  ;;  %v2249_v58 = vsel %vm20919_vm8, %v15546_v43, %v11310_v46  ;;  %v15910_v35 = vunpack.i.l.bf16 %v15507_v4  ;;  %v11471_v16 = vunpack.i.h.bf16 %v15835_v51  ;;  %v21819_v51 = vld [vmem:[#allocation145_spill] sm:$0xff] }
 0x1b3   : > { %10559 = vmatprep.mubr.msk.f32.mxu1 %vm20920_vm11, %v2313_v25  ;;  %21814 = vst [vmem:[#allocation175_spill] sm:$0xff] %v15900_v52  ;;  %v2314_v28 = vsel %vm2290_vm10, %v2281_v24, %v11466_v39  ;;  %v11240_v43 = vunpack.i.l.bf16 %v21818_v29  ;;  %v11475_v46 = vunpack.i.l.bf16 %v15811_v30  ;;  %v2222_v39 = vsel %vm2191_vm7, %v21820_v34, %v11245_v44  ;;  %v21821_v25 = vld [vmem:[#allocation273_spill] sm:$0xff]  ;;  %v21823_v24 = vld [vmem:[#allocation278_spill] sm:$0xff] }
 0x1b4   : > { %11768 = vrot.lane.b32.xlu0 %v21781_v7, %s12363_s25  ;;  %21816 = vst [vmem:[#allocation211_spill] sm:$0xff] %v15910_v35  ;;  %v2282_v7 = vsel %vm2257_vm9, %v2249_v58, %v15876_v17  ;;  %v11316_v63 = vunpack.i.h.bf16 %v21811_v61  ;;  %v2251_v60 = vsel %vm20919_vm8, %v15528_v0, %v11315_v59  ;;  %v11320_v42 = vunpack.i.l.bf16 %v21821_v25  ;;  %v10246_v61 = vld [vmem:[%s12452_s20 + $0x180] sm:$0xff]   ;;  %v21824_v58 = vld [vmem:[#allocation68_spill] sm:$0xff] }
 0x1b5   : > { %v15913_v13 = vpop.permute.xlu0 %11488  ;;  %11783 = vrot.lane.b32.xlu1 %v21784_v38, %s12363_s25  ;;  %v2315_v45 = vsel %vm2290_vm10, %v2282_v7, %v11470_v6  ;;  %v15929_v36 = vpop.permute.xlu1 %11503  ;;  %v2250_v38 = vsel %vm20919_vm8, %v15558_v40, %v11311_v19  ;;  %v15937_v6 = vunpack.i.h.bf16 %v15507_v4  ;;  %v15947_v40 = vunpack.i.l.bf16 %v15566_v23 }
 0x1b6   : > { %21817 = vst [vmem:[#allocation197_spill] sm:$0xff] %v15913_v13  ;;  %10560 = vmatmul.mubr.msk.f32.gmra.mrb[8].mxu1 %vm20920_vm11, %v2314_v28  ;;  %v2283_v44 = vsel %vm2257_vm9, %v2250_v38, %v15900_v52  ;;  %v21825_v28 = vld [vmem:[#allocation69_spill] sm:$0xff]  ;;  %v11476_v0 = vunpack.i.h.bf16 %v15811_v30  ;;  %v2284_v19 = vsel %vm2257_vm9, %v2251_v60, %v15910_v35  ;;  %v11241_v34 = vunpack.i.h.bf16 %v21818_v29 }
 0x1b7   : > { %10562 = vmatprep.mubr.msk.f32.mxu1 %vm20920_vm11, %v2315_v45  ;;  %21822 = vst [vmem:[#allocation212_spill] sm:$0xff] %v15937_v6  ;;  %v10774_v7 = vpack.c.bf16 %v21825_v28, %v21824_v58  ;;  %21826 = vst [vmem:[#allocation194_spill] sm:$0xff] %v15947_v40  ;;  %v2316_v4 = vsel %vm2290_vm10, %v2283_v44, %v11471_v16  ;;  %v21827_v45 = vld [vmem:[#allocation192_spill] sm:$0xff]  ;;  %v21828_v38 = vld [vmem:[#allocation261_spill] sm:$0xff]  ;;  %v11480_v28 = vunpack.i.l.bf16 %v15879_v56  ;;  %v11321_v16 = vunpack.i.h.bf16 %v21821_v25 }
 0x1b8   : > { %11778 = vrot.lane.b32.xlu0 %v21823_v24, %s12366_s26  ;;  %v2220_v58 = vsel %vm2191_vm7, %v21828_v38, %v11240_v43  ;;  %v2317_v30 = vsel %vm2290_vm10, %v2284_v19, %v11475_v46  ;;  %v21829_v44 = vld [vmem:[#allocation137_spill] sm:$0xff]  ;;  %v15969_v11 = vunpack.c.l.bf16 %v10246_v61  ;;  %v15971_v43 = vunpack.c.h.bf16 %v10246_v61  ;;  %v443_v38 = vld [vmem:[%s12452_s20 + $0x188] ss:$16 sps:$4 sm:$0xff]  }
 0x1b9   : > { %v15950_v59 = vpop.permute.xlu0 %11498  ;;  %11793 = vrot.lane.b32.xlu1 %v21827_v45, %s12366_s26  ;;  %10775 = vmatprep.subr.bf16.mxu0 %v10774_v7  ;;  %v2252_v29 = vsel %vm20919_vm8, %v21829_v44, %v11316_v63  ;;  %v15976_v46 = vunpack.i.h.bf16 %v15566_v23  ;;  %v21834_v25 = vld [vmem:[#allocation221_spill] sm:$0xff]  ;;  %v2253_v19 = vsel %vm20919_vm8, %v2220_v58, %v11320_v42  ;;  %v11481_v61 = vunpack.i.h.bf16 %v15879_v56 }
 0x1ba   : > { %10563 = vmatmul.mubr.msk.f32.gmra.mrb[10].mxu1 %vm20920_vm11, %v2316_v4  ;;  %21830 = vst [vmem:[#allocation218_spill] sm:$0xff] %v15969_v11  ;;  %21831 = vst [vmem:[#allocation178_spill] sm:$0xff] %v15971_v43  ;;  %v11325_v4 = vunpack.i.l.bf16 %v21832_v57  ;;  %v2285_v7 = vsel %vm2257_vm9, %v2252_v29, %v15937_v6  ;;  %v2286_v23 = vsel %vm2257_vm9, %v2253_v19, %v15947_v40  ;;  %v21839_v29 = vld [vmem:[#allocation276_spill] sm:$0xff]  ;;  %v11485_v58 = vunpack.i.l.bf16 %v15854_v21 }
 0x1bb   : > { %10565 = vmatprep.mubr.msk.f32.mxu1 %vm20920_vm11, %v2317_v30  ;;  %v15965_v60 = vpop.permute.xlu1 %11513  ;;  %21833 = vst [vmem:[#allocation282_spill] sm:$0xff] %v15976_v46  ;;  %v21835_v30 = vld [vmem:[#allocation142_spill] sm:$0xff]  ;;  %v2318_v15 = vsel %vm2290_vm10, %v2285_v7, %v11476_v0  ;;  %v2221_v42 = vsel %vm2191_vm7, %v21839_v29, %v11241_v34  ;;  %v2319_v56 = vsel %vm2290_vm10, %v2286_v23, %v11480_v28  ;;  %v16002_v1 = vunpack.c.l.bf16 %v443_v38 }
 0x1bc   : > { %11788 = vrot.lane.b32.xlu0 %v21834_v25, %s12364_s28  ;;  %v15984_v63 = vunpack.i.l.bf16 %v21835_v30  ;;  %v15995_v25 = vld [vmem:[%s12452_s20 + $0x18c] sm:$0x3]  ;;  %v11326_v0 = vunpack.i.h.bf16 %v21832_v57  ;;  %v2254_v19 = vsel %vm20919_vm8, %v2221_v42, %v11321_v16  ;;  %v21842_v40 = vunpack.c.l.bf16 %v21841_v54  ;;  %21874 = vst [vmem:[#allocation221_spill] sm:$0xff] %v16156_v32  ;;  %21878 = vst [vmem:[#allocation276_spill] sm:$0xff] %v16183_v49 }
 0x1bd   : > { %v15987_v44 = vpop.permute.xlu0 %11508  ;;  %11803 = vrot.lane.b32.xlu1 %v21837_v3, %s12364_s28  ;;  %21838 = vst [vmem:[#allocation100_spill] sm:$0xff] %v15995_v25  ;;  %21840 = vst [vmem:[#allocation217_spill] sm:$0xff] %v16002_v1  ;;  %v2980_v29 = vrot.slane %v15969_v11, 2  ;;  %v2287_v57 = vsel %vm2257_vm9, %v2254_v19, %v15976_v46  ;;  %v2255_v28 = vsel %vm20919_vm8, %v2222_v39, %v11325_v4  ;;  %v11486_v16 = vunpack.i.h.bf16 %v15854_v21  ;;  %v21845_v4 = vld [vmem:[#allocation102_spill] sm:$0xff] }
 0x1be   : > { %21836 = vst [vmem:[#allocation270_spill] sm:$0xff] %v15984_v63  ;;  %10566 = vmatmul.mubr.msk.f32.gmra.mrb[12].mxu1 %vm20920_vm11, %v2318_v15  ;;  %v3006_v34 = vrot.slane %v21842_v40, 2  ;;  %v16013_v15 = vunpack.i.h.bf16 %v21835_v30  ;;  %v2320_v54 = vsel %vm2290_vm10, %v2287_v57, %v11481_v61  ;;  %v2288_v40 = vsel %vm2257_vm9, %v2255_v28, %v15984_v63  ;;  %v10247_v30 = vld [vmem:[%s12452_s20 + $0x190] sm:$0xff]   ;;  %v21847_v57 = vld [vmem:[#allocation204_spill] sm:$0xff] }
 0x1bf   : > { %10568 = vmatprep.mubr.msk.f32.mxu1 %vm20920_vm11, %v2319_v56  ;;  %v16006_v7 = vpop.permute.xlu1 %11523  ;;  %v21844_v39 = vunpack.i.h.bf16 %v21810_v41  ;;  %v2321_v21 = vsel %vm2290_vm10, %v2288_v40, %v11485_v58  ;;  %v2983_v61 = vrot.slane %v16002_v1, 2  ;;  %v21848_v28 = vld [vmem:[#allocation147_spill] sm:$0xff]  ;;  %v21852_v40 = vrot.slane %v21819_v51, 2 }
 0x1c0   : > { %21843 = vst [vmem:[#allocation180_spill] sm:$0xff] %v16013_v15  ;;  %11798 = vrot.lane.b32.xlu0 %v21801_v50, %s12363_s25  ;;  %v2981_v50 = vrot.slane %v15971_v43, 2  ;;  %v21849_v23 = vrot.slane %v21848_v28, 2 }
 0x1c1   : > { %v16022_v42 = vpop.permute.xlu0 %11518  ;;  %11813 = vrot.lane.b32.xlu1 %v21802_v20, %s12363_s25  ;;  %v2223_v56 = vsel %vm2191_vm7, %v21845_v4, %v21844_v39  ;;  %v21850_v39 = vrot.slane %v21815_v33, 2 }
 0x1c2   : > { %10569 = vmatmul.mubr.msk.f32.gmra.mrb[14].mxu1 %vm20920_vm11, %v2320_v54  ;;  %v2256_v20 = vsel %vm20919_vm8, %v2223_v56, %v11326_v0  ;;  %v16046_v41 = vsel %vm2761_vm3, %v21849_v23, %v21847_v57  ;;  %v21851_v54 = vrot.slane %v21813_v12, 2  ;;  %v16063_v0 = vld [vmem:[%s12452_s20 + $0x19c] sm:$0x3]  ;;  %v21855_v56 = vld [vmem:[#allocation262_spill] sm:$0xff]  ;;  %v21856_v57 = vunpack.c.l.bf16 %v15995_v25 }
 0x1c3   : > { %10571 = vmatprep.mubr.msk.f32.mxu1 %vm20920_vm11, %v2321_v21  ;;  %v16039_v19 = vpop.permute.xlu1 %11533  ;;  %v21853_v4 = vmov %v21850_v39  ;;  %21854 = vst [vmem:[#allocation203_spill] sm:$0xff] %v16063_v0  ;;  %v2289_v23 = vsel %vm2257_vm9, %v2256_v20, %v16013_v15  ;;  %v21860_v12 = vrot.slane %v21819_v51, 2  ;;  %v16088_v25 = vunpack.c.h.bf16 %v443_v38  ;;  %v21867_v38 = vld [vmem:[#allocation208_spill] sm:$0xff] }
 0x1c4   : > { %21846 = vst [vmem:[#allocation125_spill] sm:$0xff] %v16039_v19  ;;  %v16053_v58 = vsel %vm2761_vm3, %v21851_v54, %v21850_v39  ;;  %v16060_v21 = vsel %vm2761_vm3, %v21853_v4, %v21852_v40  ;;  %11808 = vrot.lane.b32.xlu0 %v21855_v56, %s12366_s26  ;;  %v3008_v28 = vrot.slane %v21856_v57, 2  ;;  %v16071_v39 = vunpack.c.l.bf16 %v10247_v30  ;;  %v21859_v4 = vld [vmem:[#allocation210_spill] sm:$0xff] }
 0x1c5   : > { %v16073_v54 = vunpack.c.h.bf16 %v10247_v30  ;;  %v16075_v33 = vpop.permute.xlu0 %11528  ;;  %v2322_v40 = vsel %vm2290_vm10, %v2289_v23, %v11486_v16  ;;  %11823 = vrot.lane.b32.xlu1 %v21859_v4, %s12366_s26  ;;  %v16083_v20 = vsel %vm2761_vm3, %v21860_v12, %v3006_v34  ;;  %v16086_v57 = vsel %vm2761_vm3, %v2980_v29, %v2981_v50  ;;  %21861 = vst [vmem:[#allocation273_spill] sm:$0xff] %v16088_v25  ;;  %v21863_v12 = vld [vmem:[#allocation215_spill] sm:$0xff] }
 0x1c6   : > { %21857 = vst [vmem:[#allocation145_spill] sm:$0xff] %v16071_v39  ;;  %10572 = vmatmul.mubr.msk.f32.gmra.mrb[16].mxu1 %vm20920_vm11, %v2322_v40  ;;  %v16092_v30 = vsel %vm2761_vm3, %v2981_v50, %v2983_v61  ;;  %v2990_v16 = vrot.slane %v15969_v11, 6  ;;  %v2991_v23 = vrot.slane %v15971_v43, 6  ;;  %v11837_v34 = vpack.i.bf16 %v16046_v41, %v21863_v12  ;;  %v16105_v40 = vld [vmem:[%s12452_s20] sm:$0xff]   ;;  %v347_v50 = vld [vmem:[%s12452_s20 + $0x8] ss:$16 sps:$4 sm:$0xff]  }
 0x1c7   : > { %21858 = vst [vmem:[#allocation166_spill] sm:$0xff] %v16073_v54  ;;  %v16097_v15 = vpop.permute.xlu1 %11543  ;;  %v2993_v29 = vrot.slane %v16002_v1, 6  ;;  %21864 = vst [vmem:[#allocation68_spill] sm:$0xff] %v16105_v40  ;;  %v21865_v11 = vld [vmem:[#allocation213_spill] sm:$0xff]  ;;  %v16111_v51 = vsel %vm2761_vm3, %v2983_v61, %v3008_v28  ;;  %v2985_v43 = vrot.slane %v16071_v39, 2  ;;  %v2986_v63 = vrot.slane %v16073_v54, 2 }
 0x1c8   : > { %21862 = vst [vmem:[#allocation278_spill] sm:$0xff] %v16097_v15  ;;  %11818 = vrot.lane.b32.xlu0 %v21865_v11, %s12364_s28  ;;  %v348_v41 = vld [vmem:[%s12452_s20 + $0xc] sm:$0x3]  ;;  %v21868_v1 = vpack.i.bf16 %v21863_v12, %v21867_v38  ;;  %v2988_v61 = vrot.slane %v16088_v25, 2  ;;  %v16128_v28 = vld [vmem:[%s12452_s20 + $0x10] sm:$0xff]   ;;  %v16131_v52 = vsel %vm20914_vm0, %v2990_v16, %v2991_v23  ;;  %v21870_v17 = vunpack.c.l.bf16 %v16063_v0  ;;  %v16189_v15 = vpop.f32.mrb[2].mxu0 }
 0x1c9   : > { %v16116_v46 = vpop.permute.xlu0 %11538  ;;  %21869 = vst [vmem:[#allocation192_spill] sm:$0xff] %v16128_v28  ;;  %v16136_v14 = vunpack.c.h.bf16 %v16105_v40  ;;  %v352_v12 = vld [vmem:[%s12452_s20 + $0x1c] sm:$0x3]  ;;  %v16144_v6 = vsel %vm20914_vm0, %v2991_v23, %v2993_v29  ;;  %v460_v53 = vunpack.c.l.bf16 %v348_v41  ;;  %v16154_v55 = vunpack.c.h.bf16 %v16128_v28  ;;  %v10029_v23 = vld [vmem:[%s20196_s2 + $0x50] sm:$0xff]  ;;  %21880 = vst [vmem:[#allocation141_spill] sm:$0xff] %v16189_v15 }
 0x1ca   : > { %21866 = vst [vmem:[#allocation69_spill] sm:$0xff] %v16116_v46  ;;  %11833 = vrot.lane.b32.xlu1 %v21868_v1, %s12364_s28  ;;  %v3010_v26 = vrot.slane %v21870_v17, 2  ;;  %v459_v1 = vunpack.c.l.bf16 %v347_v50  ;;  %v16150_v17 = vsel %vm2761_vm3, %v2985_v43, %v2986_v63  ;;  %v2995_v43 = vrot.slane %v16071_v39, 6 }
 0x1cb   : > { %21871 = vst [vmem:[#allocation261_spill] sm:$0xff] %v16136_v14  ;;  %v16139_v38 = vpop.permute.xlu1 %11553  ;;  %21873 = vst [vmem:[#allocation154_spill] sm:$0xff] %v16154_v55  ;;  %v2996_v41 = vrot.slane %v16073_v54, 6  ;;  %v464_v35 = vunpack.c.l.bf16 %v352_v12  ;;  %v2998_v16 = vrot.slane %v16088_v25, 6  ;;  %v4222_v32 = vrot.slane %v16136_v14, 4 }
 0x1cc   : > { %21872 = vst [vmem:[#allocation137_spill] sm:$0xff] %v16139_v38  ;;  %11828 = vrot.lane.b32.xlu0 %v21823_v24, %s12363_s25  ;;  %v463_v38 = vunpack.c.h.bf16 %v347_v50  ;;  %v16166_v24 = vsel %vm2761_vm3, %v2986_v63, %v2988_v61  ;;  %v10030_v50 = vld [vmem:[%s20196_s2 + $0x58] sm:$0xff]  ;;  %v16174_v0 = vsel %vm2761_vm3, %v2988_v61, %v3010_v26  ;;  %v4225_v63 = vrot.slane %v460_v53, 4 }
 0x1cd   : > { %v16161_v29 = vpop.permute.xlu0 %11548  ;;  %v21877_v39 = vunpack.c.l.bf16 %v16105_v40  ;;  %v4211_v12 = vrot.slane %v16136_v14, 6  ;;  %v10766_v54 = vpack.c.bf16 %v10030_v50, %v10029_v23  ;;  %v4213_v26 = vrot.slane %v459_v1, 6  ;;  %v16198_v50 = vpop.f32.mrb[3].mxu0 }
 0x1ce   : > { %21875 = vst [vmem:[#allocation142_spill] sm:$0xff] %v16161_v29  ;;  %11843 = vrot.lane.b32.xlu1 %v21827_v45, %s12363_s25  ;;  %v4223_v45 = vrot.slane %v459_v1, 4  ;;  %v21879_v61 = vunpack.c.l.bf16 %v16128_v28  ;;  %v4216_v37 = vrot.slane %v16154_v55, 6  ;;  %v4218_v46 = vrot.slane %v463_v38, 6  ;;  %21882 = vst [vmem:[#allocation204_spill] sm:$0xff] %v16198_v50 }
 0x1cf   : > { %v16178_v29 = vpop.permute.xlu1 %11563  ;;  %v4210_v5 = vrot.slane %v21877_v39, 6  ;;  %v4227_v23 = vrot.slane %v16154_v55, 4  ;;  %v4230_v1 = vrot.slane %v464_v35, 4  ;;  %10767 = vmatprep.subr.bf16.mxu1 %v10766_v54  ;;  %v16205_v49 = vsel %vm20914_vm0, %v2995_v43, %v2996_v41 }
 0x1d0   : > { %21876 = vst [vmem:[#allocation183_spill] sm:$0xff] %v16178_v29  ;;  %11838 = vrot.lane.b32.xlu0 %v11837_v34, %s12366_s26  ;;  %v4215_v25 = vrot.slane %v21879_v61, 6  ;;  %v4228_v34 = vrot.slane %v463_v38, 4  ;;  %10769 = vmatpush3.bf16.msra.mxu1 %v10766_v54  ;;  %v16212_v38 = vsel %vm20914_vm0, %v2996_v41, %v2998_v16  ;;  %v16215_v35 = vsel %vm20916_vm2, %v4222_v32, %v4223_v45  ;;  %v21887_v41 = vld [vmem:[#allocation182_spill] sm:$0xff] }
 0x1d1   : > { %v16191_v53 = vpop.permute.xlu0 %11558  ;;  %v16218_v50 = vsel %vm20916_vm2, %v4223_v45, %v4225_v63  ;;  %v16221_v61 = vsel %vm20914_vm0, %v4210_v5, %v4211_v12  ;;  %v21886_v54 = vpack.i.bf16 %v16060_v21, %v16053_v58  ;;  %v16230_v43 = vsel %vm20914_vm0, %v4211_v12, %v4213_v26 }
 0x1d2   : > { %21881 = vst [vmem:[#allocation102_spill] sm:$0xff] %v16191_v53  ;;  %11853 = vrot.lane.b32.xlu1 %v21837_v3, %s12361_s23  ;;  %v16207_v3 = vpop.f32.mrb[4].mxu0  ;;  %v16233_v16 = vsel %vm20914_vm0, %v4215_v25, %v4216_v37  ;;  %v16236_v32 = vsel %vm20914_vm0, %v4216_v37, %v4218_v46  ;;  %v21888_v45 = vunpack.c.l.bf16 %v21887_v41  ;;  %v16247_v58 = vsel %vm20916_vm2, %v4227_v23, %v4228_v34  ;;  %v21891_v25 = vld [vmem:[#allocation96_spill] sm:$0xff]  ;;  %v21893_v46 = vld [vmem:[#allocation190_spill] sm:$0xff] }
 0x1d3   : > { %21883 = vst [vmem:[#allocation147_spill] sm:$0xff] %v16207_v3  ;;  %v16209_v39 = vpop.permute.xlu1 %11573  ;;  %v16223_v15 = vpop.f32.mrb[5].mxu0  ;;  %v16250_v12 = vsel %vm20916_vm2, %v4228_v34, %v4230_v1  ;;  %v21892_v26 = vunpack.c.l.bf16 %v21891_v25  ;;  %v21898_v23 = vld [vmem:[#allocation94_spill] sm:$0xff] }
 0x1d4   : > { %21884 = vst [vmem:[#allocation262_spill] sm:$0xff] %v16209_v39  ;;  %21885 = vst [vmem:[#allocation210_spill] sm:$0xff] %v16223_v15  ;;  %11848 = vrot.lane.b32.xlu0 %v21886_v54, %s12364_s28  ;;  %v4246_v5 = vrot.slane %v21888_v45, 4  ;;  %v16240_v63 = vpop.f32.mrb[6].mxu0  ;;  %v21894_v54 = vunpack.c.l.bf16 %v21893_v46  ;;  %v21896_v15 = vld [vmem:[#allocation252_spill] sm:$0xff]  ;;  %v21899_v14 = vunpack.c.l.bf16 %v21898_v23  ;;  %v21904_v23 = vld [vmem:[#allocation7_spill] sm:$0xff] }
 0x1d5   : > { %21889 = vst [vmem:[#allocation215_spill] sm:$0xff] %v16240_v63  ;;  %v16242_v3 = vpop.permute.xlu0 %11568  ;;  %v4248_v37 = vrot.slane %v21892_v26, 4  ;;  %v16256_v45 = vpop.f32.mrb[7].mxu0  ;;  %v4232_v55 = vrot.slane %v21896_v15, 4  ;;  %v21902_v63 = vld [vmem:[#allocation6_spill] sm:$0xff]  ;;  %v21907_v26 = vld [vmem:[#allocation11_spill] sm:$0xff] }
 0x1d6   : > { %21890 = vst [vmem:[#allocation213_spill] sm:$0xff] %v16242_v3  ;;  %11863 = vrot.lane.b32.xlu1 %v21855_v56, %s12363_s25  ;;  %v4258_v41 = vrot.slane %v21894_v54, 4  ;;  %21895 = vst [vmem:[#allocation208_spill] sm:$0xff] %v16256_v45  ;;  %v21897_v56 = vld [vmem:[#allocation253_spill] sm:$0xff]  ;;  %v4235_v40 = vrot.slane %v21899_v14, 4  ;;  %v16264_v34 = vpop.f32.mrb[8].mxu0  ;;  %v21903_v14 = vpack.i.bf16 %v16083_v20, %v16060_v21 }
 0x1d7   : > { %v4233_v28 = vrot.slane %v21897_v56, 4  ;;  %21900 = vst [vmem:[#allocation182_spill] sm:$0xff] %v16264_v34  ;;  %v16266_v1 = vpop.permute.xlu1 %11583  ;;  %v21901_v54 = vld [vmem:[#allocation5_spill] sm:$0xff]  ;;  %v21905_v34 = vrot.slane %v21904_v23, 4  ;;  %v21906_v15 = vld [vmem:[#allocation10_spill] sm:$0xff]  ;;  %v16289_v53 = vpop.f32.mrb[9].mxu0 }
 0x1d8   : > { %11858 = vrot.lane.b32.xlu0 %v21903_v14, %s12366_s26  ;;  %v21908_v3 = vld [vmem:[#allocation106_spill] sm:$0xff]  ;;  %21910 = vst [vmem:[#allocation96_spill] sm:$0xff] %v16289_v53  ;;  %v21911_v21 = vld [vmem:[#allocation12_spill] sm:$0xff]  ;;  %v21913_v23 = vld [vmem:[#allocation47_spill] sm:$0xff] }
 0x1d9   : > { %v4247_v25 = vsel %vm20916_vm2, %v21905_v34, %v4246_v5  ;;  %v21909_v46 = vunpack.c.l.bf16 %v21908_v3  ;;  %v16291_v45 = vpop.permute.xlu0 %11578  ;;  %v21912_v20 = vrot.slane %v21911_v21, 4  ;;  %v21914_v56 = vrot.slane %v21913_v23, 4  ;;  %v21915_v34 = vld [vmem:[#allocation238_spill] sm:$0xff] }
 0x1da   : > { %11873 = vrot.lane.b32.xlu1 %v21865_v11, %s12361_s23  ;;  %v4237_v39 = vrot.slane %v21915_v34, 4  ;;  %v4238_v3 = vrot.slane %v21916_v27, 4  ;;  %v16306_v53 = vsel %vm20916_vm2, %v4232_v55, %v4233_v28  ;;  %v16309_v22 = vsel %vm20916_vm2, %v4233_v28, %v4235_v40  ;;  %v21920_v11 = vld [vmem:[#allocation254_spill] sm:$0xff]  ;;  %v21931_v40 = vld [vmem:[#allocation39_spill] sm:$0xff] }
 0x1db   : > { %v4260_v29 = vrot.slane %v21909_v46, 4  ;;  %v4249_v14 = vsel %vm20916_vm2, %v21912_v20, %v4248_v37  ;;  %v4259_v5 = vsel %vm20916_vm2, %v21914_v56, %v4258_v41  ;;  %v16303_v46 = vpop.f32.mrb[10].mxu0  ;;  %21918 = vst [vmem:[#allocation253_spill] sm:$0xff] %v16306_v53  ;;  %21919 = vst [vmem:[#allocation94_spill] sm:$0xff] %v16309_v22  ;;  %v21921_v21 = vunpack.c.l.bf16 %v21920_v11  ;;  %v21922_v37 = vld [vmem:[#allocation101_spill] sm:$0xff]  ;;  %v16317_v41 = vpop.permute.xlu1 %11593  ;;  %v21926_v56 = vld [vmem:[#allocation108_spill] sm:$0xff] }
 0x1dc   : > { %21917 = vst [vmem:[#allocation190_spill] sm:$0xff] %v16303_v46  ;;  %v21923_v20 = vunpack.c.l.bf16 %v21922_v37  ;;  %v16315_v8 = vpop.f32.mrb[11].mxu0  ;;  %21925 = vst [vmem:[#allocation6_spill] sm:$0xff] %v16317_v41  ;;  %v16320_v27 = vpack.i.bf16 %v4247_v25, %v21926_v56  ;;  %v21928_v46 = vld [vmem:[#allocation42_spill] sm:$0xff]  ;;  %v16328_v28 = vpack.i.bf16 %v21931_v40, %v21930_v47  ;;  %v21933_v11 = vld [vmem:[#allocation184_spill] sm:$0xff]  ;;  %v21941_v40 = vunpack.c.l.bf16 %v21940_v9 }
 0x1dd   : > { %v4240_v19 = vrot.slane %v21921_v21, 4  ;;  %21924 = vst [vmem:[#allocation5_spill] sm:$0xff] %v16315_v8  ;;  %v21929_v34 = vld [vmem:[#allocation46_spill] sm:$0xff]  ;;  %v21934_v21 = vunpack.c.l.bf16 %v21933_v11  ;;  %v16332_v37 = vpop.f32.mrb[12].mxu0  ;;  %v21937_v25 = vld [vmem:[#allocation104_spill] sm:$0xff]  ;;  %v21938_v8 = vld [vmem:[#allocation41_spill] sm:$0xff]  ;;  %v21943_v11 = vunpack.c.l.bf16 %v21942_v62  ;;  %v16362_v9 = vsel %vm20916_vm2, %v4237_v39, %v4238_v3 }
 0x1de   : > { %v4250_v23 = vrot.slane %v21923_v20, 4  ;;  %21927 = vst [vmem:[#allocation7_spill] sm:$0xff] %v16320_v27  ;;  %v16324_v55 = vpack.i.bf16 %v21929_v34, %v21928_v46  ;;  %21932 = vst [vmem:[#allocation10_spill] sm:$0xff] %v16328_v28  ;;  %v21936_v20 = vpack.i.bf16 %v16092_v30, %v16086_v57  ;;  %v16339_v56 = vpack.i.bf16 %v4249_v14, %v21937_v25  ;;  %v16348_v31 = vpop.f32.mrb[13].mxu0  ;;  %v21946_v14 = vld [vmem:[#allocation120_spill] sm:$0xff]  ;;  %v21962_v22 = vld [vmem:[#allocation21_spill] sm:$0xff] }
 0x1df   : > { %v4252_v10 = vrot.slane %v21934_v21, 4  ;;  %21935 = vst [vmem:[#allocation11_spill] sm:$0xff] %v16332_v37  ;;  %v21939_v34 = vrot.slane %v21938_v8, 4  ;;  %v4262_v47 = vrot.slane %v21941_v40, 4  ;;  %v4242_v21 = vrot.slane %v21943_v11, 4  ;;  %21944 = vst [vmem:[#allocation106_spill] sm:$0xff] %v16348_v31  ;;  %v16350_v37 = vpop.permute.xlu0 %11588  ;;  %v16380_v53 = vpop.permute.xlu1 %11603 }
 0x1e0   : > { %11868 = vrot.lane.b32.xlu0 %v21936_v20, %s12364_s28  ;;  %v21945_v57 = vpack.i.bf16 %v16111_v51, %v16092_v30  ;;  %v16357_v20 = vpack.i.bf16 %v4259_v5, %v21946_v14  ;;  %v21948_v62 = vld [vmem:[#allocation264_spill] sm:$0xff]  ;;  %v16366_v40 = vpop.f32.mrb[14].mxu0  ;;  %v16369_v25 = vsel %vm20916_vm2, %v4238_v3, %v4240_v19  ;;  %v21953_v5 = vld [vmem:[#allocation177_spill] sm:$0xff]  ;;  %v21955_v31 = vld [vmem:[#allocation187_spill] sm:$0xff]  ;;  %21958 = vst [vmem:[#allocation254_spill] sm:$0xff] %v16380_v53 }
 0x1e1   : > { %v4261_v46 = vsel %vm20916_vm2, %v21939_v34, %v4260_v29  ;;  %v21949_v29 = vunpack.c.l.bf16 %v21948_v62  ;;  %21950 = vst [vmem:[#allocation47_spill] sm:$0xff] %v16366_v40  ;;  %v21951_v11 = vld [vmem:[#allocation24_spill] sm:$0xff]  ;;  %v21956_v8 = vunpack.c.l.bf16 %v21955_v31  ;;  %v16378_v39 = vpop.f32.mrb[15].mxu0  ;;  %v21959_v62 = vld [vmem:[#allocation118_spill] sm:$0xff]  ;;  %v21967_v31 = vpack.i.bf16 %v16144_v6, %v16131_v52 }
 0x1e2   : > { %11883 = vrot.lane.b32.xlu1 %v21945_v57, %s12366_s26  ;;  %21947 = vst [vmem:[#allocation12_spill] sm:$0xff] %v16357_v20  ;;  %v21952_v30 = vrot.slane %v21951_v11, 4  ;;  %v21954_v57 = vunpack.c.l.bf16 %v21953_v5  ;;  %21957 = vst [vmem:[#allocation164_spill] sm:$0xff] %v16378_v39  ;;  %v21963_v11 = vrot.slane %v21962_v22, 4  ;;  %v16392_v41 = vpop.f32.mrb[16].mxu0  ;;  %v21970_v39 = vld [vmem:[#allocation60_spill] sm:$0xff]  ;;  %v21978_v52 = vpack.i.bf16 %v16166_v24, %v16150_v17 }
 0x1e3   : > { %v4264_v34 = vrot.slane %v21949_v29, 4  ;;  %v4254_v2 = vrot.slane %v21956_v8, 4  ;;  %v16383_v29 = vpack.i.bf16 %v4261_v46, %v21959_v62  ;;  %21966 = vst [vmem:[#allocation101_spill] sm:$0xff] %v16392_v41  ;;  %v21971_v53 = vrot.slane %v21970_v39, 4  ;;  %v21972_v22 = vld [vmem:[#allocation9_spill] sm:$0xff]  ;;  %v16410_v41 = vpop.f32.mrb[17].mxu0  ;;  %v16412_v19 = vpop.permute.xlu0 %11598 }
 0x1e4   : > { %v4251_v51 = vsel %vm20916_vm2, %v21952_v30, %v4250_v23  ;;  %v4244_v14 = vrot.slane %v21954_v57, 4  ;;  %v4253_v23 = vsel %vm20916_vm2, %v21963_v11, %v4252_v10  ;;  %v21964_v30 = vld [vmem:[#allocation259_spill] sm:$0xff]  ;;  %11878 = vrot.lane.b32.xlu0 %v21967_v31, %s12365_s29  ;;  %v21973_v40 = vrot.slane %v21972_v22, 4  ;;  %v21975_v11 = vld [vmem:[#allocation269_spill] sm:$0xff]  ;;  %21977 = vst [vmem:[#allocation184_spill] sm:$0xff] %v16410_v41  ;;  %v21979_v6 = vld [vmem:[#allocation112_spill] sm:$0xff] }
 0x1e5   : > { %v21965_v5 = vunpack.c.l.bf16 %v21964_v30  ;;  %v4263_v3 = vsel %vm20916_vm2, %v21971_v53, %v4262_v47  ;;  %v21976_v30 = vunpack.c.l.bf16 %v21975_v11  ;;  %v16421_v53 = vpack.i.bf16 %v4251_v51, %v21979_v6  ;;  %v21982_v31 = vld [vmem:[#allocation267_spill] sm:$0xff]  ;;  %v21986_v41 = vld [vmem:[#allocation58_spill] sm:$0xff]  ;;  %v21989_v47 = vld [vmem:[#allocation17_spill] sm:$0xff] }
 0x1e6   : > { %v16406_v10 = vsel %vm20916_vm2, %v21973_v40, %v4242_v21  ;;  %11893 = vrot.lane.b32.xlu1 %v21978_v52, %s12364_s28  ;;  %v21980_v21 = vld [vmem:[#allocation54_spill] sm:$0xff]  ;;  %v21983_v22 = vunpack.c.l.bf16 %v21982_v31  ;;  %v21985_v62 = vld [vmem:[#allocation55_spill] sm:$0xff]  ;;  %v21990_v46 = vrot.slane %v21989_v47, 4  ;;  %v21991_v6 = vld [vmem:[#allocation36_spill] sm:$0xff]  ;;  %v16447_v31 = vpop.permute.xlu1 %11613 }
 0x1e7   : > { %v4256_v57 = vrot.slane %v21965_v5, 4  ;;  %21974 = vst [vmem:[#allocation108_spill] sm:$0xff] %v16406_v10  ;;  %v4266_v5 = vrot.slane %v21976_v30, 4  ;;  %v21981_v40 = vrot.slane %v21980_v21, 4  ;;  %v16428_v30 = vpop.f32.mrb[18].mxu0  ;;  %v16432_v8 = vpack.i.bf16 %v21986_v41, %v21985_v62  ;;  %v21987_v17 = vld [vmem:[#allocation110_spill] sm:$0xff] }
 0x1e8   : > { %v4268_v11 = vrot.slane %v21983_v22, 4  ;;  %21984 = vst [vmem:[#allocation104_spill] sm:$0xff] %v16428_v30  ;;  %v16435_v52 = vpack.i.bf16 %v4253_v23, %v21987_v17  ;;  %v16440_v51 = vsel %vm20916_vm2, %v21990_v46, %v4244_v14  ;;  %v21992_v21 = vrot.slane %v21991_v6, 4  ;;  %21994 = vst [vmem:[#allocation135_spill] sm:$0xff] %v16447_v31  ;;  %v21995_v22 = vld [vmem:[#allocation124_spill] sm:$0xff]  ;;  %v21996_v62 = vld [vmem:[#allocation50_spill] sm:$0xff]  ;;  %11888 = vrot.lane.b32.xlu0 %v21859_v4, %s12363_s25 }
 0x1e9   : > { %v4265_v39 = vsel %vm20916_vm2, %v21981_v40, %v4264_v34  ;;  %v16445_v40 = vpop.f32.mrb[19].mxu0  ;;  %v16450_v30 = vpack.i.bf16 %v4263_v3, %v21995_v22  ;;  %v21997_v41 = vld [vmem:[#allocation52_spill] sm:$0xff]  ;;  %v21999_v14 = vld [vmem:[#allocation31_spill] sm:$0xff]  ;;  %v22007_v47 = vld [vmem:[#allocation202_spill] sm:$0xff]  ;;  %v22010_v4 = vpack.i.bf16 %v16174_v0, %v16166_v24  ;;  %v11505_v0 = vunpack.i.l.bf16 %v15929_v36 }
 0x1ea   : > { %21988 = vst [vmem:[#allocation41_spill] sm:$0xff] %v16435_v52  ;;  %v4255_v34 = vsel %vm20916_vm2, %v21992_v21, %v4254_v2  ;;  %21993 = vst [vmem:[#allocation191_spill] sm:$0xff] %v16445_v40  ;;  %v16454_v23 = vpack.i.bf16 %v21997_v41, %v21996_v62  ;;  %v22000_v46 = vrot.slane %v21999_v14, 4  ;;  %v16461_v52 = vpop.f32.mrb[20].mxu0  ;;  %v22002_v2 = vld [vmem:[#allocation122_spill] sm:$0xff]  ;;  %v22005_v62 = vld [vmem:[#allocation71_spill] sm:$0xff]  ;;  %v22008_v17 = vunpack.c.l.bf16 %v22007_v47 }
 0x1eb   : > { %22001 = vst [vmem:[#allocation120_spill] sm:$0xff] %v16461_v52  ;;  %v16466_v21 = vpack.i.bf16 %v4265_v39, %v22002_v2  ;;  %v22006_v41 = vrot.slane %v22005_v62, 4  ;;  %v16475_v10 = vpop.f32.mrb[21].mxu0  ;;  %11903 = vrot.lane.b32.xlu1 %v22010_v4, %s12366_s26  ;;  %v22011_v39 = vld [vmem:[#allocation201_spill] sm:$0xff]  ;;  %v22012_v2 = vld [vmem:[#allocation116_spill] sm:$0xff]  ;;  %v22018_v24 = vld [vmem:[#allocation66_spill] sm:$0xff] }
 0x1ec   : > { %v4257_v6 = vsel %vm20916_vm2, %v22000_v46, %v4256_v57  ;;  %v4270_v14 = vrot.slane %v22008_v17, 4  ;;  %22009 = vst [vmem:[#allocation264_spill] sm:$0xff] %v16475_v10  ;;  %v16477_v57 = vpop.permute.xlu0 %11608  ;;  %v16486_v40 = vpack.i.bf16 %v4255_v34, %v22012_v2  ;;  %v22015_v47 = vld [vmem:[#allocation65_spill] sm:$0xff]  ;;  %v16493_v10 = vpop.f32.mrb[22].mxu0  ;;  %v22019_v4 = vld [vmem:[#allocation70_spill] sm:$0xff] }
 0x1ed   : > { %v4267_v31 = vsel %vm20916_vm2, %v22006_v41, %v4266_v5  ;;  %v22014_v41 = vld [vmem:[#allocation28_spill] sm:$0xff]  ;;  %v22016_v17 = vrot.slane %v22015_v47, 4  ;;  %22017 = vst [vmem:[#allocation24_spill] sm:$0xff] %v16493_v10  ;;  %v16499_v22 = vpack.i.bf16 %v22019_v4, %v22018_v24  ;;  %v22020_v46 = vld [vmem:[#allocation114_spill] sm:$0xff]  ;;  %v16504_v2 = vpop.f32.mrb[23].mxu0  ;;  %v16506_v5 = vpop.permute.xlu1 %11623  ;;  %v22024_v47 = vld [vmem:[#allocation131_spill] sm:$0xff] }
 0x1ee   : > { %v16502_v34 = vpack.i.bf16 %v4257_v6, %v22020_v46  ;;  %22022 = vst [vmem:[#allocation187_spill] sm:$0xff] %v16504_v2  ;;  %22023 = vst [vmem:[#allocation118_spill] sm:$0xff] %v16506_v5  ;;  %v16509_v62 = vpack.i.bf16 %v4267_v31, %v22024_v47  ;;  %v16515_v3 = vpop.f32.mrb[24].mxu0  ;;  %v22030_v6 = vpack.i.bf16 %v16212_v38, %v16205_v49  ;;  %v22031_v46 = vld [vmem:[#allocation126_spill] sm:$0xff]  ;;  %v22033_v31 = vld [vmem:[#allocation84_spill] sm:$0xff] }
 0x1ef   : > { %v4269_v52 = vsel %vm20916_vm2, %v22016_v17, %v4268_v11  ;;  %v22026_v11 = vld [vmem:[#allocation62_spill] sm:$0xff]  ;;  %v22027_v17 = vld [vmem:[#allocation63_spill] sm:$0xff]  ;;  %22029 = vst [vmem:[#allocation60_spill] sm:$0xff] %v16515_v3  ;;  %v22034_v47 = vrot.slane %v22033_v31, 4  ;;  %v22036_v49 = vpack.i.bf16 %v16218_v50, %v16215_v35  ;;  %v22041_v31 = vld [vmem:[#allocation277_spill] sm:$0xff]  ;;  %v11500_v50 = vunpack.i.l.bf16 %v15950_v59 }
 0x1f0   : > { %22021 = vst [vmem:[#allocation177_spill] sm:$0xff] %v16502_v34  ;;  %22025 = vst [vmem:[#allocation21_spill] sm:$0xff] %v16509_v62  ;;  %v16513_v10 = vpack.i.bf16 %v22027_v17, %v22026_v11  ;;  %11898 = vrot.lane.b32.xlu0 %v22030_v6, %s12365_s29  ;;  %v16524_v4 = vpack.i.bf16 %v4269_v52, %v22031_v46  ;;  %v16529_v11 = vpop.f32.mrb[25].mxu0  ;;  %v11506_v17 = vunpack.i.h.bf16 %v15929_v36  ;;  %v16533_v3 = vpop.permute.xlu0 %11618  ;;  %v22038_v52 = vunpack.i.h.bf16 %v15894_v48  ;;  %v22039_v6 = vld [vmem:[#allocation97_spill] sm:$0xff]  ;;  %v22042_v36 = vld [vmem:[#allocation79_spill] sm:$0xff] }
 0x1f1   : > { %v4271_v2 = vsel %vm20916_vm2, %v22034_v47, %v4270_v14  ;;  %22035 = vst [vmem:[#allocation269_spill] sm:$0xff] %v16529_v11  ;;  %11913 = vrot.lane.b32.xlu1 %v22036_v49, %s12360_s22  ;;  %v16539_v38 = vpop.f32.mrb[26].mxu0  ;;  %v22040_v46 = vunpack.i.l.bf16 %v15894_v48  ;;  %v22043_v24 = vld [vmem:[#allocation82_spill] sm:$0xff]  ;;  %v16556_v35 = vpop.permute.xlu1 %11633  ;;  %v22090_v62 = vld [vmem:[#allocation260_spill] sm:$0xff] }
 0x1f2   : > { %22028 = vst [vmem:[#allocation259_spill] sm:$0xff] %v16513_v10  ;;  %22032 = vst [vmem:[#allocation9_spill] sm:$0xff] %v16524_v4  ;;  %v3519_v14 = vsel %vm20915_vm1, %v22039_v6, %v22038_v52  ;;  %v16551_v11 = vpack.i.bf16 %v22043_v24, %v22042_v36  ;;  %v16553_v4 = vpop.f32.mrb[27].mxu0  ;;  %v22047_v49 = vld [vmem:[#allocation138_spill] sm:$0xff]  ;;  %v22054_v36 = vunpack.i.l.bf16 %v15913_v13 }
 0x1f3   : > { %22037 = vst [vmem:[#allocation112_spill] sm:$0xff] %v16539_v38  ;;  %v3518_v47 = vsel %vm20915_vm1, %v22041_v31, %v22040_v46  ;;  %22045 = vst [vmem:[#allocation267_spill] sm:$0xff] %v16553_v4  ;;  %v16559_v38 = vpack.i.bf16 %v4271_v2, %v22047_v49  ;;  %v22049_v10 = vld [vmem:[#allocation274_spill] sm:$0xff]  ;;  %v16563_v48 = vpop.f32.mrb[28].mxu0  ;;  %v22052_v46 = vunpack.i.h.bf16 %v15913_v13  ;;  %v22053_v31 = vld [vmem:[#allocation185_spill] sm:$0xff]  ;;  %v11516_v2 = vunpack.i.h.bf16 %v15965_v60 }
 0x1f4   : > { %22044 = vst [vmem:[#allocation54_spill] sm:$0xff] %v16551_v11  ;;  %22046 = vst [vmem:[#allocation110_spill] sm:$0xff] %v16556_v35  ;;  %v22050_v52 = vunpack.c.l.bf16 %v22049_v10  ;;  %v22055_v4 = vld [vmem:[#allocation181_spill] sm:$0xff]  ;;  %v11501_v35 = vunpack.i.h.bf16 %v15950_v59  ;;  %v22056_v10 = vpack.i.bf16 %v16230_v43, %v16221_v61  ;;  %v16579_v49 = vpop.f32.mrb[29].mxu0  ;;  %v22059_v59 = vpack.i.bf16 %v16236_v32, %v16233_v16 }
 0x1f5   : > { %22048 = vst [vmem:[#allocation17_spill] sm:$0xff] %v16559_v38  ;;  %22051 = vst [vmem:[#allocation36_spill] sm:$0xff] %v16563_v48  ;;  %v3517_v24 = vsel %vm20915_vm1, %v22053_v31, %v22052_v46  ;;  %v3516_v11 = vsel %vm20915_vm1, %v22055_v4, %v22054_v36  ;;  %v16583_v46 = vsel %vm20917_vm4, %v3519_v14, %v11506_v17  ;;  %v11515_v31 = vunpack.i.l.bf16 %v15965_v60  ;;  %v16587_v36 = vpop.permute.xlu0 %11628  ;;  %v16593_v61 = vpop.f32.mrb[30].mxu0  ;;  %v22062_v17 = vld [vmem:[#allocation14_spill] sm:$0xff]  ;;  %v22064_v60 = vld [vmem:[#allocation76_spill] sm:$0xff] }
 0x1f6   : > { %v4272_v6 = vrot.slane %v22050_v52, 4  ;;  %11908 = vrot.lane.b32.xlu0 %v22056_v10, %s12359_s21  ;;  %22057 = vst [vmem:[#allocation124_spill] sm:$0xff] %v16579_v49  ;;  %v3550_v52 = vsel %vm20917_vm4, %v3518_v47, %v11505_v0  ;;  %v11511_v4 = vunpack.i.h.bf16 %v15987_v44  ;;  %22058 = vst [vmem:[#allocation31_spill] sm:$0xff] %v16587_v36  ;;  %11923 = vrot.lane.b32.xlu1 %v22059_v59, %s12359_s21  ;;  %v11510_v43 = vunpack.i.l.bf16 %v15987_v44  ;;  %v22061_v47 = vld [vmem:[#allocation13_spill] sm:$0xff]  ;;  %v22063_v10 = vld [vmem:[#allocation74_spill] sm:$0xff]  ;;  %v16603_v49 = vpop.f32.mrb[31].mxu0  ;;  %v16607_v32 = vpop.permute.xlu1 %11643 }
 0x1f7   : > { %22060 = vst [vmem:[#allocation122_spill] sm:$0xff] %v16593_v61  ;;  %v11526_v0 = vunpack.i.h.bf16 %v16006_v7  ;;  %v16601_v48 = vpack.i.bf16 %v22064_v60, %v22063_v10  ;;  %22066 = vst [vmem:[#allocation202_spill] sm:$0xff] %v16603_v49  ;;  %v3548_v13 = vsel %vm20917_vm4, %v3516_v11, %v11500_v50  ;;  %v11525_v16 = vunpack.i.l.bf16 %v16006_v7  ;;  %v22068_v59 = vld [vmem:[#allocation78_spill] sm:$0xff]  ;;  %v22070_v36 = vld [vmem:[#allocation163_spill] sm:$0xff] }
 0x1f8   : > { %22067 = vst [vmem:[#allocation201_spill] sm:$0xff] %v16607_v32  ;;  %v22069_v61 = vrot.slane %v22068_v59, 4  ;;  %v3549_v38 = vsel %vm20917_vm4, %v3517_v24, %v11501_v35  ;;  %v16615_v14 = vsel %vm20917_vm4, %v22070_v36, %v11516_v2  ;;  %v11581_v10 = vunpack.i.h.bf16 %v16291_v45  ;;  %v22072_v11 = vld [vmem:[#allocation165_spill] sm:$0xff]  ;;  %v22084_v49 = vld [vmem:[#allocation18_spill] sm:$0xff]  ;;  %v22087_v32 = vld [vmem:[#allocation156_spill] sm:$0xff] }
 0x1f9   : > { %22065 = vst [vmem:[#allocation71_spill] sm:$0xff] %v16601_v48  ;;  %v11580_v60 = vunpack.i.l.bf16 %v16291_v45  ;;  %v22071_v7 = vpack.i.bf16 %v21902_v63, %v21901_v54  ;;  %v16625_v50 = vsel %vm20917_vm4, %v22072_v11, %v11515_v31  ;;  %v11521_v24 = vunpack.i.h.bf16 %v16022_v42  ;;  %v16632_v2 = vpop.permute.xlu0 %11638  ;;  %v22076_v36 = vld [vmem:[#allocation157_spill] sm:$0xff]  ;;  %v22077_v54 = vld [vmem:[#allocation67_spill] sm:$0xff] }
 0x1fa   : > { %v4273_v44 = vsel %vm20916_vm2, %v22069_v61, %v4272_v6  ;;  %v22073_v6 = vld [vmem:[#allocation155_spill] sm:$0xff]  ;;  %22074 = vst [vmem:[#allocation116_spill] sm:$0xff] %v16632_v2  ;;  %v22075_v45 = vpack.i.bf16 %v16250_v12, %v16247_v58  ;;  %v16640_v63 = vsel %vm20917_vm4, %v22076_v36, %v11510_v43  ;;  %v16644_v31 = vsel %vm20917_vm4, %v22077_v54, %v11526_v0  ;;  %v22078_v61 = vld [vmem:[#allocation136_spill] sm:$0xff]  ;;  %v11654_v12 = vpop.permute.xlu1 %11653 }
 0x1fb   : > { %11918 = vrot.lane.b32.xlu0 %v22071_v7, %s12361_s23  ;;  %v16629_v35 = vsel %vm20917_vm4, %v22073_v6, %v11511_v4  ;;  %v11520_v4 = vunpack.i.l.bf16 %v16022_v42  ;;  %v16648_v59 = vpack.i.bf16 %v4273_v44, %v22078_v61  ;;  %v22080_v7 = vld [vmem:[#allocation162_spill] sm:$0xff]  ;;  %v11531_v58 = vunpack.i.h.bf16 %v16075_v33  ;;  %v22081_v6 = vld [vmem:[#allocation61_spill] sm:$0xff]  ;;  %v22083_v36 = vld [vmem:[#allocation16_spill] sm:$0xff] }
 0x1fc   : > { %11933 = vrot.lane.b32.xlu1 %v22075_v45, %s12360_s22  ;;  %v16652_v11 = vsel %vm20917_vm4, %v22080_v7, %v11525_v16  ;;  %v22082_v45 = vld [vmem:[#allocation64_spill] sm:$0xff]  ;;  %v3580_v0 = vsel %vm20918_vm5, %v3548_v13, %v11580_v60  ;;  %v3581_v42 = vsel %vm20918_vm5, %v3549_v38, %v11581_v10  ;;  %v10031_v16 = vld [vmem:[%s20196_s2 + $0x60] sm:$0xff]  ;;  %v10032_v44 = vld [vmem:[%s20196_s2 + $0x68] sm:$0xff]  ;;  %v11585_v7 = vunpack.i.l.bf16 %v16266_v1 }
 0x1fd   : > { %22079 = vst [vmem:[#allocation65_spill] sm:$0xff] %v16648_v59  ;;  %v22085_v54 = vld [vmem:[#allocation48_spill] sm:$0xff]  ;;  %v11656_v13 = vunpack.i.h.bf16 %v11654_v12  ;;  %v11655_v60 = vunpack.i.l.bf16 %v11654_v12  ;;  %v11649_v38 = vpop.permute.xlu0 %11648  ;;  %v22086_v10 = vpack.i.bf16 %v21907_v26, %v21906_v15  ;;  %v16680_v43 = vsel %vm20917_vm4, %v22087_v32, %v11520_v4  ;;  %v22092_v4 = vld [vmem:[#allocation81_spill] sm:$0xff] }
 0x1fe   : > { %v16671_v61 = vsel %vm20917_vm4, %v22085_v54, %v11521_v24  ;;  %v11586_v59 = vunpack.i.h.bf16 %v16266_v1  ;;  %v11651_v48 = vunpack.i.h.bf16 %v11649_v38  ;;  %v11650_v2 = vunpack.i.l.bf16 %v11649_v38  ;;  %v22088_v24 = vld [vmem:[#allocation233_spill] sm:$0xff]  ;;  %v11664_v15 = vpop.permute.xlu1 %11663  ;;  %v22091_v1 = vld [vmem:[#allocation80_spill] sm:$0xff] }
 0x1ff   : > { %11928 = vrot.lane.b32.xlu0 %v16320_v27, %s12363_s25  ;;  %v16685_v54 = vsel %vm20917_vm4, %v22088_v24, %v11531_v58  ;;  %v22089_v27 = vld [vmem:[#allocation258_spill] sm:$0xff]  ;;  %v3613_v5 = vsel %vm2158_vm6, %v3581_v42, %v22090_v62  ;;  %v10770_v26 = vpack.c.bf16 %v10032_v44, %v10031_v16  ;;  %v22094_v24 = vld [vmem:[#allocation33_spill] sm:$0xff]  ;;  %v3582_v42 = vsel %vm20918_vm5, %v3550_v52, %v11585_v7 }
 0x200   : > { %11943 = vrot.lane.b32.xlu1 %v22086_v10, %s12361_s23  ;;  %v3612_v12 = vsel %vm2158_vm6, %v3580_v0, %v22089_v27  ;;  %v3645_v32 = vsel %vm2191_vm7, %v3613_v5, %v11651_v48  ;;  %v22093_v58 = vld [vmem:[#allocation30_spill] sm:$0xff]  ;;  %v10033_v0 = vld [vmem:[%s20196_s2 + $0x70] sm:$0xf]  ;;  %v3583_v5 = vsel %vm20918_vm5, %v16583_v46, %v11586_v59  ;;  %v11590_v44 = vunpack.i.l.bf16 %v16350_v37 }
 0x201   : > { %v3644_v10 = vsel %vm2191_vm7, %v3612_v12, %v11650_v2  ;;  %v3677_v16 = vsel %vm20919_vm8, %v3645_v32, %v11656_v13  ;;  %v11659_v2 = vpop.permute.xlu0 %11658  ;;  %10771 = vmatprep.subr.bf16.mxu1 %v10770_v26  ;;  %v11666_v38 = vunpack.i.h.bf16 %v11664_v15  ;;  %v11665_v62 = vunpack.i.l.bf16 %v11664_v15 }
 0x202   : > { %v3676_v48 = vsel %vm20919_vm8, %v3644_v10, %v11655_v60  ;;  %v11661_v12 = vunpack.i.h.bf16 %v11659_v2  ;;  %v11660_v34 = vunpack.i.l.bf16 %v11659_v2  ;;  %10773 = vmatpush3.bf16.msra.mxu1 %v10770_v26  ;;  %v22095_v52 = vunpack.i.h.bf16 %v21771_v18  ;;  %v11674_v13 = vpop.permute.xlu1 %11673  ;;  %v22097_v26 = vld [vmem:[#allocation73_spill] sm:$0xff]  ;;  %v22098_v10 = vld [vmem:[#allocation75_spill] sm:$0xff] }
 0x203   : > { %11938 = vrot.lane.b32.xlu0 %v16324_v55, %s12364_s28  ;;  %v22096_v32 = vunpack.i.l.bf16 %v21771_v18  ;;  %10640 = vmatprep.subr.msk.mxu1 %vm20916_vm2, %v10033_v0  ;;  %v11591_v46 = vunpack.i.h.bf16 %v16350_v37  ;;  %v22100_v18 = vld [vmem:[#allocation186_spill] sm:$0xff]  ;;  %v22101_v37 = vld [vmem:[#allocation25_spill] sm:$0xff]  ;;  %v11676_v27 = vunpack.i.h.bf16 %v11674_v13 }
 0x204   : > { %11953 = vrot.lane.b32.xlu1 %v16339_v56, %s12363_s25  ;;  %v3709_v7 = vsel %vm2257_vm9, %v3677_v16, %v22095_v52  ;;  %v22099_v16 = vld [vmem:[#allocation35_spill] sm:$0xff] }
 0x205   : > { %v3708_v60 = vsel %vm2257_vm9, %v3676_v48, %v22096_v32  ;;  %v3741_v59 = vsel %vm2290_vm10, %v3709_v7, %v11661_v12  ;;  %v3614_v52 = vsel %vm2158_vm6, %v3582_v42, %v22099_v16  ;;  %v3615_v48 = vsel %vm2158_vm6, %v3583_v5, %v22100_v18  ;;  %v11669_v32 = vpop.permute.xlu0 %11668  ;;  %v22102_v12 = vld [vmem:[#allocation26_spill] sm:$0xff] }
 0x206   : > { %v3740_v15 = vsel %vm2290_vm10, %v3708_v60, %v11660_v34  ;;  %v11675_v34 = vunpack.i.l.bf16 %v11674_v13  ;;  %v11671_v60 = vunpack.i.h.bf16 %v11669_v32  ;;  %10641 = vmatpush3.msk.msra.mxu1 %vm20916_vm2, %v10033_v0  ;;  %v22103_v42 = vld [vmem:[#allocation6_spill] sm:$0xff]  ;;  %v3584_v5 = vsel %vm20918_vm5, %v16640_v63, %v11590_v44  ;;  %v11684_v16 = vpop.permute.xlu1 %11683 }
 0x207   : > { %11948 = vrot.lane.b32.xlu0 %v16357_v20, %s12366_s26  ;;  %10584 = vmatprep.mubr.msk.f32.mxu0 %vm20920_vm11, %v3740_v15  ;;  %v11670_v20 = vunpack.i.l.bf16 %v11669_v32  ;;  %v11596_v2 = vunpack.i.h.bf16 %v22103_v42  ;;  %v3646_v15 = vsel %vm2191_vm7, %v3614_v52, %v11665_v62  ;;  %v3647_v18 = vsel %vm2191_vm7, %v3615_v48, %v11666_v38  ;;  %v22105_v0 = vld [vmem:[#allocation94_spill] sm:$0xff]  ;;  %v22106_v32 = vld [vmem:[#allocation253_spill] sm:$0xff]  ;;  %v22109_v52 = vld [vmem:[#allocation188_spill] sm:$0xff] }
 0x208   : > { %11963 = vrot.lane.b32.xlu1 %v16328_v28, %s12364_s28  ;;  %10585 = vmatmul.mubr.msk.f32.vlgmr.msra.gmra.mrb[46].mxu0 %vm20920_vm11, %v3741_v59  ;;  %v22104_v7 = vpack.c.bf16 %v22062_v17, %v22061_v47  ;;  %v11595_v13 = vunpack.i.l.bf16 %v22103_v42  ;;  %v3585_v59 = vsel %vm20918_vm5, %v16629_v35, %v11591_v46  ;;  %v22107_v28 = vpack.i.bf16 %v22105_v0, %v22106_v32  ;;  %v22115_v32 = vld [vmem:[#allocation88_spill] sm:$0xff] }
 0x209   : > { %v3678_v63 = vsel %vm20919_vm8, %v3646_v15, %v11670_v20  ;;  %v3679_v62 = vsel %vm20919_vm8, %v3647_v18, %v11671_v60  ;;  %v22108_v38 = vpack.c.bf16 %v22082_v45, %v22081_v6  ;;  %v11686_v47 = vunpack.i.h.bf16 %v11684_v16  ;;  %v11679_v44 = vpop.permute.xlu0 %11678  ;;  %v22112_v45 = vld [vmem:[#allocation263_spill] sm:$0xff] }
 0x20a   : > { %10777 = vmatpush3.bf16.msra.mxu0 %v22104_v7  ;;  %v11685_v17 = vunpack.i.l.bf16 %v11684_v16  ;;  %v22110_v48 = vunpack.i.l.bf16 %v22109_v52  ;;  %v11681_v46 = vunpack.i.h.bf16 %v11679_v44  ;;  %v11680_v18 = vunpack.i.l.bf16 %v11679_v44  ;;  %v22113_v60 = vld [vmem:[#allocation223_spill] sm:$0xff]  ;;  %v11694_v15 = vpop.permute.xlu1 %11693 }
 0x20b   : > { %11958 = vrot.lane.b32.xlu0 %v22107_v28, %s12360_s22  ;;  %10779 = vmatprep.subr.bf16.mxu0 %v22108_v38  ;;  %v22111_v28 = vunpack.i.h.bf16 %v22109_v52  ;;  %v3616_v16 = vsel %vm2158_vm6, %v3584_v5, %v22112_v45  ;;  %v3617_v42 = vsel %vm2158_vm6, %v3585_v59, %v22113_v60  ;;  %v22114_v0 = vpack.c.bf16 %v22084_v49, %v22083_v36  ;;  %v22117_v38 = vld [vmem:[#allocation23_spill] sm:$0xff]  ;;  %v22118_v59 = vld [vmem:[#allocation22_spill] sm:$0xff] }
 0x20c   : > { %v3710_v35 = vsel %vm2257_vm9, %v3678_v63, %v22110_v48  ;;  %11973 = vrot.lane.b32.xlu1 %v16383_v29, %s12366_s26  ;;  %v22116_v63 = vld [vmem:[#allocation89_spill] sm:$0xff]  ;;  %v3649_v5 = vsel %vm2191_vm7, %v3617_v42, %v11681_v46  ;;  %v22119_v44 = vpack.i.bf16 %v22117_v38, %v22118_v59  ;;  %v22120_v52 = vld [vmem:[#allocation254_spill] sm:$0xff]  ;;  %v11600_v36 = vunpack.i.l.bf16 %v16412_v19 }
 0x20d   : > { %v3711_v20 = vsel %vm2257_vm9, %v3679_v62, %v22111_v28  ;;  %v3742_v7 = vsel %vm2290_vm10, %v3710_v35, %v11675_v34  ;;  %v10790_v62 = vpack.c.bf16 %v22116_v63, %v22115_v32  ;;  %v3586_v34 = vsel %vm20918_vm5, %v16625_v50, %v11595_v13  ;;  %v11689_v48 = vpop.permute.xlu0 %11688 }
 0x20e   : > { %v3743_v6 = vsel %vm2290_vm10, %v3711_v20, %v11676_v27  ;;  %10587 = vmatprep.mubr.msk.f32.mxu0 %vm20920_vm11, %v3742_v7  ;;  %10781 = vmatpush3.bf16.msra.mxu0 %v22114_v0  ;;  %v3648_v27 = vsel %vm2191_vm7, %v3616_v16, %v11680_v18  ;;  %v11605_v49 = vunpack.i.l.bf16 %v22120_v52  ;;  %v22121_v50 = vpack.i.bf16 %v16369_v25, %v16362_v9  ;;  %v11704_v42 = vpop.permute.xlu1 %11703  ;;  %v22123_v9 = vld [vmem:[#allocation268_spill] sm:$0xff] }
 0x20f   : > { %11968 = vrot.lane.b32.xlu0 %v22119_v44, %s12361_s23  ;;  %10588 = vmatmul.mubr.msk.f32.gmra.mrb[48].mxu0 %vm20920_vm11, %v3743_v6  ;;  %v3680_v13 = vsel %vm20919_vm8, %v3648_v27, %v11685_v17  ;;  %v3681_v35 = vsel %vm20919_vm8, %v3649_v5, %v11686_v47  ;;  %v22122_v28 = vpack.c.bf16 %v22092_v4, %v22091_v1  ;;  %v11601_v46 = vunpack.i.h.bf16 %v16412_v19  ;;  %v22124_v17 = vld [vmem:[#allocation266_spill] sm:$0xff]  ;;  %v22130_v27 = vld [vmem:[#allocation19_spill] sm:$0xff] }
 0x210   : > { %11983 = vrot.lane.b32.xlu1 %v22121_v50, %s12360_s22  ;;  %v3587_v20 = vsel %vm20918_vm5, %v16615_v14, %v11596_v2  ;;  %v11691_v18 = vunpack.i.h.bf16 %v11689_v48  ;;  %v11690_v7 = vunpack.i.l.bf16 %v11689_v48  ;;  %v11696_v6 = vunpack.i.h.bf16 %v11694_v15  ;;  %v22126_v4 = vld [vmem:[#allocation158_spill] sm:$0xff]  ;;  %v22133_v48 = vld [vmem:[#allocation44_spill] sm:$0xff]  ;;  %v22134_v50 = vld [vmem:[#allocation45_spill] sm:$0xff] }
 0x211   : > { %10783 = vmatprep.subr.bf16.mxu0 %v22122_v28  ;;  %v11695_v16 = vunpack.i.l.bf16 %v11694_v15  ;;  %v3712_v25 = vsel %vm2257_vm9, %v3680_v13, %v22123_v9  ;;  %v3713_v47 = vsel %vm2257_vm9, %v3681_v35, %v22124_v17  ;;  %v22125_v1 = vpack.c.bf16 %v22094_v24, %v22093_v58  ;;  %v22128_v24 = vld [vmem:[#allocation105_spill] sm:$0xff]  ;;  %v11699_v63 = vpop.permute.xlu0 %11698 }
 0x212   : > { %v3618_v14 = vsel %vm2158_vm6, %v3586_v34, %v22126_v4  ;;  %v3744_v19 = vsel %vm2290_vm10, %v3712_v25, %v11690_v7  ;;  %v3745_v2 = vsel %vm2290_vm10, %v3713_v47, %v11691_v18  ;;  %v22127_v15 = vpack.c.bf16 %v22098_v10, %v22097_v26  ;;  %v22129_v34 = vld [vmem:[#allocation20_spill] sm:$0xff] }
 0x213   : > { %10785 = vmatpush3.bf16.msra.mxu0 %v22125_v1  ;;  %11978 = vrot.lane.b32.xlu0 %v16421_v53, %s12363_s25  ;;  %v16816_v0 = vsel %vm20918_vm5, %v16652_v11, %v11605_v49  ;;  %v3588_v58 = vsel %vm20918_vm5, %v16680_v43, %v11600_v36  ;;  %v3619_v32 = vsel %vm2158_vm6, %v3587_v20, %v22128_v24  ;;  %v11706_v26 = vunpack.i.h.bf16 %v11704_v42  ;;  %v11714_v49 = vpop.permute.xlu1 %11713  ;;  %v22135_v20 = vld [vmem:[#allocation85_spill] sm:$0xff] }
 0x214   : > { %10787 = vmatprep.subr.bf16.mxu0 %v22127_v15  ;;  %10590 = vmatprep.mubr.msk.f32.mxu0 %vm20920_vm11, %v3744_v19  ;;  %v22131_v5 = vpack.i.bf16 %v22129_v34, %v22130_v27  ;;  %v11705_v10 = vunpack.i.l.bf16 %v11704_v42  ;;  %v11701_v38 = vunpack.i.h.bf16 %v11699_v63  ;;  %v11700_v59 = vunpack.i.l.bf16 %v11699_v63  ;;  %v22138_v42 = vld [vmem:[#allocation41_spill] sm:$0xff]  ;;  %v22140_v19 = vld [vmem:[#allocation224_spill] sm:$0xff]  ;;  %v22141_v15 = vld [vmem:[#allocation107_spill] sm:$0xff] }
 0x215   : > { %10591 = vmatmul.mubr.msk.f32.gmra.mrb[50].mxu0 %vm20920_vm11, %v3745_v2  ;;  %v3589_v11 = vsel %vm20918_vm5, %v16671_v61, %v11601_v46  ;;  %v3650_v43 = vsel %vm2191_vm7, %v3618_v14, %v11695_v16  ;;  %v3651_v44 = vsel %vm2191_vm7, %v3619_v32, %v11696_v6  ;;  %v22132_v36 = vpack.c.bf16 %v22102_v12, %v22101_v37  ;;  %v22136_v46 = vld [vmem:[#allocation86_spill] sm:$0xff]  ;;  %v11709_v37 = vpop.permute.xlu0 %11708  ;;  %v22142_v34 = vld [vmem:[#allocation37_spill] sm:$0xff]  ;;  %v22143_v27 = vld [vmem:[#allocation40_spill] sm:$0xff] }
 0x216   : > { %11993 = vrot.lane.b32.xlu1 %v22131_v5, %s12361_s23  ;;  %v10792_v13 = vpack.c.bf16 %v22134_v50, %v22133_v48  ;;  %v11606_v35 = vunpack.i.h.bf16 %v22120_v52  ;;  %v3682_v28 = vsel %vm20919_vm8, %v3650_v43, %v11700_v59  ;;  %v3683_v61 = vsel %vm20919_vm8, %v3651_v44, %v11701_v38  ;;  %v22137_v12 = vld [vmem:[#allocation214_spill] sm:$0xff]  ;;  %v22139_v52 = vld [vmem:[#allocation152_spill] sm:$0xff] }
 0x217   : > { %10789 = vmatpush3.bf16.msra.mxu0 %v22132_v36  ;;  %11988 = vrot.lane.b32.xlu0 %v16432_v8, %s12364_s28  ;;  %v10794_v18 = vpack.c.bf16 %v22136_v46, %v22135_v20  ;;  %v11716_v7 = vunpack.i.h.bf16 %v11714_v49  ;;  %v11715_v6 = vunpack.i.l.bf16 %v11714_v49  ;;  %v3714_v16 = vsel %vm2257_vm9, %v3682_v28, %v22137_v12  ;;  %v11724_v63 = vpop.permute.xlu1 %11723  ;;  %v22146_v28 = vld [vmem:[#allocation56_spill] sm:$0xff] }
 0x218   : > { %10791 = vmatprep.subr.bf16.mxu0 %v10790_v62  ;;  %v3715_v25 = vsel %vm2257_vm9, %v3683_v61, %v22139_v52  ;;  %v11711_v47 = vunpack.i.h.bf16 %v11709_v37  ;;  %v11710_v1 = vunpack.i.l.bf16 %v11709_v37  ;;  %v3746_v14 = vsel %vm2290_vm10, %v3714_v16, %v11705_v10  ;;  %v22147_v61 = vld [vmem:[#allocation57_spill] sm:$0xff] }
 0x219   : > { %v3747_v62 = vsel %vm2290_vm10, %v3715_v25, %v11706_v26  ;;  %v3620_v2 = vsel %vm2158_vm6, %v3588_v58, %v22140_v19  ;;  %v3621_v32 = vsel %vm2158_vm6, %v3589_v11, %v22141_v15  ;;  %10593 = vmatprep.mubr.msk.f32.mxu0 %vm20920_vm11, %v3746_v14  ;;  %v10796_v5 = vpack.c.bf16 %v22143_v27, %v22142_v34  ;;  %v22144_v58 = vld [vmem:[#allocation83_spill] sm:$0xff]  ;;  %v22145_v26 = vld [vmem:[#allocation161_spill] sm:$0xff]  ;;  %v11719_v44 = vpop.permute.xlu0 %11718  ;;  %v22156_v27 = vld [vmem:[#allocation170_spill] sm:$0xff] }
 0x21a   : > { %12003 = vrot.lane.b32.xlu1 %v22138_v42, %s12363_s25  ;;  %v3652_v38 = vsel %vm2191_vm7, %v3620_v2, %v11710_v1  ;;  %v3653_v59 = vsel %vm2191_vm7, %v3621_v32, %v11711_v47  ;;  %10594 = vmatmul.mubr.msk.f32.gmra.mrb[52].mxu0 %vm20920_vm11, %v3747_v62  ;;  %v10798_v10 = vpack.c.bf16 %v22145_v26, %v22144_v58  ;;  %v11530_v11 = vunpack.i.l.bf16 %v16075_v33  ;;  %v22149_v16 = vld [vmem:[#allocation237_spill] sm:$0xff]  ;;  %v22153_v62 = vld [vmem:[#allocation159_spill] sm:$0xff]  ;;  %v22154_v2 = vld [vmem:[#allocation160_spill] sm:$0xff] }
 0x21b   : > { %10793 = vmatpush3.bf16.msra.mxu0 %v10792_v13  ;;  %11998 = vrot.lane.b32.xlu0 %v16450_v30, %s12366_s26  ;;  %v3591_v43 = vsel %vm20918_vm5, %v16644_v31, %v11606_v35  ;;  %v3684_v49 = vsel %vm20919_vm8, %v3652_v38, %v11715_v6  ;;  %v3685_v36 = vsel %vm20919_vm8, %v3653_v59, %v11716_v7  ;;  %v11610_v48 = vunpack.i.l.bf16 %v16477_v57  ;;  %v11734_v37 = vpop.permute.xlu1 %11733  ;;  %v22148_v31 = vld [vmem:[#allocation189_spill] sm:$0xff]  ;;  %v22151_v6 = vld [vmem:[#allocation199_spill] sm:$0xff]  ;;  %v22158_v59 = vld [vmem:[#allocation8_spill] sm:$0xff] }
 0x21c   : > { %10795 = vmatprep.subr.bf16.mxu0 %v10794_v18  ;;  %v11721_v50 = vunpack.i.h.bf16 %v11719_v44  ;;  %v11720_v13 = vunpack.i.l.bf16 %v11719_v44  ;;  %v10800_v20 = vpack.c.bf16 %v22147_v61, %v22146_v28  ;;  %v11726_v33 = vunpack.i.h.bf16 %v11724_v63  ;;  %v22150_v18 = vld [vmem:[#allocation108_spill] sm:$0xff]  ;;  %v22157_v38 = vld [vmem:[#allocation43_spill] sm:$0xff] }
 0x21d   : > { %v11725_v46 = vunpack.i.l.bf16 %v11724_v63  ;;  %v3716_v35 = vsel %vm2257_vm9, %v3684_v49, %v22148_v31  ;;  %v3717_v25 = vsel %vm2257_vm9, %v3685_v36, %v22149_v16  ;;  %v11611_v7 = vunpack.i.h.bf16 %v16477_v57  ;;  %v22155_v63 = vld [vmem:[#allocation125_spill] sm:$0xff]  ;;  %v11729_v26 = vpop.permute.xlu0 %11728  ;;  %v22160_v28 = vld [vmem:[#allocation51_spill] sm:$0xff] }
 0x21e   : > { %12013 = vrot.lane.b32.xlu1 %v16454_v23, %s12364_s28  ;;  %v22152_v47 = vpack.i.bf16 %v22150_v18, %v22151_v6  ;;  %v3748_v1 = vsel %vm2290_vm10, %v3716_v35, %v11720_v13  ;;  %v3749_v14 = vsel %vm2290_vm10, %v3717_v25, %v11721_v50  ;;  %v10802_v32 = vpack.c.bf16 %v22154_v2, %v22153_v62  ;;  %v22161_v25 = vld [vmem:[#allocation34_spill] sm:$0xff]  ;;  %v22162_v18 = vld [vmem:[#allocation32_spill] sm:$0xff] }
 0x21f   : > { %10797 = vmatpush3.bf16.msra.mxu0 %v10796_v5  ;;  %v11536_v34 = vunpack.i.h.bf16 %v22155_v63  ;;  %v3560_v5 = vsel %vm20917_vm4, %v22156_v27, %v11530_v11  ;;  %v3622_v57 = vsel %vm2158_vm6, %v16816_v0, %v22157_v38  ;;  %v3623_v58 = vsel %vm2158_vm6, %v3591_v43, %v22158_v59  ;;  %10596 = vmatprep.mubr.msk.f32.mxu0 %vm20920_vm11, %v3748_v1  ;;  %v11744_v13 = vpop.permute.xlu1 %11743  ;;  %v22159_v43 = vld [vmem:[#allocation49_spill] sm:$0xff]  ;;  %v22164_v1 = vld [vmem:[#allocation216_spill] sm:$0xff] }
 0x220   : > { %12008 = vrot.lane.b32.xlu0 %v22152_v47, %s12360_s22  ;;  %10799 = vmatprep.subr.bf16.mxu0 %v10798_v10  ;;  %v11736_v10 = vunpack.i.h.bf16 %v11734_v37  ;;  %v11735_v44 = vunpack.i.l.bf16 %v11734_v37  ;;  %v11731_v49 = vunpack.i.h.bf16 %v11729_v26  ;;  %v11730_v36 = vunpack.i.l.bf16 %v11729_v26  ;;  %v22168_v26 = vld [vmem:[#allocation176_spill] sm:$0xff] }
 0x221   : > { %10597 = vmatmul.mubr.msk.f32.gmra.mrb[54].mxu0 %vm20920_vm11, %v3749_v14  ;;  %v3592_v11 = vsel %vm20918_vm5, %v3560_v5, %v11610_v48  ;;  %v3654_v50 = vsel %vm2191_vm7, %v3622_v57, %v11725_v46  ;;  %v3655_v0 = vsel %vm2191_vm7, %v3623_v58, %v11726_v33  ;;  %v10804_v61 = vpack.c.bf16 %v22160_v28, %v22159_v43  ;;  %v11739_v47 = vpop.permute.xlu0 %11738  ;;  %v22167_v5 = vld [vmem:[#allocation135_spill] sm:$0xff] }
 0x222   : > { %12023 = vrot.lane.b32.xlu1 %v16466_v21, %s12366_s26  ;;  %v11535_v35 = vunpack.i.l.bf16 %v22155_v63  ;;  %v3593_v37 = vsel %vm20918_vm5, %v16685_v54, %v11611_v7  ;;  %v22163_v6 = vpack.i.bf16 %v22161_v25, %v22162_v18  ;;  %v3686_v48 = vsel %vm20919_vm8, %v3654_v50, %v11730_v36  ;;  %v22166_v7 = vld [vmem:[#allocation209_spill] sm:$0xff]  ;;  %v22169_v36 = vld [vmem:[#allocation91_spill] sm:$0xff] }
 0x223   : > { %10801 = vmatpush3.bf16.msra.mxu0 %v10800_v20  ;;  %v3687_v46 = vsel %vm20919_vm8, %v3655_v0, %v11731_v49  ;;  %v11746_v33 = vunpack.i.h.bf16 %v11744_v13  ;;  %v11745_v20 = vunpack.i.l.bf16 %v11744_v13  ;;  %v3718_v14 = vsel %vm2257_vm9, %v3686_v48, %v22164_v1  ;;  %v22170_v50 = vld [vmem:[#allocation77_spill] sm:$0xff] }
 0x224   : > { %12018 = vrot.lane.b32.xlu0 %v22163_v6, %s12361_s23  ;;  %10803 = vmatprep.subr.bf16.mxu0 %v10802_v32  ;;  %v22165_v54 = vpack.i.bf16 %v16440_v51, %v22011_v39  ;;  %v3719_v62 = vsel %vm2257_vm9, %v3687_v46, %v22166_v7  ;;  %v11741_v2 = vunpack.i.h.bf16 %v11739_v47  ;;  %v11740_v63 = vunpack.i.l.bf16 %v11739_v47  ;;  %v11754_v39 = vpop.permute.xlu1 %11753  ;;  %v22175_v48 = vld [vmem:[#allocation69_spill] sm:$0xff]  ;;  %v17417_v7 = vld [vmem:[%s12452_s20 + $0x1b0] sm:$0xff]  }
 0x225   : > { %v3750_v27 = vsel %vm2290_vm10, %v3718_v14, %v11735_v44  ;;  %v3751_v32 = vsel %vm2290_vm10, %v3719_v62, %v11736_v10  ;;  %v11616_v57 = vunpack.i.h.bf16 %v22167_v5  ;;  %v11615_v58 = vunpack.i.l.bf16 %v22167_v5  ;;  %v22171_v44 = vld [vmem:[#allocation278_spill] sm:$0xff]  ;;  %v11749_v14 = vpop.permute.xlu0 %11748 }
 0x226   : > { %12033 = vrot.lane.b32.xlu1 %v22165_v54, %s12360_s22  ;;  %v3624_v49 = vsel %vm2158_vm6, %v3592_v11, %v22168_v26  ;;  %v3625_v51 = vsel %vm2158_vm6, %v3593_v37, %v22169_v36  ;;  %10599 = vmatprep.mubr.msk.f32.mxu0 %vm20920_vm11, %v3750_v27  ;;  %v3563_v0 = vsel %vm20917_vm4, %v22170_v50, %v11536_v34  ;;  %v11546_v13 = vunpack.i.h.bf16 %v22171_v44  ;;  %v22172_v11 = vld [vmem:[#allocation169_spill] sm:$0xff]  ;;  %v22176_v54 = vld [vmem:[#allocation198_spill] sm:$0xff]  ;;  %v22267_v26 = vld [vmem:[#allocation180_spill] sm:$0xff] }
 0x227   : > { %10805 = vmatpush3.bf16.msra.mxu0 %v10804_v61  ;;  %v3656_v10 = vsel %vm2191_vm7, %v3624_v49, %v11740_v63  ;;  %v3657_v43 = vsel %vm2191_vm7, %v3625_v51, %v11741_v2  ;;  %v3562_v28 = vsel %vm20917_vm4, %v22172_v11, %v11535_v35  ;;  %v22173_v61 = vld [vmem:[#allocation27_spill] sm:$0xff]  ;;  %v11541_v46 = vunpack.i.h.bf16 %v22175_v48  ;;  %v22177_v2 = vld [vmem:[#allocation200_spill] sm:$0xff]  ;;  %v22269_v36 = vld [vmem:[#allocation197_spill] sm:$0xff] }
 0x228   : > { %12028 = vrot.lane.b32.xlu0 %v16486_v40, %s12363_s25  ;;  %10600 = vmatmul.mubr.msk.f32.gmra.mrb[56].mxu0 %vm20920_vm11, %v3751_v32  ;;  %v22174_v37 = vpack.i.bf16 %v22014_v41, %v22173_v61  ;;  %v3688_v34 = vsel %vm20919_vm8, %v3656_v10, %v11745_v20  ;;  %v3689_v6 = vsel %vm20919_vm8, %v3657_v43, %v11746_v33  ;;  %v11540_v47 = vunpack.i.l.bf16 %v22175_v48  ;;  %v11764_v20 = vpop.permute.xlu1 %11763  ;;  %v22178_v49 = vld [vmem:[#allocation239_spill] sm:$0xff] }
 0x229   : > { %v3720_v62 = vsel %vm2257_vm9, %v3688_v34, %v22176_v54  ;;  %v3721_v35 = vsel %vm2257_vm9, %v3689_v6, %v22177_v2  ;;  %v3594_v63 = vsel %vm20918_vm5, %v3562_v28, %v11615_v58  ;;  %v3595_v27 = vsel %vm20918_vm5, %v3563_v0, %v11616_v57  ;;  %v22179_v0 = vld [vmem:[#allocation177_spill] sm:$0xff]  ;;  %v22183_v6 = vld [vmem:[#allocation228_spill] sm:$0xff] }
 0x22a   : > { %12043 = vrot.lane.b32.xlu1 %v22174_v37, %s12361_s23  ;;  %v11751_v32 = vunpack.i.h.bf16 %v11749_v14  ;;  %v11750_v5 = vunpack.i.l.bf16 %v11749_v14  ;;  %v3567_v33 = vsel %vm20917_vm4, %v22178_v49, %v11546_v13  ;;  %v11545_v51 = vunpack.i.l.bf16 %v22171_v44  ;;  %v22180_v28 = vld [vmem:[#allocation241_spill] sm:$0xff]  ;;  %v22181_v44 = vld [vmem:[#allocation115_spill] sm:$0xff]  ;;  %v22182_v37 = vld [vmem:[#allocation232_spill] sm:$0xff] }
 0x22b   : > { %v11756_v50 = vunpack.i.h.bf16 %v11754_v39  ;;  %v11755_v10 = vunpack.i.l.bf16 %v11754_v39  ;;  %v11621_v43 = vunpack.i.h.bf16 %v16533_v3  ;;  %v11620_v11 = vunpack.i.l.bf16 %v16533_v3  ;;  %v11759_v3 = vpop.permute.xlu0 %11758  ;;  %v22271_v54 = vld [vmem:[#allocation252_spill] sm:$0xff] }
 0x22c   : > { %12038 = vrot.lane.b32.xlu0 %v16499_v22, %s12364_s28  ;;  %v3752_v58 = vsel %vm2290_vm10, %v3720_v62, %v11750_v5  ;;  %v3753_v57 = vsel %vm2290_vm10, %v3721_v35, %v11751_v32  ;;  %v3565_v13 = vsel %vm20917_vm4, %v22180_v28, %v11541_v46  ;;  %v3564_v39 = vsel %vm20917_vm4, %v22181_v44, %v11540_v47  ;;  %v11774_v5 = vpop.permute.xlu1 %11773  ;;  %v22184_v46 = vld [vmem:[#allocation118_spill] sm:$0xff] }
 0x22d   : > { %v3626_v34 = vsel %vm2158_vm6, %v3594_v63, %v22182_v37  ;;  %v3627_v48 = vsel %vm2158_vm6, %v3595_v27, %v22183_v6  ;;  %10602 = vmatprep.mubr.msk.f32.mxu0 %vm20920_vm11, %v3752_v58  ;;  %v11766_v14 = vunpack.i.h.bf16 %v11764_v20  ;;  %v11765_v62 = vunpack.i.l.bf16 %v11764_v20  ;;  %v22185_v27 = vld [vmem:[#allocation21_spill] sm:$0xff] }
 0x22e   : > { %12053 = vrot.lane.b32.xlu1 %v22179_v0, %s12363_s25  ;;  %v11761_v35 = vunpack.i.h.bf16 %v11759_v3  ;;  %v11760_v32 = vunpack.i.l.bf16 %v11759_v3  ;;  %10603 = vmatmul.mubr.msk.f32.gmra.mrb[58].mxu0 %vm20920_vm11, %v3753_v57  ;;  %v11626_v49 = vunpack.i.h.bf16 %v22184_v46  ;;  %v11625_v47 = vunpack.i.l.bf16 %v22184_v46  ;;  %v22186_v57 = vld [vmem:[#allocation259_spill] sm:$0xff] }
 0x22f   : > { %v3658_v28 = vsel %vm2191_vm7, %v3626_v34, %v11755_v10  ;;  %v3659_v63 = vsel %vm2191_vm7, %v3627_v48, %v11756_v50  ;;  %v3596_v58 = vsel %vm20918_vm5, %v3564_v39, %v11620_v11  ;;  %v3597_v20 = vsel %vm20918_vm5, %v3565_v13, %v11621_v43  ;;  %v11769_v41 = vpop.permute.xlu0 %11768  ;;  %v22187_v10 = vld [vmem:[#allocation195_spill] sm:$0xff]  ;;  %v22188_v34 = vld [vmem:[#allocation206_spill] sm:$0xff] }
 0x230   : > { %12048 = vrot.lane.b32.xlu0 %v22185_v27, %s12366_s26  ;;  %v3690_v44 = vsel %vm20919_vm8, %v3658_v28, %v11760_v32  ;;  %v3691_v3 = vsel %vm20919_vm8, %v3659_v63, %v11761_v35  ;;  %v11776_v61 = vunpack.i.h.bf16 %v11774_v5  ;;  %v11775_v46 = vunpack.i.l.bf16 %v11774_v5  ;;  %v11784_v39 = vpop.permute.xlu1 %11783  ;;  %v22189_v32 = vld [vmem:[#allocation90_spill] sm:$0xff]  ;;  %v22190_v35 = vld [vmem:[#allocation256_spill] sm:$0xff]  ;;  %v22191_v63 = vld [vmem:[#allocation251_spill] sm:$0xff] }
 0x231   : > { %v3722_v50 = vsel %vm2257_vm9, %v3690_v44, %v22187_v10  ;;  %v3723_v48 = vsel %vm2257_vm9, %v3691_v3, %v22188_v34  ;;  %v11771_v18 = vunpack.i.h.bf16 %v11769_v41  ;;  %v11770_v11 = vunpack.i.l.bf16 %v11769_v41  ;;  %v22192_v44 = vld [vmem:[#allocation7_spill] sm:$0xff]  ;;  %v22193_v41 = vld [vmem:[#allocation142_spill] sm:$0xff] }
 0x232   : > { %12063 = vrot.lane.b32.xlu1 %v22186_v57, %s12364_s28  ;;  %v3754_v43 = vsel %vm2290_vm10, %v3722_v50, %v11765_v62  ;;  %v3755_v13 = vsel %vm2290_vm10, %v3723_v48, %v11766_v14  ;;  %v3566_v28 = vsel %vm20917_vm4, %v22189_v32, %v11545_v51  ;;  %v3628_v5 = vsel %vm2158_vm6, %v3596_v58, %v22190_v35  ;;  %v22194_v51 = vld [vmem:[#allocation9_spill] sm:$0xff] }
 0x233   : > { %v3629_v25 = vsel %vm2158_vm6, %v3597_v20, %v22191_v63  ;;  %10605 = vmatprep.mubr.msk.f32.mxu0 %vm20920_vm11, %v3754_v43  ;;  %v11551_v3 = vunpack.i.h.bf16 %v22193_v41  ;;  %v11550_v62 = vunpack.i.l.bf16 %v22193_v41  ;;  %v3660_v14 = vsel %vm2191_vm7, %v3628_v5, %v11770_v11  ;;  %v11779_v48 = vpop.permute.xlu0 %11778  ;;  %v22195_v11 = vld [vmem:[#allocation72_spill] sm:$0xff]  ;;  %v22197_v5 = vld [vmem:[#allocation137_spill] sm:$0xff] }
 0x234   : > { %12058 = vrot.lane.b32.xlu0 %v22192_v44, %s12360_s22  ;;  %v3661_v50 = vsel %vm2191_vm7, %v3629_v25, %v11771_v18  ;;  %10606 = vmatmul.mubr.msk.f32.gmra.mrb[60].mxu0 %vm20920_vm11, %v3755_v13  ;;  %v3598_v58 = vsel %vm20918_vm5, %v3566_v28, %v11625_v47  ;;  %v3599_v20 = vsel %vm20918_vm5, %v3567_v33, %v11626_v49  ;;  %v11781_v44 = vunpack.i.h.bf16 %v11779_v48  ;;  %v11794_v63 = vpop.permute.xlu1 %11793  ;;  %v22196_v18 = vld [vmem:[#allocation280_spill] sm:$0xff]  ;;  %v22198_v49 = vld [vmem:[#allocation31_spill] sm:$0xff] }
 0x235   : > { %v3692_v43 = vsel %vm20919_vm8, %v3660_v14, %v11775_v46  ;;  %v3693_v32 = vsel %vm20919_vm8, %v3661_v50, %v11776_v61  ;;  %v11780_v41 = vunpack.i.l.bf16 %v11779_v48  ;;  %v11556_v35 = vunpack.i.h.bf16 %v22197_v5  ;;  %v22199_v48 = vld [vmem:[#allocation247_spill] sm:$0xff] }
 0x236   : > { %12073 = vrot.lane.b32.xlu1 %v22194_v51, %s12366_s26  ;;  %v3724_v25 = vsel %vm2257_vm9, %v3692_v43, %v22195_v11  ;;  %v3725_v13 = vsel %vm2257_vm9, %v3693_v32, %v22196_v18  ;;  %v11555_v47 = vunpack.i.l.bf16 %v22197_v5  ;;  %v11786_v28 = vunpack.i.h.bf16 %v11784_v39  ;;  %v22200_v32 = vld [vmem:[#allocation119_spill] sm:$0xff] }
 0x237   : > { %v11785_v33 = vunpack.i.l.bf16 %v11784_v39  ;;  %v11631_v61 = vunpack.i.h.bf16 %v22198_v49  ;;  %v11630_v46 = vunpack.i.l.bf16 %v22198_v49  ;;  %v3756_v14 = vsel %vm2290_vm10, %v3724_v25, %v11780_v41  ;;  %v22201_v5 = vld [vmem:[#allocation167_spill] sm:$0xff]  ;;  %v11789_v49 = vpop.permute.xlu0 %11788 }
 0x238   : > { %12068 = vrot.lane.b32.xlu0 %v16324_v55, %s12361_s23  ;;  %v3757_v50 = vsel %vm2290_vm10, %v3725_v13, %v11781_v44  ;;  %v3569_v43 = vsel %vm20917_vm4, %v22199_v48, %v11551_v3  ;;  %v3568_v39 = vsel %vm20917_vm4, %v22200_v32, %v11550_v62  ;;  %v3630_v55 = vsel %vm2158_vm6, %v3598_v58, %v22201_v5  ;;  %v22202_v11 = vld [vmem:[#allocation243_spill] sm:$0xff]  ;;  %v22203_v3 = vld [vmem:[#allocation110_spill] sm:$0xff] }
 0x239   : > { %v3631_v18 = vsel %vm2158_vm6, %v3599_v20, %v22202_v11  ;;  %10608 = vmatprep.mubr.msk.f32.mxu0 %vm20920_vm11, %v3756_v14  ;;  %v11796_v41 = vunpack.i.h.bf16 %v11794_v63  ;;  %v11795_v44 = vunpack.i.l.bf16 %v11794_v63  ;;  %v11791_v25 = vunpack.i.h.bf16 %v11789_v49  ;;  %v22204_v20 = vld [vmem:[#allocation12_spill] sm:$0xff] }
 0x23a   : > { %12083 = vrot.lane.b32.xlu1 %v16339_v56, %s12360_s22  ;;  %v11790_v13 = vunpack.i.l.bf16 %v11789_v49  ;;  %10609 = vmatmul.mubr.msk.f32.gmra.mrb[62].mxu0 %vm20920_vm11, %v3757_v50  ;;  %v11804_v56 = vpop.permute.xlu1 %11803  ;;  %v11636_v48 = vunpack.i.h.bf16 %v22203_v3  ;;  %v11635_v62 = vunpack.i.l.bf16 %v22203_v3  ;;  %v3662_v32 = vsel %vm2191_vm7, %v3630_v55, %v11785_v33  ;;  %v22205_v50 = vld [vmem:[#allocation10_spill] sm:$0xff]  ;;  %v22206_v33 = vld [vmem:[#allocation249_spill] sm:$0xff] }
 0x23b   : > { %v3663_v58 = vsel %vm2191_vm7, %v3631_v18, %v11786_v28  ;;  %v3600_v14 = vsel %vm20918_vm5, %v3568_v39, %v11630_v46  ;;  %v3601_v63 = vsel %vm20918_vm5, %v3569_v43, %v11631_v61  ;;  %v11806_v5 = vunpack.i.h.bf16 %v11804_v56  ;;  %v11799_v37 = vpop.permute.xlu0 %11798  ;;  %v22207_v28 = vld [vmem:[#allocation207_spill] sm:$0xff] }
 0x23c   : > { %12078 = vrot.lane.b32.xlu0 %v22204_v20, %s12363_s25  ;;  %v3694_v49 = vsel %vm20919_vm8, %v3662_v32, %v11790_v13  ;;  %v3695_v11 = vsel %vm20919_vm8, %v3663_v58, %v11791_v25  ;;  %v11805_v3 = vunpack.i.l.bf16 %v11804_v56  ;;  %v11801_v6 = vunpack.i.h.bf16 %v11799_v37  ;;  %v22208_v13 = vld [vmem:[#allocation245_spill] sm:$0xff]  ;;  %v22209_v25 = vld [vmem:[#allocation95_spill] sm:$0xff]  ;;  %v22210_v58 = vld [vmem:[#allocation168_spill] sm:$0xff] }
 0x23d   : > { %v3726_v18 = vsel %vm2257_vm9, %v3694_v49, %v22206_v33  ;;  %v3727_v55 = vsel %vm2257_vm9, %v3695_v11, %v22207_v28  ;;  %v11800_v46 = vunpack.i.l.bf16 %v11799_v37  ;;  %v3571_v32 = vsel %vm20917_vm4, %v22208_v13, %v11556_v35  ;;  %v22211_v11 = vld [vmem:[#allocation54_spill] sm:$0xff]  ;;  %v22212_v37 = vld [vmem:[#allocation117_spill] sm:$0xff]  ;;  %v22222_v33 = vld [vmem:[#allocation255_spill] sm:$0xff] }
 0x23e   : > { %12093 = vrot.lane.b32.xlu1 %v22205_v50, %s12361_s23  ;;  %v3758_v61 = vsel %vm2290_vm10, %v3726_v18, %v11795_v44  ;;  %v3759_v43 = vsel %vm2290_vm10, %v3727_v55, %v11796_v41  ;;  %v11814_v39 = vpop.permute.xlu1 %11813  ;;  %v3632_v56 = vsel %vm2158_vm6, %v3600_v14, %v22209_v25  ;;  %v3633_v50 = vsel %vm2158_vm6, %v3601_v63, %v22210_v58  ;;  %v22220_v25 = vld [vmem:[#allocation93_spill] sm:$0xff] }
 0x23f   : > { %10611 = vmatprep.mubr.msk.f32.mxu0 %vm20920_vm11, %v3758_v61  ;;  %v3570_v44 = vsel %vm20917_vm4, %v22212_v37, %v11555_v47  ;;  %v3664_v41 = vsel %vm2191_vm7, %v3632_v56, %v11800_v46  ;;  %v3665_v49 = vsel %vm2191_vm7, %v3633_v50, %v11801_v6  ;;  %v3603_v14 = vsel %vm20918_vm5, %v3571_v32, %v11636_v48  ;;  %v11809_v63 = vpop.permute.xlu0 %11808  ;;  %v22213_v46 = vld [vmem:[#allocation265_spill] sm:$0xff]  ;;  %v22214_v56 = vld [vmem:[#allocation175_spill] sm:$0xff]  ;;  %v22215_v50 = vld [vmem:[#allocation102_spill] sm:$0xff] }
 0x240   : > { %12088 = vrot.lane.b32.xlu0 %v22211_v11, %s12364_s28  ;;  %10612 = vmatmul.mubr.msk.f32.gmra.mrb[64].mxu0 %vm20920_vm11, %v3759_v43  ;;  %v3602_v35 = vsel %vm20918_vm5, %v3570_v44, %v11635_v62  ;;  %v3696_v18 = vsel %vm20919_vm8, %v3664_v41, %v11805_v3  ;;  %v3697_v55 = vsel %vm20919_vm8, %v3665_v49, %v11806_v5  ;;  %v11811_v61 = vunpack.i.h.bf16 %v11809_v63  ;;  %v22216_v32 = vld [vmem:[#allocation17_spill] sm:$0xff]  ;;  %v22217_v3 = vld [vmem:[#allocation116_spill] sm:$0xff] }
 0x241   : > { %v11810_v47 = vunpack.i.l.bf16 %v11809_v63  ;;  %v3728_v6 = vsel %vm2257_vm9, %v3696_v18, %v22213_v46  ;;  %v3729_v43 = vsel %vm2257_vm9, %v3697_v55, %v22214_v56  ;;  %v11561_v37 = vunpack.i.h.bf16 %v22215_v50  ;;  %v22218_v18 = vld [vmem:[#allocation71_spill] sm:$0xff]  ;;  %v22221_v56 = vld [vmem:[#allocation130_spill] sm:$0xff] }
 0x242   : > { %12103 = vrot.lane.b32.xlu1 %v16383_v29, %s12363_s25  ;;  %v11824_v13 = vpop.permute.xlu1 %11823  ;;  %v11560_v62 = vunpack.i.l.bf16 %v22215_v50  ;;  %v11816_v44 = vunpack.i.h.bf16 %v11814_v39  ;;  %v11815_v48 = vunpack.i.l.bf16 %v11814_v39  ;;  %v11641_v5 = vunpack.i.h.bf16 %v22217_v3  ;;  %v22219_v55 = vld [vmem:[#allocation183_spill] sm:$0xff] }
 0x243   : > { %v11640_v41 = vunpack.i.l.bf16 %v22217_v3  ;;  %v3760_v49 = vsel %vm2290_vm10, %v3728_v6, %v11810_v47  ;;  %v3761_v63 = vsel %vm2290_vm10, %v3729_v43, %v11811_v61  ;;  %v11566_v58 = vunpack.i.h.bf16 %v22219_v55  ;;  %v11819_v28 = vpop.permute.xlu0 %11818 }
 0x244   : > { %12098 = vrot.lane.b32.xlu0 %v22216_v32, %s12366_s26  ;;  %v11565_v50 = vunpack.i.l.bf16 %v22219_v55  ;;  %v3634_v39 = vsel %vm2158_vm6, %v3602_v35, %v22220_v25  ;;  %v3635_v46 = vsel %vm2158_vm6, %v3603_v14, %v22221_v56  ;;  %10614 = vmatprep.mubr.msk.f32.mxu0 %vm20920_vm11, %v3760_v49  ;;  %v11826_v3 = vunpack.i.h.bf16 %v11824_v13  ;;  %v22223_v55 = vld [vmem:[#allocation123_spill] sm:$0xff]  ;;  %v22229_v56 = vld [vmem:[#allocation98_spill] sm:$0xff]  ;;  %v22263_v25 = vld [vmem:[#allocation129_spill] sm:$0xff] }
 0x245   : > { %v11825_v47 = vunpack.i.l.bf16 %v11824_v13  ;;  %v11821_v6 = vunpack.i.h.bf16 %v11819_v28  ;;  %v11820_v61 = vunpack.i.l.bf16 %v11819_v28  ;;  %10615 = vmatmul.mubr.msk.f32.gmra.mrb[66].mxu0 %vm20920_vm11, %v3761_v63  ;;  %v3573_v34 = vsel %vm20917_vm4, %v22222_v33, %v11561_v37  ;;  %v22224_v63 = vld [vmem:[#allocation65_spill] sm:$0xff] }
 0x246   : > { %12113 = vrot.lane.b32.xlu1 %v22218_v18, %s12364_s28  ;;  %v11834_v43 = vpop.permute.xlu1 %11833  ;;  %v3572_v10 = vsel %vm20917_vm4, %v22223_v55, %v11560_v62  ;;  %v3666_v35 = vsel %vm2191_vm7, %v3634_v39, %v11815_v48  ;;  %v3667_v14 = vsel %vm2191_vm7, %v3635_v46, %v11816_v44  ;;  %v3605_v28 = vsel %vm20918_vm5, %v3573_v34, %v11641_v5  ;;  %v22225_v48 = vld [vmem:[#allocation211_spill] sm:$0xff]  ;;  %v22226_v44 = vld [vmem:[#allocation212_spill] sm:$0xff] }
 0x247   : > { %v3604_v13 = vsel %vm20918_vm5, %v3572_v10, %v11640_v41  ;;  %v3698_v49 = vsel %vm20919_vm8, %v3666_v35, %v11820_v61  ;;  %v3699_v33 = vsel %vm20919_vm8, %v3667_v14, %v11821_v6  ;;  %v11836_v37 = vunpack.i.h.bf16 %v11834_v43  ;;  %v11829_v55 = vpop.permute.xlu0 %11828  ;;  %v22227_v61 = vld [vmem:[#allocation201_spill] sm:$0xff]  ;;  %v22228_v14 = vld [vmem:[#allocation271_spill] sm:$0xff] }
 0x248   : > { %12108 = vrot.lane.b32.xlu0 %v16421_v53, %s12360_s22  ;;  %v11835_v62 = vunpack.i.l.bf16 %v11834_v43  ;;  %v3730_v46 = vsel %vm2257_vm9, %v3698_v49, %v22225_v48  ;;  %v3731_v53 = vsel %vm2257_vm9, %v3699_v33, %v22226_v44  ;;  %v11831_v39 = vunpack.i.h.bf16 %v11829_v55  ;;  %v22230_v33 = vld [vmem:[#allocation132_spill] sm:$0xff]  ;;  %v22265_v48 = vld [vmem:[#allocation262_spill] sm:$0xff] }
 0x249   : > { %v11830_v10 = vunpack.i.l.bf16 %v11829_v55  ;;  %v3762_v34 = vsel %vm2290_vm10, %v3730_v46, %v11825_v47  ;;  %v3763_v5 = vsel %vm2290_vm10, %v3731_v53, %v11826_v3  ;;  %v11646_v35 = vunpack.i.h.bf16 %v22227_v61  ;;  %v22231_v55 = vld [vmem:[#allocation133_spill] sm:$0xff]  ;;  %v22232_v46 = vld [vmem:[#allocation279_spill] sm:$0xff] }
 0x24a   : > { %12123 = vrot.lane.b32.xlu1 %v22224_v63, %s12366_s26  ;;  %v11844_v41 = vpop.permute.xlu1 %11843  ;;  %v11645_v6 = vunpack.i.l.bf16 %v22227_v61  ;;  %v3636_v43 = vsel %vm2158_vm6, %v3604_v13, %v22228_v14  ;;  %v3637_v49 = vsel %vm2158_vm6, %v3605_v28, %v22229_v56  ;;  %10617 = vmatprep.mubr.msk.f32.mxu0 %vm20920_vm11, %v3762_v34  ;;  %v17135_v13 = vpack.i.bf16 %v22231_v55, %v22230_v33  ;;  %v22234_v34 = vld [vmem:[#allocation250_spill] sm:$0xff] }
 0x24b   : > { %v3668_v47 = vsel %vm2191_vm7, %v3636_v43, %v11830_v10  ;;  %v3669_v3 = vsel %vm2191_vm7, %v3637_v49, %v11831_v39  ;;  %10618 = vmatmul.mubr.msk.f32.gmra.mrb[68].mxu0 %vm20920_vm11, %v3763_v5  ;;  %v22233_v28 = vunpack.c.l.bf16 %v22232_v46  ;;  %v3575_v61 = vsel %vm20917_vm4, %v22234_v34, %v11566_v58  ;;  %v11839_v43 = vpop.permute.xlu0 %11838  ;;  %v22236_v14 = vld [vmem:[#allocation194_spill] sm:$0xff] }
 0x24c   : > { %12118 = vrot.lane.b32.xlu0 %v16432_v8, %s12361_s23  ;;  %v22235_v8 = vld [vmem:[#allocation121_spill] sm:$0xff]  ;;  %v3700_v39 = vsel %vm20919_vm8, %v3668_v47, %v11835_v62  ;;  %v3701_v5 = vsel %vm20919_vm8, %v3669_v3, %v11836_v37  ;;  %v11841_v49 = vunpack.i.h.bf16 %v11839_v43  ;;  %v22237_v55 = vld [vmem:[#allocation282_spill] sm:$0xff]  ;;  %v3607_v58 = vsel %vm20918_vm5, %v3575_v61, %v11646_v35  ;;  %v22244_v61 = vld [vmem:[#allocation219_spill] sm:$0xff] }
 0x24d   : > { %v4274_v53 = vrot.slane %v22233_v28, 4  ;;  %v3574_v10 = vsel %vm20917_vm4, %v22235_v8, %v11565_v50  ;;  %v3732_v33 = vsel %vm2257_vm9, %v3700_v39, %v22236_v14  ;;  %v3733_v46 = vsel %vm2257_vm9, %v3701_v5, %v22237_v55  ;;  %v22238_v47 = vld [vmem:[#allocation134_spill] sm:$0xff] }
 0x24e   : > { %12133 = vrot.lane.b32.xlu1 %v22138_v42, %s12360_s22  ;;  %v11840_v42 = vunpack.i.l.bf16 %v11839_v43  ;;  %v11854_v56 = vpop.permute.xlu1 %11853  ;;  %v3606_v28 = vsel %vm20918_vm5, %v3574_v10, %v11645_v6  ;;  %v11846_v34 = vunpack.i.h.bf16 %v11844_v41  ;;  %v11845_v50 = vunpack.i.l.bf16 %v11844_v41  ;;  %v22240_v43 = vld [vmem:[#allocation173_spill] sm:$0xff]  ;;  %v22242_v10 = vld [vmem:[#allocation220_spill] sm:$0xff]  ;;  %v22245_v5 = vld [vmem:[#allocation174_spill] sm:$0xff] }
 0x24f   : > { %v3765_v62 = vsel %vm2290_vm10, %v3733_v46, %v11841_v49  ;;  %v22239_v3 = vrot.slane %v22238_v47, 4  ;;  %v22241_v6 = vunpack.i.h.bf16 %v22240_v43  ;;  %v22243_v41 = vunpack.i.l.bf16 %v22240_v43  ;;  %v22247_v49 = vld [vmem:[#allocation222_spill] sm:$0xff]  ;;  %v22248_v46 = vld [vmem:[#allocation281_spill] sm:$0xff] }
 0x250   : > { %12128 = vrot.lane.b32.xlu0 %v16450_v30, %s12363_s25  ;;  %v3764_v37 = vsel %vm2290_vm10, %v3732_v33, %v11840_v42  ;;  %v22246_v42 = vunpack.i.h.bf16 %v22245_v5  ;;  %v22264_v44 = vrot.slane %v22263_v25, 4  ;;  %v11575_v25 = vunpack.i.l.bf16 %v22265_v48 }
 0x251   : > { %v4275_v8 = vsel %vm20916_vm2, %v22239_v3, %v4274_v53  ;;  %v3547_v35 = vsel %vm20915_vm1, %v22242_v10, %v22241_v6  ;;  %v3546_v39 = vsel %vm20915_vm1, %v22244_v61, %v22243_v41  ;;  %10620 = vmatprep.mubr.msk.f32.mxu0 %vm20920_vm11, %v3764_v37  ;;  %v22249_v53 = vunpack.c.l.bf16 %v22248_v46  ;;  %v22250_v3 = vld [vmem:[#allocation179_spill] sm:$0xff] }
 0x252   : > { %12143 = vrot.lane.b32.xlu1 %v16454_v23, %s12361_s23  ;;  %v3545_v33 = vsel %vm20915_vm1, %v22247_v49, %v22246_v42  ;;  %v11849_v23 = vpop.permute.xlu0 %11848  ;;  %v3638_v55 = vsel %vm2158_vm6, %v3606_v28, %v22250_v3  ;;  %v22251_v6 = vld [vmem:[#allocation143_spill] sm:$0xff]  ;;  %10621 = vmatmul.mubr.msk.f32.gmra.mrb[70].mxu0 %vm20920_vm11, %v3765_v62  ;;  %v11864_v41 = vpop.permute.xlu1 %11863  ;;  %v22252_v61 = vunpack.i.l.bf16 %v22245_v5  ;;  %v22253_v42 = vld [vmem:[#allocation29_spill] sm:$0xff]  ;;  %v22254_v28 = vld [vmem:[#allocation140_spill] sm:$0xff]  ;;  %v22270_v2 = vunpack.i.h.bf16 %v22269_v36 }
 0x253   : > { %v4276_v47 = vrot.slane %v22249_v53, 4  ;;  %v3639_v43 = vsel %vm2158_vm6, %v3607_v58, %v22251_v6  ;;  %v11851_v10 = vunpack.i.h.bf16 %v11849_v23  ;;  %v11850_v14 = vunpack.i.l.bf16 %v11849_v23  ;;  %v22255_v58 = vld [vmem:[#allocation205_spill] sm:$0xff]  ;;  %v22257_v6 = vld [vmem:[#allocation238_spill] sm:$0xff] }
 0x254   : > { %v3544_v49 = vsel %vm20915_vm1, %v22253_v42, %v22252_v61  ;;  %v3670_v37 = vsel %vm2191_vm7, %v3638_v55, %v11845_v50  ;;  %v3671_v46 = vsel %vm2191_vm7, %v3639_v43, %v11846_v34  ;;  %12138 = vrot.lane.b32.xlu0 %v17135_v13, %s12364_s28  ;;  %v17189_v53 = vpack.i.bf16 %v4275_v8, %v22254_v28  ;;  %v22258_v34 = vld [vmem:[#allocation127_spill] sm:$0xff]  ;;  %v22259_v50 = vld [vmem:[#allocation128_spill] sm:$0xff]  ;;  %v22262_v28 = vld [vmem:[#allocation213_spill] sm:$0xff] }
 0x255   : > { %v22256_v23 = vunpack.i.h.bf16 %v22255_v58  ;;  %v3702_v5 = vsel %vm20919_vm8, %v3670_v37, %v11850_v14  ;;  %v3703_v55 = vsel %vm20919_vm8, %v3671_v46, %v11851_v10  ;;  %v17203_v43 = vpack.i.bf16 %v22259_v50, %v22258_v34  ;;  %v22261_v61 = vld [vmem:[#allocation87_spill] sm:$0xff] }
 0x256   : > { %12153 = vrot.lane.b32.xlu1 %v16466_v21, %s12363_s25  ;;  %v22260_v8 = vunpack.i.l.bf16 %v22255_v58  ;;  %v11859_v3 = vpop.permute.xlu0 %11858  ;;  %v4277_v14 = vsel %vm20916_vm2, %v22264_v44, %v4276_v47  ;;  %v11856_v10 = vunpack.i.h.bf16 %v11854_v56  ;;  %v11855_v37 = vunpack.i.l.bf16 %v11854_v56  ;;  %v11874_v50 = vpop.permute.xlu1 %11873  ;;  %v22268_v47 = vld [vmem:[#allocation139_spill] sm:$0xff] }
 0x257   : > { %v17195_v62 = vsel %vm20915_vm1, %v22257_v6, %v22256_v23  ;;  %v11571_v6 = vunpack.i.h.bf16 %v22262_v28  ;;  %v11570_v23 = vunpack.i.l.bf16 %v22262_v28  ;;  %v11861_v46 = vunpack.i.h.bf16 %v11859_v3 }
 0x258   : > { %v17209_v42 = vsel %vm20915_vm1, %v22261_v61, %v22260_v8  ;;  %v11860_v34 = vunpack.i.l.bf16 %v11859_v3  ;;  %v11576_v58 = vunpack.i.h.bf16 %v22265_v48  ;;  %12148 = vrot.lane.b32.xlu0 %v17189_v53, %s12366_s26  ;;  %v22266_v8 = vld [vmem:[#allocation270_spill] sm:$0xff]  ;;  %v3735_v28 = vsel %vm2257_vm9, %v3703_v55, %v22267_v26 }
 0x259   : > { %v3734_v61 = vsel %vm2257_vm9, %v3702_v5, %v22266_v8  ;;  %v3767_v56 = vsel %vm2290_vm10, %v3735_v28, %v11861_v46  ;;  %v17229_v3 = vpack.i.bf16 %v4277_v14, %v22268_v47  ;;  %v17235_v5 = vsel %vm20915_vm1, %v22271_v54, %v22270_v2 }
 0x25a   : > { %v3766_v44 = vsel %vm2290_vm10, %v3734_v61, %v11860_v34  ;;  %12163 = vrot.lane.b32.xlu1 %v17203_v43, %s12364_s28  ;;  %v3577_v55 = vsel %vm20917_vm4, %v3545_v33, %v11571_v6  ;;  %v3576_v48 = vsel %vm20917_vm4, %v3544_v49, %v11570_v23  ;;  %v20900_v26 = vlaneseq  ;;  %v11869_v34 = vpop.permute.xlu0 %11868  ;;  %v11884_v47 = vpop.permute.xlu1 %11883  ;;  %v22272_v23 = vld [vmem:[#allocation257_spill] sm:$0xff] }
 0x25b   : > { %10623 = vmatprep.mubr.msk.f32.mxu0 %vm20920_vm11, %v3766_v44  ;;  %v3608_v46 = vsel %vm20918_vm5, %v3576_v48, %v11855_v37  ;;  %v3609_v61 = vsel %vm20918_vm5, %v3577_v55, %v11856_v10  ;;  %v11866_v14 = vunpack.i.h.bf16 %v11864_v41  ;;  %v11865_v28 = vunpack.i.l.bf16 %v11864_v41  ;;  %v22273_v10 = vld [vmem:[#allocation275_spill] sm:$0xff] }
 0x25c   : > { %10624 = vmatmul.mubr.msk.f32.gmra.mrb[72].mxu0 %vm20920_vm11, %v3767_v56  ;;  %v3579_v54 = vsel %vm20917_vm4, %v3547_v35, %v11576_v58  ;;  %v11871_v2 = vunpack.i.h.bf16 %v11869_v34  ;;  %v11870_v8 = vunpack.i.l.bf16 %v11869_v34  ;;  %12158 = vrot.lane.b32.xlu0 %v16486_v40, %s12360_s22  ;;  %v3578_v33 = vsel %vm20917_vm4, %v3546_v39, %v11575_v25 }
 0x25d   : > { %v11876_v49 = vunpack.i.h.bf16 %v11874_v50  ;;  %v11875_v6 = vunpack.i.l.bf16 %v11874_v50  ;;  %v3640_v41 = vsel %vm2158_vm6, %v3608_v46, %v22272_v23  ;;  %v3641_v37 = vsel %vm2158_vm6, %v3609_v61, %v22273_v10 }
 0x25e   : > { %12173 = vrot.lane.b32.xlu1 %v17229_v3, %s12366_s26  ;;  %v11886_v44 = vunpack.i.h.bf16 %v11884_v47  ;;  %v11885_v35 = vunpack.i.l.bf16 %v11884_v47  ;;  %v17253_v58 = vpop.permute.xlu0 %11878  ;;  %v3672_v56 = vsel %vm2191_vm7, %v3640_v41, %v11865_v28  ;;  %v3673_v40 = vsel %vm2191_vm7, %v3641_v37, %v11866_v14  ;;  %v11894_v25 = vpop.permute.xlu1 %11893  ;;  %v22278_v37 = vld [vmem:[#allocation178_spill] sm:$0xff] }
 0x25f   : > { %22274 = vst [vmem:[#allocation66_spill] sm:$0xff] %v17253_v58  ;;  %v20902_v39 = vunpack.i.h.bf16 %v17253_v58  ;;  %v20905_v50 = vunpack.i.l.bf16 %v17253_v58  ;;  %v3704_v55 = vsel %vm20919_vm8, %v3672_v56, %v11870_v8  ;;  %v3705_v48 = vsel %vm20919_vm8, %v3673_v40, %v11871_v2  ;;  %v22277_v2 = vld [vmem:[#allocation146_spill] sm:$0xff]  ;;  %v22301_v58 = vld [vmem:[#allocation261_spill] sm:$0xff] }
 0x260   : > { %12168 = vrot.lane.b32.xlu0 %v16499_v22, %s12361_s23  ;;  %v3610_v34 = vsel %vm20918_vm5, %v3578_v33, %v11875_v6  ;;  %v3611_v46 = vsel %vm20918_vm5, %v3579_v54, %v11876_v49  ;;  %v17276_v22 = vshrl.u32 %v20900_v26, 7  ;;  %v22276_v54 = vld [vmem:[#allocation196_spill] sm:$0xff]  ;;  %v4300_v56 = vrot.slane %v22278_v37, 4 }
 0x261   : > { %v3736_v61 = vsel %vm2257_vm9, %v3704_v55, %v20905_v50  ;;  %v3737_v14 = vsel %vm2257_vm9, %v3705_v48, %v20902_v39  ;;  %v12187_v33 = vpack.i.bf16 %v22277_v2, %v22276_v54  ;;  %v11896_v40 = vunpack.i.h.bf16 %v11894_v25  ;;  %v22279_v55 = vld [vmem:[#allocation99_spill] sm:$0xff]  ;;  %v22280_v26 = vld [vmem:[#allocation272_spill] sm:$0xff] }
 0x262   : > { %12183 = vrot.lane.b32.xlu1 %v22179_v0, %s12360_s22  ;;  %22275 = vst [vmem:[#allocation70_spill] sm:$0xff] %v17276_v22  ;;  %v11889_v8 = vpop.permute.xlu0 %11888  ;;  %v3768_v28 = vsel %vm2290_vm10, %v3736_v61, %v11885_v35  ;;  %v3769_v47 = vsel %vm2290_vm10, %v3737_v14, %v11886_v44  ;;  %v11904_v41 = vpop.permute.xlu1 %11903  ;;  %v11895_v0 = vunpack.i.l.bf16 %v11894_v25  ;;  %v3642_v48 = vsel %vm2158_vm6, %v3610_v34, %v22279_v55  ;;  %v22281_v14 = vld [vmem:[#allocation217_spill] sm:$0xff]  ;;  %v22285_v54 = vld [vmem:[#allocation244_spill] sm:$0xff] }
 0x263   : > { %v11891_v49 = vunpack.i.h.bf16 %v11889_v8  ;;  %v11890_v6 = vunpack.i.l.bf16 %v11889_v8  ;;  %10626 = vmatprep.mubr.msk.f32.mxu0 %vm20920_vm11, %v3768_v28  ;;  %v3643_v35 = vsel %vm2158_vm6, %v3611_v46, %v22280_v26  ;;  %v4301_v25 = vrot.slane %v22281_v14, 4  ;;  %v22282_v8 = vld [vmem:[#allocation100_spill] sm:$0xff] }
 0x264   : > { %10627 = vmatmul.mubr.msk.f32.gmra.mrb[74].mxu0 %vm20920_vm11, %v3769_v47  ;;  %12178 = vrot.lane.b32.xlu0 %v22185_v27, %s12363_s25  ;;  %v22283_v34 = vunpack.c.l.bf16 %v22282_v8  ;;  %v22284_v46 = vunpack.i.l.bf16 %v22269_v36  ;;  %v11906_v27 = vunpack.i.h.bf16 %v11904_v41  ;;  %v11905_v2 = vunpack.i.l.bf16 %v11904_v41  ;;  %v22288_v14 = vld [vmem:[#allocation144_spill] sm:$0xff]  ;;  %v730_v36 = vld [vmem:[%s20200_s6] sm:$0x1f] }
 0x265   : > { %v3675_v44 = vsel %vm2191_vm7, %v3643_v35, %v11891_v49  ;;  %v3674_v61 = vsel %vm2191_vm7, %v3642_v48, %v11890_v6  ;;  %v22287_v35 = vld [vmem:[#allocation193_spill] sm:$0xff]  ;;  %v17311_v8 = vsub.s32 1, %v17276_v22  ;;  %v22299_v26 = vld [vmem:[#allocation68_spill] sm:$0xff] }
 0x266   : > { %12193 = vrot.lane.b32.xlu1 %v22186_v57, %s12361_s23  ;;  %v4303_v28 = vrot.slane %v22283_v34, 4  ;;  %v17302_v47 = vsel %vm20915_vm1, %v22285_v54, %v22284_v46  ;;  %v17304_v49 = vpop.permute.xlu0 %11898  ;;  %v11914_v48 = vpop.permute.xlu1 %11913  ;;  %v12212_v39 = vpack.i.bf16 %v22288_v14, %v22287_v35  ;;  %v3706_v41 = vsel %vm20919_vm8, %v3674_v61, %v11895_v0 }
 0x267   : > { %22286 = vst [vmem:[#allocation114_spill] sm:$0xff] %v17304_v49  ;;  %v20903_v6 = vunpack.i.h.bf16 %v17304_v49  ;;  %v20904_v57 = vunpack.i.l.bf16 %v17304_v49  ;;  %22289 = vst [vmem:[#allocation131_spill] sm:$0xff] %v17311_v8  ;;  %v3707_v34 = vsel %vm20919_vm8, %v3675_v44, %v11896_v40  ;;  %v17320_v46 = vstv %s17263_s19  ;;  %v17365_v49 = vld [vmem:[%s12452_s20 + $0x1a8] ss:$16 sps:$4 sm:$0xff]  }
 0x268   : > { %12188 = vrot.lane.b32.xlu0 %v12187_v33, %s12364_s28  ;;  %v17331_v14 = vsel %vm20916_vm2, %v4300_v56, %v4301_v25  ;;  %v17334_v33 = vsel %vm20916_vm2, %v4301_v25, %v4303_v28  ;;  %v22290_v56 = vld [vmem:[#allocation151_spill] sm:$0xff]  ;;  %v22291_v25 = vld [vmem:[#allocation150_spill] sm:$0xff]  ;;  %v11915_v50 = vunpack.i.l.bf16 %v11914_v48  ;;  %v22300_v55 = vunpack.c.l.bf16 %v22299_v26 }
 0x269   : > { %v3738_v54 = vsel %vm2257_vm9, %v3706_v41, %v20904_v57  ;;  %v3739_v35 = vsel %vm2257_vm9, %v3707_v34, %v20903_v6  ;;  %v17340_v34 = vrot.slane %v730_v36, %v17311_v8  ;;  %v22292_v28 = vpack.i.bf16 %v22290_v56, %v22291_v25  ;;  %v22293_v6 = vld [vmem:[#allocation218_spill] sm:$0xff]  ;;  %v22294_v36 = vld [vmem:[#allocation145_spill] sm:$0xff]  ;;  %v22297_v25 = vld [vmem:[#allocation203_spill] sm:$0xff] }
 0x26a   : > { %12203 = vrot.lane.b32.xlu1 %v22194_v51, %s12363_s25  ;;  %v11909_v40 = vpop.permute.xlu0 %11908  ;;  %v3770_v0 = vsel %vm2290_vm10, %v3738_v54, %v11905_v2  ;;  %v3771_v44 = vsel %vm2290_vm10, %v3739_v35, %v11906_v27  ;;  %v11924_v41 = vpop.permute.xlu1 %11923  ;;  %v12367_v54 = vmov 0.00390625   ;;  %v22295_v35 = vld [vmem:[#allocation166_spill] sm:$0xff]  ;;  %v17359_v8 = vld [vmem:[%s12452_s20 + $0x1a0] sm:$0xff]   ;;  %v11916_v27 = vunpack.i.h.bf16 %v11914_v48 }
 0x26b   : > { %v11910_v61 = vunpack.i.l.bf16 %v11909_v40  ;;  %10629 = vmatprep.mubr.msk.f32.mxu0 %vm20920_vm11, %v3770_v0  ;;  %v11911_v51 = vunpack.i.h.bf16 %v11909_v40  ;;  %v4305_v0 = vrot.slane %v22295_v35, 4  ;;  %v11925_v10 = vunpack.i.l.bf16 %v11924_v41  ;;  %v22302_v48 = vld [vmem:[#allocation149_spill] sm:$0xff] }
 0x26c   : > { %10630 = vmatmul.mubr.msk.f32.gmra.mrb[76].mxu0 %vm20920_vm11, %v3771_v44  ;;  %12198 = vrot.lane.b32.xlu0 %v22292_v28, %s12366_s26  ;;  %v22296_v44 = vld [vmem:[#allocation273_spill] sm:$0xff]  ;;  %v22298_v28 = vunpack.c.l.bf16 %v22297_v25  ;;  %v452_v25 = vld [vmem:[%s12452_s20 + $0x1ac] sm:$0x3]  ;;  %v563_v38 = vunpack.c.l.bf16 %v17365_v49 }
 0x26d   : > { %5576 = vmatprep.mubr.f32.mxu0 %v12367_v54  ;;  %v4306_v56 = vrot.slane %v22296_v44, 4  ;;  %v4825_v44 = vsel %vm20915_vm1, %v22301_v58, %v11911_v51  ;;  %v17384_v58 = vunpack.c.h.bf16 %v17359_v8  ;;  %v11926_v51 = vunpack.i.h.bf16 %v11924_v41 }
 0x26e   : > { %12213 = vrot.lane.b32.xlu1 %v12212_v39, %s12364_s28  ;;  %v4308_v57 = vrot.slane %v22298_v28, 4  ;;  %v11919_v2 = vpop.permute.xlu0 %11918  ;;  %v4824_v39 = vsel %vm20915_vm1, %v22300_v55, %v11910_v61  ;;  %v11934_v40 = vpop.permute.xlu1 %11933  ;;  %v22303_v28 = vld [vmem:[#allocation148_spill] sm:$0xff]  ;;  %v564_v59 = vunpack.c.l.bf16 %v452_v25 }
 0x26f   : > { %v11920_v23 = vunpack.i.l.bf16 %v11919_v2  ;;  %v11921_v22 = vunpack.i.h.bf16 %v11919_v2  ;;  %v22304_v26 = vpack.i.bf16 %v22302_v48, %v22303_v28  ;;  %v17377_v55 = vsel %vm20916_vm2, %v4305_v0, %v4306_v56  ;;  %v22305_v48 = vld [vmem:[#allocation192_spill] sm:$0xff] }
 0x270   : > { %5577 = vmatmul.mubr.f32.vlgmr.msra.gmra.mrb[78].mxu0 %v12367_v54  ;;  %12208 = vrot.lane.b32.xlu0 %v22204_v20, %s12360_s22  ;;  %v17380_v61 = vsel %vm20916_vm2, %v4306_v56, %v4308_v57  ;;  %v4856_v20 = vsel %vm20917_vm4, %v4824_v39, %v11915_v50  ;;  %v11935_v2 = vunpack.i.l.bf16 %v11934_v40  ;;  %v22306_v28 = vunpack.c.l.bf16 %v22305_v48 }
 0x271   : > { %v4888_v57 = vsel %vm20918_vm5, %v4856_v20, %v11920_v23  ;;  %v11936_v39 = vunpack.i.h.bf16 %v11934_v40  ;;  %v22307_v23 = vunpack.c.l.bf16 %v17359_v8 }
 0x272   : > { %12223 = vrot.lane.b32.xlu1 %v22304_v26, %s12366_s26  ;;  %v11929_v54 = vpop.permute.xlu0 %11928  ;;  %v4826_v0 = vsel %vm20915_vm1, %v22306_v28, %v11925_v10  ;;  %v4857_v26 = vsel %vm20917_vm4, %v4825_v44, %v11916_v27  ;;  %v11944_v56 = vpop.permute.xlu1 %11943  ;;  %v22308_v44 = vld [vmem:[#allocation154_spill] sm:$0xff]  ;;  %v22310_v28 = vld [vmem:[#allocation260_spill] sm:$0xff] }
 0x273   : > { %v4889_v15 = vsel %vm20918_vm5, %v4857_v26, %v11921_v22  ;;  %v11931_v19 = vunpack.i.h.bf16 %v11929_v54  ;;  %v11930_v41 = vunpack.i.l.bf16 %v11929_v54  ;;  %v11945_v50 = vunpack.i.l.bf16 %v11944_v56  ;;  %v22309_v54 = vld [vmem:[#allocation258_spill] sm:$0xff] }
 0x274   : > { %12218 = vrot.lane.b32.xlu0 %v22211_v11, %s12361_s23  ;;  %v17402_v27 = vrot.slane %v22307_v23, 6  ;;  %v4827_v25 = vsel %vm20915_vm1, %v22308_v44, %v11926_v51  ;;  %v4858_v11 = vsel %vm20917_vm4, %v4826_v0, %v11935_v2  ;;  %v11946_v20 = vunpack.i.h.bf16 %v11944_v56 }
 0x275   : > { %v4920_v48 = vsel %vm2158_vm6, %v4888_v57, %v22309_v54  ;;  %v4921_v26 = vsel %vm2158_vm6, %v4889_v15, %v22310_v28  ;;  %v4890_v0 = vsel %vm20918_vm5, %v4858_v11, %v11945_v50  ;;  %v17424_v56 = vrot.slane %v564_v59, 4  ;;  %v456_v57 = vld [vmem:[%s12452_s20 + $0x1bc] sm:$0x3]  ;;  %s12368_s20 = smov 2  }
 0x276   : > { %12233 = vrot.lane.b32.xlu1 %v16383_v29, %s12360_s22  ;;  %v11939_v40 = vpop.permute.xlu0 %11938  ;;  %v17410_v29 = vrot.slane %v563_v38, 4  ;;  %v11954_v22 = vpop.permute.xlu1 %11953  ;;  %v4952_v51 = vsel %vm2191_vm7, %v4920_v48, %v11930_v41  ;;  %v4953_v2 = vsel %vm2191_vm7, %v4921_v26, %v11931_v19  ;;  %v4859_v44 = vsel %vm20917_vm4, %v4827_v25, %v11936_v39  ;;  %v22311_v25 = vld [vmem:[#allocation35_spill] sm:$0xff] }
 0x277   : > { %v11941_v23 = vunpack.i.h.bf16 %v11939_v40  ;;  %v11940_v10 = vunpack.i.l.bf16 %v11939_v40  ;;  %v17429_v40 = vpop.f32.mrb[32].mxu0  ;;  %v11955_v54 = vunpack.i.l.bf16 %v11954_v22  ;;  %v4891_v41 = vsel %vm20918_vm5, %v4859_v44, %v11946_v20  ;;  %v22313_v44 = vld [vmem:[#allocation186_spill] sm:$0xff] }
 0x278   : > { %12228 = vrot.lane.b32.xlu0 %v22216_v32, %s12363_s25  ;;  %v11956_v50 = vunpack.i.h.bf16 %v11954_v22  ;;  %v17435_v32 = vpop.f32.mrb[33].mxu0  ;;  %v17438_v59 = vunpack.c.h.bf16 %v17417_v7  ;;  %v567_v39 = vunpack.c.h.bf16 %v17365_v49  ;;  %v4922_v48 = vsel %vm2158_vm6, %v4890_v0, %v22311_v25 }
 0x279   : > { %v4985_v15 = vsel %vm20919_vm8, %v4953_v2, %v11941_v23  ;;  %v4984_v19 = vsel %vm20919_vm8, %v4952_v51, %v11940_v10  ;;  %v22312_v22 = vpack.i.bf16 %v22278_v37, %v22293_v6  ;;  %v4923_v0 = vsel %vm2158_vm6, %v4891_v41, %v22313_v44  ;;  %v10531_v25 = vpop.f32.mrb[34].mxu0 }
 0x27a   : > { %12243 = vrot.lane.b32.xlu1 %v22218_v18, %s12361_s23  ;;  %v11949_v11 = vpop.permute.xlu0 %11948  ;;  %v11964_v23 = vpop.permute.xlu1 %11963  ;;  %v568_v18 = vunpack.c.l.bf16 %v456_v57  ;;  %v5017_v10 = vsel %vm2257_vm9, %v4985_v15, %v22124_v17  ;;  %v5016_v2 = vsel %vm2257_vm9, %v4984_v19, %v22123_v9  ;;  %v4955_v37 = vsel %vm2191_vm7, %v4923_v0, %v11956_v50 }
 0x27b   : > { %v11951_v28 = vunpack.i.h.bf16 %v11949_v11  ;;  %v11950_v26 = vunpack.i.l.bf16 %v11949_v11  ;;  %v11966_v20 = vunpack.i.h.bf16 %v11964_v23  ;;  %v11965_v51 = vunpack.i.l.bf16 %v11964_v23  ;;  %v2508_v9 = vpop.f32.mrb[35].mxu0 }
 0x27c   : > { %12238 = vrot.lane.b32.xlu0 %v22312_v22, %s12364_s28  ;;  %v4954_v11 = vsel %vm2191_vm7, %v4922_v48, %v11955_v54  ;;  %v17460_v6 = vadd.f32 %v10531_v25, %v17340_v34  ;;  %v4285_v19 = vrot.slane %v17384_v58, 6  ;;  %v17468_v41 = vadd.f32 %v2508_v9, %v17340_v34 }
 0x27d   : > { %v5049_v57 = vsel %vm2290_vm10, %v5017_v10, %v11951_v28  ;;  %v5048_v17 = vsel %vm2290_vm10, %v5016_v2, %v11950_v26  ;;  %v4986_v54 = vsel %vm20919_vm8, %v4954_v11, %v11965_v51  ;;  %v4987_v50 = vsel %vm20919_vm8, %v4955_v37, %v11966_v20 }
 0x27e   : > { %12253 = vrot.lane.b32.xlu1 %v22224_v63, %s12363_s25  ;;  %v17462_v15 = vpop.permute.xlu0 %11958  ;;  %10642 = vmatprep.mubr.msk.f32.mxu1 %vm20920_vm11, %v5048_v17  ;;  %v11974_v63 = vpop.permute.xlu1 %11973  ;;  %v4287_v48 = vrot.slane %v563_v38, 6  ;;  %v10221_v28 = vunpack.c.l.bf16 %v17417_v7  ;;  %v17477_v26 = vmul.f32 %v17320_v46, %v17460_v6  ;;  %v22314_v23 = vpack.i.bf16 %v17334_v33, %v17331_v14 }
 0x27f   : > { %10643 = vmatmul.mubr.msk.f32.vlgmr.msra.gmra.mrb[18].mxu1 %vm20920_vm11, %v5049_v57  ;;  %v11976_v10 = vunpack.i.h.bf16 %v11974_v63  ;;  %v11975_v22 = vunpack.i.l.bf16 %v11974_v63  ;;  %v4315_v51 = vrot.slane %v17438_v59, 4  ;;  %v17486_v20 = vmul.f32 %v17320_v46, %v17468_v41  ;;  %v10534_v38 = vpop.f32.mrb[36].mxu0 }
 0x280   : > { %12248 = vrot.lane.b32.xlu0 %v22314_v23, %s12366_s26  ;;  %v22316_v7 = vpack.i.bf16 %v22295_v35, %v22294_v36  ;;  %v5018_v2 = vsel %vm2257_vm9, %v4986_v54, %v22137_v12  ;;  %v4316_v14 = vrot.slane %v567_v39, 4  ;;  %v4318_v33 = vrot.slane %v568_v18, 4  ;;  %v2518_v11 = vpop.f32.mrb[37].mxu0  ;;  %v10549_v54 = vpop.f32.mrb[0].mxu1 }
 0x281   : > { %22315 = vst [vmem:[#allocation62_spill] sm:$0xff] %v17486_v20  ;;  %v17497_v44 = vadd.f32 %v10534_v38, %v17340_v34  ;;  %v5050_v57 = vsel %vm2290_vm10, %v5018_v2, %v11975_v22  ;;  %v5019_v25 = vsel %vm2257_vm9, %v4987_v50, %v22139_v52  ;;  %v22317_v36 = vrot.slane %v17384_v58, 4  ;;  %v2568_v23 = vpop.f32.mrb[1].mxu1 }
 0x282   : > { %12263 = vrot.lane.b32.xlu1 %v22316_v7, %s12364_s28  ;;  %v17499_v0 = vpop.permute.xlu0 %11968  ;;  %v17511_v35 = vadd.f32 %v2518_v11, %v17340_v34  ;;  %v17513_v18 = vpop.permute.xlu1 %11983  ;;  %10645 = vmatprep.mubr.msk.f32.mxu1 %vm20920_vm11, %v5050_v57  ;;  %v5051_v17 = vsel %vm2290_vm10, %v5019_v25, %v11976_v10  ;;  %v17520_v37 = vsel %vm20916_vm2, %v17410_v29, %v17424_v56  ;;  %v4289_v50 = vrot.slane %v10221_v28, 6 }
 0x283   : > { %v17508_v12 = vsel %vm20916_vm2, %v22317_v36, %v17410_v29  ;;  %v17524_v52 = vsel %vm20914_vm0, %v17402_v27, %v4285_v19  ;;  %v17528_v9 = vmul.f32 %v17320_v46, %v17497_v44  ;;  %10646 = vmatmul.mubr.msk.f32.gmra.mrb[20].mxu1 %vm20920_vm11, %v5051_v17  ;;  %v17534_v63 = vsel %vm20914_vm0, %v4285_v19, %v4287_v48  ;;  %v10537_v56 = vpop.f32.mrb[38].mxu0 }
 0x284   : > { %12258 = vrot.lane.b32.xlu0 %v16450_v30, %s12360_s22  ;;  %v4290_v29 = vrot.slane %v17438_v59, 6  ;;  %v17539_v27 = vmul.f32 %v17320_v46, %v17511_v35  ;;  %v22320_v10 = vpack.i.bf16 %v17380_v61, %v17377_v55  ;;  %v22321_v30 = vunpack.c.l.bf16 %v17359_v8  ;;  %v2528_v8 = vpop.f32.mrb[39].mxu0 }
 0x285   : > { %22318 = vst [vmem:[#allocation63_spill] sm:$0xff] %v17528_v9  ;;  %v17551_v19 = vsel %vm20916_vm2, %v4315_v51, %v4316_v14  ;;  %v17554_v48 = vsel %vm20916_vm2, %v4316_v14, %v4318_v33  ;;  %v2504_v38 = vadd.f32 %v17429_v40, %v17340_v34  ;;  %v17559_v7 = vadd.f32 %v10537_v56, %v17340_v34  ;;  %v10540_v36 = vpop.f32.mrb[40].mxu0 }
 0x286   : > { %22319 = vst [vmem:[#allocation126_spill] sm:$0xff] %v17539_v27  ;;  %12273 = vrot.lane.b32.xlu1 %v22320_v10, %s12366_s26  ;;  %v17548_v22 = vpack.i.bf16 %v17384_v58, %v22321_v30  ;;  %v17562_v55 = vadd.f32 %v10549_v54, %v17340_v34  ;;  %v17564_v61 = vpop.permute.xlu0 %11978  ;;  %v4292_v58 = vrot.slane %v567_v39, 6  ;;  %v12302_v2 = vpack.i.bf16 %v17520_v37, %v17508_v12  ;;  %v2538_v54 = vpop.f32.mrb[41].mxu0 }
 0x287   : > { %v17575_v14 = vpack.i.bf16 %v17438_v59, %v10221_v28  ;;  %v17579_v33 = vmul.f32 %v17320_v46, %v17559_v7  ;;  %v17590_v39 = vsel %vm20914_vm0, %v4289_v50, %v4290_v29  ;;  %v17594_v59 = vadd.f32 %v17435_v32, %v17340_v34  ;;  %v10543_v49 = vpop.f32.mrb[42].mxu0 }
 0x288   : > { %v17568_v51 = vpop.permute.xlu1 %11993  ;;  %v17583_v11 = vmul.f32 %v17320_v46, %v17562_v55  ;;  %12268 = vrot.lane.b32.xlu0 %v17135_v13, %s12361_s23  ;;  %v11960_v28 = vunpack.i.l.bf16 %v17462_v15  ;;  %v17598_v57 = vadd.f32 %v2528_v8, %v17340_v34  ;;  %v17601_v25 = vadd.f32 %v2568_v23, %v17340_v34  ;;  %v10552_v13 = vpop.f32.mrb[2].mxu1 }
 0x289   : > { %22322 = vst [vmem:[#allocation84_spill] sm:$0xff] %v17579_v33  ;;  %v2692_v12 = vmul.f32 %v17320_v46, %v2504_v38  ;;  %v17607_v17 = vadd.f32 %v10540_v36, %v17340_v34  ;;  %v17610_v32 = vadd.f32 %v10552_v13, %v17340_v34  ;;  %v17615_v50 = vsel %vm20914_vm0, %v4290_v29, %v4292_v58  ;;  %v2578_v30 = vpop.f32.mrb[3].mxu1 }
 0x28a   : > { %22323 = vst [vmem:[#allocation97_spill] sm:$0xff] %v17583_v11  ;;  %12283 = vrot.lane.b32.xlu1 %v16466_v21, %s12360_s22  ;;  %v17612_v37 = vpop.permute.xlu0 %11988  ;;  %v11961_v56 = vunpack.i.h.bf16 %v17462_v15  ;;  %v11970_v23 = vunpack.i.l.bf16 %v17499_v0  ;;  %v17621_v21 = vmul.f32 %v17320_v46, %v17598_v57  ;;  %v17625_v10 = vmul.f32 %v17320_v46, %v17601_v25  ;;  %v10555_v40 = vpop.f32.mrb[4].mxu1 }
 0x28b   : > { %vm2659_vm12 = vcmp.ge.f32.partialorder %v2504_v38, 0.0  ;;  %v11971_v36 = vunpack.i.h.bf16 %v17499_v0  ;;  %v17632_v29 = vmul.f32 %v17320_v46, %v17607_v17  ;;  %v17636_v15 = vmul.f32 %v17320_v46, %v17610_v32 }
 0x28c   : > { %22324 = vst [vmem:[#allocation277_spill] sm:$0xff] %v17621_v21  ;;  %22325 = vst [vmem:[#allocation79_spill] sm:$0xff] %v17625_v10  ;;  %v17627_v8 = vpop.permute.xlu1 %12003  ;;  %12278 = vrot.lane.b32.xlu0 %v17189_v53, %s12363_s25  ;;  %v17642_v58 = vmul.f32 %v17320_v46, %v17594_v59  ;;  %v4860_v13 = vsel %vm20917_vm4, %v17302_v47, %v11960_v28  ;;  %v11986_v0 = vunpack.i.h.bf16 %v17513_v18  ;;  %v2588_v21 = vpop.f32.mrb[5].mxu1  ;;  %vm2658_vm13 = vcmp.ge.f32.partialorder %v17594_v59, 0.0 }
 0x28d   : > { %22326 = vst [vmem:[#allocation82_spill] sm:$0xff] %v17632_v29  ;;  %22327 = vst [vmem:[#allocation138_spill] sm:$0xff] %v17636_v15  ;;  %v17652_v10 = vadd.f32 %v2538_v54, %v17340_v34  ;;  %v17655_v53 = vadd.f32 %v2578_v30, %v17340_v34  ;;  %v17658_v11 = vadd.f32 %v10543_v49, %v17340_v34  ;;  %v2548_v29 = vpop.f32.mrb[43].mxu0  ;;  %v11985_v54 = vunpack.i.l.bf16 %v17513_v18 }
 0x28e   : > { %12293 = vrot.lane.b32.xlu1 %v17203_v43, %s12361_s23  ;;  %v17661_v47 = vadd.f32 %v10555_v40, %v17340_v34  ;;  %v17663_v28 = vpop.permute.xlu0 %11998  ;;  %v4861_v43 = vsel %vm20917_vm4, %v17235_v5, %v11961_v56  ;;  %v4892_v15 = vsel %vm20918_vm5, %v4860_v13, %v11970_v23  ;;  %v17672_v30 = vsel %vm2659_vm12, %v2504_v38, %v2692_v12  ;;  %v10546_v23 = vpop.f32.mrb[44].mxu0  ;;  %s10107_s23 = sld [smem:[#allocation2 + $0x7]] }
 0x28f   : > { %v4893_v40 = vsel %vm20918_vm5, %v4861_v43, %v11971_v36  ;;  %v11980_v49 = vunpack.i.l.bf16 %v17564_v61  ;;  %v17679_v27 = vmul.f32 %v17320_v46, %v17652_v10  ;;  %v17683_v5 = vmul.f32 %v17320_v46, %v17655_v53  ;;  %v10558_v36 = vpop.f32.mrb[6].mxu1  ;;  %v2558_v43 = vpop.f32.mrb[45].mxu0 }
 0x290   : > { %v17669_v33 = vpop.permute.xlu1 %12013  ;;  %12288 = vrot.lane.b32.xlu0 %v17548_v22, %s12364_s28  ;;  %v4863_v18 = vsel %vm20917_vm4, %v17195_v62, %v11986_v0  ;;  %v11981_v38 = vunpack.i.h.bf16 %v17564_v61  ;;  %v17692_v12 = vmul.f32 %v17320_v46, %v17658_v11  ;;  %v17696_v56 = vmul.f32 %v17320_v46, %v17661_v47 }
 0x291   : > { %22328 = vst [vmem:[#allocation274_spill] sm:$0xff] %v17679_v27  ;;  %22329 = vst [vmem:[#allocation185_spill] sm:$0xff] %v17683_v5  ;;  %v4924_v22 = vsel %vm2158_vm6, %v4892_v15, %v22112_v45  ;;  %v11996_v13 = vunpack.i.h.bf16 %v17568_v51  ;;  %v11995_v62 = vunpack.i.l.bf16 %v17568_v51  ;;  %v11990_v61 = vunpack.i.l.bf16 %v17612_v37  ;;  %v2598_v15 = vpop.f32.mrb[7].mxu1 }
 0x292   : > { %22330 = vst [vmem:[#allocation181_spill] sm:$0xff] %v17692_v12  ;;  %22331 = vst [vmem:[#allocation13_spill] sm:$0xff] %v17696_v56  ;;  %12303 = vrot.lane.b32.xlu1 %v12302_v2, %s12366_s26  ;;  %v17704_v0 = vpop.permute.xlu0 %12008  ;;  %v17707_v5 = vadd.f32 %v2548_v29, %v17340_v34  ;;  %v17710_v56 = vadd.f32 %v2588_v21, %v17340_v34  ;;  %v17713_v2 = vadd.f32 %v10546_v23, %v17340_v34 }
 0x293   : > { %v17716_v45 = vadd.f32 %v10558_v36, %v17340_v34  ;;  %v4862_v51 = vsel %vm20917_vm4, %v17209_v42, %v11985_v54  ;;  %v4925_v27 = vsel %vm2158_vm6, %v4893_v40, %v22113_v60  ;;  %v4956_v29 = vsel %vm2191_vm7, %v4924_v22, %v11980_v49  ;;  %v10561_v42 = vpop.f32.mrb[8].mxu1 }
 0x294   : > { %v17718_v12 = vpop.permute.xlu1 %12023  ;;  %v11991_v21 = vunpack.i.h.bf16 %v17612_v37  ;;  %v22332_v23 = vpack.i.bf16 %v17534_v63, %v17524_v52  ;;  %v4957_v36 = vsel %vm2191_vm7, %v4925_v27, %v11981_v38  ;;  %v12000_v9 = vunpack.i.l.bf16 %v17663_v28  ;;  %v2608_v40 = vpop.f32.mrb[9].mxu1 }
 0x295   : > { %v17734_v20 = vmul.f32 %v17320_v46, %v17707_v5  ;;  %v17738_v60 = vmul.f32 %v17320_v46, %v17710_v56  ;;  %v4894_v37 = vsel %vm20918_vm5, %v4862_v51, %v11995_v62  ;;  %v12001_v52 = vunpack.i.h.bf16 %v17663_v28 }
 0x296   : > { %12298 = vrot.lane.b32.xlu0 %v22332_v23, %s12365_s29  ;;  %12313 = vrot.lane.b32.xlu1 %v17575_v14, %s12364_s28  ;;  %v17746_v63 = vmul.f32 %v17320_v46, %v17713_v2  ;;  %v17750_v27 = vmul.f32 %v17320_v46, %v17716_v45  ;;  %v12019_v54 = vpop.permute.xlu0 %12018  ;;  %v4895_v49 = vsel %vm20918_vm5, %v4863_v18, %v11996_v13  ;;  %v12006_v38 = vunpack.i.h.bf16 %v17627_v8  ;;  %s9922_s28 = sshll.u32 %s22696_s10, 1 }
 0x297   : > { %v4988_v14 = vsel %vm20919_vm8, %v4956_v29, %v11990_v61  ;;  %v17756_v22 = vadd.f32 %v2558_v43, %v17340_v34  ;;  %v17763_v51 = vadd.f32 %v2598_v15, %v17340_v34  ;;  %v4989_v23 = vsel %vm20919_vm8, %v4957_v36, %v11991_v21  ;;  %v10564_v43 = vpop.f32.mrb[10].mxu1  ;;  %s344_s11 = scalar_lea.vmem %s20203_s9, %s9922_s28 }
 0x298   : > { %22333 = vst [vmem:[#allocation14_spill] sm:$0xff] %v17750_v27  ;;  %v17758_v28 = vpop.permute.xlu1 %12033  ;;  %v5020_v62 = vsel %vm2257_vm9, %v4988_v14, %v22148_v31  ;;  %v17767_v27 = vadd.f32 %v10561_v42, %v17340_v34  ;;  %v12005_v18 = vunpack.i.l.bf16 %v17627_v8  ;;  %v5021_v31 = vsel %vm2257_vm9, %v4989_v23, %v22149_v16  ;;  %v2618_v16 = vpop.f32.mrb[11].mxu1 }
 0x299   : > { %v5052_v13 = vsel %vm2290_vm10, %v5020_v62, %v12000_v9  ;;  %v17775_v61 = vmul.f32 %v17320_v46, %v17756_v22  ;;  %v22334_v15 = vpack.i.bf16 %v17554_v48, %v17551_v19  ;;  %v12011_v29 = vunpack.i.h.bf16 %v17704_v0 }
 0x29a   : > { %12308 = vrot.lane.b32.xlu0 %v17229_v3, %s12363_s25  ;;  %v12010_v3 = vunpack.i.l.bf16 %v17704_v0  ;;  %10648 = vmatprep.mubr.msk.f32.mxu1 %vm20920_vm11, %v5052_v13  ;;  %v17788_v9 = vmul.f32 %v17320_v46, %v17763_v51  ;;  %v5053_v8 = vsel %vm2290_vm10, %v5021_v31, %v12001_v52  ;;  %v17791_v21 = vpop.permute.xlu0 %12028  ;;  %v4926_v36 = vsel %vm2158_vm6, %v4894_v37, %v22126_v4  ;;  %v22337_v31 = vld [vmem:[#allocation153_spill] sm:$0xff]  ;;  %s18244_s25 = sld [smem:[#allocation2 + $0x2]] }
 0x29b   : > { %12323 = vrot.lane.b32.xlu1 %v22334_v15, %s12366_s26  ;;  %10649 = vmatmul.mubr.msk.f32.gmra.mrb[22].mxu1 %vm20920_vm11, %v5053_v8  ;;  %v17798_v19 = vmul.f32 %v17320_v46, %v17767_v27  ;;  %v12021_v48 = vunpack.i.h.bf16 %v12019_v54  ;;  %v2723_v42 = vsel %vm2658_vm13, %v17594_v59, %v17642_v58  ;;  %v4927_v52 = vsel %vm2158_vm6, %v4895_v49, %v22128_v24  ;;  %v10567_v49 = vpop.f32.mrb[12].mxu1  ;;  %s10067_s26 = sld [smem:[#allocation2 + $0x3]] }
 0x29c   : > { %v12044_v0 = vpop.permute.xlu1 %12043  ;;  %v12015_v14 = vunpack.i.l.bf16 %v17669_v33  ;;  %v17808_v4 = vadd.f32 %v2608_v40, %v17340_v34  ;;  %v17811_v37 = vadd.f32 %v10564_v43, %v17340_v34  ;;  %v22335_v62 = vpack.i.bf16 %v17615_v50, %v17590_v39  ;;  %v22336_v40 = vld [vmem:[#allocation15_spill] sm:$0xff] }
 0x29d   : > { %v4958_v23 = vsel %vm2191_vm7, %v4926_v36, %v12005_v18  ;;  %v4959_v59 = vsel %vm2191_vm7, %v4927_v52, %v12006_v38  ;;  %v12016_v58 = vunpack.i.h.bf16 %v17669_v33  ;;  %v12020_v24 = vunpack.i.l.bf16 %v12019_v54  ;;  %v2628_v33 = vpop.f32.mrb[13].mxu1 }
 0x29e   : > { %12318 = vrot.lane.b32.xlu0 %v22335_v62, %s12365_s29  ;;  %v4865_v13 = vsel %vm20917_vm4, %v22336_v40, %v12011_v29  ;;  %v4864_v43 = vsel %vm20917_vm4, %v22337_v31, %v12010_v3  ;;  %v12025_v39 = vunpack.i.l.bf16 %v17718_v12  ;;  %v17829_v50 = vmul.f32 %v17320_v46, %v17808_v4  ;;  %v17831_v38 = vpop.permute.xlu0 %12038 }
 0x29f   : > { %5781 = vrot.lane.b32.xlu1 %v17672_v30, %s12368_s20  ;;  %v12026_v54 = vunpack.i.h.bf16 %v17718_v12  ;;  %v4897_v18 = vsel %vm20918_vm5, %v4865_v13, %v12021_v48  ;;  %v17837_v30 = vmul.f32 %v17320_v46, %v17811_v37  ;;  %v12036_v15 = vunpack.i.h.bf16 %v17758_v28 }
 0x2a0   : > { %v12054_v29 = vpop.permute.xlu1 %12053  ;;  %v12035_v3 = vunpack.i.l.bf16 %v17758_v28  ;;  %v12031_v8 = vunpack.i.h.bf16 %v17791_v21  ;;  %v4990_v36 = vsel %vm20919_vm8, %v4958_v23, %v12015_v14  ;;  %v17844_v52 = vadd.f32 %v2618_v16, %v17340_v34  ;;  %v10570_v28 = vpop.f32.mrb[14].mxu1 }
 0x2a1   : > { %22338 = vst [vmem:[#allocation74_spill] sm:$0xff] %v17837_v30  ;;  %v4896_v12 = vsel %vm20918_vm5, %v4864_v43, %v12020_v24  ;;  %v5022_v48 = vsel %vm2257_vm9, %v4990_v36, %v22164_v1  ;;  %v4991_v62 = vsel %vm20919_vm8, %v4959_v59, %v12016_v58  ;;  %v17852_v40 = vadd.f32 %v10567_v49, %v17340_v34  ;;  %v2638_v31 = vpop.f32.mrb[15].mxu1  ;;  %v22341_v1 = vld [vmem:[#allocation226_spill] sm:$0xff] }
 0x2a2   : > { %5779 = vrot.lane.b32.xlu0 %v2723_v42, %s12368_s20  ;;  %v12030_v13 = vunpack.i.l.bf16 %v17791_v21  ;;  %v5054_v14 = vsel %vm2290_vm10, %v5022_v48, %v12025_v39  ;;  %v17858_v16 = vmul.f32 %v17320_v46, %v17844_v52  ;;  %v22340_v42 = vld [vmem:[#allocation209_spill] sm:$0xff]  ;;  %v12049_v24 = vpop.permute.xlu0 %12048  ;;  %v4867_v59 = vsel %vm20917_vm4, %v22341_v1, %v12036_v15  ;;  %v22343_v39 = vld [vmem:[#allocation227_spill] sm:$0xff]  ;;  %v22344_v48 = vld [vmem:[#allocation224_spill] sm:$0xff] }
 0x2a3   : > { %v5023_v23 = vsel %vm2257_vm9, %v4991_v62, %v22340_v42  ;;  %10651 = vmatprep.mubr.msk.f32.mxu1 %vm20920_vm11, %v5054_v14  ;;  %v17868_v21 = vmul.f32 %v17320_v46, %v17852_v40  ;;  %v12046_v49 = vunpack.i.h.bf16 %v12044_v0  ;;  %v4866_v36 = vsel %vm20917_vm4, %v22343_v39, %v12035_v3 }
 0x2a4   : > { %22339 = vst [vmem:[#allocation76_spill] sm:$0xff] %v17858_v16  ;;  %v5055_v58 = vsel %vm2290_vm10, %v5023_v23, %v12026_v54  ;;  %v17870_v43 = vpop.permute.xlu1 %12063  ;;  %v4928_v62 = vsel %vm2158_vm6, %v4896_v12, %v22344_v48  ;;  %v12045_v15 = vunpack.i.l.bf16 %v12044_v0  ;;  %v17878_v14 = vadd.f32 %v2628_v33, %v17340_v34  ;;  %v22345_v16 = vld [vmem:[#allocation107_spill] sm:$0xff]  ;;  %v22349_v48 = vld [vmem:[#allocation8_spill] sm:$0xff] }
 0x2a5   : > { %22342 = vst [vmem:[#allocation78_spill] sm:$0xff] %v17868_v21  ;;  %10652 = vmatmul.mubr.msk.f32.gmra.mrb[24].mxu1 %vm20920_vm11, %v5055_v58  ;;  %v4899_v54 = vsel %vm20918_vm5, %v4867_v59, %v12046_v49  ;;  %v17882_v42 = vadd.f32 %v10570_v28, %v17340_v34  ;;  %v12056_v23 = vunpack.i.h.bf16 %v12054_v29  ;;  %v12055_v1 = vunpack.i.l.bf16 %v12054_v29  ;;  %v10573_v21 = vpop.f32.mrb[16].mxu1 }
 0x2a6   : > { %v4929_v3 = vsel %vm2158_vm6, %v4897_v18, %v22345_v16  ;;  %v4898_v39 = vsel %vm20918_vm5, %v4866_v36, %v12045_v15  ;;  %v12040_v12 = vunpack.i.l.bf16 %v17831_v38  ;;  %v17890_v0 = vmul.f32 %v17320_v46, %v17878_v14  ;;  %v12059_v33 = vpop.permute.xlu0 %12058  ;;  %v2648_v58 = vpop.f32.mrb[17].mxu1  ;;  %v22348_v16 = vld [vmem:[#allocation43_spill] sm:$0xff] }
 0x2a7   : > { %v4960_v59 = vsel %vm2191_vm7, %v4928_v62, %v12030_v13  ;;  %v4961_v28 = vsel %vm2191_vm7, %v4929_v3, %v12031_v8  ;;  %v12041_v29 = vunpack.i.h.bf16 %v17831_v38  ;;  %v17897_v49 = vmul.f32 %v17320_v46, %v17882_v42 }
 0x2a8   : > { %22346 = vst [vmem:[#allocation163_spill] sm:$0xff] %v17890_v0  ;;  %v17899_v18 = vpop.permute.xlu1 %12073  ;;  %v4930_v36 = vsel %vm2158_vm6, %v4898_v39, %v22348_v16  ;;  %v4931_v15 = vsel %vm2158_vm6, %v4899_v54, %v22349_v48  ;;  %v12050_v0 = vunpack.i.l.bf16 %v12049_v24  ;;  %v17906_v30 = vadd.f32 %v2638_v31, %v17340_v34  ;;  %v22353_v48 = vld [vmem:[#allocation53_spill] sm:$0xff] }
 0x2a9   : > { %22347 = vst [vmem:[#allocation165_spill] sm:$0xff] %v17897_v49  ;;  %v4962_v8 = vsel %vm2191_vm7, %v4930_v36, %v12055_v1  ;;  %v4963_v38 = vsel %vm2191_vm7, %v4931_v15, %v12056_v23  ;;  %v17911_v13 = vadd.f32 %v10573_v21, %v17340_v34  ;;  %v12061_v62 = vunpack.i.h.bf16 %v12059_v33  ;;  %v22352_v21 = vld [vmem:[#allocation198_spill] sm:$0xff] }
 0x2aa   : > { %v12051_v3 = vunpack.i.h.bf16 %v12049_v24  ;;  %v17915_v49 = vmul.f32 %v17320_v46, %v17906_v30  ;;  %v12060_v39 = vunpack.i.l.bf16 %v12059_v33  ;;  %v4992_v54 = vsel %vm20919_vm8, %v4960_v59, %v12040_v12  ;;  %v12069_v16 = vpop.permute.xlu0 %12068 }
 0x2ab   : > { %v17920_v31 = vmul.f32 %v17320_v46, %v17911_v13  ;;  %v12066_v1 = vunpack.i.h.bf16 %v17870_v43  ;;  %v12065_v23 = vunpack.i.l.bf16 %v17870_v43  ;;  %v5024_v36 = vsel %vm2257_vm9, %v4992_v54, %v22352_v21  ;;  %v22355_v43 = vld [vmem:[#allocation200_spill] sm:$0xff] }
 0x2ac   : > { %22350 = vst [vmem:[#allocation155_spill] sm:$0xff] %v17915_v49  ;;  %v12084_v24 = vpop.permute.xlu1 %12083  ;;  %v4869_v15 = vsel %vm20917_vm4, %v22353_v48, %v12061_v62  ;;  %v5056_v33 = vsel %vm2290_vm10, %v5024_v36, %v12050_v0  ;;  %v17930_v12 = vadd.f32 %v2648_v58, %v17340_v34  ;;  %v4993_v59 = vsel %vm20919_vm8, %v4961_v28, %v12041_v29 }
 0x2ad   : > { %22351 = vst [vmem:[#allocation157_spill] sm:$0xff] %v17920_v31  ;;  %vm2661_vm14 = vcmp.ge.f32.partialorder %v17460_v6, 0.0  ;;  %v22354_v31 = vld [vmem:[#allocation59_spill] sm:$0xff]  ;;  %10654 = vmatprep.mubr.msk.f32.mxu1 %vm20920_vm11, %v5056_v33  ;;  %v5025_v54 = vsel %vm2257_vm9, %v4993_v59, %v22355_v43  ;;  %v12076_v21 = vunpack.i.h.bf16 %v17899_v18  ;;  %v12071_v62 = vunpack.i.h.bf16 %v12069_v16  ;;  %v22357_v43 = vld [vmem:[#allocation225_spill] sm:$0xff] }
 0x2ae   : > { %v4868_v49 = vsel %vm20917_vm4, %v22354_v31, %v12060_v39  ;;  %vm2660_vm15 = vcmp.ge.f32.partialorder %v17468_v41, 0.0  ;;  %vm2663_vm3 = vcmp.ge.f32.partialorder %v17497_v44, 0.0  ;;  %v17944_v34 = vmul.f32 %v17320_v46, %v17930_v12  ;;  %v12079_v29 = vpop.permute.xlu0 %12078 }
 0x2af   : > { %v5057_v0 = vsel %vm2290_vm10, %v5025_v54, %v12051_v3  ;;  %v12075_v58 = vunpack.i.l.bf16 %v17899_v18  ;;  %v12070_v28 = vunpack.i.l.bf16 %v12069_v16  ;;  %vm2662_vm12 = vcmp.ge.f32.partialorder %v17511_v35, 0.0  ;;  %v22356_v3 = vld [vmem:[#allocation91_spill] sm:$0xff] }
 0x2b0   : > { %10655 = vmatmul.mubr.msk.f32.gmra.mrb[26].mxu1 %vm20920_vm11, %v5057_v0  ;;  %v4901_v39 = vsel %vm20918_vm5, %v4869_v15, %v12071_v62  ;;  %v12086_v31 = vunpack.i.h.bf16 %v12084_v24  ;;  %v12085_v36 = vunpack.i.l.bf16 %v12084_v24  ;;  %v12081_v48 = vunpack.i.h.bf16 %v12079_v29  ;;  %v12094_v33 = vpop.permute.xlu1 %12093  ;;  %v22358_v15 = vld [vmem:[#allocation103_spill] sm:$0xff]  ;;  %v22359_v62 = vld [vmem:[#allocation176_spill] sm:$0xff] }
 0x2b1   : > { %v4900_v46 = vsel %vm20918_vm5, %v4868_v49, %v12070_v28  ;;  %v12080_v59 = vunpack.i.l.bf16 %v12079_v29  ;;  %v4933_v18 = vsel %vm2158_vm6, %v4901_v39, %v22356_v3  ;;  %v4994_v16 = vsel %vm20919_vm8, %v4962_v8, %v12065_v23  ;;  %v22360_v23 = vld [vmem:[#allocation195_spill] sm:$0xff] }
 0x2b2   : > { %v4871_v54 = vsel %vm20917_vm4, %v22357_v43, %v12086_v31  ;;  %v4870_v24 = vsel %vm20917_vm4, %v22358_v15, %v12085_v36  ;;  %v4932_v0 = vsel %vm2158_vm6, %v4900_v46, %v22359_v62  ;;  %v4965_v49 = vsel %vm2191_vm7, %v4933_v18, %v12081_v48  ;;  %v12089_v31 = vpop.permute.xlu0 %12088  ;;  %v22361_v46 = vld [vmem:[#allocation206_spill] sm:$0xff]  ;;  %v22362_v15 = vld [vmem:[#allocation228_spill] sm:$0xff] }
 0x2b3   : > { %v4964_v8 = vsel %vm2191_vm7, %v4932_v0, %v12080_v59  ;;  %v5026_v28 = vsel %vm2257_vm9, %v4994_v16, %v22360_v23  ;;  %v4995_v29 = vsel %vm20919_vm8, %v4963_v38, %v12066_v1  ;;  %v12096_v39 = vunpack.i.h.bf16 %v12094_v33 }
 0x2b4   : > { %v5058_v36 = vsel %vm2290_vm10, %v5026_v28, %v12075_v58  ;;  %v5027_v48 = vsel %vm2257_vm9, %v4995_v29, %v22361_v46  ;;  %v12095_v3 = vunpack.i.l.bf16 %v12094_v33  ;;  %v12091_v18 = vunpack.i.h.bf16 %v12089_v31  ;;  %v12104_v43 = vpop.permute.xlu1 %12103 }
 0x2b5   : > { %10657 = vmatprep.mubr.msk.f32.mxu1 %vm20920_vm11, %v5058_v36  ;;  %v5059_v59 = vsel %vm2290_vm10, %v5027_v48, %v12076_v21  ;;  %v4903_v38 = vsel %vm20918_vm5, %v4871_v54, %v12096_v39  ;;  %v12090_v1 = vunpack.i.l.bf16 %v12089_v31  ;;  %v12106_v16 = vunpack.i.h.bf16 %v12104_v43  ;;  %v22363_v21 = vld [vmem:[#allocation232_spill] sm:$0xff] }
 0x2b6   : > { %vm2672_vm4 = vcmp.ge.f32.partialorder %v17601_v25, 0.0  ;;  %vm2675_vm2 = vcmp.ge.f32.partialorder %v17610_v32, 0.0  ;;  %10658 = vmatmul.mubr.msk.f32.gmra.mrb[28].mxu1 %vm20920_vm11, %v5059_v59  ;;  %v4902_v58 = vsel %vm20918_vm5, %v4870_v24, %v12095_v3  ;;  %v12105_v33 = vunpack.i.l.bf16 %v12104_v43  ;;  %v12099_v28 = vpop.permute.xlu0 %12098 }
 0x2b7   : > { %v4935_v62 = vsel %vm2158_vm6, %v4903_v38, %v22362_v15  ;;  %v4997_v0 = vsel %vm20919_vm8, %v4965_v49, %v12091_v18  ;;  %vm2674_vm13 = vcmp.ge.f32.partialorder %v17655_v53, 0.0  ;;  %vm2671_vm0 = vcmp.ge.f32.partialorder %v17713_v2, 0.0  ;;  %v22364_v49 = vld [vmem:[#allocation280_spill] sm:$0xff] }
 0x2b8   : > { %v4934_v54 = vsel %vm2158_vm6, %v4902_v58, %v22363_v21  ;;  %v4967_v23 = vsel %vm2191_vm7, %v4935_v62, %v12106_v16  ;;  %v4996_v24 = vsel %vm20919_vm8, %v4964_v8, %v12090_v1  ;;  %v12101_v39 = vunpack.i.h.bf16 %v12099_v28  ;;  %v12114_v36 = vpop.permute.xlu1 %12113  ;;  %v22365_v18 = vld [vmem:[#allocation72_spill] sm:$0xff]  ;;  %v22366_v1 = vld [vmem:[#allocation62_spill] sm:$0xff]  ;;  %v22367_v58 = vld [vmem:[#allocation63_spill] sm:$0xff] }
 0x2b9   : > { %v4966_v29 = vsel %vm2191_vm7, %v4934_v54, %v12105_v33  ;;  %v12100_v31 = vunpack.i.l.bf16 %v12099_v28  ;;  %v5029_v46 = vsel %vm2257_vm9, %v4997_v0, %v22364_v49  ;;  %vm2676_vm5 = vcmp.ge.f32.partialorder %v17710_v56, 0.0  ;;  %v22368_v62 = vld [vmem:[#allocation126_spill] sm:$0xff]  ;;  %v22376_v49 = vld [vmem:[#allocation207_spill] sm:$0xff] }
 0x2ba   : > { %vm2679_vm1 = vcmp.ge.f32.partialorder %v17716_v45, 0.0  ;;  %v12116_v48 = vunpack.i.h.bf16 %v12114_v36  ;;  %v12115_v3 = vunpack.i.l.bf16 %v12114_v36  ;;  %v5028_v43 = vsel %vm2257_vm9, %v4996_v24, %v22365_v18  ;;  %v12109_v15 = vpop.permute.xlu0 %12108 }
 0x2bb   : > { %v18004_v8 = vsel %vm2661_vm14, %v17460_v6, %v17477_v26  ;;  %v5060_v59 = vsel %vm2290_vm10, %v5028_v43, %v12100_v31  ;;  %v5061_v38 = vsel %vm2290_vm10, %v5029_v46, %v12101_v39  ;;  %v18012_v16 = vsel %vm2660_vm15, %v17468_v41, %v22366_v1  ;;  %v22369_v41 = vld [vmem:[#allocation84_spill] sm:$0xff]  ;;  %v22373_v39 = vld [vmem:[#allocation82_spill] sm:$0xff]  ;;  %v22375_v31 = vld [vmem:[#allocation249_spill] sm:$0xff] }
 0x2bc   : > { %v18018_v33 = vsel %vm2663_vm3, %v17497_v44, %v22367_v58  ;;  %10660 = vmatprep.mubr.msk.f32.mxu1 %vm20920_vm11, %v5060_v59  ;;  %v4998_v6 = vsel %vm20919_vm8, %v4966_v29, %v12115_v3  ;;  %v4999_v26 = vsel %vm20919_vm8, %v4967_v23, %v12116_v48  ;;  %v18027_v0 = vsel %vm2662_vm12, %v17511_v35, %v22368_v62  ;;  %v12124_v23 = vpop.permute.xlu1 %12123  ;;  %v22371_v29 = vld [vmem:[#allocation277_spill] sm:$0xff]  ;;  %v22377_v48 = vld [vmem:[#allocation274_spill] sm:$0xff] }
 0x2bd   : > { %vm22370_vm14 = vcmp.ge.f32.partialorder %v17559_v7, 0.0  ;;  %vm2670_vm15 = vcmp.ge.f32.partialorder %v17756_v22, 0.0  ;;  %vm2678_vm3 = vcmp.ge.f32.partialorder %v17763_v51, 0.0  ;;  %v12111_v44 = vunpack.i.h.bf16 %v12109_v15  ;;  %10661 = vmatmul.mubr.msk.f32.gmra.mrb[30].mxu1 %vm20920_vm11, %v5061_v38  ;;  %v22388_v62 = vld [vmem:[#allocation185_spill] sm:$0xff] }
 0x2be   : > { %v18033_v21 = vsel %vm22370_vm14, %v17559_v7, %v22369_v41  ;;  %v12110_v54 = vunpack.i.l.bf16 %v12109_v15  ;;  %v12126_v28 = vunpack.i.h.bf16 %v12124_v23  ;;  %v12125_v24 = vunpack.i.l.bf16 %v12124_v23 }
 0x2bf   : > { %vm22372_vm12 = vcmp.ge.f32.partialorder %v17598_v57, 0.0  ;;  %vm22374_vm14 = vcmp.ge.f32.partialorder %v17607_v17, 0.0  ;;  %v5030_v36 = vsel %vm2257_vm9, %v4998_v6, %v22375_v31  ;;  %v5031_v46 = vsel %vm2257_vm9, %v4999_v26, %v22376_v49  ;;  %v22382_v6 = vld [vmem:[#allocation97_spill] sm:$0xff] }
 0x2c0   : > { %v18042_v35 = vsel %vm22372_vm12, %v17598_v57, %v22371_v29  ;;  %v18048_v7 = vsel %vm22374_vm14, %v17607_v17, %v22373_v39  ;;  %vm22378_vm8 = vcmp.ge.f32.partialorder %v17652_v10, 0.0  ;;  %v22379_v57 = vld [vmem:[#allocation181_spill] sm:$0xff]  ;;  %vm22380_vm12 = vcmp.ge.f32.partialorder %v17658_v11, 0.0  ;;  %v12119_v17 = vpop.permute.xlu0 %12118  ;;  %v12134_v58 = vpop.permute.xlu1 %12133 }
 0x2c1   : > { %v18058_v3 = vsel %vm22378_vm8, %v17652_v10, %v22377_v48  ;;  %v18064_v18 = vsel %vm22380_vm12, %v17658_v11, %v22379_v57  ;;  %v5062_v43 = vsel %vm2290_vm10, %v5030_v36, %v12125_v24  ;;  %v5063_v59 = vsel %vm2290_vm10, %v5031_v46, %v12126_v28 }
 0x2c2   : > { %vm22381_vm14 = vcmp.ge.f32.partialorder %v17707_v5, 0.0  ;;  %v18078_v10 = vsel %vm2671_vm0, %v17713_v2, %v17746_v63  ;;  %v12121_v1 = vunpack.i.h.bf16 %v12119_v17  ;;  %v12120_v11 = vunpack.i.l.bf16 %v12119_v17  ;;  %10663 = vmatprep.mubr.msk.f32.mxu1 %vm20920_vm11, %v5062_v43  ;;  %v22385_v63 = vld [vmem:[#allocation138_spill] sm:$0xff]  ;;  %v22396_v17 = vld [vmem:[#allocation229_spill] sm:$0xff] }
 0x2c3   : > { %v18072_v38 = vsel %vm22381_vm14, %v17707_v5, %v17734_v20  ;;  %v18085_v15 = vsel %vm2670_vm15, %v17756_v22, %v17775_v61  ;;  %vm22383_vm8 = vcmp.ge.f32.partialorder %v17562_v55, 0.0  ;;  %vm2681_vm0 = vcmp.ge.f32.partialorder %v17767_v27, 0.0  ;;  %10664 = vmatmul.mubr.msk.f32.gmra.mrb[32].mxu1 %vm20920_vm11, %v5063_v59  ;;  %v22384_v5 = vld [vmem:[#allocation79_spill] sm:$0xff]  ;;  %v22400_v59 = vld [vmem:[#allocation256_spill] sm:$0xff] }
 0x2c4   : > { %v18091_v20 = vsel %vm22383_vm8, %v17562_v55, %v22382_v6  ;;  %vm2680_vm12 = vcmp.ge.f32.partialorder %v17808_v4, 0.0  ;;  %v18100_v2 = vsel %vm2672_vm4, %v17601_v25, %v22384_v5  ;;  %v18106_v22 = vsel %vm2675_vm2, %v17610_v32, %v22385_v63  ;;  %v22386_v55 = vld [vmem:[#allocation111_spill] sm:$0xff]  ;;  %v22389_v25 = vld [vmem:[#allocation13_spill] sm:$0xff]  ;;  %v22391_v32 = vld [vmem:[#allocation234_spill] sm:$0xff]  ;;  %v12129_v29 = vpop.permute.xlu0 %12128 }
 0x2c5   : > { %vm2683_vm15 = vcmp.ge.f32.partialorder %v17811_v37, 0.0  ;;  %vm22387_vm14 = vcmask 64512   ;;  %v12136_v26 = vunpack.i.h.bf16 %v12134_v58  ;;  %v18115_v41 = vsel %vm2674_vm13, %v17655_v53, %v22388_v62  ;;  %v12144_v53 = vpop.permute.xlu1 %12143 }
 0x2c6   : > { %v4872_v61 = vsel %vm22387_vm14, %v22386_v55, %v12110_v54  ;;  %vm22390_vm4 = vcmp.ge.f32.partialorder %v17661_v47, 0.0  ;;  %vm2682_vm2 = vcmp.ge.f32.partialorder %v17844_v52, 0.0  ;;  %vm22392_vm8 = vmmov %vm22387_vm14  ;;  %vm22393_vm11 = vcmask 97280  }
 0x2c7   : > { %v18121_v23 = vsel %vm22390_vm4, %v17661_v47, %v22389_v25  ;;  %v4873_v28 = vsel %vm22392_vm8, %v22391_v32, %v12111_v44  ;;  %v4904_v54 = vsel %vm22393_vm11, %v4872_v61, %v12120_v11  ;;  %v12135_v24 = vunpack.i.l.bf16 %v12134_v58  ;;  %vm22394_vm14 = vmmov %vm22393_vm11  ;;  %v22395_v47 = vld [vmem:[#allocation14_spill] sm:$0xff]  ;;  %v22401_v11 = vld [vmem:[#allocation251_spill] sm:$0xff] }
 0x2c8   : > { %v4905_v39 = vsel %vm22394_vm14, %v4873_v28, %v12121_v1  ;;  %v12131_v31 = vunpack.i.h.bf16 %v12129_v29  ;;  %v18132_v36 = vsel %vm2676_vm5, %v17710_v56, %v17738_v60  ;;  %v18138_v49 = vsel %vm2679_vm1, %v17716_v45, %v22395_v47  ;;  %vm22397_vm5 = vmmov %vm22392_vm8  ;;  %v5582_v60 = vld [vmem:[%s20197_s3] sm:$0xf] }
 0x2c9   : > { %v12130_v44 = vunpack.i.l.bf16 %v12129_v29  ;;  %v12146_v46 = vunpack.i.h.bf16 %v12144_v53  ;;  %v12145_v48 = vunpack.i.l.bf16 %v12144_v53  ;;  %v18144_v57 = vsel %vm2678_vm3, %v17763_v51, %v17788_v9  ;;  %v22398_v45 = vld [vmem:[#allocation109_spill] sm:$0xff]  ;;  %vm22399_vm13 = vmmov %vm22397_vm5  ;;  %v12139_v9 = vpop.permute.xlu0 %12138  ;;  %v12154_v61 = vpop.permute.xlu1 %12153 }
 0x2ca   : > { %vm2685_vm11 = vcmp.ge.f32.partialorder %v17852_v40, 0.0  ;;  %v4875_v56 = vsel %vm22397_vm5, %v22396_v17, %v12136_v26  ;;  %vm2684_vm1 = vcmp.ge.f32.partialorder %v17878_v14, 0.0  ;;  %v4874_v43 = vsel %vm22399_vm13, %v22398_v45, %v12135_v24  ;;  %vm22402_vm4 = vmmov %vm22394_vm14  ;;  %v22413_v45 = vld [vmem:[#allocation74_spill] sm:$0xff] }
 0x2cb   : > { %v4936_v1 = vsel %vm2158_vm6, %v4904_v54, %v22400_v59  ;;  %v4937_v51 = vsel %vm2158_vm6, %v4905_v39, %v22401_v11  ;;  %v20921_v58 = vmov 0.0   ;;  %vm12370_vm3 = vmmov 0   ;;  %vm22403_vm8 = vmmov %vm22402_vm4  ;;  %v22409_v39 = vld [vmem:[#allocation167_spill] sm:$0xff]  ;;  %v22415_v59 = vld [vmem:[#allocation76_spill] sm:$0xff] }
 0x2cc   : > { %10690 = vmatprep.subr.mxu0 %v20921_v58  ;;  %10692 = vmatprep.mubr.msk.f32.mxu0 %vm12370_vm3, %v20921_v58  ;;  %v4906_v6 = vsel %vm22402_vm4, %v4874_v43, %v12145_v48  ;;  %v4907_v5 = vsel %vm22403_vm8, %v4875_v56, %v12146_v46  ;;  %v12141_v63 = vunpack.i.h.bf16 %v12139_v9  ;;  %v12140_v55 = vunpack.i.l.bf16 %v12139_v9  ;;  %v22411_v48 = vld [vmem:[#allocation265_spill] sm:$0xff]  ;;  %v22412_v56 = vld [vmem:[#allocation175_spill] sm:$0xff] }
 0x2cd   : > { %vm22404_vm14 = vcmask 1043456   ;;  %v4968_v26 = vsel %vm2191_vm7, %v4936_v1, %v12130_v44  ;;  %v4969_v62 = vsel %vm2191_vm7, %v4937_v51, %v12131_v31  ;;  %v12156_v25 = vunpack.i.h.bf16 %v12154_v61  ;;  %v12149_v53 = vpop.permute.xlu0 %12148  ;;  %v12164_v46 = vpop.permute.xlu1 %12163 }
 0x2ce   : > { %10691 = vmatpush3.msk.msra.mxu0 %vm22404_vm14, %v5582_v60  ;;  %v18171_v32 = vsel %vm2681_vm0, %v17767_v27, %v17798_v19  ;;  %v12155_v28 = vunpack.i.l.bf16 %v12154_v61  ;;  %vm22406_vm5 = vcmask 195584   ;;  %v18180_v29 = vsel %vm2680_vm12, %v17808_v4, %v17829_v50  ;;  %v22410_v19 = vld [vmem:[#allocation243_spill] sm:$0xff] }
 0x2cf   : > { %22405 = vst [vmem:[#allocation67_spill] sm:$0xff] %v18171_v32  ;;  %10695 = vmatprep.subr.mxu0 %v20921_v58  ;;  %v5000_v54 = vsel %vm22406_vm5, %v4968_v26, %v12140_v55  ;;  %vm22407_vm13 = vmmov %vm22406_vm5  ;;  %vm2687_vm4 = vcmp.ge.f32.partialorder %v17882_v42, 0.0  ;;  %vm2686_vm8 = vcmp.ge.f32.partialorder %v17906_v30, 0.0  ;;  %v4938_v27 = vsel %vm2158_vm6, %v4906_v6, %v22409_v39  ;;  %v22420_v55 = vld [vmem:[#allocation78_spill] sm:$0xff]  ;;  %v22422_v61 = vld [vmem:[#allocation163_spill] sm:$0xff] }
 0x2d0   : > { %v5001_v24 = vsel %vm22407_vm13, %v4969_v62, %v12141_v63  ;;  %22408 = vst [vmem:[#allocation136_spill] sm:$0xff] %v18180_v29  ;;  %v4939_v31 = vsel %vm2158_vm6, %v4907_v5, %v22410_v19  ;;  %v12151_v47 = vunpack.i.h.bf16 %v12149_v53  ;;  %v12150_v44 = vunpack.i.l.bf16 %v12149_v53  ;;  %vm22418_vm12 = vmmov %vm22406_vm5  ;;  %v22429_v19 = vld [vmem:[#allocation155_spill] sm:$0xff] }
 0x2d1   : > { %v5032_v17 = vsel %vm2257_vm9, %v5000_v54, %v22411_v48  ;;  %v5033_v4 = vsel %vm2257_vm9, %v5001_v24, %v22412_v56  ;;  %v12166_v50 = vunpack.i.h.bf16 %v12164_v46  ;;  %v12165_v60 = vunpack.i.l.bf16 %v12164_v46  ;;  %v12159_v5 = vpop.permute.xlu0 %12158  ;;  %v12174_v62 = vpop.permute.xlu1 %12173  ;;  %v22425_v54 = vld [vmem:[#allocation211_spill] sm:$0xff] }
 0x2d2   : > { %v18196_v43 = vsel %vm2683_vm15, %v17811_v37, %v22413_v45  ;;  %v18202_v1 = vsel %vm2682_vm2, %v17844_v52, %v22415_v59  ;;  %v4970_v11 = vsel %vm2191_vm7, %v4938_v27, %v12155_v28  ;;  %v4971_v51 = vsel %vm2191_vm7, %v4939_v31, %v12156_v25  ;;  %vm22419_vm15 = vmmov %vm22406_vm5  ;;  %v22427_v27 = vld [vmem:[#allocation165_spill] sm:$0xff]  ;;  %v22437_v45 = vld [vmem:[#allocation34_spill] sm:$0xff] }
 0x2d3   : > { %22414 = vst [vmem:[#allocation162_spill] sm:$0xff] %v18196_v43  ;;  %22416 = vst [vmem:[#allocation61_spill] sm:$0xff] %v18202_v1  ;;  %v5064_v9 = vsel %vm2290_vm10, %v5032_v17, %v12150_v44  ;;  %v5065_v6 = vsel %vm2290_vm10, %v5033_v4, %v12151_v47  ;;  %vm22417_vm0 = vcmask 293888   ;;  %v5002_v37 = vsel %vm22418_vm12, %v4970_v11, %v12165_v60  ;;  %v22436_v60 = vld [vmem:[#allocation235_spill] sm:$0xff]  ;;  %v22439_v11 = vld [vmem:[#allocation236_spill] sm:$0xff] }
 0x2d4   : > { %10666 = vmatprep.mubr.msk.f32.mxu1 %vm22417_vm0, %v5064_v9  ;;  %v5003_v63 = vsel %vm22419_vm15, %v4971_v51, %v12166_v50  ;;  %v18215_v52 = vsel %vm2685_vm11, %v17852_v40, %v22420_v55  ;;  %v18221_v26 = vsel %vm2684_vm1, %v17878_v14, %v22422_v61  ;;  %vm22424_vm2 = vmmov %vm22417_vm0  ;;  %vm2689_vm14 = vcmp.ge.f32.partialorder %v17911_v13, 0.0  ;;  %v22426_v40 = vld [vmem:[#allocation212_spill] sm:$0xff]  ;;  %v22444_v55 = vld [vmem:[#allocation70_spill] sm:$0xff] }
 0x2d5   : > { %22421 = vst [vmem:[#allocation64_spill] sm:$0xff] %v18215_v52  ;;  %22423 = vst [vmem:[#allocation16_spill] sm:$0xff] %v18221_v26  ;;  %10667 = vmatmul.mubr.msk.f32.gmra.mrb[34].mxu1 %vm22424_vm2, %v5065_v6  ;;  %vm2688_vm5 = vcmp.ge.f32.partialorder %v17930_v12, 0.0  ;;  %v12176_v25 = vunpack.i.h.bf16 %v12174_v62  ;;  %v12175_v28 = vunpack.i.l.bf16 %v12174_v62  ;;  %v5034_v24 = vsel %vm2257_vm9, %v5002_v37, %v22425_v54  ;;  %v12169_v44 = vpop.permute.xlu0 %12168  ;;  %v12184_v4 = vpop.permute.xlu1 %12183  ;;  %v22440_v51 = vld [vmem:[#allocation32_spill] sm:$0xff]  ;;  %v22491_v58 = vld [vmem:[#allocation39_spill] sm:$0xff] }
 0x2d6   : > { %v5035_v39 = vsel %vm2257_vm9, %v5003_v63, %v22426_v40  ;;  %v18234_v14 = vsel %vm2687_vm4, %v17882_v42, %v22427_v27  ;;  %v18240_v31 = vsel %vm2686_vm8, %v17906_v30, %v22429_v19  ;;  %v12161_v53 = vunpack.i.h.bf16 %v12159_v5  ;;  %vm22431_vm11 = vmmov %vm22417_vm0  ;;  %v22432_v42 = vld [vmem:[#allocation157_spill] sm:$0xff]  ;;  %v22447_v61 = vld [vmem:[#allocation28_spill] sm:$0xff] }
 0x2d7   : > { %22428 = vst [vmem:[#allocation18_spill] sm:$0xff] %v18234_v14  ;;  %22430 = vst [vmem:[#allocation48_spill] sm:$0xff] %v18240_v31  ;;  %v12160_v47 = vunpack.i.l.bf16 %v12159_v5  ;;  %v5066_v46 = vsel %vm2290_vm10, %v5034_v24, %v12175_v28  ;;  %v5067_v48 = vsel %vm2290_vm10, %v5035_v39, %v12176_v25  ;;  %v12171_v17 = vunpack.i.h.bf16 %v12169_v44  ;;  %v22449_v25 = vld [vmem:[#allocation231_spill] sm:$0xff] }
 0x2d8   : > { %v12170_v56 = vunpack.i.l.bf16 %v12169_v44  ;;  %10669 = vmatprep.mubr.msk.f32.mxu1 %vm22431_vm11, %v5066_v46  ;;  %v18251_v30 = vsel %vm2689_vm14, %v17911_v13, %v22432_v42  ;;  %v18257_v50 = vsel %vm2688_vm5, %v17930_v12, %v17944_v34  ;;  %vm22435_vm1 = vmmov %vm22417_vm0  ;;  %vm22438_vm13 = vcmask 31744   ;;  %v22446_v34 = vld [vmem:[#allocation230_spill] sm:$0xff]  ;;  %v22450_v28 = vld [vmem:[#allocation27_spill] sm:$0xff] }
 0x2d9   : > { %22433 = vst [vmem:[#allocation156_spill] sm:$0xff] %v18251_v30  ;;  %22434 = vst [vmem:[#allocation233_spill] sm:$0xff] %v18257_v50  ;;  %10670 = vmatmul.mubr.msk.f32.gmra.mrb[36].mxu1 %vm22435_vm1, %v5067_v48  ;;  %v4845_v59 = vsel %vm22438_vm13, %v22437_v45, %v22436_v60  ;;  %v12186_v6 = vunpack.i.h.bf16 %v12184_v4  ;;  %v12185_v5 = vunpack.i.l.bf16 %v12184_v4  ;;  %vm22442_vm8 = vcmask 64512   ;;  %v12179_v63 = vpop.permute.xlu0 %12178  ;;  %v12194_v39 = vpop.permute.xlu1 %12193  ;;  %v22458_v45 = vld [vmem:[#allocation95_spill] sm:$0xff] }
 0x2da   : > { %vm22441_vm4 = vmmov %vm22438_vm13  ;;  %v4877_v13 = vsel %vm22442_vm8, %v4845_v59, %v12161_v53  ;;  %v18269_v12 = vsub.s32 2, %v22444_v55  ;;  %vm22452_vm2 = vcmask 97280   ;;  %v12181_v27 = vunpack.i.h.bf16 %v12179_v63 }
 0x2db   : > { %v4844_v9 = vsel %vm22441_vm4, %v22440_v51, %v22439_v11  ;;  %vm22443_vm0 = vmmov %vm22442_vm8  ;;  %v12180_v19 = vunpack.i.l.bf16 %v12179_v63  ;;  %v12196_v53 = vunpack.i.h.bf16 %v12194_v39  ;;  %v18293_v60 = vstv %s18244_s25  ;;  %v22459_v11 = vld [vmem:[#allocation168_spill] sm:$0xff]  ;;  %s10108_s25 = sld [smem:[#allocation2 + $0x6]] }
 0x2dc   : > { %v4876_v37 = vsel %vm22443_vm0, %v4844_v9, %v12160_v47  ;;  %22445 = vst [vmem:[#allocation80_spill] sm:$0xff] %v18269_v12  ;;  %vm22448_vm12 = vmmov %vm22441_vm4  ;;  %v12195_v47 = vunpack.i.l.bf16 %v12194_v39 }
 0x2dd   : > { %v4847_v62 = vsel %vm22448_vm12, %v22447_v61, %v22446_v34  ;;  %vm22451_vm15 = vmmov %vm22441_vm4  ;;  %v4908_v24 = vsel %vm22452_vm2, %v4876_v37, %v12170_v56  ;;  %v12189_v42 = vpop.permute.xlu0 %12188  ;;  %v18286_v56 = vld [vmem:[%s20200_s6] sm:$0x1f]  ;;  %v10586_v61 = vpop.f32.mrb[46].mxu0  ;;  %vm22462_vm4 = vcmask 195584  }
 0x2de   : > { %v4846_v54 = vsel %vm22451_vm15, %v22450_v28, %v22449_v25  ;;  %vm22453_vm14 = vmmov %vm22452_vm2  ;;  %v4940_v59 = vsel %vm2158_vm6, %v4908_v24, %v22458_v45  ;;  %v12191_v9 = vunpack.i.h.bf16 %v12189_v42  ;;  %v22461_v28 = vld [vmem:[#allocation130_spill] sm:$0xff]  ;;  %vm22466_vm15 = vcmask 293888  }
 0x2df   : > { %v4909_v40 = vsel %vm22453_vm14, %v4877_v13, %v12171_v17  ;;  %vm22454_vm5 = vmmov %vm22443_vm0  ;;  %v18290_v17 = vrot.slane %v18286_v56, %v18269_v12  ;;  %v4972_v13 = vsel %vm2191_vm7, %v4940_v59, %v12180_v19  ;;  %v22465_v59 = vld [vmem:[#allocation282_spill] sm:$0xff] }
 0x2e0   : > { %v4879_v44 = vsel %vm22454_vm5, %v4847_v62, %v12186_v6  ;;  %vm22455_vm11 = vmmov %vm22443_vm0  ;;  %v4941_v51 = vsel %vm2158_vm6, %v4909_v40, %v22459_v11  ;;  %v12190_v6 = vunpack.i.l.bf16 %v12189_v42  ;;  %v22460_v62 = vld [vmem:[#allocation93_spill] sm:$0xff] }
 0x2e1   : > { %v4878_v46 = vsel %vm22455_vm11, %v4846_v54, %v12185_v5  ;;  %vm22456_vm1 = vmmov %vm22452_vm2  ;;  %v12204_v5 = vpop.permute.xlu1 %12203  ;;  %v4973_v37 = vsel %vm2191_vm7, %v4941_v51, %v12181_v27  ;;  %v3953_v39 = vadd.f32 %v10586_v61, %v18290_v17  ;;  %v12199_v27 = vpop.permute.xlu0 %12198 }
 0x2e2   : > { %v4910_v48 = vsel %vm22456_vm1, %v4878_v46, %v12195_v47  ;;  %vm22457_vm13 = vmmov %vm22456_vm1  ;;  %v12206_v63 = vunpack.i.h.bf16 %v12204_v5  ;;  %v12205_v34 = vunpack.i.l.bf16 %v12204_v5  ;;  %v5004_v24 = vsel %vm22462_vm4, %v4972_v13, %v12190_v6  ;;  %v3947_v47 = vpop.f32.mrb[47].mxu0 }
 0x2e3   : > { %v4911_v4 = vsel %vm22457_vm13, %v4879_v44, %v12196_v53  ;;  %v4942_v25 = vsel %vm2158_vm6, %v4910_v48, %v22460_v62  ;;  %vm22463_vm8 = vmmov %vm22462_vm4  ;;  %v22464_v44 = vld [vmem:[#allocation194_spill] sm:$0xff]  ;;  %v12201_v42 = vunpack.i.h.bf16 %v12199_v27  ;;  %v12200_v48 = vunpack.i.l.bf16 %v12199_v27 }
 0x2e4   : > { %v4943_v54 = vsel %vm2158_vm6, %v4911_v4, %v22461_v28  ;;  %v5005_v40 = vsel %vm22463_vm8, %v4973_v37, %v12191_v9  ;;  %v4974_v53 = vsel %vm2191_vm7, %v4942_v25, %v12205_v34  ;;  %v5036_v46 = vsel %vm2257_vm9, %v5004_v24, %v22464_v44  ;;  %vm22467_vm2 = vmmov %vm22462_vm4  ;;  %v18323_v25 = vpop.f32.mrb[48].mxu0 }
 0x2e5   : > { %v4975_v19 = vsel %vm2191_vm7, %v4943_v54, %v12206_v63  ;;  %v3948_v45 = vadd.f32 %v3947_v47, %v18290_v17  ;;  %v12214_v4 = vpop.permute.xlu1 %12213  ;;  %v5037_v11 = vsel %vm2257_vm9, %v5005_v40, %v22465_v59  ;;  %vm4108_vm0 = vcmp.ge.f32.partialorder %v3953_v39, 0.0  ;;  %v12209_v63 = vpop.permute.xlu0 %12208  ;;  %vm22468_vm14 = vmmov %vm22467_vm2  ;;  %v22470_v47 = vld [vmem:[#allocation270_spill] sm:$0xff] }
 0x2e6   : > { %v4141_v51 = vmul.f32 %v18293_v60, %v3953_v39  ;;  %v12216_v9 = vunpack.i.h.bf16 %v12214_v4  ;;  %v12215_v6 = vunpack.i.l.bf16 %v12214_v4  ;;  %v5068_v13 = vsel %vm2290_vm10, %v5036_v46, %v12200_v48  ;;  %vm22469_vm5 = vmmov %vm22466_vm15  ;;  %v18326_v24 = vpop.f32.mrb[49].mxu0 }
 0x2e7   : > { %vm4107_vm12 = vcmp.ge.f32.partialorder %v3948_v45, 0.0  ;;  %v4140_v5 = vmul.f32 %v18293_v60, %v3948_v45  ;;  %v5069_v37 = vsel %vm2290_vm10, %v5037_v11, %v12201_v42  ;;  %10672 = vmatprep.mubr.msk.f32.mxu1 %vm22466_vm15, %v5068_v13  ;;  %v12210_v44 = vunpack.i.l.bf16 %v12209_v63  ;;  %vm22472_vm11 = vmmov %vm22469_vm5  ;;  %v22477_v13 = vld [vmem:[#allocation92_spill] sm:$0xff] }
 0x2e8   : > { %v4173_v34 = vsel %vm4108_vm0, %v3953_v39, %v4141_v51  ;;  %v5006_v61 = vsel %vm22467_vm2, %v4974_v53, %v12215_v6  ;;  %v5007_v62 = vsel %vm22468_vm14, %v4975_v19, %v12216_v9  ;;  %10673 = vmatmul.mubr.msk.f32.gmra.mrb[38].mxu1 %vm22469_vm5, %v5069_v37  ;;  %v22471_v53 = vld [vmem:[#allocation180_spill] sm:$0xff]  ;;  %vm22473_vm1 = vmmov %vm22469_vm5  ;;  %v22474_v51 = vld [vmem:[#allocation242_spill] sm:$0xff]  ;;  %vm22476_vm13 = vcmask 31744  }
 0x2e9   : > { %5909 = vrot.lane.b32.xlu1 %v4173_v34, %s12359_s21  ;;  %v4172_v28 = vsel %vm4107_vm12, %v3948_v45, %v4140_v5  ;;  %v12224_v54 = vpop.permute.xlu1 %12223  ;;  %v5038_v39 = vsel %vm2257_vm9, %v5006_v61, %v22470_v47  ;;  %v5039_v19 = vsel %vm2257_vm9, %v5007_v62, %v22471_v53  ;;  %v12219_v46 = vpop.permute.xlu0 %12218  ;;  %v12211_v45 = vunpack.i.h.bf16 %v12209_v63  ;;  %v22475_v9 = vld [vmem:[#allocation42_spill] sm:$0xff]  ;;  %vm22479_vm4 = vmmov %vm22476_vm13 }
 0x2ea   : > { %5907 = vrot.lane.b32.xlu0 %v4172_v28, %s12359_s21  ;;  %v12226_v40 = vunpack.i.h.bf16 %v12224_v54  ;;  %v12225_v27 = vunpack.i.l.bf16 %v12224_v54  ;;  %v12220_v4 = vunpack.i.l.bf16 %v12219_v46  ;;  %v12221_v11 = vunpack.i.h.bf16 %v12219_v46  ;;  %v18340_v5 = vpop.f32.mrb[50].mxu0  ;;  %v22478_v37 = vld [vmem:[#allocation46_spill] sm:$0xff]  ;;  %v22484_v46 = vld [vmem:[#allocation240_spill] sm:$0xff]  ;;  %vm22486_vm2 = vmmov %vm22479_vm4 }
 0x2eb   : > { %v4848_v6 = vsel %vm22476_vm13, %v22475_v9, %v22474_v51  ;;  %v4849_v34 = vsel %vm22479_vm4, %v22478_v37, %v22477_v13  ;;  %vm22480_vm8 = vcmask 64512   ;;  %v18346_v28 = vpop.f32.mrb[51].mxu0  ;;  %vm22482_vm12 = vcmask 97280   ;;  %v22488_v13 = vld [vmem:[#allocation271_spill] sm:$0xff]  ;;  %v22489_v37 = vld [vmem:[#allocation98_spill] sm:$0xff]  ;;  %vm22492_vm5 = vmmov %vm22486_vm2 }
 0x2ec   : > { %v5070_v42 = vsel %vm2290_vm10, %v5038_v39, %v12225_v27  ;;  %v5071_v48 = vsel %vm2290_vm10, %v5039_v19, %v12226_v40  ;;  %v4880_v61 = vsel %vm22480_vm8, %v4848_v6, %v12210_v44  ;;  %vm22481_vm0 = vmmov %vm22480_vm8  ;;  %vm22495_vm13 = vcmask 195584  }
 0x2ed   : > { %v12234_v59 = vpop.permute.xlu1 %12233  ;;  %10675 = vmatprep.mubr.msk.f32.mxu1 %vm22472_vm11, %v5070_v42  ;;  %v12229_v62 = vpop.permute.xlu0 %12228  ;;  %v4881_v54 = vsel %vm22481_vm0, %v4849_v34, %v12211_v45  ;;  %v4912_v40 = vsel %vm22482_vm12, %v4880_v61, %v12220_v4  ;;  %vm22483_vm15 = vmmov %vm22482_vm12  ;;  %v22485_v42 = vld [vmem:[#allocation38_spill] sm:$0xff] }
 0x2ee   : > { %10676 = vmatmul.mubr.msk.f32.gmra.mrb[40].mxu1 %vm22473_vm1, %v5071_v48  ;;  %v12235_v63 = vunpack.i.l.bf16 %v12234_v59  ;;  %v4913_v47 = vsel %vm22483_vm15, %v4881_v54, %v12221_v11  ;;  %v12231_v39 = vunpack.i.h.bf16 %v12229_v62  ;;  %v12230_v53 = vunpack.i.l.bf16 %v12229_v62  ;;  %vm22487_vm14 = vmmov %vm22481_vm0  ;;  %v18359_v61 = vpop.f32.mrb[52].mxu0  ;;  %v22490_v54 = vld [vmem:[#allocation113_spill] sm:$0xff] }
 0x2ef   : > { %v4850_v48 = vsel %vm22486_vm2, %v22485_v42, %v22484_v46  ;;  %v12236_v51 = vunpack.i.h.bf16 %v12234_v59  ;;  %v4944_v45 = vsel %vm2158_vm6, %v4912_v40, %v22488_v13  ;;  %v4945_v4 = vsel %vm2158_vm6, %v4913_v47, %v22489_v37  ;;  %vm22493_vm11 = vmmov %vm22482_vm12  ;;  %v18367_v42 = vpop.f32.mrb[53].mxu0 }
 0x2f0   : > { %v4882_v44 = vsel %vm22487_vm14, %v4850_v48, %v12235_v63  ;;  %v4851_v46 = vsel %vm22492_vm5, %v22491_v58, %v22490_v54  ;;  %v4976_v59 = vsel %vm2191_vm7, %v4944_v45, %v12230_v53  ;;  %v4977_v63 = vsel %vm2191_vm7, %v4945_v4, %v12231_v39  ;;  %vm22494_vm1 = vmmov %vm22481_vm0  ;;  %v22498_v58 = vld [vmem:[#allocation179_spill] sm:$0xff]  ;;  %v22499_v54 = vld [vmem:[#allocation66_spill] sm:$0xff] }
 0x2f1   : > { %v12244_v27 = vpop.permute.xlu1 %12243  ;;  %v12239_v6 = vpop.permute.xlu0 %12238  ;;  %v4883_v40 = vsel %vm22494_vm1, %v4851_v46, %v12236_v51  ;;  %vm22496_vm4 = vmmov %vm22495_vm13  ;;  %v22500_v50 = vunpack.i.l.bf16 %v22499_v54  ;;  %v22502_v46 = vld [vmem:[#allocation143_spill] sm:$0xff]  ;;  %vm22503_vm0 = vcmask 293888  }
 0x2f2   : > { %v12245_v19 = vunpack.i.l.bf16 %v12244_v27  ;;  %v12246_v9 = vunpack.i.h.bf16 %v12244_v27  ;;  %v12241_v34 = vunpack.i.h.bf16 %v12239_v6  ;;  %v12240_v11 = vunpack.i.l.bf16 %v12239_v6  ;;  %vm22497_vm8 = vmmov %vm22493_vm11 }
 0x2f3   : > { %vm22504_vm12 = vmmov %vm22496_vm4 }
 0x2f4   : > { %v4914_v27 = vsel %vm22493_vm11, %v4882_v44, %v12245_v19  ;;  %v5008_v48 = vsel %vm22495_vm13, %v4976_v59, %v12240_v11  ;;  %v5009_v6 = vsel %vm22496_vm4, %v4977_v63, %v12241_v34  ;;  %v4915_v13 = vsel %vm22497_vm8, %v4883_v40, %v12246_v9  ;;  %v18384_v59 = vpop.f32.mrb[54].mxu0  ;;  %vm22505_vm15 = vmmov %vm22503_vm0 }
 0x2f5   : > { %v12254_v62 = vpop.permute.xlu1 %12253  ;;  %v12249_v12 = vpop.permute.xlu0 %12248  ;;  %v4946_v53 = vsel %vm2158_vm6, %v4914_v27, %v22498_v58  ;;  %v5040_v51 = vsel %vm2257_vm9, %v5008_v48, %v22500_v50  ;;  %v22501_v11 = vunpack.i.h.bf16 %v22499_v54  ;;  %v4947_v9 = vsel %vm2158_vm6, %v4915_v13, %v22502_v46  ;;  %vm22506_vm2 = vmmov %vm22496_vm4 }
 0x2f6   : > { %v12255_v47 = vunpack.i.l.bf16 %v12254_v62  ;;  %v12256_v37 = vunpack.i.h.bf16 %v12254_v62  ;;  %v12251_v45 = vunpack.i.h.bf16 %v12249_v12  ;;  %v12250_v39 = vunpack.i.l.bf16 %v12249_v12  ;;  %v18390_v50 = vpop.f32.mrb[55].mxu0  ;;  %vm22510_vm14 = vmmov %vm22503_vm0 }
 0x2f7   : > { %v5041_v34 = vsel %vm2257_vm9, %v5009_v6, %v22501_v11  ;;  %vm22511_vm5 = vmmov %vm22503_vm0  ;;  %vm22514_vm11 = vcmask 31744   ;;  %vm22518_vm13 = vcmask 64512  }
 0x2f8   : > { %v4978_v62 = vsel %vm2191_vm7, %v4946_v53, %v12255_v47  ;;  %v5072_v12 = vsel %vm2290_vm10, %v5040_v51, %v12250_v39  ;;  %v5073_v63 = vsel %vm2290_vm10, %v5041_v34, %v12251_v45  ;;  %v4979_v27 = vsel %vm2191_vm7, %v4947_v9, %v12256_v37  ;;  %v22507_v53 = vld [vmem:[#allocation114_spill] sm:$0xff]  ;;  %vm22517_vm1 = vmmov %vm22514_vm11 }
 0x2f9   : > { %v12264_v4 = vpop.permute.xlu1 %12263  ;;  %v12259_v40 = vpop.permute.xlu0 %12258  ;;  %10678 = vmatprep.mubr.msk.f32.mxu1 %vm22503_vm0, %v5072_v12  ;;  %v22508_v39 = vunpack.i.l.bf16 %v22507_v53  ;;  %v22509_v54 = vunpack.i.h.bf16 %v22507_v53  ;;  %v22516_v53 = vld [vmem:[#allocation55_spill] sm:$0xff]  ;;  %vm22519_vm4 = vmmov %vm22518_vm13 }
 0x2fa   : > { %v12266_v19 = vunpack.i.h.bf16 %v12264_v4  ;;  %v12265_v44 = vunpack.i.l.bf16 %v12264_v4  ;;  %10679 = vmatmul.mubr.msk.f32.gmra.mrb[42].mxu1 %vm22505_vm15, %v5073_v63  ;;  %v12261_v46 = vunpack.i.h.bf16 %v12259_v40  ;;  %v12260_v9 = vunpack.i.l.bf16 %v12259_v40  ;;  %vm22520_vm0 = vmmov %vm22497_vm8 }
 0x2fb   : > { %v18402_v11 = vpop.f32.mrb[56].mxu0  ;;  %vm22526_vm15 = vmmov %vm22517_vm1 }
 0x2fc   : > { %v5010_v48 = vsel %vm22504_vm12, %v4978_v62, %v12265_v44  ;;  %v5011_v47 = vsel %vm22506_vm2, %v4979_v27, %v12266_v19  ;;  %v18406_v34 = vpop.f32.mrb[57].mxu0  ;;  %vm22523_vm12 = vmmov %vm22517_vm1 }
 0x2fd   : > { %v12274_v6 = vpop.permute.xlu1 %12273  ;;  %v5042_v45 = vsel %vm2257_vm9, %v5010_v48, %v22508_v39  ;;  %v12269_v4 = vpop.permute.xlu0 %12268  ;;  %v5043_v51 = vsel %vm2257_vm9, %v5011_v47, %v22509_v54  ;;  %v22512_v48 = vld [vmem:[#allocation172_spill] sm:$0xff]  ;;  %vm22529_vm2 = vmmov %vm22519_vm4 }
 0x2fe   : > { %v12276_v13 = vunpack.i.h.bf16 %v12274_v6  ;;  %v12275_v58 = vunpack.i.l.bf16 %v12274_v6  ;;  %v12271_v12 = vunpack.i.h.bf16 %v12269_v4  ;;  %v12270_v63 = vunpack.i.l.bf16 %v12269_v4  ;;  %v22513_v6 = vld [vmem:[#allocation58_spill] sm:$0xff] }
 0x2ff   : > { %v4853_v47 = vsel %vm22514_vm11, %v22513_v6, %v22512_v48 }
 0x300   : > { %v5074_v37 = vsel %vm2290_vm10, %v5042_v45, %v12275_v58  ;;  %v5075_v19 = vsel %vm2290_vm10, %v5043_v51, %v12276_v13  ;;  %v22515_v58 = vld [vmem:[#allocation248_spill] sm:$0xff]  ;;  %v4885_v13 = vsel %vm22518_vm13, %v4853_v47, %v12261_v46  ;;  %v22524_v47 = vld [vmem:[#allocation246_spill] sm:$0xff]  ;;  %vm22534_vm13 = vmmov %vm22520_vm0 }
 0x301   : > { %v12284_v44 = vpop.permute.xlu1 %12283  ;;  %10681 = vmatprep.mubr.msk.f32.mxu1 %vm22510_vm14, %v5074_v37  ;;  %v12279_v62 = vpop.permute.xlu0 %12278  ;;  %v4852_v39 = vsel %vm22517_vm1, %v22516_v53, %v22515_v58  ;;  %v4917_v4 = vsel %vm22520_vm0, %v4885_v13, %v12271_v12  ;;  %v22521_v53 = vld [vmem:[#allocation171_spill] sm:$0xff]  ;;  %v22522_v46 = vld [vmem:[#allocation52_spill] sm:$0xff]  ;;  %v22527_v12 = vld [vmem:[#allocation257_spill] sm:$0xff] }
 0x302   : > { %10682 = vmatmul.mubr.msk.f32.gmra.mrb[44].mxu1 %vm22511_vm5, %v5075_v19  ;;  %v4884_v45 = vsel %vm22519_vm4, %v4852_v39, %v12260_v9  ;;  %v18417_v37 = vpop.f32.mrb[58].mxu0  ;;  %v12281_v51 = vunpack.i.h.bf16 %v12279_v62  ;;  %v12280_v19 = vunpack.i.l.bf16 %v12279_v62  ;;  %v12286_v6 = vunpack.i.h.bf16 %v12284_v44  ;;  %v22525_v39 = vld [vmem:[#allocation50_spill] sm:$0xff]  ;;  %v22528_v13 = vld [vmem:[#allocation275_spill] sm:$0xff]  ;;  %vm22530_vm14 = vmmov %vm22529_vm2 }
 0x303   : > { %v4916_v40 = vsel %vm22497_vm8, %v4884_v45, %v12270_v63  ;;  %v18421_v30 = vpop.f32.mrb[59].mxu0  ;;  %v12285_v31 = vunpack.i.l.bf16 %v12284_v44  ;;  %v4855_v9 = vsel %vm22523_vm12, %v22522_v46, %v22521_v53  ;;  %v4854_v26 = vsel %vm22526_vm15, %v22525_v39, %v22524_v47  ;;  %vm22533_vm1 = vmmov %vm22520_vm0 }
 0x304   : > { %v4948_v62 = vsel %vm2158_vm6, %v4916_v40, %v22527_v12  ;;  %v4949_v52 = vsel %vm2158_vm6, %v4917_v4, %v22528_v13  ;;  %v4887_v47 = vsel %vm22529_vm2, %v4855_v9, %v12286_v6  ;;  %vm22531_vm5 = vcmask 195584  }
 0x305   : > { %v12294_v27 = vpop.permute.xlu1 %12293  ;;  %v12289_v54 = vpop.permute.xlu0 %12288  ;;  %v4981_v29 = vsel %vm2191_vm7, %v4949_v52, %v12281_v51  ;;  %vm22532_vm11 = vmmov %vm22531_vm5  ;;  %vm22535_vm4 = vcmask 293888  }
 0x306   : > { %v12291_v14 = vunpack.i.h.bf16 %v12289_v54  ;;  %v12290_v58 = vunpack.i.l.bf16 %v12289_v54  ;;  %v12296_v63 = vunpack.i.h.bf16 %v12294_v27  ;;  %v12295_v45 = vunpack.i.l.bf16 %v12294_v27  ;;  %vm22538_vm8 = vmmov %vm22535_vm4 }
 0x307   : > { %v4980_v54 = vsel %vm2191_vm7, %v4948_v62, %v12280_v19  ;;  %v4886_v27 = vsel %vm22530_vm14, %v4854_v26, %v12285_v31  ;;  %v18437_v39 = vpop.f32.mrb[60].mxu0  ;;  %v22537_v62 = vld [vmem:[#allocation272_spill] sm:$0xff]  ;;  %vm22539_vm0 = vmmov %vm22531_vm5 }
 0x308   : > { %v5012_v40 = vsel %vm22531_vm5, %v4980_v54, %v12290_v58  ;;  %v5013_v4 = vsel %vm22532_vm11, %v4981_v29, %v12291_v14  ;;  %v4919_v12 = vsel %vm22534_vm13, %v4887_v47, %v12296_v63  ;;  %v18443_v19 = vpop.f32.mrb[61].mxu0  ;;  %vm22540_vm12 = vmmov %vm22539_vm0 }
 0x309   : > { %v12304_v48 = vpop.permute.xlu1 %12303  ;;  %v12299_v43 = vpop.permute.xlu0 %12298  ;;  %v4951_v13 = vsel %vm2158_vm6, %v4919_v12, %v22537_v62 }
 0x30a   : > { %v12306_v1 = vunpack.i.h.bf16 %v12304_v48  ;;  %v12305_v44 = vunpack.i.l.bf16 %v12304_v48  ;;  %v12301_v53 = vunpack.i.h.bf16 %v12299_v43  ;;  %v12300_v46 = vunpack.i.l.bf16 %v12299_v43 }
 0x30b   : > { %v4918_v48 = vsel %vm22533_vm1, %v4886_v27, %v12295_v45  ;;  %v22536_v45 = vld [vmem:[#allocation99_spill] sm:$0xff] }
 0x30c   : > { %v5044_v52 = vsel %vm2257_vm9, %v5012_v40, %v12300_v46  ;;  %v5045_v43 = vsel %vm2257_vm9, %v5013_v4, %v12301_v53  ;;  %v4950_v63 = vsel %vm2158_vm6, %v4918_v48, %v22536_v45  ;;  %vm22541_vm6 = vmmov %vm22535_vm4 }
 0x30d   : > { %v12314_v32 = vpop.permute.xlu1 %12313  ;;  %v12309_v51 = vpop.permute.xlu0 %12308  ;;  %v5076_v6 = vsel %vm2290_vm10, %v5044_v52, %v12305_v44  ;;  %v5077_v26 = vsel %vm2290_vm10, %v5045_v43, %v12306_v1 }
 0x30e   : > { %v12311_v31 = vunpack.i.h.bf16 %v12309_v51  ;;  %v12310_v9 = vunpack.i.l.bf16 %v12309_v51  ;;  %10684 = vmatprep.mubr.msk.f32.mxu1 %vm22535_vm4, %v5076_v6  ;;  %v12316_v14 = vunpack.i.h.bf16 %v12314_v32  ;;  %v12315_v58 = vunpack.i.l.bf16 %v12314_v32  ;;  %v18457_v1 = vpop.f32.mrb[62].mxu0 }
 0x30f   : > { %10685 = vmatmul.mubr.msk.f32.gmra.mrb[46].mxu1 %vm22538_vm8, %v5077_v26  ;;  %v18459_v32 = vpop.f32.mrb[63].mxu0 }
 0x310   : > { %v4983_v54 = vsel %vm2191_vm7, %v4951_v13, %v12311_v31  ;;  %v4982_v44 = vsel %vm2191_vm7, %v4950_v63, %v12310_v9  ;;  %vm22542_vm7 = vmmov %vm22535_vm4 }
 0x311   : > { %v12324_v29 = vpop.permute.xlu1 %12323  ;;  %v12319_v47 = vpop.permute.xlu0 %12318  ;;  %v5014_v4 = vsel %vm22539_vm0, %v4982_v44, %v12315_v58  ;;  %v5015_v48 = vsel %vm22540_vm12, %v4983_v54, %v12316_v14 }
 0x312   : > { %v12326_v53 = vunpack.i.h.bf16 %v12324_v29  ;;  %v12325_v46 = vunpack.i.l.bf16 %v12324_v29  ;;  %v12321_v27 = vunpack.i.h.bf16 %v12319_v47  ;;  %v12320_v40 = vunpack.i.l.bf16 %v12319_v47 }
 0x313   : > { %v18468_v6 = vpop.f32.mrb[64].mxu0 }
 0x314   : > { %v5046_v12 = vsel %vm2257_vm9, %v5014_v4, %v12320_v40  ;;  %v5047_v52 = vsel %vm2257_vm9, %v5015_v48, %v12321_v27  ;;  %v18471_v26 = vpop.f32.mrb[65].mxu0  ;;  %vm22548_vm9 = vmmov %vm22526_vm15  ;;  %v22549_v40 = vmov 0.0   ;;  %v18501_v4 = vsub.s32 3, %v22444_v55  ;;  %v5667_v48 = vld [vmem:[%s20198_s4] sm:$0xff] }
 0x315   : > { %v5078_v43 = vsel %vm2290_vm10, %v5046_v12, %v12325_v46  ;;  %v5079_v51 = vsel %vm2290_vm10, %v5047_v52, %v12326_v53  ;;  %10700 = vmatprep.subr.mxu1 %v5667_v48 }
 0x316   : > { %10687 = vmatprep.mubr.msk.f32.mxu1 %vm22541_vm6, %v5078_v43  ;;  %22550 = vst [vmem:[#allocation25_spill] sm:$0xff] %v18501_v4  ;;  %v18508_v12 = vrot.slane %v18286_v56, %v18501_v4  ;;  %10701 = vmatpush3.msra.mxu1 %v5667_v48  ;;  %v18510_v43 = vstv %s10067_s26  ;;  %v3963_v4 = vadd.f32 %v18323_v25, %v18290_v17 }
 0x317   : > { %10688 = vmatmul.mubr.msk.f32.gmra.mrb[48].mxu1 %vm22542_vm7, %v5079_v51  ;;  %v3958_v48 = vadd.f32 %v18326_v24, %v18290_v17 }
 0x318   : > { %v18473_v31 = vpop.f32.mrb[66].mxu0  ;;  %vm4110_vm15 = vcmp.ge.f32.partialorder %v3963_v4, 0.0 }
 0x319   : > { %v18475_v9 = vpop.f32.mrb[67].mxu0  ;;  %vm4109_vm2 = vcmp.ge.f32.partialorder %v3958_v48, 0.0 }
 0x31e   : > { %v18477_v29 = vpop.f32.mrb[68].mxu0 }
 0x31f   : > { %v18479_v14 = vpop.f32.mrb[69].mxu0 }
 0x325   : > { %v18481_v58 = vpop.f32.mrb[70].mxu0 }
 0x326   : > { %v18483_v45 = vpop.f32.mrb[71].mxu0 }
 0x32f   : > { %v18485_v63 = vpop.f32.mrb[72].mxu0 }
 0x330   : > { %v18487_v62 = vpop.f32.mrb[73].mxu0 }
 0x331   : > { %22543 = vst [vmem:[#allocation81_spill] sm:$0xff] %v18487_v62  ;;  %v4142_v62 = vmul.f32 %v18293_v60, %v3958_v48 }
 0x337   : > { %v18489_v13 = vpop.f32.mrb[74].mxu0 }
 0x338   : > { %22544 = vst [vmem:[#allocation30_spill] sm:$0xff] %v18489_v13  ;;  %v18491_v54 = vpop.f32.mrb[75].mxu0 }
 0x339   : > { %22545 = vst [vmem:[#allocation33_spill] sm:$0xff] %v18491_v54 }
 0x33f   : > { %v18493_v44 = vpop.f32.mrb[76].mxu0 }
 0x340   : > { %22546 = vst [vmem:[#allocation73_spill] sm:$0xff] %v18493_v44  ;;  %v18495_v53 = vpop.f32.mrb[77].mxu0 }
 0x341   : > { %22547 = vst [vmem:[#allocation75_spill] sm:$0xff] %v18495_v53 }
 0x343   : > { %v10426_v46 = vpop.f32.mrb[78].mxu0 }
 0x344   : > { %v10427_v47 = vpop.f32.mrb[79].mxu0 }
 0x345   : > { %v10428_v27 = vadd.f32 %v10427_v47, %v10426_v46 }
 0x347   : > { %10693 = vmatmul.mubr.msk.f32.vlgmr.msra.gmra.mrb[80].mxu0 %vm22548_vm9, %v10428_v27 }
 0x348   : > { %10697 = vmatprep.mubr.msk.f32.mxu0 %vm12370_vm3, %v22549_v40 }
 0x352   : > { %v10644_v52 = vpop.f32.mrb[18].mxu1 }
 0x353   : > { %v5261_v51 = vadd.f32 %v10644_v52, %v18508_v12  ;;  %v5255_v46 = vpop.f32.mrb[19].mxu1 }
 0x354   : > { %v5256_v47 = vadd.f32 %v5255_v46, %v18508_v12  ;;  %v4143_v46 = vmul.f32 %v18293_v60, %v3963_v4 }
 0x355   : > { %vm5416_vm10 = vcmp.ge.f32.partialorder %v5261_v51, 0.0  ;;  %v5449_v27 = vmul.f32 %v18510_v43, %v5261_v51 }
 0x356   : > { %vm5415_vm3 = vcmp.ge.f32.partialorder %v5256_v47, 0.0  ;;  %v5448_v40 = vmul.f32 %v18510_v43, %v5256_v47  ;;  %v10647_v44 = vpop.f32.mrb[20].mxu1 }
 0x357   : > { %v5481_v53 = vsel %vm5416_vm10, %v5261_v51, %v5449_v27  ;;  %v5265_v54 = vpop.f32.mrb[21].mxu1  ;;  %v5271_v13 = vadd.f32 %v10647_v44, %v18508_v12  ;;  %v4174_v44 = vsel %vm4109_vm2, %v3958_v48, %v4142_v62 }
 0x358   : > { %6037 = vrot.lane.b32.xlu1 %v5481_v53, %s12371_s13  ;;  %v5480_v52 = vsel %vm5415_vm3, %v5256_v47, %v5448_v40  ;;  %v5266_v25 = vadd.f32 %v5265_v54, %v18508_v12  ;;  %v4175_v53 = vsel %vm4110_vm15, %v3963_v4, %v4143_v46  ;;  %v3973_v54 = vadd.f32 %v18340_v5, %v18290_v17 }
 0x359   : > { %6035 = vrot.lane.b32.xlu0 %v5480_v52, %s12371_s13  ;;  %v5451_v24 = vmul.f32 %v18510_v43, %v5271_v13  ;;  %vm5418_vm14 = vcmp.ge.f32.partialorder %v5271_v13, 0.0  ;;  %v3968_v47 = vadd.f32 %v18346_v28, %v18290_v17 }
 0x35a   : > { %v5450_v51 = vmul.f32 %v18510_v43, %v5266_v25  ;;  %vm5417_vm5 = vcmp.ge.f32.partialorder %v5266_v25, 0.0  ;;  %v4145_v4 = vmul.f32 %v18293_v60, %v3973_v54  ;;  %vm4112_vm11 = vcmp.ge.f32.partialorder %v3973_v54, 0.0 }
 0x35b   : > { %v4144_v62 = vmul.f32 %v18293_v60, %v3968_v47  ;;  %vm4111_vm1 = vcmp.ge.f32.partialorder %v3968_v47, 0.0 }
 0x35c   : > { %5785 = vrot.lane.b32.xlu1 %v18004_v8, %s12368_s20  ;;  %v5483_v8 = vsel %vm5418_vm14, %v5271_v13, %v5451_v24  ;;  %v4177_v5 = vsel %vm4112_vm11, %v3973_v54, %v4145_v4 }
 0x35d   : > { %5783 = vrot.lane.b32.xlu0 %v18012_v16, %s12368_s20  ;;  %v5482_v16 = vsel %vm5417_vm5, %v5266_v25, %v5450_v51  ;;  %v4176_v28 = vsel %vm4111_vm1, %v3968_v47, %v4144_v62  ;;  %v3978_v25 = vadd.f32 %v18367_v42, %v18290_v17 }
 0x35f   : > { %vm4113_vm0 = vcmp.ge.f32.partialorder %v3978_v25, 0.0 }
 0x360   : > { %5913 = vrot.lane.b32.xlu1 %v4175_v53, %s12359_s21 }
 0x361   : > { %5911 = vrot.lane.b32.xlu0 %v4174_v44, %s12359_s21  ;;  %v4146_v44 = vmul.f32 %v18293_v60, %v3978_v25 }
 0x363   : > { %v4178_v4 = vsel %vm4113_vm0, %v3978_v25, %v4146_v44 }
 0x364   : > { %6041 = vrot.lane.b32.xlu1 %v5483_v8, %s12371_s13 }
 0x365   : > { %6039 = vrot.lane.b32.xlu0 %v5482_v16, %s12371_s13 }
 0x368   : > { %5789 = vrot.lane.b32.xlu1 %v18018_v33, %s12368_s20 }
 0x369   : > { %5787 = vrot.lane.b32.xlu0 %v18027_v0, %s12368_s20  ;;  %v3983_v0 = vadd.f32 %v18359_v61, %v18290_v17 }
 0x36b   : > { %v4147_v53 = vmul.f32 %v18293_v60, %v3983_v0  ;;  %vm4114_vm8 = vcmp.ge.f32.partialorder %v3983_v0, 0.0 }
 0x36c   : > { %5917 = vrot.lane.b32.xlu1 %v4177_v5, %s12359_s21  ;;  %v3988_v5 = vadd.f32 %v18390_v50, %v18290_v17 }
 0x36d   : > { %5915 = vrot.lane.b32.xlu0 %v4176_v28, %s12359_s21  ;;  %v4179_v47 = vsel %vm4114_vm8, %v3983_v0, %v4147_v53  ;;  %vm22551_vm8 = vcmask 1041408  }
 0x36e   : > { %v10650_v13 = vpop.f32.mrb[22].mxu1  ;;  %vm4115_vm9 = vcmp.ge.f32.partialorder %v3988_v5, 0.0 }
 0x36f   : > { %v5281_v27 = vadd.f32 %v10650_v13, %v18508_v12  ;;  %v5275_v40 = vpop.f32.mrb[23].mxu1 }
 0x370   : > { %v5276_v48 = vadd.f32 %v5275_v40, %v18508_v12 }
 0x371   : > { %vm5420_vm13 = vcmp.ge.f32.partialorder %v5281_v27, 0.0  ;;  %v5453_v52 = vmul.f32 %v18510_v43, %v5281_v27 }
 0x372   : > { %vm5419_vm4 = vcmp.ge.f32.partialorder %v5276_v48, 0.0  ;;  %v5452_v33 = vmul.f32 %v18510_v43, %v5276_v48 }
 0x373   : > { %v5485_v46 = vsel %vm5420_vm13, %v5281_v27, %v5453_v52 }
 0x374   : > { %6045 = vrot.lane.b32.xlu1 %v5485_v46, %s12371_s13  ;;  %v5484_v24 = vsel %vm5419_vm4, %v5276_v48, %v5452_v33  ;;  %v4148_v48 = vmul.f32 %v18293_v60, %v3988_v5 }
 0x375   : > { %6043 = vrot.lane.b32.xlu0 %v5484_v24, %s12371_s13 }
 0x376   : > { %v4180_v46 = vsel %vm4115_vm9, %v3988_v5, %v4148_v48 }
 0x378   : > { %v10653_v51 = vpop.f32.mrb[24].mxu1  ;;  %5793 = vrot.lane.b32.xlu1 %v18033_v21, %s12368_s20  ;;  %v3993_v21 = vadd.f32 %v18384_v59, %v18290_v17 }
 0x379   : > { %v5291_v54 = vadd.f32 %v10653_v51, %v18508_v12  ;;  %v5285_v8 = vpop.f32.mrb[25].mxu1  ;;  %5791 = vrot.lane.b32.xlu0 %v18042_v35, %s12368_s20 }
 0x37a   : > { %v5286_v61 = vadd.f32 %v5285_v8, %v18508_v12  ;;  %v4149_v13 = vmul.f32 %v18293_v60, %v3993_v21  ;;  %vm4116_vm7 = vcmp.ge.f32.partialorder %v3993_v21, 0.0 }
 0x37b   : > { %v5455_v42 = vmul.f32 %v18510_v43, %v5291_v54  ;;  %vm5422_vm12 = vcmp.ge.f32.partialorder %v5291_v54, 0.0 }
 0x37c   : > { %v5454_v16 = vmul.f32 %v18510_v43, %v5286_v61  ;;  %5921 = vrot.lane.b32.xlu1 %v4179_v47, %s12359_s21  ;;  %vm5421_vm6 = vcmp.ge.f32.partialorder %v5286_v61, 0.0  ;;  %v4181_v52 = vsel %vm4116_vm7, %v3993_v21, %v4149_v13 }
 0x37d   : > { %5919 = vrot.lane.b32.xlu0 %v4178_v4, %s12359_s21  ;;  %v5487_v62 = vsel %vm5422_vm12, %v5291_v54, %v5455_v42 }
 0x37e   : > { %v5486_v35 = vsel %vm5421_vm6, %v5286_v61, %v5454_v16 }
 0x380   : > { %6049 = vrot.lane.b32.xlu1 %v5487_v62, %s12371_s13 }
 0x381   : > { %6047 = vrot.lane.b32.xlu0 %v5486_v35, %s12371_s13 }
 0x383   : > { %v10656_v28 = vpop.f32.mrb[26].mxu1 }
 0x384   : > { %v5301_v27 = vadd.f32 %v10656_v28, %v18508_v12  ;;  %v5295_v40 = vpop.f32.mrb[27].mxu1  ;;  %5797 = vrot.lane.b32.xlu1 %v18048_v7, %s12368_s20  ;;  %v4003_v7 = vadd.f32 %v18402_v11, %v18290_v17 }
 0x385   : > { %v5296_v59 = vadd.f32 %v5295_v40, %v18508_v12  ;;  %5795 = vrot.lane.b32.xlu0 %v18058_v3, %s12368_s20  ;;  %v3998_v3 = vadd.f32 %v18406_v34, %v18290_v17 }
 0x386   : > { %v5457_v50 = vmul.f32 %v18510_v43, %v5301_v27  ;;  %vm5424_vm10 = vcmp.ge.f32.partialorder %v5301_v27, 0.0  ;;  %v4151_v44 = vmul.f32 %v18293_v60, %v4003_v7  ;;  %vm4118_vm15 = vcmp.ge.f32.partialorder %v4003_v7, 0.0 }
 0x387   : > { %v5456_v33 = vmul.f32 %v18510_v43, %v5296_v59  ;;  %vm5423_vm3 = vcmp.ge.f32.partialorder %v5296_v59, 0.0  ;;  %v4150_v61 = vmul.f32 %v18293_v60, %v3998_v3  ;;  %vm4117_vm2 = vcmp.ge.f32.partialorder %v3998_v3, 0.0 }
 0x388   : > { %5925 = vrot.lane.b32.xlu1 %v4181_v52, %s12359_s21  ;;  %v5489_v24 = vsel %vm5424_vm10, %v5301_v27, %v5457_v50  ;;  %v4183_v42 = vsel %vm4118_vm15, %v4003_v7, %v4151_v44 }
 0x389   : > { %v10659_v0 = vpop.f32.mrb[28].mxu1  ;;  %5923 = vrot.lane.b32.xlu0 %v4180_v46, %s12359_s21  ;;  %v5488_v53 = vsel %vm5423_vm3, %v5296_v59, %v5456_v33  ;;  %v4182_v4 = vsel %vm4117_vm2, %v3998_v3, %v4150_v61  ;;  %v4018_v33 = vadd.f32 %v18443_v19, %v18290_v17 }
 0x38a   : > { %v5305_v25 = vpop.f32.mrb[29].mxu1  ;;  %v5311_v54 = vadd.f32 %v10659_v0, %v18508_v12 }
 0x38b   : > { %v5306_v11 = vadd.f32 %v5305_v25, %v18508_v12  ;;  %v4154_v7 = vmul.f32 %v18293_v60, %v4018_v33  ;;  %vm4121_vm12 = vcmp.ge.f32.partialorder %v4018_v33, 0.0 }
 0x38c   : > { %6053 = vrot.lane.b32.xlu1 %v5489_v24, %s12371_s13  ;;  %v5459_v34 = vmul.f32 %v18510_v43, %v5311_v54  ;;  %vm5426_vm14 = vcmp.ge.f32.partialorder %v5311_v54, 0.0 }
 0x38d   : > { %6051 = vrot.lane.b32.xlu0 %v5488_v53, %s12371_s13  ;;  %v5458_v16 = vmul.f32 %v18510_v43, %v5306_v11  ;;  %vm5425_vm5 = vcmp.ge.f32.partialorder %v5306_v11, 0.0  ;;  %v4186_v44 = vsel %vm4121_vm12, %v4018_v33, %v4154_v7  ;;  %v4048_v7 = vadd.f32 %v18475_v9, %v18290_v17 }
 0x38e   : > { %v5491_v62 = vsel %vm5426_vm14, %v5311_v54, %v5459_v34  ;;  %vm22554_vm12 = vcmask 31744  }
 0x38f   : > { %v5490_v5 = vsel %vm5425_vm5, %v5306_v11, %v5458_v16 }
 0x390   : > { %v10662_v51 = vpop.f32.mrb[30].mxu1  ;;  %5801 = vrot.lane.b32.xlu1 %v18064_v18, %s12368_s20  ;;  %v4013_v18 = vadd.f32 %v18417_v37, %v18290_v17 }
 0x391   : > { %v5315_v8 = vpop.f32.mrb[31].mxu1  ;;  %5799 = vrot.lane.b32.xlu0 %v18072_v38, %s12368_s20  ;;  %v4008_v38 = vadd.f32 %v18421_v30, %v18290_v17  ;;  %v5321_v28 = vadd.f32 %v10662_v51, %v18508_v12 }
 0x392   : > { %v4153_v35 = vmul.f32 %v18293_v60, %v4013_v18  ;;  %vm4120_vm11 = vcmp.ge.f32.partialorder %v4013_v18, 0.0  ;;  %v5316_v27 = vadd.f32 %v5315_v8, %v18508_v12  ;;  %v4028_v8 = vadd.f32 %v18459_v32, %v18290_v17 }
 0x393   : > { %v4152_v13 = vmul.f32 %v18293_v60, %v4008_v38  ;;  %vm4119_vm1 = vcmp.ge.f32.partialorder %v4008_v38, 0.0  ;;  %v5461_v30 = vmul.f32 %v18510_v43, %v5321_v28  ;;  %vm5428_vm13 = vcmp.ge.f32.partialorder %v5321_v28, 0.0 }
 0x394   : > { %5929 = vrot.lane.b32.xlu1 %v4183_v42, %s12359_s21  ;;  %v4185_v37 = vsel %vm4120_vm11, %v4013_v18, %v4153_v35  ;;  %v5460_v40 = vmul.f32 %v18510_v43, %v5316_v27  ;;  %vm5427_vm4 = vcmp.ge.f32.partialorder %v5316_v27, 0.0  ;;  %v4156_v34 = vmul.f32 %v18293_v60, %v4028_v8 }
 0x395   : > { %5927 = vrot.lane.b32.xlu0 %v4182_v4, %s12359_s21  ;;  %v4184_v48 = vsel %vm4119_vm1, %v4008_v38, %v4152_v13  ;;  %v5493_v50 = vsel %vm5428_vm13, %v5321_v28, %v5461_v30  ;;  %vm4123_vm10 = vcmp.ge.f32.partialorder %v4028_v8, 0.0  ;;  %v18668_v18 = vsub.s32 0, %v22444_v55  ;;  %v22552_v30 = vld [vmem:[#allocation221_spill] sm:$0xff] }
 0x396   : > { %v10665_v47 = vpop.f32.mrb[32].mxu1  ;;  %v5492_v0 = vsel %vm5427_vm4, %v5316_v27, %v5460_v40  ;;  %v4038_v38 = vadd.f32 %v18471_v26, %v18290_v17  ;;  %vm5670_vm4 = vcmask 15360  }
 0x397   : > { %v5325_v21 = vpop.f32.mrb[33].mxu1  ;;  %v18682_v28 = vrot.slane %v18286_v56, %v18668_v18  ;;  %v22553_v56 = vld [vmem:[#allocation276_spill] sm:$0xff] }
 0x398   : > { %6057 = vrot.lane.b32.xlu1 %v5491_v62, %s12371_s13  ;;  %v5326_v24 = vadd.f32 %v5325_v21, %v18508_v12  ;;  %v4188_v21 = vsel %vm4123_vm10, %v4028_v8, %v4156_v34  ;;  %v4158_v27 = vmul.f32 %v18293_v60, %v4038_v38  ;;  %vm4125_vm14 = vcmp.ge.f32.partialorder %v4038_v38, 0.0 }
 0x399   : > { %6055 = vrot.lane.b32.xlu0 %v5490_v5, %s12371_s13  ;;  %v872_v40 = vadd.f32 %v22553_v56, %v18682_v28 }
 0x39a   : > { %v5462_v51 = vmul.f32 %v18510_v43, %v5326_v24  ;;  %vm5429_vm7 = vcmp.ge.f32.partialorder %v5326_v24, 0.0 }
 0x39b   : > { %vm1031_vm13 = vcmp.ge.f32.partialorder %v872_v40, 0.0 }
 0x39c   : > { %5805 = vrot.lane.b32.xlu1 %v18078_v10, %s12368_s20  ;;  %v4023_v10 = vadd.f32 %v18437_v39, %v18290_v17  ;;  %v5331_v39 = vadd.f32 %v10665_v47, %v18508_v12 }
 0x39d   : > { %5803 = vrot.lane.b32.xlu0 %v18085_v15, %s12368_s20  ;;  %v5668_v15 = vld [vmem:[%s20198_s4 + $0x8] sm:$0x3] }
 0x39e   : > { %10696 = vmatpush3.msk.msra.mxu0 %vm22551_vm8, %v5668_v15  ;;  %v4155_v46 = vmul.f32 %v18293_v60, %v4023_v10  ;;  %vm4122_vm0 = vcmp.ge.f32.partialorder %v4023_v10, 0.0  ;;  %v5463_v3 = vmul.f32 %v18510_v43, %v5331_v39  ;;  %vm5430_vm6 = vcmp.ge.f32.partialorder %v5331_v39, 0.0 }
 0x39f   : > { %v4190_v15 = vsel %vm4125_vm14, %v4038_v38, %v4158_v27  ;;  %vm6195_vm8 = vcmask 48128  }
 0x3a0   : > { %5933 = vrot.lane.b32.xlu1 %v4185_v37, %s12359_s21  ;;  %v4187_v53 = vsel %vm4122_vm0, %v4023_v10, %v4155_v46  ;;  %v5495_v54 = vsel %vm5430_vm6, %v5331_v39, %v5463_v3  ;;  %v877_v37 = vadd.f32 %v22552_v30, %v18682_v28  ;;  %v5780_v10 = vpop.permute.xlu0 %5779  ;;  %v4053_v46 = vadd.f32 %v18473_v31, %v18290_v17  ;;  %vm22555_vm6 = vmmov %vm22554_vm12 }
 0x3a1   : > { %5931 = vrot.lane.b32.xlu0 %v4184_v48, %s12359_s21  ;;  %v18697_v48 = vstv %s1030_s16 }
 0x3a2   : > { %v1065_v33 = vmul.f32 %v18697_v48, %v877_v37  ;;  %vm1032_vm1 = vcmp.ge.f32.partialorder %v877_v37, 0.0  ;;  %vm4128_vm0 = vcmp.ge.f32.partialorder %v4053_v46, 0.0  ;;  %v4161_v31 = vmul.f32 %v18293_v60, %v4053_v46 }
 0x3a4   : > { %6061 = vrot.lane.b32.xlu1 %v5493_v50, %s12371_s13  ;;  %v5908_v39 = vpop.permute.xlu0 %5907 }
 0x3a5   : > { %6059 = vrot.lane.b32.xlu0 %v5492_v0, %s12371_s13  ;;  %v1064_v0 = vmul.f32 %v18697_v48, %v872_v40 }
 0x3a7   : > { %v1096_v3 = vsel %vm1031_vm13, %v872_v40, %v1064_v0  ;;  %v4058_v40 = vadd.f32 %v18479_v14, %v18290_v17 }
 0x3a8   : > { %v10668_v59 = vpop.f32.mrb[34].mxu1  ;;  %5809 = vrot.lane.b32.xlu1 %v18091_v20, %s12368_s20  ;;  %v4033_v20 = vadd.f32 %v18457_v1, %v18290_v17 }
 0x3a9   : > { %v5335_v52 = vpop.f32.mrb[35].mxu1  ;;  %5807 = vrot.lane.b32.xlu0 %v18100_v2, %s12368_s20  ;;  %v5494_v2 = vsel %vm5429_vm7, %v5326_v24, %v5462_v51  ;;  %v5341_v11 = vadd.f32 %v10668_v59, %v18508_v12  ;;  %v5782_v59 = vpop.permute.xlu1 %5781  ;;  %v6131_v51 = vsel %vm5670_vm4, %v1096_v3, %v5780_v10  ;;  %vm4127_vm7 = vcmp.ge.f32.partialorder %v4048_v7, 0.0 }
 0x3aa   : > { %v4157_v61 = vmul.f32 %v18293_v60, %v4033_v20  ;;  %vm4124_vm9 = vcmp.ge.f32.partialorder %v4033_v20, 0.0  ;;  %v5336_v42 = vadd.f32 %v5335_v52, %v18508_v12  ;;  %v6163_v9 = vsel %vm22554_vm12, %v6131_v51, %v5908_v39 }
 0x3ab   : > { %v5465_v32 = vmul.f32 %v18510_v43, %v5341_v11  ;;  %vm5432_vm3 = vcmp.ge.f32.partialorder %v5341_v11, 0.0  ;;  %vm4129_vm13 = vcmp.ge.f32.partialorder %v4058_v40, 0.0 }
 0x3ac   : > { %v10671_v25 = vpop.f32.mrb[36].mxu1  ;;  %5937 = vrot.lane.b32.xlu1 %v4187_v53, %s12359_s21  ;;  %v4189_v47 = vsel %vm4124_vm9, %v4033_v20, %v4157_v61  ;;  %v5464_v4 = vmul.f32 %v18510_v43, %v5336_v42  ;;  %vm5431_vm15 = vcmp.ge.f32.partialorder %v5336_v42, 0.0  ;;  %v4160_v61 = vmul.f32 %v18293_v60, %v4048_v7 }
 0x3ad   : > { %v5345_v19 = vpop.f32.mrb[37].mxu1  ;;  %5935 = vrot.lane.b32.xlu0 %v4186_v44, %s12359_s21  ;;  %vm22557_vm9 = vcmask 64512  }
 0x3ae   : > { %v5496_v5 = vsel %vm5431_vm15, %v5336_v42, %v5464_v4  ;;  %v5346_v26 = vadd.f32 %v5345_v19, %v18508_v12  ;;  %v1097_v19 = vsel %vm1032_vm1, %v877_v37, %v1065_v33  ;;  %v22558_v4 = vld [vmem:[#allocation141_spill] sm:$0xff]  ;;  %vm22559_vm10 = vmmov %vm22557_vm9 }
 0x3af   : > { %v6132_v53 = vsel %vm5670_vm4, %v1097_v19, %v5782_v59  ;;  %vm22561_vm1 = vmmov %vm22555_vm6 }
 0x3b0   : > { %6065 = vrot.lane.b32.xlu1 %v5495_v54, %s12371_s13  ;;  %vm5433_vm11 = vcmp.ge.f32.partialorder %v5346_v26, 0.0 }
 0x3b1   : > { %6063 = vrot.lane.b32.xlu0 %v5494_v2, %s12371_s13 }
 0x3b4   : > { %5813 = vrot.lane.b32.xlu1 %v18106_v22, %s12368_s20  ;;  %v4043_v22 = vadd.f32 %v18468_v6, %v18290_v17  ;;  %v5351_v6 = vadd.f32 %v10671_v25, %v18508_v12 }
 0x3b5   : > { %5811 = vrot.lane.b32.xlu0 %v18115_v41, %s12368_s20  ;;  %v5497_v41 = vsel %vm5432_vm3, %v5341_v11, %v5465_v32  ;;  %v22556_v32 = vld [vmem:[#allocation204_spill] sm:$0xff] }
 0x3b6   : > { %v4159_v13 = vmul.f32 %v18293_v60, %v4043_v22  ;;  %vm4126_vm2 = vcmp.ge.f32.partialorder %v4043_v22, 0.0  ;;  %v5467_v50 = vmul.f32 %v18510_v43, %v5351_v6  ;;  %vm5434_vm5 = vcmp.ge.f32.partialorder %v5351_v6, 0.0 }
 0x3b8   : > { %5941 = vrot.lane.b32.xlu1 %v4189_v47, %s12359_s21  ;;  %v4191_v52 = vsel %vm4126_vm2, %v4043_v22, %v4159_v13  ;;  %v5499_v25 = vsel %vm5434_vm5, %v5351_v6, %v5467_v50  ;;  %v882_v47 = vadd.f32 %v22556_v32, %v18682_v28  ;;  %v4193_v22 = vsel %vm4128_vm0, %v4053_v46, %v4161_v31  ;;  %vm22564_vm0 = vmmov %vm22557_vm9  ;;  %v22566_v31 = vld [vmem:[#allocation210_spill] sm:$0xff] }
 0x3b9   : > { %5939 = vrot.lane.b32.xlu0 %v4188_v21, %s12359_s21  ;;  %v887_v21 = vadd.f32 %v22558_v4, %v18682_v28  ;;  %vm22565_vm12 = vmmov %vm22564_vm0 }
 0x3ba   : > { %v1066_v6 = vmul.f32 %v18697_v48, %v882_v47  ;;  %vm1033_vm2 = vcmp.ge.f32.partialorder %v882_v47, 0.0 }
 0x3bb   : > { %v18660_v1 = vpop.f32.mrb[38].mxu1  ;;  %v1067_v27 = vmul.f32 %v18697_v48, %v887_v21  ;;  %vm1034_vm14 = vcmp.ge.f32.partialorder %v887_v21, 0.0 }
 0x3bc   : > { %v18663_v16 = vpop.f32.mrb[39].mxu1  ;;  %6069 = vrot.lane.b32.xlu1 %v5497_v41, %s12371_s13  ;;  %v5361_v54 = vadd.f32 %v18660_v1, %v18508_v12  ;;  %v1098_v10 = vsel %vm1033_vm2, %v882_v47, %v1066_v6  ;;  %vm22570_vm2 = vmmov %vm22561_vm1 }
 0x3bd   : > { %6067 = vrot.lane.b32.xlu0 %v5496_v5, %s12371_s13  ;;  %v5356_v34 = vadd.f32 %v18663_v16, %v18508_v12  ;;  %v4192_v5 = vsel %vm4127_vm7, %v4048_v7, %v4160_v61  ;;  %v1099_v50 = vsel %vm1034_vm14, %v887_v21, %v1067_v27  ;;  %v4073_v61 = vadd.f32 %v18481_v58, %v18290_v17 }
 0x3be   : > { %vm5436_vm3 = vcmp.ge.f32.partialorder %v5361_v54, 0.0 }
 0x3bf   : > { %vm5435_vm15 = vcmp.ge.f32.partialorder %v5356_v34, 0.0  ;;  %v4165_v58 = vmul.f32 %v18293_v60, %v4073_v61 }
 0x3c0   : > { %5817 = vrot.lane.b32.xlu1 %v18121_v23, %s12368_s20  ;;  %v5466_v23 = vmul.f32 %v18510_v43, %v5346_v26 }
 0x3c1   : > { %v18673_v62 = vpop.f32.mrb[40].mxu1  ;;  %5815 = vrot.lane.b32.xlu0 %v18132_v36, %s12368_s20  ;;  %v5910_v36 = vpop.permute.xlu1 %5909 }
 0x3c2   : > { %v18678_v35 = vpop.f32.mrb[41].mxu1  ;;  %v5498_v24 = vsel %vm5433_vm11, %v5346_v26, %v5466_v23  ;;  %v6164_v11 = vsel %vm22555_vm6, %v6132_v53, %v5910_v36  ;;  %v4063_v26 = vadd.f32 %v18477_v29, %v18290_v17  ;;  %vm22560_vm11 = vmmov %vm22555_vm6  ;;  %v4162_v36 = vmul.f32 %v18293_v60, %v4058_v40 }
 0x3c3   : > { %v5366_v46 = vadd.f32 %v18678_v35, %v18508_v12 }
 0x3c4   : > { %5945 = vrot.lane.b32.xlu1 %v4191_v52, %s12359_s21  ;;  %vm4130_vm5 = vcmp.ge.f32.partialorder %v4063_v26, 0.0  ;;  %v4163_v29 = vmul.f32 %v18293_v60, %v4063_v26 }
 0x3c5   : > { %5943 = vrot.lane.b32.xlu0 %v4190_v15, %s12359_s21  ;;  %v5371_v15 = vadd.f32 %v18673_v62, %v18508_v12  ;;  %v22563_v62 = vld [vmem:[#allocation136_spill] sm:$0xff]  ;;  %v5470_v51 = vmul.f32 %v18510_v43, %v5366_v46  ;;  %vm5437_vm7 = vcmp.ge.f32.partialorder %v5366_v46, 0.0 }
 0x3c6   : > { %v4195_v3 = vsel %vm4130_vm5, %v4063_v26, %v4163_v29  ;;  %vm22571_vm5 = vmmov %vm22561_vm1  ;;  %v22572_v29 = vld [vmem:[#allocation208_spill] sm:$0xff] }
 0x3c7   : > { %v5471_v35 = vmul.f32 %v18510_v43, %v5371_v15  ;;  %vm5438_vm6 = vcmp.ge.f32.partialorder %v5371_v15, 0.0  ;;  %v5502_v32 = vsel %vm5437_vm7, %v5366_v46, %v5470_v51 }
 0x3c8   : > { %6073 = vrot.lane.b32.xlu1 %v5499_v25, %s12371_s13  ;;  %v22562_v25 = vld [vmem:[#allocation67_spill] sm:$0xff] }
 0x3c9   : > { %6071 = vrot.lane.b32.xlu0 %v5498_v24, %s12371_s13 }
 0x3ca   : > { %v6038_v44 = vpop.permute.xlu1 %6037 }
 0x3cb   : > { %v6036_v2 = vpop.permute.xlu0 %6035  ;;  %v6197_v1 = vsel %vm6195_vm8, %v6164_v11, %v6038_v44  ;;  %v4194_v44 = vsel %vm4129_vm13, %v4058_v40, %v4162_v36  ;;  %v4068_v11 = vadd.f32 %v18483_v45, %v18290_v17  ;;  %v4083_v36 = vadd.f32 %v18485_v63, %v18290_v17  ;;  %vm22575_vm13 = vmmov %vm22564_vm0 }
 0x3cc   : > { %5821 = vrot.lane.b32.xlu1 %v18138_v49, %s12368_s20  ;;  %v6196_v42 = vsel %vm6195_vm8, %v6163_v9, %v6036_v2  ;;  %v5469_v49 = vmul.f32 %v18510_v43, %v5361_v54  ;;  %v892_v9 = vadd.f32 %v22566_v31, %v18682_v28 }
 0x3cd   : > { %v18713_v20 = vpop.f32.mrb[42].mxu1  ;;  %5819 = vrot.lane.b32.xlu0 %v18144_v57, %s12368_s20  ;;  %10702 = vmatprep.mubr.msk.f32.mxu1 %vm22557_vm9, %v6196_v42  ;;  %v5468_v57 = vmul.f32 %v18510_v43, %v5356_v34  ;;  %v4164_v45 = vmul.f32 %v18293_v60, %v4068_v11  ;;  %v4167_v63 = vmul.f32 %v18293_v60, %v4083_v36 }
 0x3ce   : > { %v18719_v8 = vpop.f32.mrb[43].mxu1  ;;  %v5786_v16 = vpop.permute.xlu1 %5785  ;;  %10703 = vmatmul.mubr.msk.f32.vlgmr.msra.gmra.mrb[50].mxu1 %vm22559_vm10, %v6197_v1  ;;  %v5501_v37 = vsel %vm5436_vm3, %v5361_v54, %v5469_v49  ;;  %v22567_v54 = vld [vmem:[#allocation147_spill] sm:$0xff]  ;;  %v1068_v4 = vmul.f32 %v18697_v48, %v892_v9  ;;  %vm1035_vm9 = vcmp.ge.f32.partialorder %v892_v9, 0.0  ;;  %vm4132_vm3 = vcmp.ge.f32.partialorder %v4073_v61, 0.0 }
 0x3cf   : > { %v5784_v41 = vpop.permute.xlu0 %5783  ;;  %v5500_v59 = vsel %vm5435_vm15, %v5356_v34, %v5468_v57  ;;  %v6134_v33 = vsel %vm5670_vm4, %v1099_v50, %v5786_v16  ;;  %v897_v2 = vadd.f32 %v22567_v54, %v18682_v28  ;;  %v5503_v34 = vsel %vm5438_vm6, %v5371_v15, %v5471_v35 }
 0x3d0   : > { %5949 = vrot.lane.b32.xlu1 %v4193_v22, %s12359_s21  ;;  %v6133_v52 = vsel %vm5670_vm4, %v1098_v10, %v5784_v41  ;;  %v5381_v49 = vadd.f32 %v18713_v20, %v18508_v12  ;;  %vm4131_vm15 = vcmp.ge.f32.partialorder %v4068_v11, 0.0  ;;  %v5376_v22 = vadd.f32 %v18719_v8, %v18508_v12  ;;  %v22568_v41 = vld [vmem:[#allocation162_spill] sm:$0xff] }
 0x3d1   : > { %5947 = vrot.lane.b32.xlu0 %v4192_v5, %s12359_s21  ;;  %v1069_v16 = vmul.f32 %v18697_v48, %v897_v2  ;;  %vm1036_vm10 = vcmp.ge.f32.partialorder %v897_v2, 0.0  ;;  %v1100_v57 = vsel %vm1035_vm9, %v892_v9, %v1068_v4  ;;  %v22569_v5 = vld [vmem:[#allocation61_spill] sm:$0xff]  ;;  %v4196_v8 = vsel %vm4131_vm15, %v4068_v11, %v4164_v45  ;;  %v22577_v9 = vld [vmem:[#allocation64_spill] sm:$0xff]  ;;  %vm22579_vm9 = vmmov %vm22570_vm2 }
 0x3d2   : > { %v5914_v30 = vpop.permute.xlu1 %5913  ;;  %vm5440_vm14 = vcmp.ge.f32.partialorder %v5381_v49, 0.0  ;;  %v5472_v10 = vmul.f32 %v18510_v43, %v5376_v22  ;;  %v902_v15 = vadd.f32 %v22572_v29, %v18682_v28  ;;  %vm4134_vm6 = vcmp.ge.f32.partialorder %v4083_v36, 0.0 }
 0x3d3   : > { %v5912_v56 = vpop.permute.xlu0 %5911  ;;  %v6166_v39 = vsel %vm22561_vm1, %v6134_v33, %v5914_v30  ;;  %v1101_v6 = vsel %vm1036_vm10, %v897_v2, %v1069_v16  ;;  %v4197_v30 = vsel %vm4132_vm3, %v4073_v61, %v4165_v58  ;;  %vm22573_vm1 = vmmov %vm22564_vm0  ;;  %v22578_v2 = vld [vmem:[#allocation16_spill] sm:$0xff] }
 0x3d4   : > { %6077 = vrot.lane.b32.xlu1 %v5501_v37, %s12371_s13  ;;  %v6165_v14 = vsel %vm22560_vm11, %v6133_v52, %v5912_v56  ;;  %v5473_v37 = vmul.f32 %v18510_v43, %v5381_v49  ;;  %vm5439_vm11 = vcmp.ge.f32.partialorder %v5376_v22, 0.0  ;;  %vm22580_vm3 = vmmov %vm22570_vm2 }
 0x3d5   : > { %v18739_v38 = vpop.f32.mrb[44].mxu1  ;;  %6075 = vrot.lane.b32.xlu0 %v5500_v59, %s12371_s13 }
 0x3d6   : > { %v18743_v13 = vpop.f32.mrb[45].mxu1  ;;  %v6042_v23 = vpop.permute.xlu1 %6041  ;;  %v5391_v51 = vadd.f32 %v18739_v38, %v18508_v12 }
 0x3d7   : > { %v6040_v0 = vpop.permute.xlu0 %6039  ;;  %v6199_v24 = vsel %vm6195_vm8, %v6166_v39, %v6042_v23  ;;  %v22576_v39 = vld [vmem:[#allocation81_spill] sm:$0xff]  ;;  %v5386_v31 = vadd.f32 %v18743_v13, %v18508_v12 }
 0x3d8   : > { %5825 = vrot.lane.b32.xlu1 %v22562_v25, %s12368_s20  ;;  %v6198_v7 = vsel %vm6195_vm8, %v6165_v14, %v6040_v0  ;;  %v22574_v14 = vld [vmem:[#allocation215_spill] sm:$0xff]  ;;  %v4078_v25 = vadd.f32 %v22576_v39, %v18290_v17  ;;  %vm5442_vm10 = vcmp.ge.f32.partialorder %v5391_v51, 0.0 }
 0x3d9   : > { %5823 = vrot.lane.b32.xlu0 %v22563_v62, %s12368_s20  ;;  %10705 = vmatprep.mubr.msk.f32.mxu1 %vm22564_vm0, %v6198_v7  ;;  %v907_v0 = vadd.f32 %v22574_v14, %v18682_v28  ;;  %v5505_v62 = vsel %vm5440_vm14, %v5381_v49, %v5473_v37  ;;  %vm1037_vm0 = vcmp.ge.f32.partialorder %v902_v15, 0.0  ;;  %v5474_v16 = vmul.f32 %v18510_v43, %v5386_v31  ;;  %v22581_v49 = vld [vmem:[#allocation96_spill] sm:$0xff]  ;;  %vm22585_vm14 = vmmov %vm22573_vm1 }
 0x3da   : > { %v5790_v19 = vpop.permute.xlu1 %5789  ;;  %10706 = vmatmul.mubr.msk.f32.gmra.mrb[52].mxu1 %vm22565_vm12, %v6199_v24  ;;  %v5504_v24 = vsel %vm5439_vm11, %v5376_v22, %v5472_v10  ;;  %vm4133_vm7 = vcmp.ge.f32.partialorder %v4078_v25, 0.0  ;;  %v912_v22 = vadd.f32 %v22581_v49, %v18682_v28  ;;  %vm5441_vm15 = vcmp.ge.f32.partialorder %v5386_v31, 0.0 }
 0x3db   : > { %v5788_v53 = vpop.permute.xlu0 %5787  ;;  %v6136_v20 = vsel %vm5670_vm4, %v1101_v6, %v5790_v19  ;;  %v1070_v19 = vmul.f32 %v18697_v48, %v902_v15  ;;  %v1071_v35 = vmul.f32 %v18697_v48, %v907_v0  ;;  %vm1038_vm12 = vcmp.ge.f32.partialorder %v907_v0, 0.0  ;;  %v22584_v6 = vld [vmem:[#allocation30_spill] sm:$0xff] }
 0x3dc   : > { %5953 = vrot.lane.b32.xlu1 %v4195_v3, %s12359_s21  ;;  %v6135_v27 = vsel %vm5670_vm4, %v1100_v57, %v5788_v53  ;;  %v4166_v53 = vmul.f32 %v18293_v60, %v4078_v25  ;;  %v22583_v57 = vld [vmem:[#allocation182_spill] sm:$0xff] }
 0x3dd   : > { %5951 = vrot.lane.b32.xlu0 %v4194_v44, %s12359_s21  ;;  %v1102_v54 = vsel %vm1037_vm0, %v902_v15, %v1070_v19  ;;  %v1103_v61 = vsel %vm1038_vm12, %v907_v0, %v1071_v35  ;;  %v22587_v0 = vld [vmem:[#allocation18_spill] sm:$0xff]  ;;  %vm22589_vm0 = vmmov %vm22580_vm3 }
 0x3de   : > { %v5918_v47 = vpop.permute.xlu1 %5917  ;;  %v4198_v13 = vsel %vm4133_vm7, %v4078_v25, %v4166_v53 }
 0x3df   : > { %v5916_v21 = vpop.permute.xlu0 %5915  ;;  %v6168_v50 = vsel %vm22571_vm5, %v6136_v20, %v5918_v47  ;;  %v5475_v47 = vmul.f32 %v18510_v43, %v5391_v51  ;;  %vm1039_vm5 = vcmp.ge.f32.partialorder %v912_v22, 0.0 }
 0x3e0   : > { %6081 = vrot.lane.b32.xlu1 %v5503_v34, %s12371_s13  ;;  %v6167_v56 = vsel %vm22570_vm2, %v6135_v27, %v5916_v21  ;;  %vm22582_vm2 = vmmov %vm22573_vm1  ;;  %v4093_v27 = vadd.f32 %v22584_v6, %v18290_v17 }
 0x3e1   : > { %6079 = vrot.lane.b32.xlu0 %v5502_v32, %s12371_s13  ;;  %v4199_v32 = vsel %vm4134_vm6, %v4083_v36, %v4167_v63  ;;  %vm22590_vm6 = vmmov %vm22589_vm0 }
 0x3e2   : > { %v18785_v42 = vpop.f32.mrb[46].mxu1 }
 0x3e3   : > { %v18788_v1 = vpop.f32.mrb[47].mxu1  ;;  %v5401_v15 = vadd.f32 %v18785_v42, %v18508_v12 }
 0x3e4   : > { %5829 = vrot.lane.b32.xlu1 %v22568_v41, %s12368_s20  ;;  %v5396_v14 = vadd.f32 %v18788_v1, %v18508_v12 }
 0x3e5   : > { %5827 = vrot.lane.b32.xlu0 %v22569_v5, %s12368_s20  ;;  %v917_v5 = vadd.f32 %v22583_v57, %v18682_v28  ;;  %vm5444_vm12 = vcmp.ge.f32.partialorder %v5401_v15, 0.0 }
 0x3e6   : > { %v6046_v26 = vpop.permute.xlu1 %6045  ;;  %v5476_v63 = vmul.f32 %v18510_v43, %v5396_v14  ;;  %vm5443_vm7 = vcmp.ge.f32.partialorder %v5396_v14, 0.0 }
 0x3e7   : > { %v6044_v40 = vpop.permute.xlu0 %6043  ;;  %v6201_v33 = vsel %vm6195_vm8, %v6168_v50, %v6046_v26  ;;  %v1073_v10 = vmul.f32 %v18697_v48, %v917_v5  ;;  %v4169_v50 = vmul.f32 %v18293_v60, %v4093_v27  ;;  %vm1040_vm11 = vcmp.ge.f32.partialorder %v917_v5, 0.0 }
 0x3e8   : > { %v6200_v52 = vsel %vm6195_vm8, %v6167_v56, %v6044_v40  ;;  %5957 = vrot.lane.b32.xlu1 %v4197_v30, %s12359_s21  ;;  %v22586_v30 = vld [vmem:[#allocation33_spill] sm:$0xff]  ;;  %v5507_v56 = vsel %vm5442_vm10, %v5391_v51, %v5475_v47  ;;  %v5506_v40 = vsel %vm5441_vm15, %v5386_v31, %v5474_v16  ;;  %vm22595_vm10 = vmmov %vm22582_vm2 }
 0x3e9   : > { %5955 = vrot.lane.b32.xlu0 %v4196_v8, %s12359_s21  ;;  %10708 = vmatprep.mubr.msk.f32.mxu1 %vm22573_vm1, %v6200_v52  ;;  %v4088_v37 = vadd.f32 %v22586_v30, %v18290_v17  ;;  %v1072_v8 = vmul.f32 %v18697_v48, %v912_v22  ;;  %vm4136_vm1 = vcmp.ge.f32.partialorder %v4093_v27, 0.0  ;;  %v1105_v39 = vsel %vm1040_vm11, %v917_v5, %v1073_v10  ;;  %v22591_v51 = vld [vmem:[#allocation5_spill] sm:$0xff] }
 0x3ea   : > { %v18807_v59 = vpop.f32.mrb[48].mxu1  ;;  %v5794_v46 = vpop.permute.xlu1 %5793  ;;  %10709 = vmatmul.mubr.msk.f32.gmra.mrb[54].mxu1 %vm22575_vm13, %v6201_v33  ;;  %v22598_v5 = vld [vmem:[#allocation233_spill] sm:$0xff] }
 0x3eb   : > { %v18813_v23 = vpop.f32.mrb[49].mxu1  ;;  %v5792_v7 = vpop.permute.xlu0 %5791  ;;  %v6138_v38 = vsel %vm5670_vm4, %v1103_v61, %v5794_v46  ;;  %v4168_v29 = vmul.f32 %v18293_v60, %v4088_v37  ;;  %vm4135_vm13 = vcmp.ge.f32.partialorder %v4088_v37, 0.0  ;;  %v1104_v36 = vsel %vm1039_vm5, %v912_v22, %v1072_v8  ;;  %v22588_v46 = vld [vmem:[#allocation48_spill] sm:$0xff]  ;;  %vm22599_vm5 = vmmov %vm22589_vm0  ;;  %v22601_v8 = vld [vmem:[#allocation106_spill] sm:$0xff] }
 0x3ec   : > { %6085 = vrot.lane.b32.xlu1 %v5505_v62, %s12371_s13  ;;  %v6137_v11 = vsel %vm5670_vm4, %v1102_v54, %v5792_v7  ;;  %v4201_v62 = vsel %vm4136_vm1, %v4093_v27, %v4169_v50  ;;  %v5406_v22 = vadd.f32 %v18813_v23, %v18508_v12  ;;  %vm22600_vm1 = vmmov %vm22589_vm0  ;;  %v932_v10 = vadd.f32 %v22601_v8, %v18682_v28 }
 0x3ed   : > { %6083 = vrot.lane.b32.xlu0 %v5504_v24, %s12371_s13  ;;  %v5477_v24 = vmul.f32 %v18510_v43, %v5401_v15  ;;  %v4200_v1 = vsel %vm4135_vm13, %v4088_v37, %v4168_v29 }
 0x3ee   : > { %v5922_v3 = vpop.permute.xlu1 %5921  ;;  %v5478_v23 = vmul.f32 %v18510_v43, %v5406_v22  ;;  %vm5445_vm13 = vcmp.ge.f32.partialorder %v5406_v22, 0.0 }
 0x3ef   : > { %v5920_v44 = vpop.permute.xlu0 %5919  ;;  %v6170_v58 = vsel %vm22580_vm3, %v6138_v38, %v5922_v3  ;;  %v5509_v38 = vsel %vm5444_vm12, %v5401_v15, %v5477_v24 }
 0x3f0   : > { %5833 = vrot.lane.b32.xlu1 %v22577_v9, %s12368_s20  ;;  %v6169_v4 = vsel %vm22579_vm9, %v6137_v11, %v5920_v44  ;;  %v922_v44 = vadd.f32 %v22591_v51, %v18682_v28  ;;  %vm22592_vm9 = vmmov %vm22582_vm2  ;;  %v22593_v9 = vld [vmem:[#allocation190_spill] sm:$0xff]  ;;  %v22607_v51 = vld [vmem:[#allocation164_spill] sm:$0xff] }
 0x3f1   : > { %5831 = vrot.lane.b32.xlu0 %v22578_v2, %s12368_s20  ;;  %v927_v54 = vadd.f32 %v22593_v9, %v18682_v28  ;;  %v22594_v2 = vld [vmem:[#allocation73_spill] sm:$0xff]  ;;  %v22609_v9 = vld [vmem:[#allocation47_spill] sm:$0xff] }
 0x3f2   : > { %v6050_v34 = vpop.permute.xlu1 %6049  ;;  %v4103_v61 = vadd.f32 %v22594_v2, %v18290_v17  ;;  %vm1041_vm3 = vcmp.ge.f32.partialorder %v922_v44, 0.0 }
 0x3f3   : > { %v6048_v21 = vpop.permute.xlu0 %6047  ;;  %v6203_v41 = vsel %vm6195_vm8, %v6170_v58, %v6050_v34  ;;  %v22596_v34 = vld [vmem:[#allocation75_spill] sm:$0xff]  ;;  %vm1042_vm15 = vcmp.ge.f32.partialorder %v927_v54, 0.0 }
 0x3f4   : > { %v6202_v45 = vsel %vm6195_vm8, %v6169_v4, %v6048_v21  ;;  %5961 = vrot.lane.b32.xlu1 %v4199_v32, %s12359_s21  ;;  %v4098_v32 = vadd.f32 %v22596_v34, %v18290_v17  ;;  %v5508_v4 = vsel %vm5443_vm7, %v5396_v14, %v5476_v63  ;;  %v1074_v21 = vmul.f32 %v18697_v48, %v922_v44 }
 0x3f5   : > { %5959 = vrot.lane.b32.xlu0 %v4198_v13, %s12359_s21  ;;  %10711 = vmatprep.mubr.msk.f32.mxu1 %vm22582_vm2, %v6202_v45  ;;  %v1075_v13 = vmul.f32 %v18697_v48, %v927_v54  ;;  %v4171_v16 = vmul.f32 %v18293_v60, %v4103_v61  ;;  %vm4138_vm2 = vcmp.ge.f32.partialorder %v4103_v61, 0.0  ;;  %v5411_v45 = vadd.f32 %v18807_v59, %v18508_v12 }
 0x3f6   : > { %v5798_v26 = vpop.permute.xlu1 %5797  ;;  %10712 = vmatmul.mubr.msk.f32.gmra.mrb[56].mxu1 %vm22585_vm14, %v6203_v41  ;;  %v4170_v17 = vmul.f32 %v18293_v60, %v4098_v32  ;;  %vm4137_vm14 = vcmp.ge.f32.partialorder %v4098_v32, 0.0  ;;  %v22597_v41 = vld [vmem:[#allocation156_spill] sm:$0xff]  ;;  %v1106_v57 = vsel %vm1041_vm3, %v922_v44, %v1074_v21  ;;  %v5510_v14 = vsel %vm5445_vm13, %v5406_v22, %v5478_v23 }
 0x3f7   : > { %v5796_v20 = vpop.permute.xlu0 %5795  ;;  %v6140_v42 = vsel %vm5670_vm4, %v1105_v39, %v5798_v26  ;;  %v1107_v6 = vsel %vm1042_vm15, %v927_v54, %v1075_v13  ;;  %v4203_v60 = vsel %vm4138_vm2, %v4103_v61, %v4171_v16  ;;  %v5479_v30 = vmul.f32 %v18510_v43, %v5411_v45 }
 0x3f8   : > { %6089 = vrot.lane.b32.xlu1 %v5507_v56, %s12371_s13  ;;  %v6139_v25 = vsel %vm5670_vm4, %v1104_v36, %v5796_v20  ;;  %v4202_v12 = vsel %vm4137_vm14, %v4098_v32, %v4170_v17  ;;  %vm5446_vm11 = vcmp.ge.f32.partialorder %v5411_v45, 0.0  ;;  %v942_v44 = vadd.f32 %v22607_v51, %v18682_v28 }
 0x3f9   : > { %6087 = vrot.lane.b32.xlu0 %v5506_v40, %s12371_s13  ;;  %v947_v54 = vadd.f32 %v22609_v9, %v18682_v28 }
 0x3fa   : > { %v5926_v52 = vpop.permute.xlu1 %5925  ;;  %vm1045_vm14 = vcmp.ge.f32.partialorder %v942_v44, 0.0 }
 0x3fb   : > { %v5924_v33 = vpop.permute.xlu0 %5923  ;;  %v6172_v3 = vsel %vm22590_vm6, %v6140_v42, %v5926_v52  ;;  %v22603_v52 = vld [vmem:[#allocation11_spill] sm:$0xff]  ;;  %vm1043_vm6 = vcmp.ge.f32.partialorder %v932_v10, 0.0  ;;  %v1079_v21 = vmul.f32 %v18697_v48, %v947_v54 }
 0x3fc   : > { %5837 = vrot.lane.b32.xlu1 %v22587_v0, %s12368_s20  ;;  %v6171_v19 = vsel %vm22589_vm0, %v6139_v25, %v5924_v33  ;;  %vm22602_vm0 = vmmov %vm22592_vm9  ;;  %v937_v29 = vadd.f32 %v22603_v52, %v18682_v28  ;;  %v5511_v33 = vsel %vm5446_vm11, %v5411_v45, %v5479_v30  ;;  %v1076_v0 = vmul.f32 %v18697_v48, %v932_v10 }
 0x3fd   : > { %5835 = vrot.lane.b32.xlu0 %v22588_v46, %s12368_s20  ;;  %vm22604_vm12 = vmmov %vm22602_vm0 }
 0x3fe   : > { %v6054_v7 = vpop.permute.xlu1 %6053  ;;  %v1077_v36 = vmul.f32 %v18697_v48, %v937_v29  ;;  %vm1044_vm7 = vcmp.ge.f32.partialorder %v937_v29, 0.0  ;;  %v1108_v25 = vsel %vm1043_vm6, %v932_v10, %v1076_v0  ;;  %vm22608_vm3 = vmmov %vm22602_vm0 }
 0x3ff   : > { %v6052_v35 = vpop.permute.xlu0 %6051  ;;  %v6205_v31 = vsel %vm6195_vm8, %v6172_v3, %v6054_v7  ;;  %vm22610_vm15 = vmmov %vm22602_vm0 }
 0x400   : > { %v6204_v53 = vsel %vm6195_vm8, %v6171_v19, %v6052_v35  ;;  %5965 = vrot.lane.b32.xlu1 %v4201_v62, %s12359_s21  ;;  %v1109_v7 = vsel %vm1044_vm7, %v937_v29, %v1077_v36  ;;  %vm22611_vm11 = vmmov %vm22600_vm1  ;;  %v22617_v36 = vld [vmem:[#allocation191_spill] sm:$0xff] }
 0x401   : > { %5963 = vrot.lane.b32.xlu0 %v4200_v1, %s12359_s21  ;;  %10714 = vmatprep.mubr.msk.f32.mxu1 %vm22592_vm9, %v6204_v53  ;;  %vm22605_vm9 = vmmov %vm22600_vm1  ;;  %v12330_v1 = vld [vmem:[%s20200_s6] sm:$0x1f] }
 0x402   : > { %v5802_v11 = vpop.permute.xlu1 %5801  ;;  %10715 = vmatmul.mubr.msk.f32.gmra.mrb[58].mxu1 %vm22595_vm10, %v6205_v31  ;;  %v5584_v63 = vrot.slane %v12330_v1, 4  ;;  %vm22606_vm10 = vmmov %vm22600_vm1 }
 0x403   : > { %v5800_v47 = vpop.permute.xlu0 %5799  ;;  %v6142_v59 = vsel %vm5670_vm4, %v1107_v6, %v5802_v11  ;;  %vm22613_vm13 = vmmov %vm22602_vm0 }
 0x404   : > { %6093 = vrot.lane.b32.xlu1 %v5509_v38, %s12371_s13  ;;  %v6141_v27 = vsel %vm5670_vm4, %v1106_v57, %v5800_v47  ;;  %v1078_v38 = vmul.f32 %v18697_v48, %v942_v44  ;;  %vm22615_vm7 = vmmov %vm22600_vm1 }
 0x405   : > { %6091 = vrot.lane.b32.xlu0 %v5508_v4, %s12371_s13 }
 0x406   : > { %v5930_v58 = vpop.permute.xlu1 %5929  ;;  %v1110_v17 = vsel %vm1045_vm14, %v942_v44, %v1078_v38  ;;  %vm22621_vm14 = vmmov %vm22600_vm1 }
 0x407   : > { %v5928_v49 = vpop.permute.xlu0 %5927  ;;  %v6174_v56 = vsel %vm22600_vm1, %v6142_v59, %v5930_v58  ;;  %v22614_v59 = vld [vmem:[#allocation101_spill] sm:$0xff] }
 0x408   : > { %5841 = vrot.lane.b32.xlu1 %v22597_v41, %s12368_s20  ;;  %v6173_v37 = vsel %vm22599_vm5, %v6141_v27, %v5928_v49  ;;  %vm1046_vm5 = vcmp.ge.f32.partialorder %v947_v54, 0.0 }
 0x409   : > { %5839 = vrot.lane.b32.xlu0 %v22598_v5, %s12368_s20  ;;  %v1111_v45 = vsel %vm1046_vm5, %v947_v54, %v1079_v21  ;;  %vm22622_vm5 = vmmov %vm22600_vm1 }
 0x40a   : > { %v6058_v26 = vpop.permute.xlu1 %6057 }
 0x40b   : > { %v6056_v20 = vpop.permute.xlu0 %6055  ;;  %v6207_v50 = vsel %vm6195_vm8, %v6174_v56, %v6058_v26  ;;  %v22612_v26 = vld [vmem:[#allocation184_spill] sm:$0xff] }
 0x40c   : > { %v6206_v40 = vsel %vm6195_vm8, %v6173_v37, %v6056_v20  ;;  %5969 = vrot.lane.b32.xlu1 %v4203_v60, %s12359_s21  ;;  %v952_v60 = vadd.f32 %v22612_v26, %v18682_v28  ;;  %v957_v37 = vadd.f32 %v22614_v59, %v18682_v28  ;;  %v22629_v26 = vld [vmem:[#allocation187_spill] sm:$0xff]  ;;  %v22631_v59 = vld [vmem:[#allocation24_spill] sm:$0xff] }
 0x40d   : > { %5967 = vrot.lane.b32.xlu0 %v4202_v12, %s12359_s21  ;;  %10717 = vmatprep.mubr.msk.f32.mxu1 %vm22602_vm0, %v6206_v40  ;;  %s10070_s21 = sld [smem:[#allocation2 + $0x4]] }
 0x40e   : > { %v5806_v43 = vpop.permute.xlu1 %5805  ;;  %10718 = vmatmul.mubr.msk.f32.gmra.mrb[60].mxu1 %vm22604_vm12, %v6207_v50  ;;  %v1080_v23 = vmul.f32 %v18697_v48, %v952_v60  ;;  %v1081_v56 = vmul.f32 %v18697_v48, %v957_v37  ;;  %vm1047_vm12 = vcmp.ge.f32.partialorder %v952_v60, 0.0  ;;  %vm1048_vm6 = vcmp.ge.f32.partialorder %v957_v37, 0.0 }
 0x40f   : > { %v5804_v15 = vpop.permute.xlu0 %5803  ;;  %v6144_v42 = vsel %vm5670_vm4, %v1109_v7, %v5806_v43 }
 0x410   : > { %6097 = vrot.lane.b32.xlu1 %v5511_v33, %s12371_s13  ;;  %v6143_v62 = vsel %vm5670_vm4, %v1108_v25, %v5804_v15  ;;  %v1112_v10 = vsel %vm1047_vm12, %v952_v60, %v1080_v23  ;;  %v1113_v50 = vsel %vm1048_vm6, %v957_v37, %v1081_v56  ;;  %v22619_v25 = vld [vmem:[#allocation104_spill] sm:$0xff]  ;;  %vm22627_vm12 = vmmov %vm22622_vm5  ;;  %v982_v60 = vadd.f32 %v22629_v26, %v18682_v28 }
 0x411   : > { %6095 = vrot.lane.b32.xlu0 %v5510_v14, %s12371_s13  ;;  %v967_v7 = vadd.f32 %v22619_v25, %v18682_v28  ;;  %vm22628_vm6 = vmmov %vm22622_vm5  ;;  %v987_v37 = vadd.f32 %v22631_v59, %v18682_v28  ;;  %v22637_v25 = vld [vmem:[#allocation60_spill] sm:$0xff] }
 0x412   : > { %v5934_v46 = vpop.permute.xlu1 %5933  ;;  %v1086_v23 = vmul.f32 %v18697_v48, %v982_v60  ;;  %v22647_v26 = vld [vmem:[#allocation124_spill] sm:$0xff] }
 0x413   : > { %v5932_v39 = vpop.permute.xlu0 %5931  ;;  %v6176_v3 = vsel %vm22606_vm10, %v6144_v42, %v5934_v46  ;;  %v5664_v11 = vstv %s10070_s21  ;;  %v962_v46 = vadd.f32 %v22617_v36, %v18682_v28  ;;  %vm22618_vm10 = vmmov %vm22602_vm0  ;;  %v1087_v56 = vmul.f32 %v18697_v48, %v987_v37  ;;  %v22635_v36 = vld [vmem:[#allocation269_spill] sm:$0xff]  ;;  %v22649_v59 = vld [vmem:[#allocation36_spill] sm:$0xff] }
 0x414   : > { %v6175_v19 = vsel %vm22605_vm9, %v6143_v62, %v5932_v39  ;;  %vm22616_vm9 = vmmov %vm22600_vm1 }
 0x415   : > { %v1082_v42 = vmul.f32 %v18697_v48, %v962_v46 }
 0x416   : > { %v6062_v24 = vpop.permute.xlu1 %6061 }
 0x417   : > { %v6060_v35 = vpop.permute.xlu0 %6059  ;;  %v6209_v31 = vsel %vm6195_vm8, %v6176_v3, %v6062_v24 }
 0x418   : > { %v6208_v53 = vsel %vm6195_vm8, %v6175_v19, %v6060_v35  ;;  %v1083_v19 = vmul.f32 %v18697_v48, %v967_v7 }
 0x419   : > { %10720 = vmatprep.mubr.msk.f32.mxu1 %vm22608_vm3, %v6208_v53  ;;  %vm22620_vm3 = vmmov %vm22602_vm0 }
 0x41a   : > { %v5810_v2 = vpop.permute.xlu1 %5809  ;;  %10721 = vmatmul.mubr.msk.f32.gmra.mrb[62].mxu1 %vm22610_vm15, %v6209_v31  ;;  %v5658_v61 = vpop.f32.mrb[80].mxu0  ;;  %vm1049_vm15 = vcmp.ge.f32.partialorder %v962_v46, 0.0 }
 0x41b   : > { %v5808_v34 = vpop.permute.xlu0 %5807  ;;  %v5659_v32 = vadd.f32 %v5658_v61, %v5584_v63  ;;  %v10694_v47 = vpop.f32.mrb[81].mxu0  ;;  %v6146_v41 = vsel %vm5670_vm4, %v1111_v45, %v5810_v2  ;;  %v1114_v63 = vsel %vm1049_vm15, %v962_v46, %v1082_v42  ;;  %v22623_v61 = vld [vmem:[#allocation264_spill] sm:$0xff]  ;;  %vm22633_vm15 = vmmov %vm22622_vm5  ;;  %v992_v46 = vadd.f32 %v22635_v36, %v18682_v28  ;;  %v22653_v36 = vld [vmem:[#allocation202_spill] sm:$0xff] }
 0x41c   : > { %v6145_v49 = vsel %vm5670_vm4, %v1110_v17, %v5808_v34 }
 0x41d   : > { %vm5663_vm2 = vcmp.ge.f32.partialorder %v5659_v32, 0.0  ;;  %v5665_v4 = vmul.f32 %v5664_v11, %v5659_v32  ;;  %v972_v11 = vadd.f32 %v22623_v61, %v18682_v28  ;;  %v1088_v42 = vmul.f32 %v18697_v48, %v992_v46  ;;  %v22641_v61 = vld [vmem:[#allocation267_spill] sm:$0xff] }
 0x41e   : > { %v5938_v13 = vpop.permute.xlu1 %5937 }
 0x41f   : > { %v5666_v16 = vsel %vm5663_vm2, %v5659_v32, %v5665_v4  ;;  %v5936_v58 = vpop.permute.xlu0 %5935  ;;  %v6178_v6 = vsel %vm22600_vm1, %v6146_v41, %v5938_v13  ;;  %vm1050_vm2 = vcmp.ge.f32.partialorder %v967_v7, 0.0  ;;  %v22625_v32 = vld [vmem:[#allocation120_spill] sm:$0xff]  ;;  %vm22626_vm1 = vmmov %vm22602_vm0  ;;  %v1084_v21 = vmul.f32 %v18697_v48, %v972_v11 }
 0x420   : > { %10698 = vmatmul.mubr.msk.f32.vlgmr.msra.gmra.mrb[82].mxu0 %vm5670_vm4, %v5666_v16  ;;  %v6177_v57 = vsel %vm22611_vm11, %v6145_v49, %v5936_v58  ;;  %v1115_v3 = vsel %vm1050_vm2, %v967_v7, %v1083_v19  ;;  %vm22624_vm11 = vmmov %vm22602_vm0  ;;  %v977_v47 = vadd.f32 %v22625_v32, %v18682_v28  ;;  %v997_v7 = vadd.f32 %v22637_v25, %v18682_v28  ;;  %v22643_v32 = vld [vmem:[#allocation112_spill] sm:$0xff]  ;;  %v22655_v25 = vld [vmem:[#allocation122_spill] sm:$0xff] }
 0x421   : > { %vm22634_vm2 = vmmov %vm22622_vm5 }
 0x422   : > { %v6066_v22 = vpop.permute.xlu1 %6065  ;;  %v1085_v13 = vmul.f32 %v18697_v48, %v977_v47  ;;  %v1089_v19 = vmul.f32 %v18697_v48, %v997_v7 }
 0x423   : > { %v6064_v5 = vpop.permute.xlu0 %6063  ;;  %v6211_v30 = vsel %vm6195_vm8, %v6178_v6, %v6066_v22 }
 0x424   : > { %v6210_v27 = vsel %vm6195_vm8, %v6177_v57, %v6064_v5 }
 0x425   : > { %10723 = vmatprep.mubr.msk.f32.mxu1 %vm22613_vm13, %v6210_v27  ;;  %vm1051_vm13 = vcmp.ge.f32.partialorder %v972_v11, 0.0 }
 0x426   : > { %v5814_v20 = vpop.permute.xlu1 %5813  ;;  %10724 = vmatmul.mubr.msk.f32.gmra.mrb[64].mxu1 %vm22602_vm0, %v6211_v30  ;;  %vm1052_vm0 = vcmp.ge.f32.partialorder %v977_v47, 0.0  ;;  %v1116_v17 = vsel %vm1051_vm13, %v972_v11, %v1084_v21  ;;  %vm22639_vm13 = vmmov %vm22634_vm2  ;;  %v1002_v11 = vadd.f32 %v22641_v61, %v18682_v28 }
 0x427   : > { %v5812_v12 = vpop.permute.xlu0 %5811  ;;  %v6148_v43 = vsel %vm5670_vm4, %v1113_v50, %v5814_v20  ;;  %v1117_v45 = vsel %vm1052_vm0, %v977_v47, %v1085_v13  ;;  %vm22640_vm0 = vmmov %vm22634_vm2  ;;  %v1007_v47 = vadd.f32 %v22643_v32, %v18682_v28 }
 0x428   : > { %v6147_v52 = vsel %vm5670_vm4, %v1112_v10, %v5812_v12  ;;  %v1090_v21 = vmul.f32 %v18697_v48, %v1002_v11 }
 0x429   : > { %v1091_v13 = vmul.f32 %v18697_v48, %v1007_v47 }
 0x42a   : > { %v5942_v40 = vpop.permute.xlu1 %5941 }
 0x42b   : > { %v5940_v8 = vpop.permute.xlu0 %5939  ;;  %v6180_v14 = vsel %vm22616_vm9, %v6148_v43, %v5942_v40  ;;  %vm22632_vm9 = vmmov %vm22626_vm1 }
 0x42c   : > { %v6179_v15 = vsel %vm22615_vm7, %v6147_v52, %v5940_v8  ;;  %vm22630_vm7 = vmmov %vm22626_vm1 }
 0x42e   : > { %v6070_v29 = vpop.permute.xlu1 %6069 }
 0x42f   : > { %v6068_v33 = vpop.permute.xlu0 %6067  ;;  %v6213_v39 = vsel %vm6195_vm8, %v6180_v14, %v6070_v29 }
 0x430   : > { %v6212_v0 = vsel %vm6195_vm8, %v6179_v15, %v6068_v33 }
 0x431   : > { %10726 = vmatprep.mubr.msk.f32.mxu1 %vm22618_vm10, %v6212_v0  ;;  %vm1053_vm10 = vcmp.ge.f32.partialorder %v982_v60, 0.0 }
 0x432   : > { %v5818_v62 = vpop.permute.xlu1 %5817  ;;  %10727 = vmatmul.mubr.msk.f32.gmra.mrb[66].mxu1 %vm22620_vm3, %v6213_v39  ;;  %vm1054_vm3 = vcmp.ge.f32.partialorder %v987_v37, 0.0  ;;  %v1118_v10 = vsel %vm1053_vm10, %v982_v60, %v1086_v23  ;;  %vm22645_vm10 = vmmov %vm22640_vm0  ;;  %v1012_v60 = vadd.f32 %v22647_v26, %v18682_v28 }
 0x433   : > { %v5816_v24 = vpop.permute.xlu0 %5815  ;;  %v6150_v44 = vsel %vm5670_vm4, %v1115_v3, %v5818_v62  ;;  %v1119_v50 = vsel %vm1054_vm3, %v987_v37, %v1087_v56  ;;  %vm22646_vm3 = vmmov %vm22640_vm0  ;;  %v1017_v37 = vadd.f32 %v22649_v59, %v18682_v28 }
 0x434   : > { %v6149_v53 = vsel %vm5670_vm4, %v1114_v63, %v5816_v24  ;;  %v1092_v23 = vmul.f32 %v18697_v48, %v1012_v60 }
 0x435   : > { %v1093_v56 = vmul.f32 %v18697_v48, %v1017_v37 }
 0x436   : > { %v5946_v35 = vpop.permute.xlu1 %5945 }
 0x437   : > { %v5944_v1 = vpop.permute.xlu0 %5943  ;;  %v6182_v54 = vsel %vm22622_vm5, %v6150_v44, %v5946_v35  ;;  %vm22638_vm5 = vmmov %vm22626_vm1 }
 0x438   : > { %v6181_v31 = vsel %vm22621_vm14, %v6149_v53, %v5944_v1  ;;  %vm22636_vm14 = vmmov %vm22626_vm1 }
 0x43a   : > { %v6074_v51 = vpop.permute.xlu1 %6073 }
 0x43b   : > { %v6072_v9 = vpop.permute.xlu0 %6071  ;;  %v6215_v34 = vsel %vm6195_vm8, %v6182_v54, %v6074_v51 }
 0x43c   : > { %v6214_v2 = vsel %vm6195_vm8, %v6181_v31, %v6072_v9 }
 0x43d   : > { %10729 = vmatprep.mubr.msk.f32.mxu1 %vm22624_vm11, %v6214_v2  ;;  %vm1055_vm11 = vcmp.ge.f32.partialorder %v992_v46, 0.0 }
 0x43e   : > { %v5822_v38 = vpop.permute.xlu1 %5821  ;;  %10730 = vmatmul.mubr.msk.f32.gmra.mrb[68].mxu1 %vm22626_vm1, %v6215_v34  ;;  %vm1056_vm1 = vcmp.ge.f32.partialorder %v997_v7, 0.0  ;;  %v1120_v63 = vsel %vm1055_vm11, %v992_v46, %v1088_v42  ;;  %vm22651_vm11 = vmmov %vm22640_vm0  ;;  %v1022_v46 = vadd.f32 %v22653_v36, %v18682_v28 }
 0x43f   : > { %v5820_v4 = vpop.permute.xlu0 %5819  ;;  %v6152_v41 = vsel %vm5670_vm4, %v1117_v45, %v5822_v38  ;;  %v1121_v3 = vsel %vm1056_vm1, %v997_v7, %v1089_v19  ;;  %vm22652_vm1 = vmmov %vm22640_vm0  ;;  %v1027_v7 = vadd.f32 %v22655_v25, %v18682_v28 }
 0x440   : > { %v6151_v49 = vsel %vm5670_vm4, %v1116_v17, %v5820_v4  ;;  %v1094_v42 = vmul.f32 %v18697_v48, %v1022_v46 }
 0x441   : > { %v1095_v19 = vmul.f32 %v18697_v48, %v1027_v7 }
 0x442   : > { %v5950_v16 = vpop.permute.xlu1 %5949 }
 0x443   : > { %v5948_v58 = vpop.permute.xlu0 %5947  ;;  %v6184_v6 = vsel %vm22628_vm6, %v6152_v41, %v5950_v16  ;;  %vm22644_vm6 = vmmov %vm22638_vm5 }
 0x444   : > { %v6183_v57 = vsel %vm22627_vm12, %v6151_v49, %v5948_v58  ;;  %vm22642_vm12 = vmmov %vm22638_vm5 }
 0x446   : > { %v6078_v22 = vpop.permute.xlu1 %6077 }
 0x447   : > { %v6076_v5 = vpop.permute.xlu0 %6075  ;;  %v6217_v30 = vsel %vm6195_vm8, %v6184_v6, %v6078_v22 }
 0x448   : > { %v6216_v27 = vsel %vm6195_vm8, %v6183_v57, %v6076_v5 }
 0x449   : > { %10732 = vmatprep.mubr.msk.f32.mxu1 %vm22630_vm7, %v6216_v27  ;;  %vm1057_vm7 = vcmp.ge.f32.partialorder %v1002_v11, 0.0 }
 0x44a   : > { %v5826_v20 = vpop.permute.xlu1 %5825  ;;  %10733 = vmatmul.mubr.msk.f32.gmra.mrb[70].mxu1 %vm22632_vm9, %v6217_v30  ;;  %vm1058_vm9 = vcmp.ge.f32.partialorder %v1007_v47, 0.0  ;;  %v1122_v17 = vsel %vm1057_vm7, %v1002_v11, %v1090_v21  ;;  %vm22657_vm7 = vmmov %vm22652_vm1 }
 0x44b   : > { %v5824_v12 = vpop.permute.xlu0 %5823  ;;  %v6154_v43 = vsel %vm5670_vm4, %v1119_v50, %v5826_v20  ;;  %v1123_v45 = vsel %vm1058_vm9, %v1007_v47, %v1091_v13  ;;  %vm22658_vm9 = vmmov %vm22652_vm1 }
 0x44c   : > { %v6153_v52 = vsel %vm5670_vm4, %v1118_v10, %v5824_v12 }
 0x44e   : > { %v5954_v40 = vpop.permute.xlu1 %5953 }
 0x44f   : > { %v5952_v8 = vpop.permute.xlu0 %5951  ;;  %v6186_v14 = vsel %vm22634_vm2, %v6154_v43, %v5954_v40  ;;  %vm22650_vm2 = vmmov %vm22638_vm5 }
 0x450   : > { %v6185_v15 = vsel %vm22633_vm15, %v6153_v52, %v5952_v8  ;;  %vm22648_vm15 = vmmov %vm22638_vm5 }
 0x452   : > { %v6082_v29 = vpop.permute.xlu1 %6081 }
 0x453   : > { %v6080_v33 = vpop.permute.xlu0 %6079  ;;  %v6219_v39 = vsel %vm6195_vm8, %v6186_v14, %v6082_v29 }
 0x454   : > { %v6218_v0 = vsel %vm6195_vm8, %v6185_v15, %v6080_v33 }
 0x455   : > { %10735 = vmatprep.mubr.msk.f32.mxu1 %vm22636_vm14, %v6218_v0  ;;  %vm1059_vm14 = vcmp.ge.f32.partialorder %v1012_v60, 0.0 }
 0x456   : > { %v5830_v62 = vpop.permute.xlu1 %5829  ;;  %10736 = vmatmul.mubr.msk.f32.gmra.mrb[72].mxu1 %vm22638_vm5, %v6219_v39  ;;  %vm1060_vm5 = vcmp.ge.f32.partialorder %v1017_v37, 0.0  ;;  %v1124_v10 = vsel %vm1059_vm14, %v1012_v60, %v1092_v23  ;;  %v19083_v60 = vstv %s10105_s27 }
 0x457   : > { %v5828_v24 = vpop.permute.xlu0 %5827  ;;  %v6156_v44 = vsel %vm5670_vm4, %v1121_v3, %v5830_v62  ;;  %v1125_v50 = vsel %vm1060_vm5, %v1017_v37, %v1093_v56 }
 0x458   : > { %v6155_v53 = vsel %vm5670_vm4, %v1120_v63, %v5828_v24 }
 0x45a   : > { %v5958_v35 = vpop.permute.xlu1 %5957 }
 0x45b   : > { %v5956_v1 = vpop.permute.xlu0 %5955  ;;  %v6188_v54 = vsel %vm22640_vm0, %v6156_v44, %v5958_v35  ;;  %vm22656_vm0 = vmmov %vm22650_vm2 }
 0x45c   : > { %v6187_v31 = vsel %vm22639_vm13, %v6155_v53, %v5956_v1  ;;  %vm22654_vm13 = vmmov %vm22650_vm2 }
 0x45e   : > { %v6086_v51 = vpop.permute.xlu1 %6085 }
 0x45f   : > { %v6084_v9 = vpop.permute.xlu0 %6083  ;;  %v6221_v34 = vsel %vm6195_vm8, %v6188_v54, %v6086_v51 }
 0x460   : > { %v6220_v2 = vsel %vm6195_vm8, %v6187_v31, %v6084_v9 }
 0x461   : > { %10738 = vmatprep.mubr.msk.f32.mxu1 %vm22642_vm12, %v6220_v2  ;;  %vm1061_vm12 = vcmp.ge.f32.partialorder %v1022_v46, 0.0 }
 0x462   : > { %v5834_v38 = vpop.permute.xlu1 %5833  ;;  %10739 = vmatmul.mubr.msk.f32.gmra.mrb[74].mxu1 %vm22644_vm6, %v6221_v34  ;;  %vm1062_vm6 = vcmp.ge.f32.partialorder %v1027_v7, 0.0  ;;  %v1126_v63 = vsel %vm1061_vm12, %v1022_v46, %v1094_v42  ;;  %vm22662_vm12 = vmmov %vm22652_vm1 }
 0x463   : > { %v5832_v4 = vpop.permute.xlu0 %5831  ;;  %v6158_v41 = vsel %vm5670_vm4, %v1123_v45, %v5834_v38  ;;  %v1127_v3 = vsel %vm1062_vm6, %v1027_v7, %v1095_v19  ;;  %vm22663_vm6 = vmmov %vm22652_vm1 }
 0x464   : > { %v6157_v49 = vsel %vm5670_vm4, %v1122_v17, %v5832_v4 }
 0x466   : > { %v5962_v16 = vpop.permute.xlu1 %5961 }
 0x467   : > { %v5960_v58 = vpop.permute.xlu0 %5959  ;;  %v6190_v6 = vsel %vm22646_vm3, %v6158_v41, %v5962_v16  ;;  %vm22660_vm3 = vmmov %vm22656_vm0 }
 0x468   : > { %v6189_v57 = vsel %vm22645_vm10, %v6157_v49, %v5960_v58  ;;  %vm22659_vm10 = vmmov %vm22656_vm0  ;;  %v5669_v49 = vld [vmem:[%s20201_s7] sm:$0x1] }
 0x46a   : > { %v6090_v22 = vpop.permute.xlu1 %6089 }
 0x46b   : > { %v6088_v5 = vpop.permute.xlu0 %6087  ;;  %v6223_v30 = vsel %vm6195_vm8, %v6190_v6, %v6090_v22 }
 0x46c   : > { %v6222_v27 = vsel %vm6195_vm8, %v6189_v57, %v6088_v5 }
 0x46d   : > { %10741 = vmatprep.mubr.msk.f32.mxu1 %vm22648_vm15, %v6222_v27 }
 0x46e   : > { %v5838_v20 = vpop.permute.xlu1 %5837  ;;  %10742 = vmatmul.mubr.msk.f32.gmra.mrb[76].mxu1 %vm22650_vm2, %v6223_v30 }
 0x46f   : > { %v5836_v12 = vpop.permute.xlu0 %5835  ;;  %v6160_v43 = vsel %vm5670_vm4, %v1125_v50, %v5838_v20 }
 0x470   : > { %v6159_v52 = vsel %vm5670_vm4, %v1124_v10, %v5836_v12  ;;  %v19097_v10 = vld [vmem:[%s20199_s5] ss:$0 sm:$0xff] }
 0x472   : > { %v5966_v40 = vpop.permute.xlu1 %5965 }
 0x473   : > { %v5964_v8 = vpop.permute.xlu0 %5963  ;;  %v6192_v14 = vsel %vm22652_vm1, %v6160_v43, %v5966_v40 }
 0x474   : > { %v6191_v15 = vsel %vm22651_vm11, %v6159_v52, %v5964_v8  ;;  %vm22661_vm11 = vmmov %vm22652_vm1 }
 0x476   : > { %v6094_v29 = vpop.permute.xlu1 %6093 }
 0x477   : > { %v6092_v33 = vpop.permute.xlu0 %6091  ;;  %v6225_v39 = vsel %vm6195_vm8, %v6192_v14, %v6094_v29 }
 0x478   : > { %v6224_v0 = vsel %vm6195_vm8, %v6191_v15, %v6092_v33 }
 0x479   : > { %10744 = vmatprep.mubr.msk.f32.mxu1 %vm22654_vm13, %v6224_v0 }
 0x47a   : > { %v5842_v62 = vpop.permute.xlu1 %5841  ;;  %10745 = vmatmul.mubr.msk.f32.gmra.mrb[78].mxu1 %vm22656_vm0, %v6225_v39 }
 0x47b   : > { %v5840_v24 = vpop.permute.xlu0 %5839  ;;  %v6162_v44 = vsel %vm5670_vm4, %v1127_v3, %v5842_v62 }
 0x47c   : > { %v6161_v53 = vsel %vm5670_vm4, %v1126_v63, %v5840_v24 }
 0x47e   : > { %v5970_v35 = vpop.permute.xlu1 %5969 }
 0x47f   : > { %v5968_v1 = vpop.permute.xlu0 %5967  ;;  %v6194_v9 = vsel %vm22658_vm9, %v6162_v44, %v5970_v35 }
 0x480   : > { %v6193_v28 = vsel %vm22657_vm7, %v6161_v53, %v5968_v1 }
 0x482   : > { %v6098_v51 = vpop.permute.xlu1 %6097 }
 0x483   : > { %v6096_v31 = vpop.permute.xlu0 %6095  ;;  %v6227_v48 = vsel %vm6195_vm8, %v6194_v9, %v6098_v51 }
 0x484   : > { %v6226_v54 = vsel %vm6195_vm8, %v6193_v28, %v6096_v31 }
 0x485   : > { %10747 = vmatprep.mubr.msk.f32.mxu1 %vm22659_vm10, %v6226_v54  ;;  %vm22664_vm10 = vmmov %vm22652_vm1 }
 0x486   : > { %10748 = vmatmul.mubr.msk.f32.gmra.mrb[80].mxu1 %vm22660_vm3, %v6227_v48  ;;  %vm22665_vm3 = vmmov %vm22652_vm1 }
 0x4a1   : > { %v10704_v2 = vpop.f32.mrb[50].mxu1 }
 0x4a2   : > { %v6394_v61 = vpop.f32.mrb[51].mxu1 }
 0x4ad   : > { %v10707_v11 = vpop.f32.mrb[52].mxu1 }
 0x4ae   : > { %v6404_v34 = vpop.f32.mrb[53].mxu1 }
 0x4bd   : > { %v10710_v32 = vpop.f32.mrb[54].mxu1 }
 0x4be   : > { %v6414_v47 = vpop.f32.mrb[55].mxu1 }
 0x4c9   : > { %v10713_v38 = vpop.f32.mrb[56].mxu1 }
 0x4ca   : > { %v6424_v4 = vpop.f32.mrb[57].mxu1 }
 0x4d5   : > { %v10716_v21 = vpop.f32.mrb[58].mxu1 }
 0x4d6   : > { %v6434_v13 = vpop.f32.mrb[59].mxu1 }
 0x4e1   : > { %v19070_v16 = vpop.f32.mrb[60].mxu1 }
 0x4e2   : > { %v6444_v58 = vpop.f32.mrb[61].mxu1 }
 0x4ed   : > { %v19072_v17 = vpop.f32.mrb[62].mxu1 }
 0x4ee   : > { %v6454_v45 = vpop.f32.mrb[63].mxu1 }
 0x4f3   : > { %v5743_v22 = vpop.f32.mrb[82].mxu0 }
 0x4f4   : > { %v5744_v41 = vadd.f32 %v5743_v22, %v5669_v49  ;;  %v10699_v57 = vpop.f32.mrb[83].mxu0 }
 0x4f6   : > { %v19078_v5 = vrot.slane %v5744_v41, %v18668_v18 }
 0x4f8   : > { %v6395_v26 = vadd.f32 %v6394_v61, %v19078_v5  ;;  %v6400_v30 = vadd.f32 %v10704_v2, %v19078_v5  ;;  %v6405_v59 = vadd.f32 %v6404_v34, %v19078_v5  ;;  %v6415_v37 = vadd.f32 %v6414_v47, %v19078_v5 }
 0x4f9   : > { %v19080_v6 = vpop.f32.mrb[64].mxu1  ;;  %v6410_v20 = vadd.f32 %v10707_v11, %v19078_v5  ;;  %v6425_v12 = vadd.f32 %v6424_v4, %v19078_v5  ;;  %v6420_v50 = vadd.f32 %v10710_v32, %v19078_v5  ;;  %v6435_v52 = vadd.f32 %v6434_v13, %v19078_v5 }
 0x4fa   : > { %v6464_v27 = vpop.f32.mrb[65].mxu1  ;;  %vm6554_vm4 = vcmp.ge.f32.partialorder %v6395_v26, 0.0  ;;  %v6587_v23 = vmul.f32 %v19083_v60, %v6395_v26  ;;  %vm6555_vm8 = vcmp.ge.f32.partialorder %v6400_v30, 0.0  ;;  %v6588_v56 = vmul.f32 %v19083_v60, %v6400_v30 }
 0x4fb   : > { %v6589_v40 = vmul.f32 %v19083_v60, %v6405_v59  ;;  %v6591_v8 = vmul.f32 %v19083_v60, %v6415_v37  ;;  %vm6556_vm15 = vcmp.ge.f32.partialorder %v6405_v59, 0.0  ;;  %vm6558_vm2 = vcmp.ge.f32.partialorder %v6415_v37, 0.0 }
 0x4fc   : > { %vm6557_vm14 = vcmp.ge.f32.partialorder %v6410_v20, 0.0  ;;  %v6590_v29 = vmul.f32 %v19083_v60, %v6410_v20  ;;  %v6593_v43 = vmul.f32 %v19083_v60, %v6425_v12  ;;  %v6620_v15 = vsel %vm6555_vm8, %v6400_v30, %v6588_v56 }
 0x4fd   : > { %v6619_v33 = vsel %vm6554_vm4, %v6395_v26, %v6587_v23  ;;  %v6659_v14 = vmul.f32 %v19097_v10, %v6620_v15  ;;  %v6621_v36 = vsel %vm6556_vm15, %v6405_v59, %v6589_v40  ;;  %v6623_v46 = vsel %vm6558_vm2, %v6415_v37, %v6591_v8  ;;  %vm22666_vm2 = vmmov %vm22652_vm1 }
 0x4fe   : > { %v6658_v0 = vmul.f32 %v19097_v10, %v6619_v33  ;;  %v6430_v39 = vadd.f32 %v10713_v38, %v19078_v5  ;;  %v6445_v25 = vadd.f32 %v6444_v58, %v19078_v5  ;;  %vm6560_vm5 = vcmp.ge.f32.partialorder %v6425_v12, 0.0 }
 0x4ff   : > { %v6693_v62 = vsel %vm22661_vm11, %v6659_v14, 0.0  ;;  %v6660_v19 = vmul.f32 %v19097_v10, %v6621_v36  ;;  %v6662_v35 = vmul.f32 %v19097_v10, %v6623_v46  ;;  %v6592_v1 = vmul.f32 %v19083_v60, %v6420_v50  ;;  %vm22668_vm11 = vmmov %vm22652_vm1 }
 0x500   : > { %v6690_v24 = vsel %vm22652_vm1, %v6658_v0, 0.0  ;;  %v6595_v63 = vmul.f32 %v19083_v60, %v6435_v52  ;;  %6694 = vadd.xlane.f32.xlu1 %v6693_v62  ;;  %v6622_v3 = vsel %vm6557_vm14, %v6410_v20, %v6590_v29  ;;  %vm6559_vm13 = vcmp.ge.f32.partialorder %v6420_v50, 0.0  ;;  %vm22667_vm14 = vmmov %vm22652_vm1 }
 0x501   : > { %6691 = vadd.xlane.f32.xlu0 %v6690_v24  ;;  %vm6562_vm0 = vcmp.ge.f32.partialorder %v6435_v52, 0.0  ;;  %v6625_v53 = vsel %vm6560_vm5, %v6425_v12, %v6593_v43  ;;  %v6440_v51 = vadd.f32 %v10716_v21, %v19078_v5  ;;  %v6455_v44 = vadd.f32 %v6454_v45, %v19078_v5 }
 0x502   : > { %v6594_v28 = vmul.f32 %v19083_v60, %v6430_v39  ;;  %v6696_v31 = vsel %vm22662_vm12, %v6660_v19, 0.0  ;;  %v6702_v9 = vsel %vm22663_vm6, %v6662_v35, 0.0  ;;  %v6661_v54 = vmul.f32 %v19097_v10, %v6622_v3  ;;  %vm22669_vm12 = vmmov %vm22652_vm1 }
 0x503   : > { %v6664_v48 = vmul.f32 %v19097_v10, %v6625_v53  ;;  %v6597_v2 = vmul.f32 %v19083_v60, %v6445_v25  ;;  %v6624_v61 = vsel %vm6559_vm13, %v6420_v50, %v6592_v1  ;;  %v6627_v11 = vsel %vm6562_vm0, %v6435_v52, %v6595_v63  ;;  %vm22670_vm6 = vmmov %vm22652_vm1 }
 0x504   : > { %6703 = vadd.xlane.f32.xlu1 %v6702_v9  ;;  %vm6561_vm7 = vcmp.ge.f32.partialorder %v6430_v39, 0.0  ;;  %vm6564_vm9 = vcmp.ge.f32.partialorder %v6445_v25, 0.0  ;;  %v6450_v34 = vadd.f32 %v19070_v16, %v19078_v5  ;;  %v6596_v32 = vmul.f32 %v19083_v60, %v6440_v51 }
 0x505   : > { %v19107_v7 = vpop.f32.mrb[66].mxu1  ;;  %6697 = vadd.xlane.f32.xlu0 %v6696_v31  ;;  %v6465_v47 = vadd.f32 %v6464_v27, %v19078_v5  ;;  %v6699_v38 = vsel %vm22664_vm10, %v6661_v54, 0.0  ;;  %v6708_v4 = vsel %vm22665_vm3, %v6664_v48, 0.0  ;;  %v6663_v21 = vmul.f32 %v19097_v10, %v6624_v61  ;;  %vm22671_vm10 = vmmov %vm22652_vm1 }
 0x506   : > { %v6474_v42 = vpop.f32.mrb[67].mxu1  ;;  %v6666_v13 = vmul.f32 %v19097_v10, %v6627_v11  ;;  %v6599_v58 = vmul.f32 %v19083_v60, %v6455_v44  ;;  %v6626_v45 = vsel %vm6561_vm7, %v6430_v39, %v6594_v28  ;;  %v6629_v49 = vsel %vm6564_vm9, %v6445_v25, %v6597_v2  ;;  %vm22672_vm3 = vmmov %vm22652_vm1 }
 0x507   : > { %vm6563_vm4 = vcmp.ge.f32.partialorder %v6440_v51, 0.0  ;;  %vm6566_vm8 = vcmp.ge.f32.partialorder %v6455_v44, 0.0  ;;  %v6460_v16 = vadd.f32 %v19072_v17, %v19078_v5  ;;  %vm6565_vm15 = vcmp.ge.f32.partialorder %v6450_v34, 0.0 }
 0x508   : > { %6709 = vadd.xlane.f32.xlu1 %v6708_v4  ;;  %v6598_v22 = vmul.f32 %v19083_v60, %v6450_v34  ;;  %v6601_v41 = vmul.f32 %v19083_v60, %v6465_v47  ;;  %v6705_v27 = vsel %vm22666_vm2, %v6663_v21, 0.0  ;;  %v6714_v26 = vsel %vm22667_vm14, %v6666_v13, 0.0  ;;  %vm22674_vm2 = vmmov %vm22652_vm1 }
 0x509   : > { %6700 = vadd.xlane.f32.xlu0 %v6699_v38  ;;  %v6665_v59 = vmul.f32 %v19097_v10, %v6626_v45  ;;  %v6668_v37 = vmul.f32 %v19097_v10, %v6629_v49  ;;  %v6475_v20 = vadd.f32 %v6474_v42, %v19078_v5  ;;  %v6628_v17 = vsel %vm6563_vm4, %v6440_v51, %v6596_v32 }
 0x50a   : > { %v6631_v12 = vsel %vm6566_vm8, %v6455_v44, %v6599_v58  ;;  %vm6568_vm5 = vcmp.ge.f32.partialorder %v6465_v47, 0.0  ;;  %v6470_v23 = vadd.f32 %v19080_v6, %v19078_v5  ;;  %v6600_v56 = vmul.f32 %v19083_v60, %v6460_v16 }
 0x50b   : > { %v6630_v40 = vsel %vm6565_vm15, %v6450_v34, %v6598_v22  ;;  %v6711_v8 = vsel %vm22668_vm11, %v6665_v59, 0.0  ;;  %v6720_v50 = vsel %vm22652_vm1, %v6668_v37, 0.0  ;;  %v6667_v52 = vmul.f32 %v19097_v10, %v6628_v17  ;;  %vm22673_vm15 = vmmov %vm22652_vm1 }
 0x50c   : > { %6715 = vadd.xlane.f32.xlu1 %v6714_v26  ;;  %v6670_v29 = vmul.f32 %v19097_v10, %v6631_v12  ;;  %vm6567_vm13 = vcmp.ge.f32.partialorder %v6460_v16, 0.0  ;;  %v6603_v43 = vmul.f32 %v19083_v60, %v6475_v20  ;;  %v6633_v6 = vsel %vm6568_vm5, %v6465_v47, %v6601_v41  ;;  %vm22675_vm5 = vmmov %vm22652_vm1 }
 0x50d   : > { %6706 = vadd.xlane.f32.xlu0 %v6705_v27  ;;  %vm6570_vm0 = vcmp.ge.f32.partialorder %v6475_v20, 0.0  ;;  %v6602_v33 = vmul.f32 %v19083_v60, %v6470_v23  ;;  %v6480_v14 = vadd.f32 %v19107_v7, %v19078_v5  ;;  %v6669_v0 = vmul.f32 %v19097_v10, %v6630_v40  ;;  %vm22676_vm11 = vmmov %vm22652_vm1 }
 0x50e   : > { %v6717_v36 = vsel %vm22669_vm12, %v6667_v52, 0.0  ;;  %v6726_v46 = vsel %vm22670_vm6, %v6670_v29, 0.0  ;;  %v6672_v39 = vmul.f32 %v19097_v10, %v6633_v6  ;;  %v6632_v25 = vsel %vm6567_vm13, %v6460_v16, %v6600_v56  ;;  %vm22677_vm13 = vmmov %vm22674_vm2 }
 0x50f   : > { %vm6569_vm7 = vcmp.ge.f32.partialorder %v6470_v23, 0.0  ;;  %v6635_v24 = vsel %vm6570_vm0, %v6475_v20, %v6603_v43  ;;  %v6604_v42 = vmul.f32 %v19083_v60, %v6480_v14  ;;  %v6671_v7 = vmul.f32 %v19097_v10, %v6632_v25  ;;  %vm22678_vm0 = vmmov %vm22674_vm2 }
 0x510   : > { %6721 = vadd.xlane.f32.xlu1 %v6720_v50  ;;  %v6723_v35 = vsel %vm22671_vm10, %v6669_v0, 0.0  ;;  %v6732_v1 = vsel %vm22672_vm3, %v6672_v39, 0.0  ;;  %v6674_v3 = vmul.f32 %v19097_v10, %v6635_v24  ;;  %v6634_v53 = vsel %vm6569_vm7, %v6470_v23, %v6602_v33  ;;  %vm22679_vm7 = vmmov %vm22678_vm0 }
 0x511   : > { %v10731_v57 = vpop.f32.mrb[68].mxu1  ;;  %6712 = vadd.xlane.f32.xlu0 %v6711_v8  ;;  %vm6571_vm4 = vcmp.ge.f32.partialorder %v6480_v14, 0.0  ;;  %v6729_v9 = vsel %vm22673_vm15, %v6671_v7, 0.0  ;;  %v6673_v48 = vmul.f32 %v19097_v10, %v6634_v53  ;;  %v12372_v27 = vmov 0   ;;  %vm22681_vm10 = vmmov %vm22678_vm0 }
 0x512   : > { %v6484_v30 = vpop.f32.mrb[69].mxu1  ;;  %v6490_v51 = vadd.f32 %v10731_v57, %v19078_v5  ;;  %v6738_v54 = vsel %vm22674_vm2, %v6674_v3, 0.0  ;;  %v6636_v61 = vsel %vm6571_vm4, %v6480_v14, %v6604_v42  ;;  %12328 = vset.pattern.permute.xlu0 %v12372_v27  ;;  %12327 = vset.pattern.permute.xlu1 %v12372_v27  ;;  %vm22682_vm3 = vmmov %vm22678_vm0 }
 0x513   : > { %v6485_v15 = vadd.f32 %v6484_v30, %v19078_v5  ;;  %v6735_v38 = vsel %vm22675_vm5, %v6673_v48, 0.0  ;;  %v6675_v21 = vmul.f32 %v19097_v10, %v6636_v61  ;;  %vm22683_vm15 = vmmov %vm22678_vm0 }
 0x514   : > { %6727 = vadd.xlane.f32.xlu1 %v6726_v46  ;;  %v6606_v11 = vmul.f32 %v19083_v60, %v6490_v51  ;;  %vm6573_vm14 = vcmp.ge.f32.partialorder %v6490_v51, 0.0  ;;  %vm22684_vm2 = vmmov %vm22678_vm0 }
 0x515   : > { %v6605_v62 = vmul.f32 %v19083_v60, %v6485_v15  ;;  %6718 = vadd.xlane.f32.xlu0 %v6717_v36  ;;  %vm6572_vm9 = vcmp.ge.f32.partialorder %v6485_v15, 0.0  ;;  %v6741_v16 = vsel %vm22678_vm0, %v6675_v21, 0.0 }
 0x516   : > { %v6638_v58 = vsel %vm6573_vm14, %v6490_v51, %v6606_v11 }
 0x517   : > { %v6637_v28 = vsel %vm6572_vm9, %v6485_v15, %v6605_v62  ;;  %v6677_v57 = vmul.f32 %v19097_v10, %v6638_v58  ;;  %vm22680_vm9 = vmmov %vm22678_vm0 }
 0x518   : > { %6733 = vadd.xlane.f32.xlu1 %v6732_v1  ;;  %v6676_v2 = vmul.f32 %v19097_v10, %v6637_v28 }
 0x519   : > { %6724 = vadd.xlane.f32.xlu0 %v6723_v35  ;;  %v6747_v20 = vsel %vm22679_vm7, %v6677_v57, 0.0 }
 0x51a   : > { %v6744_v4 = vsel %vm22676_vm11, %v6676_v2, 0.0  ;;  %vm22685_vm11 = vmmov %vm22678_vm0 }
 0x51c   : > { %6739 = vadd.xlane.f32.xlu1 %v6738_v54 }
 0x51d   : > { %v10734_v19 = vpop.f32.mrb[70].mxu1  ;;  %6730 = vadd.xlane.f32.xlu0 %v6729_v9 }
 0x51e   : > { %v6494_v63 = vpop.f32.mrb[71].mxu1  ;;  %v6500_v34 = vadd.f32 %v10734_v19, %v19078_v5 }
 0x51f   : > { %v6495_v44 = vadd.f32 %v6494_v63, %v19078_v5 }
 0x520   : > { %v6608_v13 = vmul.f32 %v19083_v60, %v6500_v34  ;;  %6745 = vadd.xlane.f32.xlu1 %v6744_v4  ;;  %vm6575_vm1 = vcmp.ge.f32.partialorder %v6500_v34, 0.0 }
 0x521   : > { %vm6574_vm8 = vcmp.ge.f32.partialorder %v6495_v44, 0.0  ;;  %v6607_v31 = vmul.f32 %v19083_v60, %v6495_v44  ;;  %6736 = vadd.xlane.f32.xlu0 %v6735_v38 }
 0x522   : > { %v6640_v30 = vsel %vm6575_vm1, %v6500_v34, %v6608_v13  ;;  %vm22686_vm1 = vmmov %vm22678_vm0 }
 0x523   : > { %v6639_v32 = vsel %vm6574_vm8, %v6495_v44, %v6607_v31  ;;  %v6679_v17 = vmul.f32 %v19097_v10, %v6640_v30 }
 0x524   : > { %v6678_v47 = vmul.f32 %v19097_v10, %v6639_v32 }
 0x525   : > { %6742 = vadd.xlane.f32.xlu0 %v6741_v16  ;;  %v6753_v40 = vsel %vm22680_vm9, %v6679_v17, 0.0 }
 0x526   : > { %v6750_v45 = vsel %vm22677_vm13, %v6678_v47, 0.0 }
 0x527   : > { %6751 = vadd.xlane.f32.xlu1 %v6750_v45 }
 0x529   : > { %v10737_v49 = vpop.f32.mrb[72].mxu1  ;;  %6748 = vadd.xlane.f32.xlu0 %v6747_v20  ;;  %v19227_v20 = vstv %s10108_s25 }
 0x52a   : > { %v6510_v22 = vadd.f32 %v10737_v49, %v19078_v5  ;;  %v6504_v41 = vpop.f32.mrb[73].mxu1 }
 0x52b   : > { %v6505_v26 = vadd.f32 %v6504_v41, %v19078_v5 }
 0x52c   : > { %vm6577_vm12 = vcmp.ge.f32.partialorder %v6510_v22, 0.0  ;;  %v6610_v59 = vmul.f32 %v19083_v60, %v6510_v22 }
 0x52d   : > { %vm6576_vm6 = vcmp.ge.f32.partialorder %v6505_v26, 0.0  ;;  %v6609_v37 = vmul.f32 %v19083_v60, %v6505_v26  ;;  %6754 = vadd.xlane.f32.xlu0 %v6753_v40 }
 0x52e   : > { %v6642_v23 = vsel %vm6577_vm12, %v6510_v22, %v6610_v59  ;;  %vm22687_vm12 = vmmov %vm22686_vm1 }
 0x52f   : > { %v6641_v12 = vsel %vm6576_vm6, %v6505_v26, %v6609_v37  ;;  %v6681_v50 = vmul.f32 %v19097_v10, %v6642_v23  ;;  %vm22688_vm6 = vmmov %vm22686_vm1  ;;  %v19225_v37 = vstv %s10107_s23 }
 0x530   : > { %v6680_v56 = vmul.f32 %v19097_v10, %v6641_v12 }
 0x531   : > { %v6759_v29 = vsel %vm22682_vm3, %v6681_v50, 0.0  ;;  %vm22690_vm3 = vmmov %vm22686_vm1 }
 0x532   : > { %v6756_v8 = vsel %vm22681_vm10, %v6680_v56, 0.0  ;;  %6760 = vadd.xlane.f32.xlu0 %v6759_v29  ;;  %vm22689_vm10 = vmmov %vm22686_vm1  ;;  %v19232_v56 = vsub.s32 4, %v22444_v55  ;;  %v19237_v29 = vsub.s32 5, %v22444_v55 }
 0x533   : > { %6757 = vadd.xlane.f32.xlu1 %v6756_v8 }
 0x535   : > { %v10740_v52 = vpop.f32.mrb[74].mxu1 }
 0x536   : > { %v6520_v43 = vadd.f32 %v10740_v52, %v19078_v5  ;;  %v6514_v15 = vpop.f32.mrb[75].mxu1 }
 0x537   : > { %v6515_v6 = vadd.f32 %v6514_v15, %v19078_v5  ;;  %v19243_v15 = vsub.s32 7, %v22444_v55 }
 0x538   : > { %vm6579_vm4 = vcmp.ge.f32.partialorder %v6520_v43, 0.0  ;;  %v6612_v33 = vmul.f32 %v19083_v60, %v6520_v43 }
 0x539   : > { %vm6578_vm8 = vcmp.ge.f32.partialorder %v6515_v6, 0.0  ;;  %v6611_v14 = vmul.f32 %v19083_v60, %v6515_v6 }
 0x53a   : > { %v6644_v0 = vsel %vm6579_vm4, %v6520_v43, %v6612_v33  ;;  %v19240_v43 = vsub.s32 6, %v22444_v55 }
 0x53b   : > { %v6683_v36 = vmul.f32 %v19097_v10, %v6644_v0  ;;  %v6643_v46 = vsel %vm6578_vm8, %v6515_v6, %v6611_v14 }
 0x53c   : > { %v6682_v39 = vmul.f32 %v19097_v10, %v6643_v46 }
 0x53d   : > { %v6765_v25 = vsel %vm22683_vm15, %v6683_v36, 0.0 }
 0x53e   : > { %6766 = vadd.xlane.f32.xlu0 %v6765_v25  ;;  %v6762_v62 = vsel %vm22684_vm2, %v6682_v39, 0.0  ;;  %v22691_v39 = vld [vmem:[#allocation131_spill] sm:$0xff] }
 0x53f   : > { %6763 = vadd.xlane.f32.xlu1 %v6762_v62  ;;  %v22692_v62 = vld [vmem:[#allocation80_spill] sm:$0xff] }
 0x541   : > { %v10743_v24 = vpop.f32.mrb[76].mxu1 }
 0x542   : > { %v6530_v42 = vadd.f32 %v10743_v24, %v19078_v5  ;;  %v6524_v19 = vpop.f32.mrb[77].mxu1 }
 0x543   : > { %v6525_v7 = vadd.f32 %v6524_v19, %v19078_v5 }
 0x544   : > { %vm6581_vm14 = vcmp.ge.f32.partialorder %v6530_v42, 0.0  ;;  %v6614_v35 = vmul.f32 %v19083_v60, %v6530_v42 }
 0x545   : > { %vm6580_vm5 = vcmp.ge.f32.partialorder %v6525_v7, 0.0  ;;  %v6613_v1 = vmul.f32 %v19083_v60, %v6525_v7 }
 0x546   : > { %v6646_v63 = vsel %vm6581_vm14, %v6530_v42, %v6614_v35  ;;  %v22693_v42 = vld [vmem:[#allocation25_spill] sm:$0xff] }
 0x547   : > { %v6685_v3 = vmul.f32 %v19097_v10, %v6646_v63  ;;  %v6645_v53 = vsel %vm6580_vm5, %v6525_v7, %v6613_v1 }
 0x548   : > { %v6684_v51 = vmul.f32 %v19097_v10, %v6645_v53 }
 0x549   : > { %v6771_v44 = vsel %vm22685_vm11, %v6685_v3, 0.0 }
 0x54a   : > { %6772 = vadd.xlane.f32.xlu0 %v6771_v44  ;;  %v6768_v28 = vsel %vm22686_vm1, %v6684_v51, 0.0 }
 0x54b   : > { %6769 = vadd.xlane.f32.xlu1 %v6768_v28 }
 0x54d   : > { %v10746_v31 = vpop.f32.mrb[78].mxu1 }
 0x54e   : > { %v6540_v9 = vadd.f32 %v10746_v31, %v19078_v5  ;;  %v6534_v54 = vpop.f32.mrb[79].mxu1 }
 0x54f   : > { %v6535_v48 = vadd.f32 %v6534_v54, %v19078_v5 }
 0x550   : > { %vm6583_vm13 = vcmp.ge.f32.partialorder %v6540_v9, 0.0  ;;  %v6616_v2 = vmul.f32 %v19083_v60, %v6540_v9 }
 0x551   : > { %vm6582_vm0 = vcmp.ge.f32.partialorder %v6535_v48, 0.0  ;;  %v6615_v61 = vmul.f32 %v19083_v60, %v6535_v48 }
 0x552   : > { %v6648_v11 = vsel %vm6583_vm13, %v6540_v9, %v6616_v2 }
 0x553   : > { %v6687_v34 = vmul.f32 %v19097_v10, %v6648_v11  ;;  %v6647_v32 = vsel %vm6582_vm0, %v6535_v48, %v6615_v61 }
 0x554   : > { %v6686_v47 = vmul.f32 %v19097_v10, %v6647_v32 }
 0x555   : > { %v6777_v38 = vsel %vm22687_vm12, %v6687_v34, 0.0 }
 0x556   : > { %6778 = vadd.xlane.f32.xlu0 %v6777_v38  ;;  %v6774_v4 = vsel %vm22688_vm6, %v6686_v47, 0.0 }
 0x557   : > { %6775 = vadd.xlane.f32.xlu1 %v6774_v4 }
 0x559   : > { %v10749_v21 = vpop.f32.mrb[80].mxu1 }
 0x55a   : > { %v6550_v13 = vadd.f32 %v10749_v21, %v19078_v5  ;;  %v6544_v58 = vpop.f32.mrb[81].mxu1 }
 0x55b   : > { %v6545_v45 = vadd.f32 %v6544_v58, %v19078_v5  ;;  %v12373_v5 = vmov 1966171168  }
 0x55c   : > { %vm6585_vm7 = vcmp.ge.f32.partialorder %v6550_v13, 0.0  ;;  %v6618_v49 = vmul.f32 %v19083_v60, %v6550_v13  ;;  %v7979_v59 = vunpack.c.l.s4 %v12373_v5 }
 0x55d   : > { %vm6584_vm9 = vcmp.ge.f32.partialorder %v6545_v45, 0.0  ;;  %v6617_v16 = vmul.f32 %v19083_v60, %v6545_v45 }
 0x55e   : > { %v6650_v22 = vsel %vm6585_vm7, %v6550_v13, %v6618_v49  ;;  %v7980_v12 = vunpack.c.0.s8 %v7979_v59 }
 0x55f   : > { %v6689_v41 = vmul.f32 %v19097_v10, %v6650_v22  ;;  %v6649_v57 = vsel %vm6584_vm9, %v6545_v45, %v6617_v16 }
 0x560   : > { %v6688_v27 = vmul.f32 %v19097_v10, %v6649_v57  ;;  %v19246_v6 = vsub.s32 %v7980_v12, %v22444_v55 }
 0x561   : > { %v6783_v26 = vsel %vm22689_vm10, %v6689_v41, 0.0 }
 0x562   : > { %6784 = vadd.xlane.f32.xlu0 %v6783_v26  ;;  %v6780_v30 = vsel %vm22690_vm3, %v6688_v27, 0.0 }
 0x563   : > { %6781 = vadd.xlane.f32.xlu1 %v6780_v30 }
 0x58d   : > { %v6695_v60 = vpop.xlane.xlu1 %6694 }
 0x58e   : > { %v6692_v17 = vpop.xlane.xlu0 %6691  ;;  %v6789_v23 = vadd.f32 %v19225_v37, %v6695_v60 }
 0x58f   : > { %v6788_v10 = vadd.f32 %v19225_v37, %v6692_v17 }
 0x590   : > { %vm6822_vm4 = vcmp.ge.f32.partialorder %v6789_v23, 0.0  ;;  %v6855_v40 = vmul.f32 %v19227_v20, %v6789_v23 }
 0x591   : > { %vm6821_vm8 = vcmp.ge.f32.partialorder %v6788_v10, 0.0  ;;  %v6854_v8 = vmul.f32 %v19227_v20, %v6788_v10  ;;  %v6704_v50 = vpop.xlane.xlu1 %6703 }
 0x592   : > { %v6698_v52 = vpop.xlane.xlu0 %6697  ;;  %v6887_v33 = vsel %vm6822_vm4, %v6789_v23, %v6855_v40  ;;  %v6792_v0 = vadd.f32 %v19225_v37, %v6704_v50 }
 0x593   : > { %v19248_v14 = vsel %vm6821_vm8, %v6788_v10, %v6854_v8  ;;  %v6790_v36 = vadd.f32 %v19225_v37, %v6698_v52  ;;  %v6985_v46 = vrot.slane %v6887_v33, %v18668_v18  ;;  %v6989_v25 = vrot.slane %v6887_v33, %v22691_v39 }
 0x594   : > { %v6993_v24 = vrot.slane %v6887_v33, %v22692_v62  ;;  %v6997_v19 = vrot.slane %v6887_v33, %v22693_v42  ;;  %vm6825_vm15 = vcmp.ge.f32.partialorder %v6792_v0, 0.0  ;;  %v6858_v7 = vmul.f32 %v19227_v20, %v6792_v0 }
 0x595   : > { %vm6823_vm2 = vcmp.ge.f32.partialorder %v6790_v36, 0.0  ;;  %v6856_v35 = vmul.f32 %v19227_v20, %v6790_v36  ;;  %v6710_v1 = vpop.xlane.xlu1 %6709  ;;  %v7001_v3 = vrot.slane %v6887_v33, %v19232_v56  ;;  %v7005_v53 = vrot.slane %v6887_v33, %v19237_v29 }
 0x596   : > { %v6701_v63 = vpop.xlane.xlu0 %6700  ;;  %v7009_v51 = vrot.slane %v6887_v33, %v19240_v43  ;;  %v7013_v44 = vrot.slane %v6887_v33, %v19243_v15  ;;  %v19262_v28 = vsel %vm6825_vm15, %v6792_v0, %v6858_v7  ;;  %v6794_v9 = vadd.f32 %v19225_v37, %v6710_v1 }
 0x597   : > { %v19264_v31 = vsel %vm6823_vm2, %v6790_v36, %v6856_v35  ;;  %v6791_v54 = vadd.f32 %v19225_v37, %v6701_v63  ;;  %v8023_v48 = vcombine.low %v6985_v46, %v6989_v25  ;;  %v8024_v2 = vcombine.low %v6993_v24, %v6997_v19 }
 0x598   : > { %v8025_v61 = vcombine.low %v7001_v3, %v7005_v53  ;;  %v8026_v11 = vcombine.low %v7009_v51, %v7013_v44  ;;  %vm6827_vm14 = vcmp.ge.f32.partialorder %v6794_v9, 0.0  ;;  %v6860_v34 = vmul.f32 %v19227_v20, %v6794_v9 }
 0x599   : > { %vm6824_vm5 = vcmp.ge.f32.partialorder %v6791_v54, 0.0  ;;  %v6857_v32 = vmul.f32 %v19227_v20, %v6791_v54  ;;  %v6716_v47 = vpop.xlane.xlu1 %6715  ;;  %v8033_v4 = vrot.slane %v8023_v48, %v19246_v6  ;;  %v8040_v21 = vrot.slane %v8024_v2, %v19246_v6 }
 0x59a   : > { %v6707_v38 = vpop.xlane.xlu0 %6706  ;;  %v8047_v13 = vrot.slane %v8025_v61, %v19246_v6  ;;  %v8054_v58 = vrot.slane %v8026_v11, %v19246_v6  ;;  %v19274_v45 = vsel %vm6827_vm14, %v6794_v9, %v6860_v34  ;;  %v6796_v16 = vadd.f32 %v19225_v37, %v6716_v47 }
 0x59b   : > { %v19276_v49 = vsel %vm6824_vm5, %v6791_v54, %v6857_v32  ;;  %v6793_v22 = vadd.f32 %v19225_v37, %v6707_v38  ;;  %v8055_v41 = vcombine.low %v8033_v4, %v8040_v21  ;;  %v6953_v27 = vrot.slane %v19248_v14, %v18668_v18 }
 0x59c   : > { %v8056_v57 = vcombine.low %v8047_v13, %v8054_v58  ;;  %v6957_v26 = vrot.slane %v19248_v14, %v22691_v39  ;;  %vm6829_vm11 = vcmp.ge.f32.partialorder %v6796_v16, 0.0  ;;  %v6862_v30 = vmul.f32 %v19227_v20, %v6796_v16 }
 0x59d   : > { %vm6826_vm1 = vcmp.ge.f32.partialorder %v6793_v22, 0.0  ;;  %v6859_v5 = vmul.f32 %v19227_v20, %v6793_v22  ;;  %v6722_v59 = vpop.xlane.xlu1 %6721  ;;  %v8063_v17 = vrot.slane %v8055_v41, %v19246_v6  ;;  %v6961_v23 = vrot.slane %v19248_v14, %v22692_v62 }
 0x59e   : > { %v6713_v60 = vpop.xlane.xlu0 %6712  ;;  %v8070_v12 = vrot.slane %v8056_v57, %v19246_v6  ;;  %v6965_v10 = vrot.slane %v19248_v14, %v22693_v42  ;;  %v19292_v40 = vsel %vm6829_vm11, %v6796_v16, %v6862_v30  ;;  %v6798_v50 = vadd.f32 %v19225_v37, %v6722_v59 }
 0x59f   : > { %v19294_v8 = vsel %vm6826_vm1, %v6793_v22, %v6859_v5  ;;  %v6795_v52 = vadd.f32 %v19225_v37, %v6713_v60  ;;  %v6969_v0 = vrot.slane %v19248_v14, %v19232_v56  ;;  %v6973_v36 = vrot.slane %v19248_v14, %v19237_v29 }
 0x5a0   : > { %v8071_v33 = vcombine.low %v8063_v17, %v8070_v12  ;;  %v6977_v46 = vrot.slane %v19248_v14, %v19240_v43  ;;  %vm6831_vm13 = vcmp.ge.f32.partialorder %v6798_v50, 0.0  ;;  %v6864_v25 = vmul.f32 %v19227_v20, %v6798_v50 }
 0x5a1   : > { %vm6828_vm0 = vcmp.ge.f32.partialorder %v6795_v52, 0.0  ;;  %v6861_v24 = vmul.f32 %v19227_v20, %v6795_v52  ;;  %v6981_v19 = vrot.slane %v19248_v14, %v19243_v15  ;;  %v7974_v7 = vcombine.low %v6953_v27, %v6957_v26  ;;  %v6728_v63 = vpop.xlane.xlu1 %6727 }
 0x5a2   : > { %9546 = vperm.xlu0 %12328, %v8071_v33   ;;  %v7975_v35 = vcombine.low %v6961_v23, %v6965_v10  ;;  %v7976_v1 = vcombine.low %v6969_v0, %v6973_v36  ;;  %v6719_v3 = vpop.xlane.xlu0 %6718  ;;  %v19308_v53 = vsel %vm6831_vm13, %v6798_v50, %v6864_v25  ;;  %v6800_v44 = vadd.f32 %v19225_v37, %v6728_v63 }
 0x5a3   : > { %v19310_v51 = vsel %vm6828_vm0, %v6795_v52, %v6861_v24  ;;  %v6797_v9 = vadd.f32 %v19225_v37, %v6719_v3  ;;  %v7977_v54 = vcombine.low %v6977_v46, %v6981_v19  ;;  %v7984_v48 = vrot.slane %v7974_v7, %v19246_v6 }
 0x5a4   : > { %v7991_v2 = vrot.slane %v7975_v35, %v19246_v6  ;;  %v7998_v14 = vrot.slane %v7976_v1, %v19246_v6  ;;  %vm6833_vm12 = vcmp.ge.f32.partialorder %v6800_v44, 0.0  ;;  %v6866_v61 = vmul.f32 %v19227_v20, %v6800_v44 }
 0x5a5   : > { %vm6830_vm6 = vcmp.ge.f32.partialorder %v6797_v9, 0.0  ;;  %v6863_v11 = vmul.f32 %v19227_v20, %v6797_v9  ;;  %v8005_v34 = vrot.slane %v7977_v54, %v19246_v6  ;;  %v7017_v47 = vrot.slane %v19264_v31, %v18668_v18  ;;  %v6734_v16 = vpop.xlane.xlu1 %6733 }
 0x5a6   : > { %v8006_v32 = vcombine.low %v7984_v48, %v7991_v2  ;;  %v7021_v38 = vrot.slane %v19264_v31, %v22691_v39  ;;  %v19324_v4 = vsel %vm6833_vm12, %v6800_v44, %v6866_v61  ;;  %v7025_v13 = vrot.slane %v19264_v31, %v22692_v62  ;;  %v6725_v22 = vpop.xlane.xlu0 %6724 }
 0x5a7   : > { %v19326_v21 = vsel %vm6830_vm6, %v6797_v9, %v6863_v11  ;;  %v7029_v58 = vrot.slane %v19264_v31, %v22693_v42  ;;  %v8007_v41 = vcombine.low %v7998_v14, %v8005_v34  ;;  %v7033_v27 = vrot.slane %v19264_v31, %v19232_v56 }
 0x5a8   : > { %v8014_v57 = vrot.slane %v8006_v32, %v19246_v6  ;;  %v7037_v26 = vrot.slane %v19264_v31, %v19237_v29  ;;  %v7041_v30 = vrot.slane %v19264_v31, %v19240_v43  ;;  %v7045_v5 = vrot.slane %v19264_v31, %v19243_v15 }
 0x5a9   : > { %v8072_v59 = vcombine.low %v7017_v47, %v7021_v38  ;;  %v8073_v60 = vcombine.low %v7025_v13, %v7029_v58  ;;  %v8021_v17 = vrot.slane %v8007_v41, %v19246_v6  ;;  %v6802_v23 = vadd.f32 %v19225_v37, %v6734_v16  ;;  %v6740_v3 = vpop.xlane.xlu1 %6739 }
 0x5aa   : > { %v8074_v12 = vcombine.low %v7033_v27, %v7037_v26  ;;  %v6799_v10 = vadd.f32 %v19225_v37, %v6725_v22  ;;  %v8075_v50 = vcombine.low %v7041_v30, %v7045_v5  ;;  %v7049_v0 = vrot.slane %v19276_v49, %v18668_v18  ;;  %v6731_v44 = vpop.xlane.xlu0 %6730 }
 0x5ab   : > { %v8082_v52 = vrot.slane %v8072_v59, %v19246_v6  ;;  %v8089_v33 = vrot.slane %v8073_v60, %v19246_v6  ;;  %v8022_v36 = vcombine.low %v8014_v57, %v8021_v17  ;;  %vm6835_vm7 = vcmp.ge.f32.partialorder %v6802_v23, 0.0 }
 0x5ac   : > { %v8096_v31 = vrot.slane %v8074_v12, %v19246_v6  ;;  %v6868_v46 = vmul.f32 %v19227_v20, %v6802_v23  ;;  %v8103_v25 = vrot.slane %v8075_v50, %v19246_v6  ;;  %vm6832_vm9 = vcmp.ge.f32.partialorder %v6799_v10, 0.0 }
 0x5ad   : > { %v8104_v24 = vcombine.low %v8082_v52, %v8089_v33  ;;  %v6865_v19 = vmul.f32 %v19227_v20, %v6799_v10  ;;  %9543 = vperm.xlu1 %12327, %v8022_v36   ;;  %v7053_v35 = vrot.slane %v19276_v49, %v22691_v39  ;;  %v7057_v1 = vrot.slane %v19276_v49, %v22692_v62 }
 0x5ae   : > { %v19352_v7 = vsel %vm6835_vm7, %v6802_v23, %v6868_v46  ;;  %v7061_v63 = vrot.slane %v19276_v49, %v22693_v42  ;;  %v8105_v9 = vcombine.low %v8096_v31, %v8103_v25  ;;  %v7065_v2 = vrot.slane %v19276_v49, %v19232_v56  ;;  %v6746_v23 = vpop.xlane.xlu1 %6745 }
 0x5af   : > { %v8112_v54 = vrot.slane %v8104_v24, %v19246_v6  ;;  %v19361_v48 = vsel %vm6832_vm9, %v6799_v10, %v6865_v19  ;;  %v7069_v14 = vrot.slane %v19276_v49, %v19237_v29  ;;  %v7073_v61 = vrot.slane %v19276_v49, %v19240_v43 }
 0x5b0   : > { %v7077_v11 = vrot.slane %v19276_v49, %v19243_v15  ;;  %v8121_v34 = vcombine.low %v7049_v0, %v7053_v35  ;;  %v8119_v32 = vrot.slane %v8105_v9, %v19246_v6  ;;  %v8122_v47 = vcombine.low %v7057_v1, %v7061_v63  ;;  %v6737_v0 = vpop.xlane.xlu0 %6736 }
 0x5b1   : > { %v6804_v38 = vadd.f32 %v19225_v37, %v6740_v3  ;;  %v6801_v13 = vadd.f32 %v19225_v37, %v6731_v44  ;;  %v8123_v58 = vcombine.low %v7065_v2, %v7069_v14  ;;  %v7081_v41 = vrot.slane %v19262_v28, %v18668_v18 }
 0x5b2   : > { %v8124_v16 = vcombine.low %v7073_v61, %v7077_v11  ;;  %v8131_v22 = vrot.slane %v8121_v34, %v19246_v6  ;;  %v8120_v57 = vcombine.low %v8112_v54, %v8119_v32  ;;  %v8138_v27 = vrot.slane %v8122_v47, %v19246_v6 }
 0x5b3   : > { %vm6837_vm10 = vcmp.ge.f32.partialorder %v6804_v38, 0.0  ;;  %v6870_v49 = vmul.f32 %v19227_v20, %v6804_v38  ;;  %v8145_v26 = vrot.slane %v8123_v58, %v19246_v6  ;;  %vm6834_vm3 = vcmp.ge.f32.partialorder %v6801_v13, 0.0 }
 0x5b4   : > { %v8152_v30 = vrot.slane %v8124_v16, %v19246_v6  ;;  %v6867_v5 = vmul.f32 %v19227_v20, %v6801_v13  ;;  %9549 = vperm.xlu1 %12327, %v8120_v57   ;;  %v8153_v59 = vcombine.low %v8131_v22, %v8138_v27  ;;  %v7085_v17 = vrot.slane %v19262_v28, %v22691_v39  ;;  %v6743_v57 = vpop.xlane.xlu0 %6742 }
 0x5b5   : > { %v19382_v60 = vsel %vm6837_vm10, %v6804_v38, %v6870_v49  ;;  %v7089_v12 = vrot.slane %v19262_v28, %v22692_v62  ;;  %v7093_v52 = vrot.slane %v19262_v28, %v22693_v42  ;;  %v7097_v33 = vrot.slane %v19262_v28, %v19232_v56 }
 0x5b6   : > { %v8154_v10 = vcombine.low %v8145_v26, %v8152_v30  ;;  %v19388_v50 = vsel %vm6834_vm3, %v6801_v13, %v6867_v5  ;;  %v8161_v36 = vrot.slane %v8153_v59, %v19246_v6  ;;  %v7101_v31 = vrot.slane %v19262_v28, %v19237_v29 }
 0x5b7   : > { %v7105_v46 = vrot.slane %v19262_v28, %v19240_v43  ;;  %v7109_v25 = vrot.slane %v19262_v28, %v19243_v15  ;;  %v8170_v19 = vcombine.low %v7081_v41, %v7085_v17  ;;  %v8171_v35 = vcombine.low %v7089_v12, %v7093_v52  ;;  %v6752_v41 = vpop.xlane.xlu1 %6751 }
 0x5b8   : > { %v8168_v24 = vrot.slane %v8154_v10, %v19246_v6  ;;  %v6806_v1 = vadd.f32 %v19225_v37, %v6746_v23  ;;  %v8172_v63 = vcombine.low %v7097_v33, %v7101_v31  ;;  %v6803_v44 = vadd.f32 %v19225_v37, %v6737_v0 }
 0x5b9   : > { %v8173_v3 = vcombine.low %v7105_v46, %v7109_v25  ;;  %v7113_v9 = vrot.slane %v19294_v8, %v18668_v18  ;;  %v8180_v2 = vrot.slane %v8170_v19, %v19246_v6  ;;  %v8187_v14 = vrot.slane %v8171_v35, %v19246_v6 }
 0x5ba   : > { %v8169_v54 = vcombine.low %v8161_v36, %v8168_v24  ;;  %vm6839_vm4 = vcmp.ge.f32.partialorder %v6806_v1, 0.0  ;;  %v8194_v28 = vrot.slane %v8172_v63, %v19246_v6  ;;  %v6872_v11 = vmul.f32 %v19227_v20, %v6806_v1 }
 0x5bb   : > { %v8201_v61 = vrot.slane %v8173_v3, %v19246_v6  ;;  %vm6836_vm8 = vcmp.ge.f32.partialorder %v6803_v44, 0.0  ;;  %v8202_v34 = vcombine.low %v8180_v2, %v8187_v14  ;;  %v6869_v32 = vmul.f32 %v19227_v20, %v6803_v44 }
 0x5bc   : > { %9552 = vperm.xlu1 %12327, %v8169_v54   ;;  %v7117_v47 = vrot.slane %v19294_v8, %v22691_v39  ;;  %v7121_v38 = vrot.slane %v19294_v8, %v22692_v62  ;;  %v19416_v58 = vsel %vm6839_vm4, %v6806_v1, %v6872_v11  ;;  %v7125_v16 = vrot.slane %v19294_v8, %v22693_v42  ;;  %v6749_v54 = vpop.xlane.xlu0 %6748 }
 0x5bd   : > { %v8203_v13 = vcombine.low %v8194_v28, %v8201_v61  ;;  %v7129_v22 = vrot.slane %v19294_v8, %v19232_v56  ;;  %v8210_v27 = vrot.slane %v8202_v34, %v19246_v6  ;;  %v19423_v49 = vsel %vm6836_vm8, %v6803_v44, %v6869_v32 }
 0x5be   : > { %v7133_v26 = vrot.slane %v19294_v8, %v19237_v29  ;;  %v7137_v30 = vrot.slane %v19294_v8, %v19240_v43  ;;  %v7141_v59 = vrot.slane %v19294_v8, %v19243_v15  ;;  %v8219_v17 = vcombine.low %v7113_v9, %v7117_v47 }
 0x5bf   : > { %v8217_v5 = vrot.slane %v8203_v13, %v19246_v6  ;;  %v8220_v12 = vcombine.low %v7121_v38, %v7125_v16  ;;  %v6808_v10 = vadd.f32 %v19225_v37, %v6752_v41  ;;  %v6805_v52 = vadd.f32 %v19225_v37, %v6743_v57 }
 0x5c0   : > { %v8221_v23 = vcombine.low %v7129_v22, %v7133_v26  ;;  %v7145_v33 = vrot.slane %v19274_v45, %v18668_v18  ;;  %v8222_v36 = vcombine.low %v7137_v30, %v7141_v59  ;;  %v8229_v31 = vrot.slane %v8219_v17, %v19246_v6 }
 0x5c1   : > { %v8218_v0 = vcombine.low %v8210_v27, %v8217_v5  ;;  %v8236_v46 = vrot.slane %v8220_v12, %v19246_v6  ;;  %vm6841_vm15 = vcmp.ge.f32.partialorder %v6808_v10, 0.0  ;;  %v6874_v8 = vmul.f32 %v19227_v20, %v6808_v10 }
 0x5c2   : > { %v8243_v25 = vrot.slane %v8221_v23, %v19246_v6  ;;  %vm6838_vm2 = vcmp.ge.f32.partialorder %v6805_v52, 0.0  ;;  %v8250_v24 = vrot.slane %v8222_v36, %v19246_v6  ;;  %v6871_v35 = vmul.f32 %v19227_v20, %v6805_v52 }
 0x5c3   : > { %9555 = vperm.xlu1 %12327, %v8218_v0   ;;  %v8251_v19 = vcombine.low %v8229_v31, %v8236_v46  ;;  %v7149_v1 = vrot.slane %v19274_v45, %v22691_v39  ;;  %v19444_v63 = vsel %vm6841_vm15, %v6808_v10, %v6874_v8  ;;  %v7153_v3 = vrot.slane %v19274_v45, %v22692_v62  ;;  %v6755_v10 = vpop.xlane.xlu0 %6754 }
 0x5c4   : > { %v7157_v44 = vrot.slane %v19274_v45, %v22693_v42  ;;  %v7161_v9 = vrot.slane %v19274_v45, %v19232_v56  ;;  %v8252_v2 = vcombine.low %v8243_v25, %v8250_v24  ;;  %v19453_v28 = vsel %vm6838_vm2, %v6805_v52, %v6871_v35 }
 0x5c5   : > { %v8259_v14 = vrot.slane %v8251_v19, %v19246_v6  ;;  %v7165_v61 = vrot.slane %v19274_v45, %v19237_v29  ;;  %v7169_v11 = vrot.slane %v19274_v45, %v19240_v43  ;;  %v7173_v34 = vrot.slane %v19274_v45, %v19243_v15 }
 0x5c6   : > { %v8268_v32 = vcombine.low %v7145_v33, %v7149_v1  ;;  %v8269_v47 = vcombine.low %v7153_v3, %v7157_v44  ;;  %v8266_v38 = vrot.slane %v8252_v2, %v19246_v6  ;;  %v6807_v16 = vadd.f32 %v19225_v37, %v6749_v54 }
 0x5c7   : > { %v8270_v13 = vcombine.low %v7161_v9, %v7165_v61  ;;  %v7177_v22 = vrot.slane %v19310_v51, %v18668_v18  ;;  %v8271_v41 = vcombine.low %v7169_v11, %v7173_v34  ;;  %v7181_v26 = vrot.slane %v19310_v51, %v22691_v39 }
 0x5c8   : > { %v8278_v57 = vrot.slane %v8268_v32, %v19246_v6  ;;  %v8285_v27 = vrot.slane %v8269_v47, %v19246_v6  ;;  %v8267_v30 = vcombine.low %v8259_v14, %v8266_v38  ;;  %vm6840_vm14 = vcmp.ge.f32.partialorder %v6807_v16, 0.0 }
 0x5c9   : > { %v8292_v45 = vrot.slane %v8270_v13, %v19246_v6  ;;  %v6873_v5 = vmul.f32 %v19227_v20, %v6807_v16  ;;  %v8299_v59 = vrot.slane %v8271_v41, %v19246_v6  ;;  %v7185_v12 = vrot.slane %v19310_v51, %v22692_v62 }
 0x5ca   : > { %v8300_v17 = vcombine.low %v8278_v57, %v8285_v27  ;;  %v7189_v23 = vrot.slane %v19310_v51, %v22693_v42  ;;  %9558 = vperm.xlu1 %12327, %v8267_v30   ;;  %v7193_v33 = vrot.slane %v19310_v51, %v19232_v56  ;;  %v7197_v0 = vrot.slane %v19310_v51, %v19237_v29 }
 0x5cb   : > { %v19476_v52 = vsel %vm6840_vm14, %v6807_v16, %v6873_v5  ;;  %v7201_v36 = vrot.slane %v19310_v51, %v19240_v43  ;;  %v8301_v31 = vcombine.low %v8292_v45, %v8299_v59  ;;  %v7205_v25 = vrot.slane %v19310_v51, %v19243_v15 }
 0x5cc   : > { %v8308_v46 = vrot.slane %v8300_v17, %v19246_v6  ;;  %v8317_v8 = vcombine.low %v7177_v22, %v7181_v26  ;;  %v8318_v24 = vcombine.low %v7185_v12, %v7189_v23  ;;  %v8319_v19 = vcombine.low %v7193_v33, %v7197_v0 }
 0x5cd   : > { %v6809_v35 = vadd.f32 %v19225_v37, %v6755_v10  ;;  %v7465_v1 = vrot.slane %v19382_v60, %v18668_v18  ;;  %v8315_v3 = vrot.slane %v8301_v31, %v19246_v6  ;;  %v8320_v44 = vcombine.low %v7201_v36, %v7205_v25  ;;  %v6758_v36 = vpop.xlane.xlu1 %6757 }
 0x5ce   : > { %v8327_v9 = vrot.slane %v8317_v8, %v19246_v6  ;;  %v7469_v54 = vrot.slane %v19382_v60, %v22691_v39  ;;  %v8334_v2 = vrot.slane %v8318_v24, %v19246_v6  ;;  %v8341_v51 = vrot.slane %v8319_v19, %v19246_v6  ;;  %v6761_v24 = vpop.xlane.xlu0 %6760 }
 0x5cf   : > { %vm6842_vm5 = vcmp.ge.f32.partialorder %v6809_v35, 0.0  ;;  %v6875_v14 = vmul.f32 %v19227_v20, %v6809_v35  ;;  %v8316_v61 = vcombine.low %v8308_v46, %v8315_v3  ;;  %v8348_v11 = vrot.slane %v8320_v44, %v19246_v6 }
 0x5d0   : > { %v7473_v34 = vrot.slane %v19382_v60, %v22692_v62  ;;  %v7477_v32 = vrot.slane %v19382_v60, %v22693_v42  ;;  %v8349_v47 = vcombine.low %v8327_v9, %v8334_v2  ;;  %v7481_v13 = vrot.slane %v19382_v60, %v19232_v56 }
 0x5d1   : > { %v19502_v38 = vsel %vm6842_vm5, %v6809_v35, %v6875_v14  ;;  %v7485_v16 = vrot.slane %v19382_v60, %v19237_v29  ;;  %9561 = vperm.xlu1 %12327, %v8316_v61   ;;  %v8350_v22 = vcombine.low %v8341_v51, %v8348_v11  ;;  %v7489_v41 = vrot.slane %v19382_v60, %v19240_v43 }
 0x5d2   : > { %v7493_v57 = vrot.slane %v19382_v60, %v19243_v15  ;;  %v8758_v27 = vcombine.low %v7465_v1, %v7469_v54  ;;  %v8357_v26 = vrot.slane %v8349_v47, %v19246_v6  ;;  %v8759_v30 = vcombine.low %v7473_v34, %v7477_v32 }
 0x5d3   : > { %v8760_v45 = vcombine.low %v7481_v13, %v7485_v16  ;;  %v7209_v5 = vrot.slane %v19292_v40, %v18668_v18  ;;  %v8364_v59 = vrot.slane %v8350_v22, %v19246_v6  ;;  %v7213_v23 = vrot.slane %v19292_v40, %v22691_v39 }
 0x5d4   : > { %v8761_v17 = vcombine.low %v7489_v41, %v7493_v57  ;;  %v8768_v12 = vrot.slane %v8758_v27, %v19246_v6  ;;  %v8775_v10 = vrot.slane %v8759_v30, %v19246_v6  ;;  %v7217_v33 = vrot.slane %v19292_v40, %v22692_v62 }
 0x5d5   : > { %v8782_v60 = vrot.slane %v8760_v45, %v19246_v6  ;;  %v7221_v0 = vrot.slane %v19292_v40, %v22693_v42  ;;  %v8365_v31 = vcombine.low %v8357_v26, %v8364_v59  ;;  %v7225_v25 = vrot.slane %v19292_v40, %v19232_v56 }
 0x5d6   : > { %v8789_v46 = vrot.slane %v8761_v17, %v19246_v6  ;;  %v7229_v8 = vrot.slane %v19292_v40, %v19237_v29  ;;  %v8790_v19 = vcombine.low %v8768_v12, %v8775_v10  ;;  %v7233_v35 = vrot.slane %v19292_v40, %v19240_v43 }
 0x5d7   : > { %v7237_v1 = vrot.slane %v19292_v40, %v19243_v15  ;;  %v8366_v3 = vcombine.low %v7209_v5, %v7213_v23  ;;  %9564 = vperm.xlu1 %12327, %v8365_v31   ;;  %v8367_v9 = vcombine.low %v7217_v33, %v7221_v0  ;;  %v6810_v2 = vadd.f32 %v19225_v37, %v6758_v36 }
 0x5d8   : > { %v8791_v44 = vcombine.low %v8782_v60, %v8789_v46  ;;  %v8368_v54 = vcombine.low %v7225_v25, %v7229_v8  ;;  %v8798_v51 = vrot.slane %v8790_v19, %v19246_v6  ;;  %v6811_v11 = vadd.f32 %v19225_v37, %v6761_v24 }
 0x5d9   : > { %v8369_v14 = vcombine.low %v7233_v35, %v7237_v1  ;;  %v8376_v61 = vrot.slane %v8366_v3, %v19246_v6  ;;  %v8383_v32 = vrot.slane %v8367_v9, %v19246_v6  ;;  %vm6843_vm11 = vcmp.ge.f32.partialorder %v6810_v2, 0.0 }
 0x5da   : > { %v8805_v34 = vrot.slane %v8791_v44, %v19246_v6  ;;  %v8390_v40 = vrot.slane %v8368_v54, %v19246_v6  ;;  %v6876_v13 = vmul.f32 %v19227_v20, %v6810_v2  ;;  %vm6844_vm1 = vcmp.ge.f32.partialorder %v6811_v11, 0.0 }
 0x5db   : > { %v8397_v47 = vrot.slane %v8369_v14, %v19246_v6  ;;  %v6877_v16 = vmul.f32 %v19227_v20, %v6811_v11  ;;  %v8398_v41 = vcombine.low %v8376_v61, %v8383_v32  ;;  %v7529_v57 = vrot.slane %v19416_v58, %v18668_v18 }
 0x5dc   : > { %v8806_v22 = vcombine.low %v8798_v51, %v8805_v34  ;;  %v7533_v27 = vrot.slane %v19416_v58, %v22691_v39  ;;  %v19548_v30 = vsel %vm6843_vm11, %v6810_v2, %v6876_v13  ;;  %v7537_v5 = vrot.slane %v19416_v58, %v22692_v62 }
 0x5dd   : > { %v8399_v26 = vcombine.low %v8390_v40, %v8397_v47  ;;  %v19550_v45 = vsel %vm6844_vm1, %v6811_v11, %v6877_v16  ;;  %v8406_v59 = vrot.slane %v8398_v41, %v19246_v6  ;;  %v7541_v17 = vrot.slane %v19416_v58, %v22693_v42 }
 0x5de   : > { %9591 = vperm.xlu0 %12328, %v8806_v22   ;;  %v7545_v12 = vrot.slane %v19416_v58, %v19232_v56  ;;  %v7549_v23 = vrot.slane %v19416_v58, %v19237_v29  ;;  %v7553_v60 = vrot.slane %v19416_v58, %v19240_v43  ;;  %v7557_v33 = vrot.slane %v19416_v58, %v19243_v15 }
 0x5df   : > { %v8413_v10 = vrot.slane %v8399_v26, %v19246_v6  ;;  %v8856_v0 = vcombine.low %v7529_v57, %v7533_v27  ;;  %v8857_v36 = vcombine.low %v7537_v5, %v7541_v17  ;;  %v7241_v46 = vrot.slane %v19326_v21, %v18668_v18 }
 0x5e0   : > { %v8858_v31 = vcombine.low %v7545_v12, %v7549_v23  ;;  %v7245_v25 = vrot.slane %v19326_v21, %v22691_v39  ;;  %v8859_v24 = vcombine.low %v7553_v60, %v7557_v33  ;;  %v7249_v35 = vrot.slane %v19326_v21, %v22692_v62 }
 0x5e1   : > { %v8414_v8 = vcombine.low %v8406_v59, %v8413_v10  ;;  %v8866_v19 = vrot.slane %v8856_v0, %v19246_v6  ;;  %v8873_v1 = vrot.slane %v8857_v36, %v19246_v6  ;;  %v7253_v3 = vrot.slane %v19326_v21, %v22693_v42 }
 0x5e2   : > { %v8880_v58 = vrot.slane %v8858_v31, %v19246_v6  ;;  %v7257_v44 = vrot.slane %v19326_v21, %v19232_v56  ;;  %v8887_v9 = vrot.slane %v8859_v24, %v19246_v6  ;;  %v7261_v54 = vrot.slane %v19326_v21, %v19237_v29 }
 0x5e3   : > { %9567 = vperm.xlu1 %12327, %v8414_v8   ;;  %v7265_v2 = vrot.slane %v19326_v21, %v19240_v43  ;;  %v7269_v51 = vrot.slane %v19326_v21, %v19243_v15  ;;  %v8888_v14 = vcombine.low %v8866_v19, %v8873_v1  ;;  %v8415_v61 = vcombine.low %v7241_v46, %v7245_v25 }
 0x5e4   : > { %v8416_v11 = vcombine.low %v7249_v35, %v7253_v3  ;;  %v7593_v34 = vrot.slane %v19444_v63, %v18668_v18  ;;  %v8889_v32 = vcombine.low %v8880_v58, %v8887_v9  ;;  %v8417_v40 = vcombine.low %v7257_v44, %v7261_v54 }
 0x5e5   : > { %v8418_v47 = vcombine.low %v7265_v2, %v7269_v51  ;;  %v7597_v13 = vrot.slane %v19444_v63, %v22691_v39  ;;  %v8896_v16 = vrot.slane %v8888_v14, %v19246_v6  ;;  %v8425_v22 = vrot.slane %v8415_v61, %v19246_v6 }
 0x5e6   : > { %v8432_v41 = vrot.slane %v8416_v11, %v19246_v6  ;;  %v7601_v21 = vrot.slane %v19444_v63, %v22692_v62  ;;  %v8903_v57 = vrot.slane %v8889_v32, %v19246_v6  ;;  %v8439_v27 = vrot.slane %v8417_v40, %v19246_v6 }
 0x5e7   : > { %v8446_v26 = vrot.slane %v8418_v47, %v19246_v6  ;;  %v7605_v5 = vrot.slane %v19444_v63, %v22693_v42  ;;  %v7609_v17 = vrot.slane %v19444_v63, %v19232_v56  ;;  %v7613_v12 = vrot.slane %v19444_v63, %v19237_v29 }
 0x5e8   : > { %v8447_v59 = vcombine.low %v8425_v22, %v8432_v41  ;;  %v7617_v23 = vrot.slane %v19444_v63, %v19240_v43  ;;  %v8904_v10 = vcombine.low %v8896_v16, %v8903_v57  ;;  %v7621_v33 = vrot.slane %v19444_v63, %v19243_v15 }
 0x5e9   : > { %v8448_v60 = vcombine.low %v8439_v27, %v8446_v26  ;;  %v8954_v0 = vcombine.low %v7593_v34, %v7597_v13  ;;  %v8955_v31 = vcombine.low %v7601_v21, %v7605_v5  ;;  %v8956_v46 = vcombine.low %v7609_v17, %v7613_v12  ;;  %v6767_v12 = vpop.xlane.xlu0 %6766 }
 0x5ea   : > { %v8455_v36 = vrot.slane %v8447_v59, %v19246_v6  ;;  %v7497_v25 = vrot.slane %v19453_v28, %v18668_v18  ;;  %9597 = vperm.xlu0 %12328, %v8904_v10   ;;  %v8957_v24 = vcombine.low %v7617_v23, %v7621_v33  ;;  %v7501_v35 = vrot.slane %v19453_v28, %v22691_v39  ;;  %v6764_v23 = vpop.xlane.xlu1 %6763 }
 0x5eb   : > { %v8462_v8 = vrot.slane %v8448_v60, %v19246_v6  ;;  %v8964_v19 = vrot.slane %v8954_v0, %v19246_v6  ;;  %v8971_v1 = vrot.slane %v8955_v31, %v19246_v6  ;;  %v8978_v63 = vrot.slane %v8956_v46, %v19246_v6 }
 0x5ec   : > { %v7505_v58 = vrot.slane %v19453_v28, %v22692_v62  ;;  %v7509_v3 = vrot.slane %v19453_v28, %v22693_v42  ;;  %v8985_v9 = vrot.slane %v8957_v24, %v19246_v6  ;;  %v7513_v54 = vrot.slane %v19453_v28, %v19232_v56 }
 0x5ed   : > { %v8463_v44 = vcombine.low %v8455_v36, %v8462_v8  ;;  %v7517_v2 = vrot.slane %v19453_v28, %v19237_v29  ;;  %v8986_v51 = vcombine.low %v8964_v19, %v8971_v1  ;;  %v7521_v14 = vrot.slane %v19453_v28, %v19240_v43 }
 0x5ee   : > { %v7525_v61 = vrot.slane %v19453_v28, %v19243_v15  ;;  %v8807_v11 = vcombine.low %v7497_v25, %v7501_v35  ;;  %v8987_v34 = vcombine.low %v8978_v63, %v8985_v9  ;;  %v8808_v32 = vcombine.low %v7505_v58, %v7509_v3 }
 0x5ef   : > { %9570 = vperm.xlu1 %12327, %v8463_v44   ;;  %v8809_v40 = vcombine.low %v7513_v54, %v7517_v2  ;;  %v7561_v47 = vrot.slane %v19476_v52, %v18668_v18  ;;  %v8994_v13 = vrot.slane %v8986_v51, %v19246_v6  ;;  %v7565_v41 = vrot.slane %v19476_v52, %v22691_v39 }
 0x5f0   : > { %v8810_v16 = vcombine.low %v7521_v14, %v7525_v61  ;;  %v8817_v22 = vrot.slane %v8807_v11, %v19246_v6  ;;  %v9001_v21 = vrot.slane %v8987_v34, %v19246_v6  ;;  %v8824_v28 = vrot.slane %v8808_v32, %v19246_v6 }
 0x5f1   : > { %v8831_v57 = vrot.slane %v8809_v40, %v19246_v6  ;;  %v7569_v27 = vrot.slane %v19476_v52, %v22692_v62  ;;  %v7573_v5 = vrot.slane %v19476_v52, %v22693_v42  ;;  %v7577_v59 = vrot.slane %v19476_v52, %v19232_v56 }
 0x5f2   : > { %v8838_v26 = vrot.slane %v8810_v16, %v19246_v6  ;;  %v7581_v17 = vrot.slane %v19476_v52, %v19237_v29  ;;  %v9002_v10 = vcombine.low %v8994_v13, %v9001_v21  ;;  %v8839_v60 = vcombine.low %v8817_v22, %v8824_v28 }
 0x5f3   : > { %v7585_v33 = vrot.slane %v19476_v52, %v19240_v43  ;;  %v7589_v0 = vrot.slane %v19476_v52, %v19243_v15  ;;  %v8905_v31 = vcombine.low %v7561_v47, %v7565_v41  ;;  %v8906_v46 = vcombine.low %v7569_v27, %v7573_v5 }
 0x5f4   : > { %v8840_v36 = vcombine.low %v8831_v57, %v8838_v26  ;;  %v8907_v25 = vcombine.low %v7577_v59, %v7581_v17  ;;  %9603 = vperm.xlu0 %12328, %v9002_v10   ;;  %v8847_v8 = vrot.slane %v8839_v60, %v19246_v6  ;;  %v6813_v19 = vadd.f32 %v19225_v37, %v6767_v12 }
 0x5f5   : > { %v8908_v24 = vcombine.low %v7585_v33, %v7589_v0  ;;  %v6812_v35 = vadd.f32 %v19225_v37, %v6764_v23  ;;  %v8915_v63 = vrot.slane %v8905_v31, %v19246_v6  ;;  %v8922_v58 = vrot.slane %v8906_v46, %v19246_v6 }
 0x5f6   : > { %v8854_v1 = vrot.slane %v8840_v36, %v19246_v6  ;;  %v8929_v52 = vrot.slane %v8907_v25, %v19246_v6  ;;  %vm6846_vm13 = vcmp.ge.f32.partialorder %v6813_v19, 0.0  ;;  %v6879_v44 = vmul.f32 %v19227_v20, %v6813_v19 }
 0x5f7   : > { %v8936_v3 = vrot.slane %v8908_v24, %v19246_v6  ;;  %vm6845_vm0 = vcmp.ge.f32.partialorder %v6812_v35, 0.0  ;;  %v8937_v54 = vcombine.low %v8915_v63, %v8922_v58  ;;  %v6878_v2 = vmul.f32 %v19227_v20, %v6812_v35 }
 0x5f8   : > { %v8855_v9 = vcombine.low %v8847_v8, %v8854_v1  ;;  %v7625_v51 = vrot.slane %v19502_v38, %v18668_v18  ;;  %v19664_v61 = vsel %vm6846_vm13, %v6813_v19, %v6879_v44  ;;  %v7629_v11 = vrot.slane %v19502_v38, %v22691_v39 }
 0x5f9   : > { %v8938_v14 = vcombine.low %v8929_v52, %v8936_v3  ;;  %v7633_v34 = vrot.slane %v19502_v38, %v22692_v62  ;;  %v8945_v32 = vrot.slane %v8937_v54, %v19246_v6  ;;  %v19671_v40 = vsel %vm6845_vm0, %v6812_v35, %v6878_v2 }
 0x5fa   : > { %9594 = vperm.xlu1 %12327, %v8855_v9   ;;  %v7637_v47 = vrot.slane %v19502_v38, %v22693_v42  ;;  %v7641_v13 = vrot.slane %v19502_v38, %v19232_v56  ;;  %v7645_v22 = vrot.slane %v19502_v38, %v19237_v29  ;;  %v7649_v41 = vrot.slane %v19502_v38, %v19240_v43 }
 0x5fb   : > { %v8952_v16 = vrot.slane %v8938_v14, %v19246_v6  ;;  %v7653_v21 = vrot.slane %v19502_v38, %v19243_v15  ;;  %v9003_v28 = vcombine.low %v7625_v51, %v7629_v11  ;;  %v7657_v27 = vrot.slane %v19548_v30, %v18668_v18 }
 0x5fc   : > { %v9004_v57 = vcombine.low %v7633_v34, %v7637_v47  ;;  %v7661_v26 = vrot.slane %v19548_v30, %v22691_v39  ;;  %v9005_v59 = vcombine.low %v7641_v13, %v7645_v22  ;;  %v7665_v12 = vrot.slane %v19548_v30, %v22692_v62  ;;  %v6770_v47 = vpop.xlane.xlu1 %6769 }
 0x5fd   : > { %v8953_v5 = vcombine.low %v8945_v32, %v8952_v16  ;;  %v9006_v17 = vcombine.low %v7649_v41, %v7653_v21  ;;  %v9013_v23 = vrot.slane %v9003_v28, %v19246_v6  ;;  %v7669_v38 = vrot.slane %v19548_v30, %v22693_v42  ;;  %v6773_v32 = vpop.xlane.xlu0 %6772 }
 0x5fe   : > { %v9020_v10 = vrot.slane %v9004_v57, %v19246_v6  ;;  %v7673_v60 = vrot.slane %v19548_v30, %v19232_v56  ;;  %v9027_v33 = vrot.slane %v9005_v59, %v19246_v6  ;;  %v7677_v36 = vrot.slane %v19548_v30, %v19237_v29 }
 0x5ff   : > { %9600 = vperm.xlu1 %12327, %v8953_v5   ;;  %v9034_v0 = vrot.slane %v9006_v17, %v19246_v6  ;;  %v7681_v31 = vrot.slane %v19548_v30, %v19240_v43  ;;  %v7685_v25 = vrot.slane %v19548_v30, %v19243_v15  ;;  %v9052_v8 = vcombine.low %v7657_v27, %v7661_v26 }
 0x600   : > { %v9035_v46 = vcombine.low %v9013_v23, %v9020_v10  ;;  %v9053_v24 = vcombine.low %v7665_v12, %v7669_v38  ;;  %v9054_v35 = vcombine.low %v7673_v60, %v7677_v36  ;;  %v7689_v1 = vrot.slane %v19550_v45, %v18668_v18 }
 0x601   : > { %v9036_v19 = vcombine.low %v9027_v33, %v9034_v0  ;;  %v7693_v63 = vrot.slane %v19550_v45, %v22691_v39  ;;  %v9055_v52 = vcombine.low %v7681_v31, %v7685_v25  ;;  %v9062_v3 = vrot.slane %v9052_v8, %v19246_v6 }
 0x602   : > { %v9043_v58 = vrot.slane %v9035_v46, %v19246_v6  ;;  %v9069_v44 = vrot.slane %v9053_v24, %v19246_v6  ;;  %v9076_v30 = vrot.slane %v9054_v35, %v19246_v6  ;;  %v7697_v54 = vrot.slane %v19550_v45, %v22692_v62 }
 0x603   : > { %v9050_v9 = vrot.slane %v9036_v19, %v19246_v6  ;;  %v7701_v2 = vrot.slane %v19550_v45, %v22693_v42  ;;  %v9083_v51 = vrot.slane %v9055_v52, %v19246_v6  ;;  %v7705_v11 = vrot.slane %v19550_v45, %v19232_v56 }
 0x604   : > { %v9084_v14 = vcombine.low %v9062_v3, %v9069_v44  ;;  %v7709_v34 = vrot.slane %v19550_v45, %v19237_v29  ;;  %v7713_v16 = vrot.slane %v19550_v45, %v19240_v43  ;;  %v7717_v22 = vrot.slane %v19550_v45, %v19243_v15 }
 0x605   : > { %v9051_v13 = vcombine.low %v9043_v58, %v9050_v9  ;;  %v9101_v41 = vcombine.low %v7689_v1, %v7693_v63  ;;  %v9085_v21 = vcombine.low %v9076_v30, %v9083_v51  ;;  %v9102_v57 = vcombine.low %v7697_v54, %v7701_v2 }
 0x606   : > { %v9092_v28 = vrot.slane %v9084_v14, %v19246_v6  ;;  %v9103_v27 = vcombine.low %v7705_v11, %v7709_v34  ;;  %v9104_v26 = vcombine.low %v7713_v16, %v7717_v22  ;;  %v6815_v59 = vadd.f32 %v19225_v37, %v6773_v32 }
 0x607   : > { %9606 = vperm.xlu1 %12327, %v9051_v13   ;;  %v9111_v5 = vrot.slane %v9101_v41, %v19246_v6  ;;  %v6814_v17 = vadd.f32 %v19225_v37, %v6770_v47  ;;  %v9099_v12 = vrot.slane %v9085_v21, %v19246_v6  ;;  %v9118_v23 = vrot.slane %v9102_v57, %v19246_v6 }
 0x608   : > { %v9125_v45 = vrot.slane %v9103_v27, %v19246_v6  ;;  %v7753_v10 = vrot.slane %v19664_v61, %v18668_v18  ;;  %v9132_v38 = vrot.slane %v9104_v26, %v19246_v6  ;;  %vm6848_vm12 = vcmp.ge.f32.partialorder %v6815_v59, 0.0 }
 0x609   : > { %v6881_v60 = vmul.f32 %v19227_v20, %v6815_v59  ;;  %vm6847_vm6 = vcmp.ge.f32.partialorder %v6814_v17, 0.0  ;;  %v9100_v33 = vcombine.low %v9092_v28, %v9099_v12  ;;  %v9133_v0 = vcombine.low %v9111_v5, %v9118_v23 }
 0x60a   : > { %v6880_v36 = vmul.f32 %v19227_v20, %v6814_v17  ;;  %v7757_v31 = vrot.slane %v19664_v61, %v22691_v39  ;;  %v9134_v46 = vcombine.low %v9125_v45, %v9132_v38  ;;  %v7761_v8 = vrot.slane %v19664_v61, %v22692_v62 }
 0x60b   : > { %v19740_v25 = vsel %vm6848_vm12, %v6815_v59, %v6881_v60  ;;  %v7765_v24 = vrot.slane %v19664_v61, %v22693_v42  ;;  %9609 = vperm.xlu0 %12328, %v9100_v33   ;;  %v9141_v19 = vrot.slane %v9133_v0, %v19246_v6  ;;  %v7769_v1 = vrot.slane %v19664_v61, %v19232_v56 }
 0x60c   : > { %v19747_v35 = vsel %vm6847_vm6, %v6814_v17, %v6880_v36  ;;  %v7773_v63 = vrot.slane %v19664_v61, %v19237_v29  ;;  %v9148_v58 = vrot.slane %v9134_v46, %v19246_v6  ;;  %v7777_v52 = vrot.slane %v19664_v61, %v19240_v43  ;;  %v6779_v36 = vpop.xlane.xlu0 %6778 }
 0x60d   : > { %v7781_v3 = vrot.slane %v19664_v61, %v19243_v15  ;;  %v9199_v44 = vcombine.low %v7753_v10, %v7757_v31  ;;  %v9200_v9 = vcombine.low %v7761_v8, %v7765_v24  ;;  %v7721_v54 = vrot.slane %v19671_v40, %v18668_v18 }
 0x60e   : > { %v9201_v30 = vcombine.low %v7769_v1, %v7773_v63  ;;  %v7725_v2 = vrot.slane %v19671_v40, %v22691_v39  ;;  %v9149_v51 = vcombine.low %v9141_v19, %v9148_v58  ;;  %v7729_v34 = vrot.slane %v19671_v40, %v22692_v62  ;;  %v6776_v19 = vpop.xlane.xlu1 %6775 }
 0x60f   : > { %v9202_v14 = vcombine.low %v7777_v52, %v7781_v3  ;;  %v9209_v11 = vrot.slane %v9199_v44, %v19246_v6  ;;  %v9216_v32 = vrot.slane %v9200_v9, %v19246_v6  ;;  %v7733_v47 = vrot.slane %v19671_v40, %v22693_v42 }
 0x610   : > { %v9223_v61 = vrot.slane %v9201_v30, %v19246_v6  ;;  %v7737_v13 = vrot.slane %v19671_v40, %v19232_v56  ;;  %9612 = vperm.xlu1 %12327, %v9149_v51   ;;  %v7741_v22 = vrot.slane %v19671_v40, %v19237_v29  ;;  %v7745_v41 = vrot.slane %v19671_v40, %v19240_v43 }
 0x611   : > { %v9230_v16 = vrot.slane %v9202_v14, %v19246_v6  ;;  %v7749_v21 = vrot.slane %v19671_v40, %v19243_v15  ;;  %v9231_v28 = vcombine.low %v9209_v11, %v9216_v32  ;;  %v9150_v57 = vcombine.low %v7721_v54, %v7725_v2 }
 0x612   : > { %v9151_v27 = vcombine.low %v7729_v34, %v7733_v47  ;;  %v7273_v26 = vrot.slane %v19308_v53, %v18668_v18  ;;  %v9152_v59 = vcombine.low %v7737_v13, %v7741_v22  ;;  %v7277_v12 = vrot.slane %v19308_v53, %v22691_v39 }
 0x613   : > { %v9232_v5 = vcombine.low %v9223_v61, %v9230_v16  ;;  %v9153_v17 = vcombine.low %v7745_v41, %v7749_v21  ;;  %v9239_v23 = vrot.slane %v9231_v28, %v19246_v6  ;;  %v9160_v45 = vrot.slane %v9150_v57, %v19246_v6 }
 0x614   : > { %v9167_v10 = vrot.slane %v9151_v27, %v19246_v6  ;;  %v7281_v40 = vrot.slane %v19308_v53, %v22692_v62  ;;  %v9174_v60 = vrot.slane %v9152_v59, %v19246_v6  ;;  %v7285_v0 = vrot.slane %v19308_v53, %v22693_v42 }
 0x615   : > { %v9246_v38 = vrot.slane %v9232_v5, %v19246_v6  ;;  %v9181_v33 = vrot.slane %v9153_v17, %v19246_v6  ;;  %v7289_v46 = vrot.slane %v19308_v53, %v19232_v56  ;;  %v7293_v8 = vrot.slane %v19308_v53, %v19237_v29 }
 0x616   : > { %v9182_v31 = vcombine.low %v9160_v45, %v9167_v10  ;;  %v7297_v24 = vrot.slane %v19308_v53, %v19240_v43  ;;  %v7301_v58 = vrot.slane %v19308_v53, %v19243_v15  ;;  %v8464_v52 = vcombine.low %v7273_v26, %v7277_v12 }
 0x617   : > { %v9247_v1 = vcombine.low %v9239_v23, %v9246_v38  ;;  %v9183_v63 = vcombine.low %v9174_v60, %v9181_v33  ;;  %v8465_v44 = vcombine.low %v7281_v40, %v7285_v0  ;;  %v8466_v9 = vcombine.low %v7289_v46, %v7293_v8 }
 0x618   : > { %v9190_v3 = vrot.slane %v9182_v31, %v19246_v6  ;;  %v6817_v30 = vadd.f32 %v19225_v37, %v6779_v36  ;;  %v8467_v2 = vcombine.low %v7297_v24, %v7301_v58  ;;  %v8474_v51 = vrot.slane %v8464_v52, %v19246_v6 }
 0x619   : > { %9618 = vperm.xlu1 %12327, %v9247_v1   ;;  %v9197_v54 = vrot.slane %v9183_v63, %v19246_v6  ;;  %v6816_v14 = vadd.f32 %v19225_v37, %v6776_v19  ;;  %v8481_v11 = vrot.slane %v8465_v44, %v19246_v6  ;;  %v8488_v34 = vrot.slane %v8466_v9, %v19246_v6 }
 0x61a   : > { %vm6850_vm7 = vcmp.ge.f32.partialorder %v6817_v30, 0.0  ;;  %v6883_v53 = vmul.f32 %v19227_v20, %v6817_v30  ;;  %v8495_v61 = vrot.slane %v8467_v2, %v19246_v6  ;;  %v7305_v22 = vrot.slane %v19361_v48, %v18668_v18 }
 0x61b   : > { %v9198_v32 = vcombine.low %v9190_v3, %v9197_v54  ;;  %vm6849_vm9 = vcmp.ge.f32.partialorder %v6816_v14, 0.0  ;;  %v6882_v47 = vmul.f32 %v19227_v20, %v6816_v14  ;;  %v8496_v13 = vcombine.low %v8474_v51, %v8481_v11 }
 0x61c   : > { %v19810_v16 = vsel %vm6850_vm7, %v6817_v30, %v6883_v53  ;;  %v7309_v41 = vrot.slane %v19361_v48, %v22691_v39  ;;  %v8497_v21 = vcombine.low %v8488_v34, %v8495_v61  ;;  %v7313_v57 = vrot.slane %v19361_v48, %v22692_v62 }
 0x61d   : > { %9615 = vperm.xlu0 %12328, %v9198_v32   ;;  %v19816_v28 = vsel %vm6849_vm9, %v6816_v14, %v6882_v47  ;;  %v7317_v27 = vrot.slane %v19361_v48, %v22693_v42  ;;  %v8504_v26 = vrot.slane %v8496_v13, %v19246_v6  ;;  %v7321_v5 = vrot.slane %v19361_v48, %v19232_v56 }
 0x61e   : > { %v7325_v59 = vrot.slane %v19361_v48, %v19237_v29  ;;  %v7329_v17 = vrot.slane %v19361_v48, %v19240_v43  ;;  %v8511_v12 = vrot.slane %v8497_v21, %v19246_v6  ;;  %v7333_v23 = vrot.slane %v19361_v48, %v19243_v15 }
 0x61f   : > { %v8513_v45 = vcombine.low %v7305_v22, %v7309_v41  ;;  %v8514_v10 = vcombine.low %v7313_v57, %v7317_v27  ;;  %v7337_v38 = vrot.slane %v19324_v4, %v18668_v18  ;;  %v7341_v60 = vrot.slane %v19324_v4, %v22691_v39 }
 0x620   : > { %v8515_v40 = vcombine.low %v7321_v5, %v7325_v59  ;;  %v7345_v33 = vrot.slane %v19324_v4, %v22692_v62  ;;  %v8512_v0 = vcombine.low %v8504_v26, %v8511_v12  ;;  %v8516_v36 = vcombine.low %v7329_v17, %v7333_v23 }
 0x621   : > { %v8523_v31 = vrot.slane %v8513_v45, %v19246_v6  ;;  %v8530_v46 = vrot.slane %v8514_v10, %v19246_v6  ;;  %v7349_v8 = vrot.slane %v19324_v4, %v22693_v42  ;;  %v7353_v24 = vrot.slane %v19324_v4, %v19232_v56 }
 0x622   : > { %v8537_v48 = vrot.slane %v8515_v40, %v19246_v6  ;;  %v7357_v19 = vrot.slane %v19324_v4, %v19237_v29  ;;  %9573 = vperm.xlu0 %12328, %v8512_v0   ;;  %v8544_v1 = vrot.slane %v8516_v36, %v19246_v6  ;;  %v7361_v58 = vrot.slane %v19324_v4, %v19240_v43 }
 0x623   : > { %v8545_v63 = vcombine.low %v8523_v31, %v8530_v46  ;;  %v7365_v52 = vrot.slane %v19324_v4, %v19243_v15  ;;  %v8562_v3 = vcombine.low %v7337_v38, %v7341_v60  ;;  %v8563_v44 = vcombine.low %v7345_v33, %v7349_v8 }
 0x624   : > { %v8564_v9 = vcombine.low %v7353_v24, %v7357_v19  ;;  %v7785_v30 = vrot.slane %v19747_v35, %v18668_v18  ;;  %v8546_v54 = vcombine.low %v8537_v48, %v8544_v1  ;;  %v7789_v14 = vrot.slane %v19747_v35, %v22691_v39 }
 0x625   : > { %v8553_v2 = vrot.slane %v8545_v63, %v19246_v6  ;;  %v8565_v51 = vcombine.low %v7361_v58, %v7365_v52  ;;  %v8572_v11 = vrot.slane %v8562_v3, %v19246_v6  ;;  %v8579_v34 = vrot.slane %v8563_v44, %v19246_v6 }
 0x626   : > { %v8586_v53 = vrot.slane %v8564_v9, %v19246_v6  ;;  %v7793_v4 = vrot.slane %v19747_v35, %v22692_v62  ;;  %v8560_v32 = vrot.slane %v8546_v54, %v19246_v6  ;;  %v7797_v47 = vrot.slane %v19747_v35, %v22693_v42 }
 0x627   : > { %v8593_v61 = vrot.slane %v8565_v51, %v19246_v6  ;;  %v7801_v13 = vrot.slane %v19747_v35, %v19232_v56  ;;  %v8594_v22 = vcombine.low %v8572_v11, %v8579_v34  ;;  %v7805_v41 = vrot.slane %v19747_v35, %v19237_v29  ;;  %v6785_v34 = vpop.xlane.xlu0 %6784 }
 0x628   : > { %v7809_v21 = vrot.slane %v19747_v35, %v19240_v43  ;;  %v7813_v57 = vrot.slane %v19747_v35, %v19243_v15  ;;  %v8561_v27 = vcombine.low %v8553_v2, %v8560_v32  ;;  %v9248_v5 = vcombine.low %v7785_v30, %v7789_v14 }
 0x629   : > { %v8595_v26 = vcombine.low %v8586_v53, %v8593_v61  ;;  %v9249_v59 = vcombine.low %v7793_v4, %v7797_v47  ;;  %v8602_v17 = vrot.slane %v8594_v22, %v19246_v6  ;;  %v9250_v12 = vcombine.low %v7801_v13, %v7805_v41  ;;  %v6782_v47 = vpop.xlane.xlu1 %6781 }
 0x62a   : > { %v9251_v23 = vcombine.low %v7809_v21, %v7813_v57  ;;  %v7369_v45 = vrot.slane %v19388_v50, %v18668_v18  ;;  %9576 = vperm.xlu0 %12328, %v8561_v27   ;;  %v9258_v40 = vrot.slane %v9248_v5, %v19246_v6  ;;  %v7373_v35 = vrot.slane %v19388_v50, %v22691_v39 }
 0x62b   : > { %v8609_v10 = vrot.slane %v8595_v26, %v19246_v6  ;;  %v9265_v38 = vrot.slane %v9249_v59, %v19246_v6  ;;  %v9272_v60 = vrot.slane %v9250_v12, %v19246_v6  ;;  %v7377_v0 = vrot.slane %v19388_v50, %v22692_v62 }
 0x62c   : > { %v9279_v33 = vrot.slane %v9251_v23, %v19246_v6  ;;  %v7381_v36 = vrot.slane %v19388_v50, %v22693_v42  ;;  %v7385_v48 = vrot.slane %v19388_v50, %v19232_v56  ;;  %v7389_v8 = vrot.slane %v19388_v50, %v19237_v29 }
 0x62d   : > { %v8610_v31 = vcombine.low %v8602_v17, %v8609_v10  ;;  %v9280_v46 = vcombine.low %v9258_v40, %v9265_v38  ;;  %v7393_v19 = vrot.slane %v19388_v50, %v19240_v43  ;;  %v7397_v1 = vrot.slane %v19388_v50, %v19243_v15 }
 0x62e   : > { %v9281_v24 = vcombine.low %v9272_v60, %v9279_v33  ;;  %v8611_v63 = vcombine.low %v7369_v45, %v7373_v35  ;;  %v8612_v52 = vcombine.low %v7377_v0, %v7381_v36  ;;  %v8613_v3 = vcombine.low %v7385_v48, %v7389_v8 }
 0x62f   : > { %9579 = vperm.xlu0 %12328, %v8610_v31   ;;  %v9288_v58 = vrot.slane %v9280_v46, %v19246_v6  ;;  %v7817_v44 = vrot.slane %v19740_v25, %v18668_v18  ;;  %v8614_v30 = vcombine.low %v7393_v19, %v7397_v1  ;;  %v7821_v2 = vrot.slane %v19740_v25, %v22691_v39 }
 0x630   : > { %v9295_v9 = vrot.slane %v9281_v24, %v19246_v6  ;;  %v8621_v54 = vrot.slane %v8611_v63, %v19246_v6  ;;  %v8628_v51 = vrot.slane %v8612_v52, %v19246_v6  ;;  %v8635_v50 = vrot.slane %v8613_v3, %v19246_v6 }
 0x631   : > { %v7825_v14 = vrot.slane %v19740_v25, %v22692_v62  ;;  %v7829_v11 = vrot.slane %v19740_v25, %v22693_v42  ;;  %v8642_v4 = vrot.slane %v8614_v30, %v19246_v6  ;;  %v7833_v32 = vrot.slane %v19740_v25, %v19232_v56 }
 0x632   : > { %v9296_v53 = vcombine.low %v9288_v58, %v9295_v9  ;;  %v7837_v61 = vrot.slane %v19740_v25, %v19237_v29  ;;  %v8643_v13 = vcombine.low %v8621_v54, %v8628_v51  ;;  %v7841_v22 = vrot.slane %v19740_v25, %v19240_v43 }
 0x633   : > { %v7845_v41 = vrot.slane %v19740_v25, %v19243_v15  ;;  %v9297_v21 = vcombine.low %v7817_v44, %v7821_v2  ;;  %v8644_v57 = vcombine.low %v8635_v50, %v8642_v4  ;;  %v9298_v27 = vcombine.low %v7825_v14, %v7829_v11 }
 0x634   : > { %9621 = vperm.xlu1 %12327, %v9296_v53   ;;  %v9299_v26 = vcombine.low %v7833_v32, %v7837_v61  ;;  %v6819_v5 = vadd.f32 %v19225_v37, %v6785_v34  ;;  %v8651_v59 = vrot.slane %v8643_v13, %v19246_v6  ;;  %v6818_v23 = vadd.f32 %v19225_v37, %v6782_v47 }
 0x635   : > { %v9300_v17 = vcombine.low %v7841_v22, %v7845_v41  ;;  %v9307_v12 = vrot.slane %v9297_v21, %v19246_v6  ;;  %v8658_v45 = vrot.slane %v8644_v57, %v19246_v6  ;;  %v9314_v10 = vrot.slane %v9298_v27, %v19246_v6 }
 0x636   : > { %v9321_v25 = vrot.slane %v9299_v26, %v19246_v6  ;;  %vm6852_vm10 = vcmp.ge.f32.partialorder %v6819_v5, 0.0  ;;  %v6885_v38 = vmul.f32 %v19227_v20, %v6819_v5  ;;  %vm6851_vm3 = vcmp.ge.f32.partialorder %v6818_v23, 0.0 }
 0x637   : > { %v9328_v40 = vrot.slane %v9300_v17, %v19246_v6  ;;  %v6884_v35 = vmul.f32 %v19227_v20, %v6818_v23  ;;  %v8659_v60 = vcombine.low %v8651_v59, %v8658_v45  ;;  %v9329_v33 = vcombine.low %v9307_v12, %v9314_v10 }
 0x638   : > { %v7401_v0 = vrot.slane %v19352_v7, %v18668_v18  ;;  %v7405_v37 = vrot.slane %v19352_v7, %v22691_v39  ;;  %v19932_v31 = vsel %vm6852_vm10, %v6819_v5, %v6885_v38  ;;  %v7409_v48 = vrot.slane %v19352_v7, %v22692_v62 }
 0x639   : > { %v9330_v36 = vcombine.low %v9321_v25, %v9328_v40  ;;  %v19934_v46 = vsel %vm6851_vm3, %v6818_v23, %v6884_v35  ;;  %9582 = vperm.xlu0 %12328, %v8659_v60   ;;  %v9337_v8 = vrot.slane %v9329_v33, %v19246_v6  ;;  %v7413_v20 = vrot.slane %v19352_v7, %v22693_v42 }
 0x63a   : > { %v7417_v24 = vrot.slane %v19352_v7, %v19232_v56  ;;  %v7421_v19 = vrot.slane %v19352_v7, %v19237_v29  ;;  %v7425_v63 = vrot.slane %v19352_v7, %v19240_v43  ;;  %v7429_v58 = vrot.slane %v19352_v7, %v19243_v15 }
 0x63b   : > { %v9344_v1 = vrot.slane %v9330_v36, %v19246_v6  ;;  %v8660_v52 = vcombine.low %v7401_v0, %v7405_v37  ;;  %v8661_v3 = vcombine.low %v7409_v48, %v7413_v20  ;;  %v7433_v9 = vrot.slane %v19423_v49, %v18668_v18 }
 0x63c   : > { %v8662_v44 = vcombine.low %v7417_v24, %v7421_v19  ;;  %v7437_v30 = vrot.slane %v19423_v49, %v22691_v39  ;;  %v8663_v2 = vcombine.low %v7425_v63, %v7429_v58  ;;  %v7441_v50 = vrot.slane %v19423_v49, %v22692_v62 }
 0x63d   : > { %v9345_v54 = vcombine.low %v9337_v8, %v9344_v1  ;;  %v8670_v51 = vrot.slane %v8660_v52, %v19246_v6  ;;  %v8677_v14 = vrot.slane %v8661_v3, %v19246_v6  ;;  %v7445_v11 = vrot.slane %v19423_v49, %v22693_v42 }
 0x63e   : > { %v8684_v7 = vrot.slane %v8662_v44, %v19246_v6  ;;  %v7449_v34 = vrot.slane %v19423_v49, %v19232_v56  ;;  %v8691_v53 = vrot.slane %v8663_v2, %v19246_v6  ;;  %v7453_v4 = vrot.slane %v19423_v49, %v19237_v29 }
 0x63f   : > { %9624 = vperm.xlu1 %12327, %v9345_v54   ;;  %v7457_v32 = vrot.slane %v19423_v49, %v19240_v43  ;;  %v7461_v61 = vrot.slane %v19423_v49, %v19243_v15  ;;  %v8692_v47 = vcombine.low %v8670_v51, %v8677_v14  ;;  %v8709_v13 = vcombine.low %v7433_v9, %v7437_v30 }
 0x640   : > { %v8710_v22 = vcombine.low %v7441_v50, %v7445_v11  ;;  %v7849_v41 = vrot.slane %v19816_v28, %v18668_v18  ;;  %v8693_v21 = vcombine.low %v8684_v7, %v8691_v53  ;;  %v8711_v57 = vcombine.low %v7449_v34, %v7453_v4 }
 0x641   : > { %v8712_v27 = vcombine.low %v7457_v32, %v7461_v61  ;;  %v7853_v26 = vrot.slane %v19816_v28, %v22691_v39  ;;  %v8700_v5 = vrot.slane %v8692_v47, %v19246_v6  ;;  %v8719_v59 = vrot.slane %v8709_v13, %v19246_v6 }
 0x642   : > { %v8726_v17 = vrot.slane %v8710_v22, %v19246_v6  ;;  %v7857_v49 = vrot.slane %v19816_v28, %v22692_v62  ;;  %v8707_v12 = vrot.slane %v8693_v21, %v19246_v6  ;;  %v8733_v23 = vrot.slane %v8711_v57, %v19246_v6 }
 0x643   : > { %v8740_v45 = vrot.slane %v8712_v27, %v19246_v6  ;;  %v7861_v10 = vrot.slane %v19816_v28, %v22693_v42  ;;  %v7865_v40 = vrot.slane %v19816_v28, %v19232_v56  ;;  %v7869_v38 = vrot.slane %v19816_v28, %v19237_v29 }
 0x644   : > { %v8741_v25 = vcombine.low %v8719_v59, %v8726_v17  ;;  %v7873_v35 = vrot.slane %v19816_v28, %v19240_v43  ;;  %v8708_v60 = vcombine.low %v8700_v5, %v8707_v12  ;;  %v7877_v0 = vrot.slane %v19816_v28, %v19243_v15 }
 0x645   : > { %v8742_v33 = vcombine.low %v8733_v23, %v8740_v45  ;;  %v9346_v37 = vcombine.low %v7849_v41, %v7853_v26  ;;  %v9347_v48 = vcombine.low %v7857_v49, %v7861_v10  ;;  %v9348_v8 = vcombine.low %v7865_v40, %v7869_v38 }
 0x646   : > { %v8749_v36 = vrot.slane %v8741_v25, %v19246_v6  ;;  %v7881_v20 = vrot.slane %v19810_v16, %v18668_v18  ;;  %9585 = vperm.xlu0 %12328, %v8708_v60   ;;  %v9349_v19 = vcombine.low %v7873_v35, %v7877_v0  ;;  %v7885_v63 = vrot.slane %v19810_v16, %v22691_v39 }
 0x647   : > { %v8756_v24 = vrot.slane %v8742_v33, %v19246_v6  ;;  %v9356_v1 = vrot.slane %v9346_v37, %v19246_v6  ;;  %v9363_v58 = vrot.slane %v9347_v48, %v19246_v6  ;;  %v9370_v28 = vrot.slane %v9348_v8, %v19246_v6 }
 0x648   : > { %v7889_v52 = vrot.slane %v19810_v16, %v22692_v62  ;;  %v7893_v3 = vrot.slane %v19810_v16, %v22693_v42  ;;  %v9377_v9 = vrot.slane %v9349_v19, %v19246_v6  ;;  %v7897_v30 = vrot.slane %v19810_v16, %v19232_v56 }
 0x649   : > { %v8757_v44 = vcombine.low %v8749_v36, %v8756_v24  ;;  %v7901_v54 = vrot.slane %v19810_v16, %v19237_v29  ;;  %v9378_v2 = vcombine.low %v9356_v1, %v9363_v58  ;;  %v7905_v51 = vrot.slane %v19810_v16, %v19240_v43 }
 0x64a   : > { %v7909_v50 = vrot.slane %v19810_v16, %v19243_v15  ;;  %v9395_v14 = vcombine.low %v7881_v20, %v7885_v63  ;;  %v9379_v7 = vcombine.low %v9370_v28, %v9377_v9  ;;  %v9396_v11 = vcombine.low %v7889_v52, %v7893_v3 }
 0x64b   : > { %9588 = vperm.xlu0 %12328, %v8757_v44   ;;  %v9397_v34 = vcombine.low %v7897_v30, %v7901_v54  ;;  %v7913_v53 = vrot.slane %v19934_v46, %v18668_v18  ;;  %v9386_v4 = vrot.slane %v9378_v2, %v19246_v6  ;;  %v7917_v47 = vrot.slane %v19934_v46, %v22691_v39  ;;  %v9544_v2 = vpop.permute.xlu1 %9543 }
 0x64c   : > { %v9398_v32 = vcombine.low %v7905_v51, %v7909_v50  ;;  %v9405_v61 = vrot.slane %v9395_v14, %v19246_v6  ;;  %v9393_v13 = vrot.slane %v9379_v7, %v19246_v6  ;;  %v9412_v16 = vrot.slane %v9396_v11, %v19246_v6 }
 0x64d   : > { %v9419_v22 = vrot.slane %v9397_v34, %v19246_v6  ;;  %v7921_v41 = vrot.slane %v19934_v46, %v22692_v62  ;;  %v7925_v57 = vrot.slane %v19934_v46, %v22693_v42  ;;  %v7929_v27 = vrot.slane %v19934_v46, %v19232_v56 }
 0x64e   : > { %v9426_v21 = vrot.slane %v9398_v32, %v19246_v6  ;;  %v7933_v26 = vrot.slane %v19934_v46, %v19237_v29  ;;  %v9394_v5 = vcombine.low %v9386_v4, %v9393_v13  ;;  %v9427_v59 = vcombine.low %v9405_v61, %v9412_v16 }
 0x64f   : > { %v7937_v17 = vrot.slane %v19934_v46, %v19240_v43  ;;  %v7941_v49 = vrot.slane %v19934_v46, %v19243_v15  ;;  %v9444_v23 = vcombine.low %v7913_v53, %v7917_v47  ;;  %v9445_v45 = vcombine.low %v7921_v41, %v7925_v57  ;;  %v9550_v51 = vpop.permute.xlu1 %9549  ;;  %v9547_v53 = vpop.permute.xlu0 %9546 }
 0x650   : > { %v9428_v12 = vcombine.low %v9419_v22, %v9426_v21  ;;  %v9446_v10 = vcombine.low %v7929_v27, %v7933_v26  ;;  %9627 = vperm.xlu1 %12327, %v9394_v5   ;;  %v9435_v25 = vrot.slane %v9427_v59, %v19246_v6  ;;  %v7945_v38 = vrot.slane %v19932_v31, %v18668_v18 }
 0x651   : > { %v9447_v40 = vcombine.low %v7937_v17, %v7941_v49  ;;  %v7949_v35 = vrot.slane %v19932_v31, %v22691_v39  ;;  %v9454_v33 = vrot.slane %v9444_v23, %v19246_v6  ;;  %v9461_v46 = vrot.slane %v9445_v45, %v19246_v6 }
 0x652   : > { %v9442_v60 = vrot.slane %v9428_v12, %v19246_v6  ;;  %v9468_v0 = vrot.slane %v9446_v10, %v19246_v6  ;;  %v7953_v36 = vrot.slane %v19932_v31, %v22692_v62  ;;  %v7957_v48 = vrot.slane %v19932_v31, %v22693_v42 }
 0x653   : > { %v9475_v37 = vrot.slane %v9447_v40, %v19246_v6  ;;  %v7961_v18 = vrot.slane %v19932_v31, %v19232_v56  ;;  %v9476_v8 = vcombine.low %v9454_v33, %v9461_v46  ;;  %v7965_v20 = vrot.slane %v19932_v31, %v19237_v29  ;;  %v9553_v50 = vpop.permute.xlu1 %9552 }
 0x654   : > { %v9443_v39 = vcombine.low %v9435_v25, %v9442_v60  ;;  %v7969_v24 = vrot.slane %v19932_v31, %v19240_v43  ;;  %v7973_v1 = vrot.slane %v19932_v31, %v19243_v15  ;;  %v9493_v63 = vcombine.low %v7945_v38, %v7949_v35 }
 0x655   : > { %v9477_v19 = vcombine.low %v9468_v0, %v9475_v37  ;;  %v9494_v62 = vcombine.low %v7953_v36, %v7957_v48  ;;  %v9484_v42 = vrot.slane %v9476_v8, %v19246_v6  ;;  %v9495_v58 = vcombine.low %v7961_v18, %v7965_v20 }
 0x656   : > { %9630 = vperm.xlu1 %12327, %v9443_v39   ;;  %v9496_v28 = vcombine.low %v7969_v24, %v7973_v1  ;;  %v9503_v52 = vrot.slane %v9493_v63, %v19246_v6  ;;  %v22694_v27 = vlaneseq  ;;  %vm9649_vm4 = vcmask 130112  }
 0x657   : > { %v9491_v56 = vrot.slane %v9477_v19, %v19246_v6  ;;  %v9510_v29 = vrot.slane %v9494_v62, %v19246_v6  ;;  %v9517_v3 = vrot.slane %v9495_v58, %v19246_v6  ;;  %v20066_v14 = vpop.permute.xlu1 %9555  ;;  %vm9656_vm8 = vcmask 195712  }
 0x658   : > { %v9524_v44 = vrot.slane %v9496_v28, %v19246_v6  ;;  %v20087_v26 = vand.u32 127, %v22694_v27  ;;  %vm9663_vm15 = vcmask 261312   ;;  %vm9670_vm2 = vcmask 326912  }
 0x659   : > { %v9492_v43 = vcombine.low %v9484_v42, %v9491_v56  ;;  %v9525_v9 = vcombine.low %v9503_v52, %v9510_v29  ;;  %vm9677_vm14 = vcmask 392512   ;;  %vm9684_vm5 = vcmask 458112  }
 0x65a   : > { %v9526_v15 = vcombine.low %v9517_v3, %v9524_v44  ;;  %v9644_v17 = vadd.s32 4294967288, %v20087_v26  ;;  %v9651_v12 = vadd.s32 4294967280, %v20087_v26  ;;  %v9658_v23 = vadd.s32 4294967272, %v20087_v26 }
 0x65b   : > { %9633 = vperm.xlu1 %12327, %v9492_v43   ;;  %v9533_v31 = vrot.slane %v9525_v9, %v19246_v6  ;;  %v20068_v7 = vpop.permute.xlu1 %9558  ;;  %v9665_v10 = vadd.s32 4294967264, %v20087_v26  ;;  %v9642_v25 = vsub.s32 %v20087_v26, %v22444_v55  ;;  %v9672_v60 = vadd.s32 4294967256, %v20087_v26 }
 0x65c   : > { %v9540_v30 = vrot.slane %v9526_v15, %v19246_v6  ;;  %v9647_v40 = vsub.s32 %v9644_v17, %v22444_v55  ;;  %v9654_v35 = vsub.s32 %v9651_v12, %v22444_v55  ;;  %v9661_v33 = vsub.s32 %v9658_v23, %v22444_v55 }
 0x65d   : > { %v9592_v32 = vpop.permute.xlu0 %9591  ;;  %v9668_v46 = vsub.s32 %v9665_v10, %v22444_v55  ;;  %v9643_v37 = vrot.slane %v9544_v2, %v9642_v25  ;;  %v9675_v39 = vsub.s32 %v9672_v60, %v22444_v55  ;;  %v9679_v8 = vadd.s32 4294967248, %v20087_v26 }
 0x65e   : > { %v9541_v54 = vcombine.low %v9533_v31, %v9540_v30  ;;  %v9648_v36 = vrot.slane %v9547_v53, %v9647_v40  ;;  %v9655_v18 = vrot.slane %v9550_v51, %v9654_v35  ;;  %v9752_v20 = vrot.slane %v9592_v32, %v9642_v25 }
 0x65f   : > { %v20070_v11 = vpop.permute.xlu1 %9561  ;;  %v9662_v24 = vrot.slane %v9553_v50, %v9661_v33  ;;  %v9686_v19 = vadd.s32 4294967240, %v20087_v26  ;;  %v9669_v63 = vrot.slane %v20066_v14, %v9668_v46  ;;  %v9676_v52 = vrot.slane %v20068_v7, %v9675_v39 }
 0x660   : > { %9636 = vperm.xlu1 %12327, %v9541_v54   ;;  %v9650_v58 = vsel %vm9649_vm4, %v9648_v36, %v9643_v37  ;;  %v9682_v29 = vsub.s32 %v9679_v8, %v22444_v55  ;;  %v9693_v3 = vadd.s32 4294967232, %v20087_v26  ;;  %vm9691_vm11 = vcmask 523712  }
 0x661   : > { %v9657_v28 = vsel %vm9656_vm8, %v9655_v18, %v9650_v58  ;;  %v9689_v44 = vsub.s32 %v9686_v19, %v22444_v55  ;;  %v9700_v54 = vadd.s32 4294967224, %v20087_v26  ;;  %vm9698_vm1 = vcmask 589312  }
 0x662   : > { %v9664_v43 = vsel %vm9663_vm15, %v9662_v24, %v9657_v28  ;;  %v9707_v7 = vadd.s32 4294967216, %v20087_v26  ;;  %v9683_v32 = vrot.slane %v20070_v11, %v9682_v29  ;;  %vm9705_vm13 = vcmask 654912  }
 0x663   : > { %v20072_v34 = vpop.permute.xlu1 %9564  ;;  %v9671_v30 = vsel %vm9670_vm2, %v9669_v63, %v9664_v43  ;;  %v9721_v17 = vadd.s32 4294967200, %v20087_v26  ;;  %v9728_v23 = vadd.s32 4294967192, %v20087_v26  ;;  %vm9712_vm0 = vcmask 720512  }
 0x664   : > { %v9678_v53 = vsel %vm9677_vm14, %v9676_v52, %v9671_v30  ;;  %v9710_v25 = vsub.s32 %v9707_v7, %v22444_v55  ;;  %vm9719_vm12 = vcmask 786112   ;;  %vm9726_vm6 = vcmask 851712  }
 0x665   : > { %v9685_v60 = vsel %vm9684_vm5, %v9683_v32, %v9678_v53  ;;  %v9731_v18 = vsub.s32 %v9728_v23, %v22444_v55  ;;  %vm9733_vm7 = vcmask 917312   ;;  %vm9740_vm9 = vcmask 982912  }
 0x666   : > { %vm9747_vm10 = vcmask 1048512   ;;  %vm9846_vm3 = vcmp.lt.s32.totalorder %v22694_v27, 256 }
 0x667   : > { %v20074_v4 = vpop.permute.xlu1 %9567 }
 0x669   : > { %v9598_v47 = vpop.permute.xlu0 %9597 }
 0x66a   : > { %v9761_v56 = vrot.slane %v9598_v47, %v9654_v35  ;;  %v9696_v47 = vsub.s32 %v9693_v3, %v22444_v55 }
 0x66e   : > { %v20076_v61 = vpop.permute.xlu1 %9570 }
 0x673   : > { %v20078_v16 = vpop.permute.xlu0 %9603 }
 0x674   : > { %v9771_v50 = vrot.slane %v20078_v16, %v9668_v46  ;;  %v9703_v16 = vsub.s32 %v9700_v54, %v22444_v55  ;;  %v9742_v46 = vadd.s32 4294967176, %v20087_v26 }
 0x676   : > { %v9704_v37 = vrot.slane %v20076_v61, %v9703_v16  ;;  %v9745_v63 = vsub.s32 %v9742_v46, %v22444_v55 }
 0x679   : > { %v9595_v13 = vpop.permute.xlu1 %9594 }
 0x67a   : > { %v9756_v0 = vrot.slane %v9595_v13, %v9647_v40  ;;  %v9714_v13 = vadd.s32 4294967208, %v20087_v26 }
 0x67c   : > { %v9757_v62 = vsel %vm9649_vm4, %v9756_v0, %v9752_v20  ;;  %v9697_v0 = vrot.slane %v20074_v4, %v9696_v47 }
 0x67d   : > { %v9762_v9 = vsel %vm9656_vm8, %v9761_v56, %v9757_v62 }
 0x67e   : > { %v9601_v22 = vpop.permute.xlu1 %9600 }
 0x67f   : > { %v9766_v42 = vrot.slane %v9601_v22, %v9661_v33  ;;  %v9690_v22 = vrot.slane %v20072_v34, %v9689_v44  ;;  %v9735_v34 = vadd.s32 4294967184, %v20087_v26  ;;  %v9717_v33 = vsub.s32 %v9714_v13, %v22444_v55 }
 0x681   : > { %v9767_v2 = vsel %vm9663_vm15, %v9766_v42, %v9762_v9  ;;  %v9738_v20 = vsub.s32 %v9735_v34, %v22444_v55 }
 0x686   : > { %v20082_v21 = vpop.permute.xlu1 %9606 }
 0x687   : > { %v9776_v51 = vrot.slane %v20082_v21, %v9675_v39  ;;  %v9772_v21 = vsel %vm9670_vm2, %v9771_v50, %v9767_v2 }
 0x68a   : > { %v20080_v41 = vpop.permute.xlu0 %9609 }
 0x68b   : > { %v9781_v14 = vrot.slane %v20080_v41, %v9682_v29  ;;  %v9777_v41 = vsel %vm9677_vm14, %v9776_v51, %v9772_v21 }
 0x68d   : > { %v9782_v11 = vsel %vm9684_vm5, %v9781_v14, %v9777_v41 }
 0x68f   : > { %v20089_v5 = vpop.permute.xlu1 %9612 }
 0x690   : > { %v9786_v12 = vrot.slane %v20089_v5, %v9689_v44  ;;  %v9692_v5 = vsel %vm9691_vm11, %v9690_v22, %v9685_v60 }
 0x691   : > { %v9699_v62 = vsel %vm9698_vm1, %v9697_v0, %v9692_v5 }
 0x692   : > { %v9787_v36 = vsel %vm9691_vm11, %v9786_v12, %v9782_v11 }
 0x698   : > { %v20094_v49 = vpop.permute.xlu1 %9618 }
 0x699   : > { %v9796_v4 = vrot.slane %v20094_v49, %v9703_v16 }
 0x69c   : > { %v20084_v57 = vpop.permute.xlu0 %9615 }
 0x69d   : > { %v9791_v10 = vrot.slane %v20084_v57, %v9696_v47  ;;  %v9724_v57 = vsub.s32 %v9721_v17, %v22444_v55 }
 0x69f   : > { %v9792_v39 = vsel %vm9698_vm1, %v9791_v10, %v9787_v36 }
 0x6a0   : > { %v9797_v56 = vsel %vm9705_vm13, %v9796_v4, %v9792_v39 }
 0x6a1   : > { %v20091_v59 = vpop.permute.xlu0 %9573 }
 0x6a2   : > { %v9711_v8 = vrot.slane %v20091_v59, %v9710_v25 }
 0x6a9   : > { %v20098_v45 = vpop.permute.xlu0 %9576 }
 0x6aa   : > { %v9718_v19 = vrot.slane %v20098_v45, %v9717_v33 }
 0x6ae   : > { %v20110_v48 = vpop.permute.xlu0 %9579 }
 0x6af   : > { %v9725_v42 = vrot.slane %v20110_v48, %v9724_v57 }
 0x6b3   : > { %v20104_v38 = vpop.permute.xlu1 %9621 }
 0x6b4   : > { %v9801_v26 = vrot.slane %v20104_v38, %v9710_v25  ;;  %v9706_v38 = vsel %vm9705_vm13, %v9704_v37, %v9699_v62 }
 0x6b5   : > { %v9713_v45 = vsel %vm9712_vm0, %v9711_v8, %v9706_v38 }
 0x6b6   : > { %v9720_v48 = vsel %vm9719_vm12, %v9718_v19, %v9713_v45 }
 0x6b7   : > { %v9727_v43 = vsel %vm9726_vm6, %v9725_v42, %v9720_v48 }
 0x6b8   : > { %v20127_v15 = vpop.permute.xlu0 %9582 }
 0x6b9   : > { %v9732_v49 = vrot.slane %v20127_v15, %v9731_v18 }
 0x6bb   : > { %v9734_v15 = vsel %vm9733_vm7, %v9732_v49, %v9727_v43 }
 0x6be   : > { %v20115_v1 = vpop.permute.xlu1 %9624 }
 0x6bf   : > { %v9806_v61 = vrot.slane %v20115_v1, %v9717_v33  ;;  %v9802_v1 = vsel %vm9712_vm0, %v9801_v26, %v9797_v56 }
 0x6c1   : > { %v9807_v29 = vsel %vm9719_vm12, %v9806_v61, %v9802_v1 }
 0x6c5   : > { %v9586_v40 = vpop.permute.xlu0 %9585 }
 0x6c6   : > { %v9739_v55 = vrot.slane %v9586_v40, %v9738_v20 }
 0x6c8   : > { %v9741_v54 = vsel %vm9740_vm9, %v9739_v55, %v9734_v15 }
 0x6ca   : > { %v9589_v58 = vpop.permute.xlu0 %9588 }
 0x6cb   : > { %v9746_v3 = vrot.slane %v9589_v58, %v9745_v63 }
 0x6cd   : > { %v9748_v51 = vsel %vm9747_vm10, %v9746_v3, %v9741_v54 }
 0x6cf   : > { %v20129_v31 = vpop.permute.xlu1 %9627 }
 0x6d0   : > { %v9811_v59 = vrot.slane %v20129_v31, %v9724_v57 }
 0x6d2   : > { %v9812_v44 = vsel %vm9726_vm6, %v9811_v59, %v9807_v29 }
 0x6d5   : > { %v9631_v35 = vpop.permute.xlu1 %9630 }
 0x6d6   : > { %v9816_v28 = vrot.slane %v9631_v35, %v9731_v18 }
 0x6d8   : > { %v9817_v31 = vsel %vm9733_vm7, %v9816_v28, %v9812_v44 }
 0x6da   : > { %v9634_v24 = vpop.permute.xlu1 %9633 }
 0x6db   : > { %v9821_v52 = vrot.slane %v9634_v24, %v9738_v20 }
 0x6dd   : > { %v9822_v2 = vsel %vm9740_vm9, %v9821_v52, %v9817_v31 }
 0x6df   : > { %v9637_v9 = vpop.permute.xlu1 %9636 }
 0x6e0   : > { %v9826_v30 = vrot.slane %v9637_v9, %v9745_v63 }
 0x6e2   : > { %v9827_v50 = vsel %vm9747_vm10, %v9826_v30, %v9822_v2 }
 0x6e3   : > { %v9828_v14 = vcombine.low %v9748_v51, %v9827_v50 }
 0x6e5   : > { %v9835_v7 = vrot.slane %v9828_v14, %v19246_v6 }
 0x6e7   : > { %v9842_v53 = vrot.slane %v9835_v7, %v19246_v6 }
 0x6e9   : > { %9848 = vst.msk [vmem:[%s344_s11] sm:$0x3] %vm9846_vm3, %v9842_v53 }
 0x6ea PF: > { %s20_s30 = sadd.s32 1, %s12356_s30  }
 0x6eb   : > { %p17_p1 = scmp.ge.s32.totalorder %s20_s30, 4  }
 0x6ed   :  { %19 = sbr.rel (!%p17_p1) target bundleno = 1 (0x1), region = 93 }
 0x6f4   :  { %9868 = vsyncpa [#allocation3], 1 }
 0x6f5   :  { %9870 = vsyncpa [#allocation3 + $0x1], 1 }

</bundles_post_ra>
